<compile_context>
chip_gen: v7x
topology: tpu7x:2x2x1
jax: 0.10.0
libtpu: 0.0.40
codegen_flags: <defaults>
</compile_context>

<pallas_src>
import functools

import numpy as np
import jax
import jax.numpy as jnp
from jax.experimental import pallas as pl
from jax.experimental.pallas import tpu as pltpu


# ----------------------------- Pallas kernel -------------------------------
def _stock_block_kernel(
    bd_ref, x_ref,
    w1l_ref, b1l_ref, w1r_ref, b1r_ref,
    g12_wl_ref, g12_bl_ref, g12_wr_ref, g12_br_ref,
    wir_ref, wii_ref,
    fc_w_ref, fc_b_ref, fr_w_ref, fr_b_ref,
    bc_w_ref, bc_b_ref, bs_w_ref, bs_b_ref,
    fore_ref, back_ref):
  f32 = jnp.float32
  bf16 = jnp.bfloat16
  K = bd_ref.shape[0]

  def mm(a, w):
    # bf16 x bf16 on the MXU, f32 accumulate.
    return jnp.dot(a.astype(bf16), w, preferred_element_type=f32)

  x = x_ref[...]                       # [M, T]  (M = Bb * N rows)
  xb = x.astype(bf16)

  # GFT: block-diagonal graph conv per Laplacian power, lane-concat over k.
  feat = jnp.concatenate(
      [jnp.dot(bd_ref[k], xb, preferred_element_type=f32) for k in range(K)],
      axis=-1)                         # [M, K*T]

  def glu(v, wl, bl, wr, br):
    left = mm(v, wl) + bl
    right = mm(v, wr) + br
    return left * jax.nn.sigmoid(right)

  # GLU stack. The forward DFT (real / -imag parts) is pre-folded into the
  # first-layer weights, so both paths consume the raw GFT features.
  real = glu(feat, w1l_ref[0], b1l_ref[0], w1r_ref[0], b1r_ref[0])
  img = glu(feat, w1l_ref[1], b1l_ref[1], w1r_ref[1], b1r_ref[1])
  for layer in range(2):
    real = glu(real, g12_wl_ref[layer, 0], g12_bl_ref[layer, 0],
               g12_wr_ref[layer, 0], g12_br_ref[layer, 0])
    img = glu(img, g12_wl_ref[layer, 1], g12_bl_ref[layer, 1],
              g12_wr_ref[layer, 1], g12_br_ref[layer, 1])

  # Inverse DFT (real part), graph-kernel matmul, 1/MT scaling and the sum
  # over k are all folded into two block matrices: acc = real@Wr - img@Wi.
  acc = mm(real, wir_ref[...]) - mm(img, wii_ref[...])    # [M, MT]

  # forecast head
  fsrc = jax.nn.sigmoid(mm(acc, fc_w_ref[...]) + fc_b_ref[...])
  fore = mm(fsrc, fr_w_ref[...]) + fr_b_ref[...]
  fore_ref[...] = fore.astype(fore_ref.dtype)

  # backcast head (stack_cnt == 0 path)
  bshort = mm(x, bs_w_ref[...]) + bs_b_ref[...]
  back = jax.nn.sigmoid(mm(acc, bc_w_ref[...]) + bc_b_ref[...] - bshort)
  # note: outputs stay in the [rows, T] compute layout; a lane-dense
  # [Bb, N*T] store would need an in-kernel sublane->lane relayout and the
  # store volume here is negligible relative to the GLU matmuls.
  back_ref[...] = back.astype(back_ref.dtype)


# --------------------- host-side constant folding ---------------------------
def prepare_fused_params(mul_L, params, *, block_batch):
  """One-time folding of DFT/IDFT/graph-kernel constants into the weights."""
  f32, bf16 = jnp.float32, jnp.bfloat16
  K, N, _ = mul_L.shape
  T = params["bs_w"].shape[0]
  MT = params["gweight"].shape[1]
  OCT = params["g0_wl"].shape[-1]

  # DFT / inverse-DFT matrices (both symmetric).
  t = np.arange(T)
  dftc = jnp.asarray(np.cos(2.0 * np.pi * np.outer(t, t) / T), f32)
  dfts = jnp.asarray(np.sin(2.0 * np.pi * np.outer(t, t) / T), f32)
  m = np.arange(MT)
  idftc = jnp.asarray(np.cos(2.0 * np.pi * np.outer(m, m) / MT), f32)
  idfts = jnp.asarray(np.sin(2.0 * np.pi * np.outer(m, m) / MT), f32)

  def fold_front(w, mat):                       # w: [K*T, OCT], mat: [T, T]
    return jnp.einsum("tf,kfo->kto", mat,
                      w.reshape(K, T, OCT)).reshape(K * T, OCT)

  # Re(fft(g)) = g @ dftc ; Im(fft(g)) = -(g @ dfts)  -> folded into GLU-0.
  w1l = jnp.stack([fold_front(params["g0_wl"][0], dftc),
                   fold_front(params["g0_wl"][1], -dfts)]).astype(bf16)
  w1r = jnp.stack([fold_front(params["g0_wr"][0], dftc),
                   fold_front(params["g0_wr"][1], -dfts)]).astype(bf16)

  # acc = real @ wir - img @ wii  ==  sum_k irfft_k(real, img) @ gweight[k].
  wir = (jnp.einsum("mf,kfo->kmo", idftc, params["gweight"])
         .reshape(K * MT, MT) / MT).astype(bf16)
  wii = (jnp.einsum("mf,kfo->kmo", idfts, params["gweight"])
         .reshape(K * MT, MT) / MT).astype(bf16)

  # Block-diagonal graph-conv operator kron(I_Bb, mul_L[k]) so the GFT is a
  # full-row [Bb*N, Bb*N] @ [Bb*N, T] matmul per k.
  eye = jnp.eye(block_batch, dtype=f32)
  bd = jnp.einsum("ij,knm->kinjm", eye, mul_L).reshape(
      K, block_batch * N, block_batch * N).astype(bf16)

  return dict(
      bd=bd,
      w1l=w1l, b1l=params["g0_bl"], w1r=w1r, b1r=params["g0_br"],
      g12_wl=params["g12_wl"].astype(bf16), g12_bl=params["g12_bl"],
      g12_wr=params["g12_wr"].astype(bf16), g12_br=params["g12_br"],
      wir=wir, wii=wii,
      fc_w=params["fc_w"].astype(bf16), fc_b=params["fc_b"],
      fr_w=params["fr_w"].astype(bf16), fr_b=params["fr_b"],
      bc_w=params["bc_w"].astype(bf16), bc_b=params["bc_b"],
      bs_w=params["bs_w"].astype(bf16), bs_b=params["bs_b"])


# ------------------------------- wrapper ------------------------------------
@functools.partial(jax.jit, static_argnames=("block_batch",))
def stock_block_forward(x, fused, *, block_batch):
  B, _, N, T = x.shape
  Bb = block_batch
  assert B % Bb == 0, "batch must be divisible by the batch block"
  M = Bb * N
  x2 = x.reshape(B * N, T)

  tail_names = ("w1l", "b1l", "w1r", "b1r",
                "g12_wl", "g12_bl", "g12_wr", "g12_br",
                "wir", "wii",
                "fc_w", "fc_b", "fr_w", "fr_b",
                "bc_w", "bc_b", "bs_w", "bs_b")
  tail = [fused[k] for k in tail_names]

  def full_spec(a):
    nd = a.ndim
    return pl.BlockSpec(a.shape, lambda i, nd=nd: (0,) * nd)

  in_specs = ([full_spec(fused["bd"]),
               pl.BlockSpec((M, T), lambda i: (i, 0))]
              + [full_spec(a) for a in tail])
  out_specs = (pl.BlockSpec((M, T), lambda i: (i, 0)),
               pl.BlockSpec((M, T), lambda i: (i, 0)))
  out_shape = (jax.ShapeDtypeStruct((B * N, T), jnp.float32),
               jax.ShapeDtypeStruct((B * N, T), jnp.float32))

  fore, back = pl.pallas_call(
      _stock_block_kernel,
      grid=(B // Bb,),
      in_specs=in_specs,
      out_specs=out_specs,
      out_shape=out_shape,
      compiler_params=pltpu.CompilerParams(
          dimension_semantics=("parallel",)),
  )(fused["bd"], x2, *tail)
  # forecast: [B, N, T]; backcast_source: [B, 1, N, T] (matches torch shapes)
  return fore.reshape(B, N, T), back.reshape(B, 1, N, T)


# --------------------------- parameter creation ------------------------------
def init_params(key, time_step, unit, multi_layer):
  T = time_step
  MT = T * multi_layer
  OCT = 4 * MT           # output_channel * time_step, output_channel = 4*multi
  T4 = 4 * T
  ks = jax.random.split(key, 17)

  def w(k, shape, scale):
    return scale * jax.random.normal(k, shape, dtype=jnp.float32)

  return {
      # GLU weights stacked as [path(real=0, img=1), in, out]
      "g0_wl": w(ks[0], (2, T4, OCT), 0.15),
      "g0_wr": w(ks[1], (2, T4, OCT), 0.15),
      "g0_bl": w(ks[2], (2, 1, OCT), 0.05),
      "g0_br": w(ks[3], (2, 1, OCT), 0.05),
      # layers i=1,2 stacked as [layer, path, in, out]
      "g12_wl": w(ks[4], (2, 2, OCT, OCT), 0.08),
      "g12_wr": w(ks[5], (2, 2, OCT, OCT), 0.08),
      "g12_bl": w(ks[6], (2, 2, 1, OCT), 0.05),
      "g12_br": w(ks[7], (2, 2, 1, OCT), 0.05),
      # torch self.weight [1, 4, 1, MT, MT] stored as [4, MT, MT] (xavier-ish)
      "gweight": w(ks[8], (4, MT, MT), float(np.sqrt(2.0 / (MT + MT)))),
      "fc_w": w(ks[9], (MT, MT), 0.1), "fc_b": w(ks[10], (1, MT), 0.05),
      "fr_w": w(ks[11], (MT, T), 0.1), "fr_b": w(ks[12], (1, T), 0.05),
      "bc_w": w(ks[13], (MT, T), 0.1), "bc_b": w(ks[14], (1, T), 0.05),
      "bs_w": w(ks[15], (T, T), 0.2), "bs_b": w(ks[16], (1, T), 0.05),
  }


# ------------------------ pure-JAX reference (check) -------------------------
def reference_forward(x, mul_L, params):
  B, _, N, T = x.shape
  MT = params["gweight"].shape[1]
  x3 = x[:, 0]                                               # [B, N, T]
  gfted = jnp.einsum("knm,bmt->bknt", mul_L, x3)             # [B, 4, N, T]
  ff = jnp.fft.fft(gfted, axis=-1)
  real = jnp.transpose(ff.real, (0, 2, 1, 3)).reshape(B, N, -1)
  img = jnp.transpose(ff.imag, (0, 2, 1, 3)).reshape(B, N, -1)

  def glu(v, wl, bl, wr, br):
    return (v @ wl + bl) * jax.nn.sigmoid(v @ wr + br)

  real = glu(real, params["g0_wl"][0], params["g0_bl"][0],
             params["g0_wr"][0], params["g0_br"][0])
  img = glu(img, params["g0_wl"][1], params["g0_bl"][1],
            params["g0_wr"][1], params["g0_br"][1])
  for layer in range(2):
    real = glu(real, params["g12_wl"][layer, 0], params["g12_bl"][layer, 0],
               params["g12_wr"][layer, 0], params["g12_br"][layer, 0])
    img = glu(img, params["g12_wl"][layer, 1], params["g12_bl"][layer, 1],
              params["g12_wr"][layer, 1], params["g12_br"][layer, 1])

  real = jnp.transpose(real.reshape(B, N, 4, MT), (0, 2, 1, 3))   # [B,4,N,MT]
  img = jnp.transpose(img.reshape(B, N, 4, MT), (0, 2, 1, 3))
  iff = jnp.fft.ifft(real + 1j * img, axis=-1).real                # irfft intent
  igfted = jnp.einsum("bknm,kmo->bno", iff, params["gweight"])     # sum over k
  fsrc = jax.nn.sigmoid(igfted @ params["fc_w"] + params["fc_b"])
  fore = fsrc @ params["fr_w"] + params["fr_b"]
  bshort = x3 @ params["bs_w"] + params["bs_b"]
  back = jax.nn.sigmoid(igfted @ params["bc_w"] + params["bc_b"] - bshort)
  return fore, back.reshape(B, 1, N, T)


# ---------------------------------- main -------------------------------------
if __name__ == "__main__":
  # batch, node_cnt(unit), time_step, multi_layer; Bb*N = 256 rows per block,
  # grid = B/Bb = 2 parallel steps (keeps both v7x TensorCores busy).
  B, N, T, MULTI = 16, 32, 8, 4
  Bb = 8
  key = jax.random.PRNGKey(0)
  k_x, k_l, k_p = jax.random.split(key, 3)
  x = jax.random.normal(k_x, (B, 1, N, T), dtype=jnp.float32)
  mul_L = 0.3 * jax.random.normal(k_l, (4, N, N), dtype=jnp.float32)
  params = init_params(k_p, time_step=T, unit=N, multi_layer=MULTI)

  fused = prepare_fused_params(mul_L, params, block_batch=Bb)   # once, cached
  fore, back = stock_block_forward(x, fused, block_batch=Bb)
  jax.block_until_ready((fore, back))

  fore_ref, back_ref = reference_forward(x, mul_L, params)
  assert fore.shape == (B, N, T) and back.shape == (B, 1, N, T)
  # tolerance accounts for the deliberate bf16 weight quantization in-kernel
  np.testing.assert_allclose(np.asarray(fore), np.asarray(fore_ref),
                             rtol=3e-2, atol=3e-2)
  np.testing.assert_allclose(np.asarray(back), np.asarray(back_ref),
                             rtol=3e-2, atol=3e-2)
  print("KERNEL_OK")
</pallas_src>

<mosaic_0001>
module attributes {stable_mosaic.version = 11 : i64} {
  func.func @_stock_block_kernel(%arg0: i32, %arg1: memref<4x256x256xbf16, #tpu.memory_space<vmem>>, %arg2: memref<256x8xf32, #tpu.memory_space<vmem>>, %arg3: memref<2x32x128xbf16, #tpu.memory_space<vmem>>, %arg4: memref<2x1x128xf32, #tpu.memory_space<vmem>>, %arg5: memref<2x32x128xbf16, #tpu.memory_space<vmem>>, %arg6: memref<2x1x128xf32, #tpu.memory_space<vmem>>, %arg7: memref<2x2x128x128xbf16, #tpu.memory_space<vmem>>, %arg8: memref<2x2x1x128xf32, #tpu.memory_space<vmem>>, %arg9: memref<2x2x128x128xbf16, #tpu.memory_space<vmem>>, %arg10: memref<2x2x1x128xf32, #tpu.memory_space<vmem>>, %arg11: memref<128x32xbf16, #tpu.memory_space<vmem>>, %arg12: memref<128x32xbf16, #tpu.memory_space<vmem>>, %arg13: memref<32x32xbf16, #tpu.memory_space<vmem>>, %arg14: memref<1x32xf32, #tpu.memory_space<vmem>>, %arg15: memref<32x8xbf16, #tpu.memory_space<vmem>>, %arg16: memref<1x8xf32, #tpu.memory_space<vmem>>, %arg17: memref<32x8xbf16, #tpu.memory_space<vmem>>, %arg18: memref<1x8xf32, #tpu.memory_space<vmem>>, %arg19: memref<8x8xbf16, #tpu.memory_space<vmem>>, %arg20: memref<1x8xf32, #tpu.memory_space<vmem>>, %arg21: memref<256x8xf32, #tpu.memory_space<vmem>>, %arg22: memref<256x8xf32, #tpu.memory_space<vmem>>) attributes {dimension_semantics = [#tpu.dimension_semantics<parallel>], iteration_bounds = array<i64: 2>, scalar_prefetch = 0 : i64, scratch_operands = 0 : i64, tpu.core_type = #tpu.core_type<tc>, window_params = [{pipeline_mode = #tpu.pipeline_mode<synchronous>, transform_indices = @transform_0, window_bounds = array<i64: 4, 256, 256>}, {transform_indices = @transform_1, window_bounds = array<i64: 256, 8>}, {pipeline_mode = #tpu.pipeline_mode<synchronous>, transform_indices = @transform_2, window_bounds = array<i64: 2, 32, 128>}, {pipeline_mode = #tpu.pipeline_mode<synchronous>, transform_indices = @transform_3, window_bounds = array<i64: 2, 1, 128>}, {pipeline_mode = #tpu.pipeline_mode<synchronous>, transform_indices = @transform_4, window_bounds = array<i64: 2, 32, 128>}, {pipeline_mode = #tpu.pipeline_mode<synchronous>, transform_indices = @transform_5, window_bounds = array<i64: 2, 1, 128>}, {pipeline_mode = #tpu.pipeline_mode<synchronous>, transform_indices = @transform_6, window_bounds = array<i64: 2, 2, 128, 128>}, {pipeline_mode = #tpu.pipeline_mode<synchronous>, transform_indices = @transform_7, window_bounds = array<i64: 2, 2, 1, 128>}, {pipeline_mode = #tpu.pipeline_mode<synchronous>, transform_indices = @transform_8, window_bounds = array<i64: 2, 2, 128, 128>}, {pipeline_mode = #tpu.pipeline_mode<synchronous>, transform_indices = @transform_9, window_bounds = array<i64: 2, 2, 1, 128>}, {pipeline_mode = #tpu.pipeline_mode<synchronous>, transform_indices = @transform_10, window_bounds = array<i64: 128, 32>}, {pipeline_mode = #tpu.pipeline_mode<synchronous>, transform_indices = @transform_11, window_bounds = array<i64: 128, 32>}, {pipeline_mode = #tpu.pipeline_mode<synchronous>, transform_indices = @transform_12, window_bounds = array<i64: 32, 32>}, {pipeline_mode = #tpu.pipeline_mode<synchronous>, transform_indices = @transform_13, window_bounds = array<i64: 1, 32>}, {pipeline_mode = #tpu.pipeline_mode<synchronous>, transform_indices = @transform_14, window_bounds = array<i64: 32, 8>}, {pipeline_mode = #tpu.pipeline_mode<synchronous>, transform_indices = @transform_15, window_bounds = array<i64: 1, 8>}, {pipeline_mode = #tpu.pipeline_mode<synchronous>, transform_indices = @transform_16, window_bounds = array<i64: 32, 8>}, {pipeline_mode = #tpu.pipeline_mode<synchronous>, transform_indices = @transform_17, window_bounds = array<i64: 1, 8>}, {pipeline_mode = #tpu.pipeline_mode<synchronous>, transform_indices = @transform_18, window_bounds = array<i64: 8, 8>}, {pipeline_mode = #tpu.pipeline_mode<synchronous>, transform_indices = @transform_19, window_bounds = array<i64: 1, 8>}, {transform_indices = @transform_20, window_bounds = array<i64: 256, 8>}, {transform_indices = @transform_21, window_bounds = array<i64: 256, 8>}]} {
    %c0 = arith.constant 0 : index
    %c0_0 = arith.constant 0 : index
    %0 = vector.load %arg2[%c0, %c0_0] : memref<256x8xf32, #tpu.memory_space<vmem>>, vector<256x8xf32>
    %1 = arith.truncf %0 : vector<256x8xf32> to vector<256x8xbf16>
    %c0_1 = arith.constant 0 : index
    %c0_2 = arith.constant 0 : index
    %c0_3 = arith.constant 0 : index
    %2 = vector.load %arg1[%c0_1, %c0_2, %c0_3] : memref<4x256x256xbf16, #tpu.memory_space<vmem>>, vector<1x256x256xbf16>
    %3 = vector.shape_cast %2 : vector<1x256x256xbf16> to vector<256x256xbf16>
    %cst = arith.constant dense<0.000000e+00> : vector<256x8xf32>
    %4 = tpu.matmul %3, %1, %cst {dimension_numbers = #tpu.dot_dimension_numbers<[1], [0], [0], [1], [0, 0, 1, 1], [], []>} : vector<256x256xbf16>, vector<256x8xbf16>, vector<256x8xf32> -> vector<256x8xf32>
    %c1 = arith.constant 1 : index
    %c0_4 = arith.constant 0 : index
    %c0_5 = arith.constant 0 : index
    %5 = vector.load %arg1[%c1, %c0_4, %c0_5] : memref<4x256x256xbf16, #tpu.memory_space<vmem>>, vector<1x256x256xbf16>
    %6 = vector.shape_cast %5 : vector<1x256x256xbf16> to vector<256x256xbf16>
    %cst_6 = arith.constant dense<0.000000e+00> : vector<256x8xf32>
    %7 = tpu.matmul %6, %1, %cst_6 {dimension_numbers = #tpu.dot_dimension_numbers<[1], [0], [0], [1], [0, 0, 1, 1], [], []>} : vector<256x256xbf16>, vector<256x8xbf16>, vector<256x8xf32> -> vector<256x8xf32>
    %c2 = arith.constant 2 : index
    %c0_7 = arith.constant 0 : index
    %c0_8 = arith.constant 0 : index
    %8 = vector.load %arg1[%c2, %c0_7, %c0_8] : memref<4x256x256xbf16, #tpu.memory_space<vmem>>, vector<1x256x256xbf16>
    %9 = vector.shape_cast %8 : vector<1x256x256xbf16> to vector<256x256xbf16>
    %cst_9 = arith.constant dense<0.000000e+00> : vector<256x8xf32>
    %10 = tpu.matmul %9, %1, %cst_9 {dimension_numbers = #tpu.dot_dimension_numbers<[1], [0], [0], [1], [0, 0, 1, 1], [], []>} : vector<256x256xbf16>, vector<256x8xbf16>, vector<256x8xf32> -> vector<256x8xf32>
    %c3 = arith.constant 3 : index
    %c0_10 = arith.constant 0 : index
    %c0_11 = arith.constant 0 : index
    %11 = vector.load %arg1[%c3, %c0_10, %c0_11] : memref<4x256x256xbf16, #tpu.memory_space<vmem>>, vector<1x256x256xbf16>
    %12 = vector.shape_cast %11 : vector<1x256x256xbf16> to vector<256x256xbf16>
    %cst_12 = arith.constant dense<0.000000e+00> : vector<256x8xf32>
    %13 = tpu.matmul %12, %1, %cst_12 {dimension_numbers = #tpu.dot_dimension_numbers<[1], [0], [0], [1], [0, 0, 1, 1], [], []>} : vector<256x256xbf16>, vector<256x8xbf16>, vector<256x8xf32> -> vector<256x8xf32>
    %14 = tpu.concatenate %4, %7, %10, %13 in 1 : vector<256x8xf32>, vector<256x8xf32>, vector<256x8xf32>, vector<256x8xf32> -> vector<256x32xf32>
    %c0_13 = arith.constant 0 : index
    %c0_14 = arith.constant 0 : index
    %c0_15 = arith.constant 0 : index
    %15 = vector.load %arg3[%c0_13, %c0_14, %c0_15] : memref<2x32x128xbf16, #tpu.memory_space<vmem>>, vector<1x32x128xbf16>
    %16 = vector.shape_cast %15 : vector<1x32x128xbf16> to vector<32x128xbf16>
    %c0_16 = arith.constant 0 : index
    %c0_17 = arith.constant 0 : index
    %c0_18 = arith.constant 0 : index
    %17 = vector.load %arg4[%c0_16, %c0_17, %c0_18] : memref<2x1x128xf32, #tpu.memory_space<vmem>>, vector<1x1x128xf32>
    %18 = vector.shape_cast %17 : vector<1x1x128xf32> to vector<1x128xf32>
    %c0_19 = arith.constant 0 : index
    %c0_20 = arith.constant 0 : index
    %c0_21 = arith.constant 0 : index
    %19 = vector.load %arg5[%c0_19, %c0_20, %c0_21] : memref<2x32x128xbf16, #tpu.memory_space<vmem>>, vector<1x32x128xbf16>
    %20 = vector.shape_cast %19 : vector<1x32x128xbf16> to vector<32x128xbf16>
    %c0_22 = arith.constant 0 : index
    %c0_23 = arith.constant 0 : index
    %c0_24 = arith.constant 0 : index
    %21 = vector.load %arg6[%c0_22, %c0_23, %c0_24] : memref<2x1x128xf32, #tpu.memory_space<vmem>>, vector<1x1x128xf32>
    %22 = vector.shape_cast %21 : vector<1x1x128xf32> to vector<1x128xf32>
    %23 = arith.truncf %14 : vector<256x32xf32> to vector<256x32xbf16>
    %cst_25 = arith.constant dense<0.000000e+00> : vector<256x128xf32>
    %24 = tpu.matmul %23, %16, %cst_25 {dimension_numbers = #tpu.dot_dimension_numbers<[1], [0], [0], [1], [0, 0, 1, 1], [], []>} : vector<256x32xbf16>, vector<32x128xbf16>, vector<256x128xf32> -> vector<256x128xf32>
    %25 = vector.broadcast %18 : vector<1x128xf32> to vector<256x128xf32>
    %26 = arith.addf %24, %25 : vector<256x128xf32>
    %27 = arith.truncf %14 : vector<256x32xf32> to vector<256x32xbf16>
    %cst_26 = arith.constant dense<0.000000e+00> : vector<256x128xf32>
    %28 = tpu.matmul %27, %20, %cst_26 {dimension_numbers = #tpu.dot_dimension_numbers<[1], [0], [0], [1], [0, 0, 1, 1], [], []>} : vector<256x32xbf16>, vector<32x128xbf16>, vector<256x128xf32> -> vector<256x128xf32>
    %29 = vector.broadcast %22 : vector<1x128xf32> to vector<256x128xf32>
    %30 = arith.addf %28, %29 : vector<256x128xf32>
    %31 = arith.negf %30 : vector<256x128xf32>
    %32 = math.exp %31 : vector<256x128xf32>
    %cst_27 = arith.constant 1.000000e+00 : f32
    %33 = vector.broadcast %cst_27 : f32 to vector<256x128xf32>
    %34 = arith.addf %33, %32 : vector<256x128xf32>
    %35 = arith.divf %33, %34 : vector<256x128xf32>
    %36 = arith.mulf %26, %35 : vector<256x128xf32>
    %c1_28 = arith.constant 1 : index
    %c0_29 = arith.constant 0 : index
    %c0_30 = arith.constant 0 : index
    %37 = vector.load %arg3[%c1_28, %c0_29, %c0_30] : memref<2x32x128xbf16, #tpu.memory_space<vmem>>, vector<1x32x128xbf16>
    %38 = vector.shape_cast %37 : vector<1x32x128xbf16> to vector<32x128xbf16>
    %c1_31 = arith.constant 1 : index
    %c0_32 = arith.constant 0 : index
    %c0_33 = arith.constant 0 : index
    %39 = vector.load %arg4[%c1_31, %c0_32, %c0_33] : memref<2x1x128xf32, #tpu.memory_space<vmem>>, vector<1x1x128xf32>
    %40 = vector.shape_cast %39 : vector<1x1x128xf32> to vector<1x128xf32>
    %c1_34 = arith.constant 1 : index
    %c0_35 = arith.constant 0 : index
    %c0_36 = arith.constant 0 : index
    %41 = vector.load %arg5[%c1_34, %c0_35, %c0_36] : memref<2x32x128xbf16, #tpu.memory_space<vmem>>, vector<1x32x128xbf16>
    %42 = vector.shape_cast %41 : vector<1x32x128xbf16> to vector<32x128xbf16>
    %c1_37 = arith.constant 1 : index
    %c0_38 = arith.constant 0 : index
    %c0_39 = arith.constant 0 : index
    %43 = vector.load %arg6[%c1_37, %c0_38, %c0_39] : memref<2x1x128xf32, #tpu.memory_space<vmem>>, vector<1x1x128xf32>
    %44 = vector.shape_cast %43 : vector<1x1x128xf32> to vector<1x128xf32>
    %45 = arith.truncf %14 : vector<256x32xf32> to vector<256x32xbf16>
    %cst_40 = arith.constant dense<0.000000e+00> : vector<256x128xf32>
    %46 = tpu.matmul %45, %38, %cst_40 {dimension_numbers = #tpu.dot_dimension_numbers<[1], [0], [0], [1], [0, 0, 1, 1], [], []>} : vector<256x32xbf16>, vector<32x128xbf16>, vector<256x128xf32> -> vector<256x128xf32>
    %47 = vector.broadcast %40 : vector<1x128xf32> to vector<256x128xf32>
    %48 = arith.addf %46, %47 : vector<256x128xf32>
    %49 = arith.truncf %14 : vector<256x32xf32> to vector<256x32xbf16>
    %cst_41 = arith.constant dense<0.000000e+00> : vector<256x128xf32>
    %50 = tpu.matmul %49, %42, %cst_41 {dimension_numbers = #tpu.dot_dimension_numbers<[1], [0], [0], [1], [0, 0, 1, 1], [], []>} : vector<256x32xbf16>, vector<32x128xbf16>, vector<256x128xf32> -> vector<256x128xf32>
    %51 = vector.broadcast %44 : vector<1x128xf32> to vector<256x128xf32>
    %52 = arith.addf %50, %51 : vector<256x128xf32>
    %53 = arith.negf %52 : vector<256x128xf32>
    %54 = math.exp %53 : vector<256x128xf32>
    %cst_42 = arith.constant 1.000000e+00 : f32
    %55 = vector.broadcast %cst_42 : f32 to vector<256x128xf32>
    %56 = arith.addf %55, %54 : vector<256x128xf32>
    %57 = arith.divf %55, %56 : vector<256x128xf32>
    %58 = arith.mulf %48, %57 : vector<256x128xf32>
    %c0_43 = arith.constant 0 : index
    %c0_44 = arith.constant 0 : index
    %c0_45 = arith.constant 0 : index
    %c0_46 = arith.constant 0 : index
    %59 = vector.load %arg7[%c0_43, %c0_44, %c0_45, %c0_46] : memref<2x2x128x128xbf16, #tpu.memory_space<vmem>>, vector<1x1x128x128xbf16>
    %60 = vector.shape_cast %59 : vector<1x1x128x128xbf16> to vector<128x128xbf16>
    %c0_47 = arith.constant 0 : index
    %c0_48 = arith.constant 0 : index
    %c0_49 = arith.constant 0 : index
    %c0_50 = arith.constant 0 : index
    %61 = vector.load %arg8[%c0_47, %c0_48, %c0_49, %c0_50] : memref<2x2x1x128xf32, #tpu.memory_space<vmem>>, vector<1x1x1x128xf32>
    %62 = vector.shape_cast %61 : vector<1x1x1x128xf32> to vector<1x128xf32>
    %c0_51 = arith.constant 0 : index
    %c0_52 = arith.constant 0 : index
    %c0_53 = arith.constant 0 : index
    %c0_54 = arith.constant 0 : index
    %63 = vector.load %arg9[%c0_51, %c0_52, %c0_53, %c0_54] : memref<2x2x128x128xbf16, #tpu.memory_space<vmem>>, vector<1x1x128x128xbf16>
    %64 = vector.shape_cast %63 : vector<1x1x128x128xbf16> to vector<128x128xbf16>
    %c0_55 = arith.constant 0 : index
    %c0_56 = arith.constant 0 : index
    %c0_57 = arith.constant 0 : index
    %c0_58 = arith.constant 0 : index
    %65 = vector.load %arg10[%c0_55, %c0_56, %c0_57, %c0_58] : memref<2x2x1x128xf32, #tpu.memory_space<vmem>>, vector<1x1x1x128xf32>
    %66 = vector.shape_cast %65 : vector<1x1x1x128xf32> to vector<1x128xf32>
    %67 = arith.truncf %36 : vector<256x128xf32> to vector<256x128xbf16>
    %cst_59 = arith.constant dense<0.000000e+00> : vector<256x128xf32>
    %68 = tpu.matmul %67, %60, %cst_59 {dimension_numbers = #tpu.dot_dimension_numbers<[1], [0], [0], [1], [0, 0, 1, 1], [], []>} : vector<256x128xbf16>, vector<128x128xbf16>, vector<256x128xf32> -> vector<256x128xf32>
    %69 = vector.broadcast %62 : vector<1x128xf32> to vector<256x128xf32>
    %70 = arith.addf %68, %69 : vector<256x128xf32>
    %71 = arith.truncf %36 : vector<256x128xf32> to vector<256x128xbf16>
    %cst_60 = arith.constant dense<0.000000e+00> : vector<256x128xf32>
    %72 = tpu.matmul %71, %64, %cst_60 {dimension_numbers = #tpu.dot_dimension_numbers<[1], [0], [0], [1], [0, 0, 1, 1], [], []>} : vector<256x128xbf16>, vector<128x128xbf16>, vector<256x128xf32> -> vector<256x128xf32>
    %73 = vector.broadcast %66 : vector<1x128xf32> to vector<256x128xf32>
    %74 = arith.addf %72, %73 : vector<256x128xf32>
    %75 = arith.negf %74 : vector<256x128xf32>
    %76 = math.exp %75 : vector<256x128xf32>
    %cst_61 = arith.constant 1.000000e+00 : f32
    %77 = vector.broadcast %cst_61 : f32 to vector<256x128xf32>
    %78 = arith.addf %77, %76 : vector<256x128xf32>
    %79 = arith.divf %77, %78 : vector<256x128xf32>
    %80 = arith.mulf %70, %79 : vector<256x128xf32>
    %c0_62 = arith.constant 0 : index
    %c1_63 = arith.constant 1 : index
    %c0_64 = arith.constant 0 : index
    %c0_65 = arith.constant 0 : index
    %81 = vector.load %arg7[%c0_62, %c1_63, %c0_64, %c0_65] : memref<2x2x128x128xbf16, #tpu.memory_space<vmem>>, vector<1x1x128x128xbf16>
    %82 = vector.shape_cast %81 : vector<1x1x128x128xbf16> to vector<128x128xbf16>
    %c0_66 = arith.constant 0 : index
    %c1_67 = arith.constant 1 : index
    %c0_68 = arith.constant 0 : index
    %c0_69 = arith.constant 0 : index
    %83 = vector.load %arg8[%c0_66, %c1_67, %c0_68, %c0_69] : memref<2x2x1x128xf32, #tpu.memory_space<vmem>>, vector<1x1x1x128xf32>
    %84 = vector.shape_cast %83 : vector<1x1x1x128xf32> to vector<1x128xf32>
    %c0_70 = arith.constant 0 : index
    %c1_71 = arith.constant 1 : index
    %c0_72 = arith.constant 0 : index
    %c0_73 = arith.constant 0 : index
    %85 = vector.load %arg9[%c0_70, %c1_71, %c0_72, %c0_73] : memref<2x2x128x128xbf16, #tpu.memory_space<vmem>>, vector<1x1x128x128xbf16>
    %86 = vector.shape_cast %85 : vector<1x1x128x128xbf16> to vector<128x128xbf16>
    %c0_74 = arith.constant 0 : index
    %c1_75 = arith.constant 1 : index
    %c0_76 = arith.constant 0 : index
    %c0_77 = arith.constant 0 : index
    %87 = vector.load %arg10[%c0_74, %c1_75, %c0_76, %c0_77] : memref<2x2x1x128xf32, #tpu.memory_space<vmem>>, vector<1x1x1x128xf32>
    %88 = vector.shape_cast %87 : vector<1x1x1x128xf32> to vector<1x128xf32>
    %89 = arith.truncf %58 : vector<256x128xf32> to vector<256x128xbf16>
    %cst_78 = arith.constant dense<0.000000e+00> : vector<256x128xf32>
    %90 = tpu.matmul %89, %82, %cst_78 {dimension_numbers = #tpu.dot_dimension_numbers<[1], [0], [0], [1], [0, 0, 1, 1], [], []>} : vector<256x128xbf16>, vector<128x128xbf16>, vector<256x128xf32> -> vector<256x128xf32>
    %91 = vector.broadcast %84 : vector<1x128xf32> to vector<256x128xf32>
    %92 = arith.addf %90, %91 : vector<256x128xf32>
    %93 = arith.truncf %58 : vector<256x128xf32> to vector<256x128xbf16>
    %cst_79 = arith.constant dense<0.000000e+00> : vector<256x128xf32>
    %94 = tpu.matmul %93, %86, %cst_79 {dimension_numbers = #tpu.dot_dimension_numbers<[1], [0], [0], [1], [0, 0, 1, 1], [], []>} : vector<256x128xbf16>, vector<128x128xbf16>, vector<256x128xf32> -> vector<256x128xf32>
    %95 = vector.broadcast %88 : vector<1x128xf32> to vector<256x128xf32>
    %96 = arith.addf %94, %95 : vector<256x128xf32>
    %97 = arith.negf %96 : vector<256x128xf32>
    %98 = math.exp %97 : vector<256x128xf32>
    %cst_80 = arith.constant 1.000000e+00 : f32
    %99 = vector.broadcast %cst_80 : f32 to vector<256x128xf32>
    %100 = arith.addf %99, %98 : vector<256x128xf32>
    %101 = arith.divf %99, %100 : vector<256x128xf32>
    %102 = arith.mulf %92, %101 : vector<256x128xf32>
    %c1_81 = arith.constant 1 : index
    %c0_82 = arith.constant 0 : index
    %c0_83 = arith.constant 0 : index
    %c0_84 = arith.constant 0 : index
    %103 = vector.load %arg7[%c1_81, %c0_82, %c0_83, %c0_84] : memref<2x2x128x128xbf16, #tpu.memory_space<vmem>>, vector<1x1x128x128xbf16>
    %104 = vector.shape_cast %103 : vector<1x1x128x128xbf16> to vector<128x128xbf16>
    %c1_85 = arith.constant 1 : index
    %c0_86 = arith.constant 0 : index
    %c0_87 = arith.constant 0 : index
    %c0_88 = arith.constant 0 : index
    %105 = vector.load %arg8[%c1_85, %c0_86, %c0_87, %c0_88] : memref<2x2x1x128xf32, #tpu.memory_space<vmem>>, vector<1x1x1x128xf32>
    %106 = vector.shape_cast %105 : vector<1x1x1x128xf32> to vector<1x128xf32>
    %c1_89 = arith.constant 1 : index
    %c0_90 = arith.constant 0 : index
    %c0_91 = arith.constant 0 : index
    %c0_92 = arith.constant 0 : index
    %107 = vector.load %arg9[%c1_89, %c0_90, %c0_91, %c0_92] : memref<2x2x128x128xbf16, #tpu.memory_space<vmem>>, vector<1x1x128x128xbf16>
    %108 = vector.shape_cast %107 : vector<1x1x128x128xbf16> to vector<128x128xbf16>
    %c1_93 = arith.constant 1 : index
    %c0_94 = arith.constant 0 : index
    %c0_95 = arith.constant 0 : index
    %c0_96 = arith.constant 0 : index
    %109 = vector.load %arg10[%c1_93, %c0_94, %c0_95, %c0_96] : memref<2x2x1x128xf32, #tpu.memory_space<vmem>>, vector<1x1x1x128xf32>
    %110 = vector.shape_cast %109 : vector<1x1x1x128xf32> to vector<1x128xf32>
    %111 = arith.truncf %80 : vector<256x128xf32> to vector<256x128xbf16>
    %cst_97 = arith.constant dense<0.000000e+00> : vector<256x128xf32>
    %112 = tpu.matmul %111, %104, %cst_97 {dimension_numbers = #tpu.dot_dimension_numbers<[1], [0], [0], [1], [0, 0, 1, 1], [], []>} : vector<256x128xbf16>, vector<128x128xbf16>, vector<256x128xf32> -> vector<256x128xf32>
    %113 = vector.broadcast %106 : vector<1x128xf32> to vector<256x128xf32>
    %114 = arith.addf %112, %113 : vector<256x128xf32>
    %115 = arith.truncf %80 : vector<256x128xf32> to vector<256x128xbf16>
    %cst_98 = arith.constant dense<0.000000e+00> : vector<256x128xf32>
    %116 = tpu.matmul %115, %108, %cst_98 {dimension_numbers = #tpu.dot_dimension_numbers<[1], [0], [0], [1], [0, 0, 1, 1], [], []>} : vector<256x128xbf16>, vector<128x128xbf16>, vector<256x128xf32> -> vector<256x128xf32>
    %117 = vector.broadcast %110 : vector<1x128xf32> to vector<256x128xf32>
    %118 = arith.addf %116, %117 : vector<256x128xf32>
    %119 = arith.negf %118 : vector<256x128xf32>
    %120 = math.exp %119 : vector<256x128xf32>
    %cst_99 = arith.constant 1.000000e+00 : f32
    %121 = vector.broadcast %cst_99 : f32 to vector<256x128xf32>
    %122 = arith.addf %121, %120 : vector<256x128xf32>
    %123 = arith.divf %121, %122 : vector<256x128xf32>
    %124 = arith.mulf %114, %123 : vector<256x128xf32>
    %c1_100 = arith.constant 1 : index
    %c1_101 = arith.constant 1 : index
    %c0_102 = arith.constant 0 : index
    %c0_103 = arith.constant 0 : index
    %125 = vector.load %arg7[%c1_100, %c1_101, %c0_102, %c0_103] : memref<2x2x128x128xbf16, #tpu.memory_space<vmem>>, vector<1x1x128x128xbf16>
    %126 = vector.shape_cast %125 : vector<1x1x128x128xbf16> to vector<128x128xbf16>
    %c1_104 = arith.constant 1 : index
    %c1_105 = arith.constant 1 : index
    %c0_106 = arith.constant 0 : index
    %c0_107 = arith.constant 0 : index
    %127 = vector.load %arg8[%c1_104, %c1_105, %c0_106, %c0_107] : memref<2x2x1x128xf32, #tpu.memory_space<vmem>>, vector<1x1x1x128xf32>
    %128 = vector.shape_cast %127 : vector<1x1x1x128xf32> to vector<1x128xf32>
    %c1_108 = arith.constant 1 : index
    %c1_109 = arith.constant 1 : index
    %c0_110 = arith.constant 0 : index
    %c0_111 = arith.constant 0 : index
    %129 = vector.load %arg9[%c1_108, %c1_109, %c0_110, %c0_111] : memref<2x2x128x128xbf16, #tpu.memory_space<vmem>>, vector<1x1x128x128xbf16>
    %130 = vector.shape_cast %129 : vector<1x1x128x128xbf16> to vector<128x128xbf16>
    %c1_112 = arith.constant 1 : index
    %c1_113 = arith.constant 1 : index
    %c0_114 = arith.constant 0 : index
    %c0_115 = arith.constant 0 : index
    %131 = vector.load %arg10[%c1_112, %c1_113, %c0_114, %c0_115] : memref<2x2x1x128xf32, #tpu.memory_space<vmem>>, vector<1x1x1x128xf32>
    %132 = vector.shape_cast %131 : vector<1x1x1x128xf32> to vector<1x128xf32>
    %133 = arith.truncf %102 : vector<256x128xf32> to vector<256x128xbf16>
    %cst_116 = arith.constant dense<0.000000e+00> : vector<256x128xf32>
    %134 = tpu.matmul %133, %126, %cst_116 {dimension_numbers = #tpu.dot_dimension_numbers<[1], [0], [0], [1], [0, 0, 1, 1], [], []>} : vector<256x128xbf16>, vector<128x128xbf16>, vector<256x128xf32> -> vector<256x128xf32>
    %135 = vector.broadcast %128 : vector<1x128xf32> to vector<256x128xf32>
    %136 = arith.addf %134, %135 : vector<256x128xf32>
    %137 = arith.truncf %102 : vector<256x128xf32> to vector<256x128xbf16>
    %cst_117 = arith.constant dense<0.000000e+00> : vector<256x128xf32>
    %138 = tpu.matmul %137, %130, %cst_117 {dimension_numbers = #tpu.dot_dimension_numbers<[1], [0], [0], [1], [0, 0, 1, 1], [], []>} : vector<256x128xbf16>, vector<128x128xbf16>, vector<256x128xf32> -> vector<256x128xf32>
    %139 = vector.broadcast %132 : vector<1x128xf32> to vector<256x128xf32>
    %140 = arith.addf %138, %139 : vector<256x128xf32>
    %141 = arith.negf %140 : vector<256x128xf32>
    %142 = math.exp %141 : vector<256x128xf32>
    %cst_118 = arith.constant 1.000000e+00 : f32
    %143 = vector.broadcast %cst_118 : f32 to vector<256x128xf32>
    %144 = arith.addf %143, %142 : vector<256x128xf32>
    %145 = arith.divf %143, %144 : vector<256x128xf32>
    %146 = arith.mulf %136, %145 : vector<256x128xf32>
    %c0_119 = arith.constant 0 : index
    %c0_120 = arith.constant 0 : index
    %147 = vector.load %arg11[%c0_119, %c0_120] : memref<128x32xbf16, #tpu.memory_space<vmem>>, vector<128x32xbf16>
    %148 = arith.truncf %124 : vector<256x128xf32> to vector<256x128xbf16>
    %cst_121 = arith.constant dense<0.000000e+00> : vector<256x32xf32>
    %149 = tpu.matmul %148, %147, %cst_121 {dimension_numbers = #tpu.dot_dimension_numbers<[1], [0], [0], [1], [0, 0, 1, 1], [], []>} : vector<256x128xbf16>, vector<128x32xbf16>, vector<256x32xf32> -> vector<256x32xf32>
    %c0_122 = arith.constant 0 : index
    %c0_123 = arith.constant 0 : index
    %150 = vector.load %arg12[%c0_122, %c0_123] : memref<128x32xbf16, #tpu.memory_space<vmem>>, vector<128x32xbf16>
    %151 = arith.truncf %146 : vector<256x128xf32> to vector<256x128xbf16>
    %cst_124 = arith.constant dense<0.000000e+00> : vector<256x32xf32>
    %152 = tpu.matmul %151, %150, %cst_124 {dimension_numbers = #tpu.dot_dimension_numbers<[1], [0], [0], [1], [0, 0, 1, 1], [], []>} : vector<256x128xbf16>, vector<128x32xbf16>, vector<256x32xf32> -> vector<256x32xf32>
    %153 = arith.subf %149, %152 : vector<256x32xf32>
    %c0_125 = arith.constant 0 : index
    %c0_126 = arith.constant 0 : index
    %154 = vector.load %arg13[%c0_125, %c0_126] : memref<32x32xbf16, #tpu.memory_space<vmem>>, vector<32x32xbf16>
    %155 = arith.truncf %153 : vector<256x32xf32> to vector<256x32xbf16>
    %cst_127 = arith.constant dense<0.000000e+00> : vector<256x32xf32>
    %156 = tpu.matmul %155, %154, %cst_127 {dimension_numbers = #tpu.dot_dimension_numbers<[1], [0], [0], [1], [0, 0, 1, 1], [], []>} : vector<256x32xbf16>, vector<32x32xbf16>, vector<256x32xf32> -> vector<256x32xf32>
    %c0_128 = arith.constant 0 : index
    %c0_129 = arith.constant 0 : index
    %157 = vector.load %arg14[%c0_128, %c0_129] : memref<1x32xf32, #tpu.memory_space<vmem>>, vector<1x32xf32>
    %158 = vector.broadcast %157 : vector<1x32xf32> to vector<256x32xf32>
    %159 = arith.addf %156, %158 : vector<256x32xf32>
    %160 = arith.negf %159 : vector<256x32xf32>
    %161 = math.exp %160 : vector<256x32xf32>
    %cst_130 = arith.constant 1.000000e+00 : f32
    %162 = vector.broadcast %cst_130 : f32 to vector<256x32xf32>
    %163 = arith.addf %162, %161 : vector<256x32xf32>
    %164 = arith.divf %162, %163 : vector<256x32xf32>
    %c0_131 = arith.constant 0 : index
    %c0_132 = arith.constant 0 : index
    %165 = vector.load %arg15[%c0_131, %c0_132] : memref<32x8xbf16, #tpu.memory_space<vmem>>, vector<32x8xbf16>
    %166 = arith.truncf %164 : vector<256x32xf32> to vector<256x32xbf16>
    %cst_133 = arith.constant dense<0.000000e+00> : vector<256x8xf32>
    %167 = tpu.matmul %166, %165, %cst_133 {dimension_numbers = #tpu.dot_dimension_numbers<[1], [0], [0], [1], [0, 0, 1, 1], [], []>} : vector<256x32xbf16>, vector<32x8xbf16>, vector<256x8xf32> -> vector<256x8xf32>
    %c0_134 = arith.constant 0 : index
    %c0_135 = arith.constant 0 : index
    %168 = vector.load %arg16[%c0_134, %c0_135] : memref<1x8xf32, #tpu.memory_space<vmem>>, vector<1x8xf32>
    %169 = vector.broadcast %168 : vector<1x8xf32> to vector<256x8xf32>
    %170 = arith.addf %167, %169 : vector<256x8xf32>
    %c0_136 = arith.constant 0 : index
    %c0_137 = arith.constant 0 : index
    %171 = vector.load %arg21[%c0_136, %c0_137] : memref<256x8xf32, #tpu.memory_space<vmem>>, vector<256x8xf32>
    tpu.vector_store %arg21[%c0_136, %c0_137], %170 {strides = array<i32>} : memref<256x8xf32, #tpu.memory_space<vmem>>, vector<256x8xf32>,
    %c0_138 = arith.constant 0 : index
    %c0_139 = arith.constant 0 : index
    %172 = vector.load %arg19[%c0_138, %c0_139] : memref<8x8xbf16, #tpu.memory_space<vmem>>, vector<8x8xbf16>
    %173 = arith.truncf %0 : vector<256x8xf32> to vector<256x8xbf16>
    %cst_140 = arith.constant dense<0.000000e+00> : vector<256x8xf32>
    %174 = tpu.matmul %173, %172, %cst_140 {dimension_numbers = #tpu.dot_dimension_numbers<[1], [0], [0], [1], [0, 0, 1, 1], [], []>} : vector<256x8xbf16>, vector<8x8xbf16>, vector<256x8xf32> -> vector<256x8xf32>
    %c0_141 = arith.constant 0 : index
    %c0_142 = arith.constant 0 : index
    %175 = vector.load %arg20[%c0_141, %c0_142] : memref<1x8xf32, #tpu.memory_space<vmem>>, vector<1x8xf32>
    %176 = vector.broadcast %175 : vector<1x8xf32> to vector<256x8xf32>
    %177 = arith.addf %174, %176 : vector<256x8xf32>
    %c0_143 = arith.constant 0 : index
    %c0_144 = arith.constant 0 : index
    %178 = vector.load %arg17[%c0_143, %c0_144] : memref<32x8xbf16, #tpu.memory_space<vmem>>, vector<32x8xbf16>
    %179 = arith.truncf %153 : vector<256x32xf32> to vector<256x32xbf16>
    %cst_145 = arith.constant dense<0.000000e+00> : vector<256x8xf32>
    %180 = tpu.matmul %179, %178, %cst_145 {dimension_numbers = #tpu.dot_dimension_numbers<[1], [0], [0], [1], [0, 0, 1, 1], [], []>} : vector<256x32xbf16>, vector<32x8xbf16>, vector<256x8xf32> -> vector<256x8xf32>
    %c0_146 = arith.constant 0 : index
    %c0_147 = arith.constant 0 : index
    %181 = vector.load %arg18[%c0_146, %c0_147] : memref<1x8xf32, #tpu.memory_space<vmem>>, vector<1x8xf32>
    %182 = vector.broadcast %181 : vector<1x8xf32> to vector<256x8xf32>
    %183 = arith.addf %180, %182 : vector<256x8xf32>
    %184 = arith.subf %183, %177 : vector<256x8xf32>
    %185 = arith.negf %184 : vector<256x8xf32>
    %186 = math.exp %185 : vector<256x8xf32>
    %cst_148 = arith.constant 1.000000e+00 : f32
    %187 = vector.broadcast %cst_148 : f32 to vector<256x8xf32>
    %188 = arith.addf %187, %186 : vector<256x8xf32>
    %189 = arith.divf %187, %188 : vector<256x8xf32>
    %c0_149 = arith.constant 0 : index
    %c0_150 = arith.constant 0 : index
    %190 = vector.load %arg22[%c0_149, %c0_150] : memref<256x8xf32, #tpu.memory_space<vmem>>, vector<256x8xf32>
    tpu.vector_store %arg22[%c0_149, %c0_150], %189 {strides = array<i32>} : memref<256x8xf32, #tpu.memory_space<vmem>>, vector<256x8xf32>,
    return
  }
  func.func @transform_0(%arg0: i32) -> (i32, i32, i32) {
    %c0_i32 = arith.constant 0 : i32
    %c0_i32_0 = arith.constant 0 : i32
    %c0_i32_1 = arith.constant 0 : i32
    %c0_i32_2 = arith.constant 0 : i32
    return %c0_i32, %c0_i32_0, %c0_i32_1 : i32, i32, i32
  }
  func.func @transform_1(%arg0: i32) -> (i32, i32) {
    %c0_i32 = arith.constant 0 : i32
    %c0_i32_0 = arith.constant 0 : i32
    return %arg0, %c0_i32 : i32, i32
  }
  func.func @transform_2(%arg0: i32) -> (i32, i32, i32) {
    %c0_i32 = arith.constant 0 : i32
    %c0_i32_0 = arith.constant 0 : i32
    %c0_i32_1 = arith.constant 0 : i32
    %c0_i32_2 = arith.constant 0 : i32
    return %c0_i32, %c0_i32_0, %c0_i32_1 : i32, i32, i32
  }
  func.func @transform_3(%arg0: i32) -> (i32, i32, i32) {
    %c0_i32 = arith.constant 0 : i32
    %c0_i32_0 = arith.constant 0 : i32
    %c0_i32_1 = arith.constant 0 : i32
    %c0_i32_2 = arith.constant 0 : i32
    return %c0_i32, %c0_i32_0, %c0_i32_1 : i32, i32, i32
  }
  func.func @transform_4(%arg0: i32) -> (i32, i32, i32) {
    %c0_i32 = arith.constant 0 : i32
    %c0_i32_0 = arith.constant 0 : i32
    %c0_i32_1 = arith.constant 0 : i32
    %c0_i32_2 = arith.constant 0 : i32
    return %c0_i32, %c0_i32_0, %c0_i32_1 : i32, i32, i32
  }
  func.func @transform_5(%arg0: i32) -> (i32, i32, i32) {
    %c0_i32 = arith.constant 0 : i32
    %c0_i32_0 = arith.constant 0 : i32
    %c0_i32_1 = arith.constant 0 : i32
    %c0_i32_2 = arith.constant 0 : i32
    return %c0_i32, %c0_i32_0, %c0_i32_1 : i32, i32, i32
  }
  func.func @transform_6(%arg0: i32) -> (i32, i32, i32, i32) {
    %c0_i32 = arith.constant 0 : i32
    %c0_i32_0 = arith.constant 0 : i32
    %c0_i32_1 = arith.constant 0 : i32
    %c0_i32_2 = arith.constant 0 : i32
    %c0_i32_3 = arith.constant 0 : i32
    return %c0_i32, %c0_i32_0, %c0_i32_1, %c0_i32_2 : i32, i32, i32, i32
  }
  func.func @transform_7(%arg0: i32) -> (i32, i32, i32, i32) {
    %c0_i32 = arith.constant 0 : i32
    %c0_i32_0 = arith.constant 0 : i32
    %c0_i32_1 = arith.constant 0 : i32
    %c0_i32_2 = arith.constant 0 : i32
    %c0_i32_3 = arith.constant 0 : i32
    return %c0_i32, %c0_i32_0, %c0_i32_1, %c0_i32_2 : i32, i32, i32, i32
  }
  func.func @transform_8(%arg0: i32) -> (i32, i32, i32, i32) {
    %c0_i32 = arith.constant 0 : i32
    %c0_i32_0 = arith.constant 0 : i32
    %c0_i32_1 = arith.constant 0 : i32
    %c0_i32_2 = arith.constant 0 : i32
    %c0_i32_3 = arith.constant 0 : i32
    return %c0_i32, %c0_i32_0, %c0_i32_1, %c0_i32_2 : i32, i32, i32, i32
  }
  func.func @transform_9(%arg0: i32) -> (i32, i32, i32, i32) {
    %c0_i32 = arith.constant 0 : i32
    %c0_i32_0 = arith.constant 0 : i32
    %c0_i32_1 = arith.constant 0 : i32
    %c0_i32_2 = arith.constant 0 : i32
    %c0_i32_3 = arith.constant 0 : i32
    return %c0_i32, %c0_i32_0, %c0_i32_1, %c0_i32_2 : i32, i32, i32, i32
  }
  func.func @transform_10(%arg0: i32) -> (i32, i32) {
    %c0_i32 = arith.constant 0 : i32
    %c0_i32_0 = arith.constant 0 : i32
    %c0_i32_1 = arith.constant 0 : i32
    return %c0_i32, %c0_i32_0 : i32, i32
  }
  func.func @transform_11(%arg0: i32) -> (i32, i32) {
    %c0_i32 = arith.constant 0 : i32
    %c0_i32_0 = arith.constant 0 : i32
    %c0_i32_1 = arith.constant 0 : i32
    return %c0_i32, %c0_i32_0 : i32, i32
  }
  func.func @transform_12(%arg0: i32) -> (i32, i32) {
    %c0_i32 = arith.constant 0 : i32
    %c0_i32_0 = arith.constant 0 : i32
    %c0_i32_1 = arith.constant 0 : i32
    return %c0_i32, %c0_i32_0 : i32, i32
  }
  func.func @transform_13(%arg0: i32) -> (i32, i32) {
    %c0_i32 = arith.constant 0 : i32
    %c0_i32_0 = arith.constant 0 : i32
    %c0_i32_1 = arith.constant 0 : i32
    return %c0_i32, %c0_i32_0 : i32, i32
  }
  func.func @transform_14(%arg0: i32) -> (i32, i32) {
    %c0_i32 = arith.constant 0 : i32
    %c0_i32_0 = arith.constant 0 : i32
    %c0_i32_1 = arith.constant 0 : i32
    return %c0_i32, %c0_i32_0 : i32, i32
  }
  func.func @transform_15(%arg0: i32) -> (i32, i32) {
    %c0_i32 = arith.constant 0 : i32
    %c0_i32_0 = arith.constant 0 : i32
    %c0_i32_1 = arith.constant 0 : i32
    return %c0_i32, %c0_i32_0 : i32, i32
  }
  func.func @transform_16(%arg0: i32) -> (i32, i32) {
    %c0_i32 = arith.constant 0 : i32
    %c0_i32_0 = arith.constant 0 : i32
    %c0_i32_1 = arith.constant 0 : i32
    return %c0_i32, %c0_i32_0 : i32, i32
  }
  func.func @transform_17(%arg0: i32) -> (i32, i32) {
    %c0_i32 = arith.constant 0 : i32
    %c0_i32_0 = arith.constant 0 : i32
    %c0_i32_1 = arith.constant 0 : i32
    return %c0_i32, %c0_i32_0 : i32, i32
  }
  func.func @transform_18(%arg0: i32) -> (i32, i32) {
    %c0_i32 = arith.constant 0 : i32
    %c0_i32_0 = arith.constant 0 : i32
    %c0_i32_1 = arith.constant 0 : i32
    return %c0_i32, %c0_i32_0 : i32, i32
  }
  func.func @transform_19(%arg0: i32) -> (i32, i32) {
    %c0_i32 = arith.constant 0 : i32
    %c0_i32_0 = arith.constant 0 : i32
    %c0_i32_1 = arith.constant 0 : i32
    return %c0_i32, %c0_i32_0 : i32, i32
  }
  func.func @transform_20(%arg0: i32) -> (i32, i32) {
    %c0_i32 = arith.constant 0 : i32
    %c0_i32_0 = arith.constant 0 : i32
    return %arg0, %c0_i32 : i32, i32
  }
  func.func @transform_21(%arg0: i32) -> (i32, i32) {
    %c0_i32 = arith.constant 0 : i32
    %c0_i32_0 = arith.constant 0 : i32
    return %arg0, %c0_i32 : i32, i32
  }
}

</mosaic_0001>

<bundles_post_ra>
// kernel: stock_block_forward.1
= control target key start
LH: loop header
LB: loop body
LE: loop exit
PB: predicated region body
PF: predicated region fallthrough
CT: control target
= control target key end

     0   :  { %s15383_s0 = inlined_call_operand.hbm [shape: bf16[4,256,256], index: 0, kind: input, shape index: {}]   ;;  %s15384_s1 = inlined_call_operand.vmem [shape: f32[512,8], index: 1, kind: input, shape index: {}]   ;;  %s15385_s2 = inlined_call_operand.vmem [shape: bf16[2,32,128], index: 2, kind: input, shape index: {}]   ;;  %s15386_s3 = inlined_call_operand.vmem [shape: f32[2,1,128], index: 3, kind: input, shape index: {}]   ;;  %s15387_s4 = inlined_call_operand.vmem [shape: bf16[2,32,128], index: 4, kind: input, shape index: {}]   ;;  %s15388_s5 = inlined_call_operand.vmem [shape: f32[2,1,128], index: 5, kind: input, shape index: {}]   ;;  %s15389_s6 = inlined_call_operand.vmem [shape: bf16[2,2,128,128], index: 6, kind: input, shape index: {}]   ;;  %s15390_s7 = inlined_call_operand.vmem [shape: f32[2,2,1,128], index: 7, kind: input, shape index: {}]   ;;  %s15391_s8 = inlined_call_operand.vmem [shape: bf16[2,2,128,128], index: 8, kind: input, shape index: {}]   ;;  %s15392_s9 = inlined_call_operand.vmem [shape: f32[2,2,1,128], index: 9, kind: input, shape index: {}]   ;;  %s15393_s10 = inlined_call_operand.vmem [shape: bf16[128,32], index: 10, kind: input, shape index: {}]   ;;  %s15394_s11 = inlined_call_operand.vmem [shape: bf16[128,32], index: 11, kind: input, shape index: {}]   ;;  %s15395_s12 = inlined_call_operand.vmem [shape: bf16[32,32], index: 12, kind: input, shape index: {}]   ;;  %s15396_s13 = inlined_call_operand.vmem [shape: f32[1,32], index: 13, kind: input, shape index: {}]   ;;  %s15397_s14 = inlined_call_operand.vmem [shape: bf16[32,8], index: 14, kind: input, shape index: {}]   ;;  %s15398_s15 = inlined_call_operand.vmem [shape: f32[1,8], index: 15, kind: input, shape index: {}]   ;;  %s15399_s16 = inlined_call_operand.vmem [shape: bf16[32,8], index: 16, kind: input, shape index: {}]   ;;  %s15400_s17 = inlined_call_operand.vmem [shape: f32[1,8], index: 17, kind: input, shape index: {}]   ;;  %s15401_s18 = inlined_call_operand.vmem [shape: bf16[8,8], index: 18, kind: input, shape index: {}]   ;;  %s15402_s19 = inlined_call_operand.vmem [shape: f32[1,8], index: 19, kind: input, shape index: {}]   ;;  %s15403_s20 = inlined_call_operand.vmem [shape: f32[512,8], index: 20, kind: output, shape index: {0}]   ;;  %s15404_s21 = inlined_call_operand.vmem [shape: f32[512,8], index: 21, kind: output, shape index: {1}]  }
   0x1   :  { %15427 = sst [smem:[#allocation19_spill]] %s15383_s0 }
   0x2   :  { %15428 = sst [smem:[#allocation20_spill]] %s15384_s1 }
   0x3   :  { %15429 = sst [smem:[#allocation21_spill]] %s15385_s2 }
   0x4   :  { %15430 = sst [smem:[#allocation22_spill]] %s15386_s3 }
   0x5   :  { %15431 = sst [smem:[#allocation23_spill]] %s15387_s4 }
   0x6   :  { %15432 = sst [smem:[#allocation24_spill]] %s15388_s5 }
   0x7   :  { %27 = vsyncpa [#allocation3], 0  ;;  %s12791_s2 = smov 0  }
   0x8 LB: > { %s8714_s25 = sadd.s32 4294967295, %s12673_s2   ;;  %p8716_p0 = scmp.ge.s32.totalorder %s12673_s2, 1  ;;  %s12673_s2 = sphi %s12791_s2, %s33_s2  }
   0x9   : > { %p515_p1 = scmp.lt.s32.totalorder %s12673_s2, 3  ;;  %s12675_s26 = smov [#allocation2]  }
   0xa   : > { %s527_s27 = sshll.u32 %s12675_s26, 4  ;;  %p12805_p3 = scmp.eq.s32.totalorder %s8714_s25, 0  ;;  %s528_s27 = int_to_ptr.vmem [resolvable:$true] %s527_s27 }
   0xb   : > { %p12799_p2 = pnand %p8716_p0, %p515_p1  ;;  %s15436_s30 = sld [smem:[#allocation19_spill]] }
   0xc   : > { %s15434_s28 = scalar_select %p12805_p3, 1, 0 }
   0xd   : > { %s15433_s3 = scalar_select %p12799_p2, 1, 0 }
   0xe   : > { %p11065_p4 = pneg %p12799_p2 }
  0x10   : > { %p12813_p5 = pnand %p12805_p3, %p11065_p4 }
  0x11   : > { %s12635_s5 = scalar_lea.hbm %s15436_s30, 16384 }
  0x12   : > { %p12636_p6 = scmp.ne.s32.totalorder %s15436_s30, %s12635_s5  ;;  %p12637_p7 = pneg %p12813_p5 }
  0x13   : > { %p12642_p10 = scmp.lt.u32.totalorder %s12635_s5, %s15436_s30 }
  0x14   : > { %p12638_p8 = pnand %p12637_p7, %p12636_p6 }
  0x16   : > { %p12639_p9 = pneg %p12638_p8 }
  0x18   : > { %p12644_p11 = pnand %p12642_p10, %p12639_p9 }
  0x1a   : > { %12647 = shalt.err (!%p12644_p11)
}
  0x1b   : > { %s12648_s26 = scalar_lea.vmem %s528_s27, 16384  ;;  %p12656_p1 = scmp.lt.s32.totalorder %s528_s27, %s528_s27 }
  0x1c   : > { %p12649_p12 = scmp.ne.s32.totalorder %s528_s27, %s12648_s26  ;;  %p12657_p4 = scmp.lt.s32.totalorder %s12648_s26, %s12648_s26 }
  0x1e   : > { %p12651_p13 = pnand %p12649_p12, %p12637_p7  ;;  %p12658_p3 = por %p12657_p4, %p12656_p1 }
  0x20   : > { %p12652_p0 = pneg %p12651_p13 }
  0x22   : > { %p12659_p2 = pnand %p12658_p3, %p12652_p0 }
  0x24   : > { %12662 = shalt.err (!%p12659_p2)
}
  0x25   : > { %s12676_s0 = smov 128   ;;  %s12677_s4 = smov 8  }
  0x26   : > { %11068 = dma.hbm_to_vmem [thread:$0]  (!%p12813_p5), %s15436_s30, 16384, %s528_s27, [#allocation3], %s12676_s0, %s12676_s0, %s12677_s4  }
  0x27   : > { %p15437_p6 = scmp.ne.s32.totalorder %s15433_s3, 0 }
  0x29   : > { %606 = sbr.rel (%p15437_p6) target bundleno = 2305 (0x901), region = 100 }
  0x30   : > { %p15438_p8 = scmp.ne.s32.totalorder %s15434_s28, 0 }
  0x32   : > { %12668 = dma.done.wait (%p15438_p8), [#allocation3], 16384  }
  0x33   : > { %12670 = vsyncadd (%p15438_p8), [#allocation3], 4294950912  ;;  %s8721_s5 = sshll.u32 %s8714_s25, 5  ;;  %s15439_s27 = sld [smem:[#allocation20_spill]]  ;;  %v11327_v27 = vld [vmem:[#allocation2 + $0x4] ss:$8 sps:$4 sm:$0xff]  }
  0x34   : > { %p672_p2 = scmp.lt.s32.totalorder %s8721_s5, 63  ;;  %v11330_v31 = vld [vmem:[#allocation2 + $0x104] ss:$8 sps:$4 sm:$0xff]   ;;  %962 = vmatprep.mubr.bf16.mxu0 %v11327_v27  ;;  %v11325_v50 = vld [vmem:[#allocation2] ss:$8 sps:$4 sm:$0xff]   ;;  %s12678_s25 = smov 8  }
  0x35   : > { %1316 = vmatprep.mubr.bf16.mxu1 %v11330_v31  ;;  %v11328_v51 = vld [vmem:[#allocation2 + $0x100] ss:$8 sps:$4 sm:$0xff]   ;;  %v11331_v52 = vld [vmem:[#allocation2 + $0x14] ss:$8 sps:$4 sm:$0xff]   ;;  %v11335_v54 = vld [vmem:[#allocation2 + $0x10] ss:$8 sps:$4 sm:$0xff]  }
  0x36   : > { %s15473_s5 = smov (!%p672_p2, %s8721_s5), 63  ;;  %v11333_v53 = vld [vmem:[#allocation2 + $0x114] ss:$8 sps:$4 sm:$0xff]   ;;  %v11336_v55 = vld [vmem:[#allocation2 + $0x110] ss:$8 sps:$4 sm:$0xff]   ;;  %s15454_s0 = sld [smem:[#allocation23_spill]] }
  0x37   : > { %s12841_s1 = sshll.u32 %s15473_s5, 3  ;;  %v11337_v56 = vld [vmem:[#allocation2 + $0x24] ss:$8 sps:$4 sm:$0xff]   ;;  %v11341_v58 = vld [vmem:[#allocation2 + $0x20] ss:$8 sps:$4 sm:$0xff]   ;;  %s15455_s23 = sld [smem:[#allocation21_spill]] }
  0x38   : > { %v11339_v57 = vld [vmem:[#allocation2 + $0x124] ss:$8 sps:$4 sm:$0xff]   ;;  %v11342_v59 = vld [vmem:[#allocation2 + $0x120] ss:$8 sps:$4 sm:$0xff]   ;;  %v11343_v60 = vld [vmem:[#allocation2 + $0x34] ss:$8 sps:$4 sm:$0xff]   ;;  %s15090_s29 = scalar_lea.vmem %s15403_s20, %s12841_s1  ;;  %s15265_s22 = scalar_lea.vmem %s15404_s21, %s12841_s1 }
  0x39   : > { %s12847_s26 = scalar_lea.vmem %s15439_s27, %s12841_s1  ;;  %v11345_v61 = vld [vmem:[#allocation2 + $0x134] ss:$8 sps:$4 sm:$0xff]   ;;  %v11347_v62 = vld [vmem:[#allocation2 + $0x30] ss:$8 sps:$4 sm:$0xff]   ;;  %vm2537_vm0 = vcmask 64512   ;;  %vm2570_vm1 = vcmask 130048  }
  0x3a   : > { %v706_v0 = vld [vmem:[%s12847_s26 + $0x80] sm:$0xff]  ;;  %v707_v1 = vld [vmem:[%s12847_s26 + $0x88] sm:$0xff]  ;;  %v708_v5 = vld [vmem:[%s12847_s26 + $0x90] sm:$0xff]  ;;  %vm2603_vm2 = vcmask 195584   ;;  %vm2680_vm3 = vcmask 261120   ;;  %s15456_s5 = sld [smem:[#allocation24_spill]] }
  0x3b   : > { %v690_v2 = vld [vmem:[%s12847_s26] sm:$0xff]  ;;  %v12852_v3 = vpack.c.bf16 %v707_v1, %v706_v0  ;;  %v691_v4 = vld [vmem:[%s12847_s26 + $0x8] sm:$0xff]  ;;  %v709_v6 = vld [vmem:[%s12847_s26 + $0x98] sm:$0xff]  ;;  %vm8007_vm4 = vcmask 1043456  }
  0x3c   : > { %v12857_v7 = vpack.c.bf16 %v691_v4, %v690_v2  ;;  %v12859_v8 = vpack.c.bf16 %v709_v6, %v708_v5  ;;  %v692_v9 = vld [vmem:[%s12847_s26 + $0x10] sm:$0xff]  ;;  %v693_v10 = vld [vmem:[%s12847_s26 + $0x18] sm:$0xff]  ;;  %v710_v11 = vld [vmem:[%s12847_s26 + $0xa0] sm:$0xff] }
  0x3d   : > { %15440 = vst [vmem:[#allocation5_spill] sm:$0xff] %v12852_v3  ;;  %9463 = vmatprep.subr.bf16.mxu0 %v12852_v3  ;;  %9575 = vmatprep.subr.bf16.mxu1 %v12852_v3  ;;  %v711_v12 = vld [vmem:[%s12847_s26 + $0xa8] sm:$0xff]  ;;  %v12869_v13 = vpack.c.bf16 %v693_v10, %v692_v9  ;;  %v694_v15 = vld [vmem:[%s12847_s26 + $0x20] sm:$0xff]  ;;  %v712_v17 = vld [vmem:[%s12847_s26 + $0xb0] sm:$0xff] }
  0x3e   : > { %15441 = vst [vmem:[#allocation6_spill] sm:$0xff] %v12859_v8  ;;  %9464 = vmatpush3.bf16.msra.mxu0 %v12857_v7  ;;  %9576 = vmatpush3.bf16.msra.mxu1 %v12857_v7  ;;  %v12873_v14 = vpack.c.bf16 %v711_v12, %v710_v11  ;;  %v695_v16 = vld [vmem:[%s12847_s26 + $0x28] sm:$0xff]  ;;  %v713_v18 = vld [vmem:[%s12847_s26 + $0xb8] sm:$0xff]  ;;  %v696_v21 = vld [vmem:[%s12847_s26 + $0x30] sm:$0xff] }
  0x3f   : > { %9465 = vmatprep.subr.bf16.mxu0 %v12859_v8  ;;  %9577 = vmatprep.subr.bf16.mxu1 %v12859_v8  ;;  %v12881_v19 = vpack.c.bf16 %v695_v16, %v694_v15  ;;  %v12885_v20 = vpack.c.bf16 %v713_v18, %v712_v17  ;;  %v697_v22 = vld [vmem:[%s12847_s26 + $0x38] sm:$0xff]  ;;  %v714_v23 = vld [vmem:[%s12847_s26 + $0xc0] sm:$0xff]  ;;  %v715_v24 = vld [vmem:[%s12847_s26 + $0xc8] sm:$0xff] }
  0x40   : > { %15442 = vst [vmem:[#allocation7_spill] sm:$0xff] %v12873_v14  ;;  %v698_v25 = vld [vmem:[%s12847_s26 + $0x40] sm:$0xff]  ;;  %v699_v26 = vld [vmem:[%s12847_s26 + $0x48] sm:$0xff]  ;;  %v12895_v28 = vpack.c.bf16 %v697_v22, %v696_v21  ;;  %v716_v29 = vld [vmem:[%s12847_s26 + $0xd0] sm:$0xff]  ;;  %v12900_v30 = vpack.c.bf16 %v715_v24, %v714_v23 }
  0x41   : > { %15443 = vst [vmem:[#allocation8_spill] sm:$0xff] %v12881_v19  ;;  %15444 = vst [vmem:[#allocation9_spill] sm:$0xff] %v12885_v20  ;;  %v717_v32 = vld [vmem:[%s12847_s26 + $0xd8] sm:$0xff]  ;;  %v12905_v33 = vpack.c.bf16 %v699_v26, %v698_v25  ;;  %v700_v34 = vld [vmem:[%s12847_s26 + $0x50] sm:$0xff] }
  0x42   : > { %9466 = vmatpush3.bf16.msra.mxu0 %v12869_v13  ;;  %9578 = vmatpush3.bf16.msra.mxu1 %v12869_v13  ;;  %15445 = vst [vmem:[#allocation10_spill] sm:$0xff] %v12895_v28  ;;  %15446 = vst [vmem:[#allocation11_spill] sm:$0xff] %v12900_v30  ;;  %v12910_v35 = vpack.c.bf16 %v717_v32, %v716_v29  ;;  %v701_v36 = vld [vmem:[%s12847_s26 + $0x58] sm:$0xff]  ;;  %v718_v37 = vld [vmem:[%s12847_s26 + $0xe0] sm:$0xff] }
  0x43   : > { %9467 = vmatprep.subr.bf16.mxu0 %v12873_v14  ;;  %9579 = vmatprep.subr.bf16.mxu1 %v12873_v14  ;;  %15447 = vst [vmem:[#allocation12_spill] sm:$0xff] %v12905_v33  ;;  %v719_v38 = vld [vmem:[%s12847_s26 + $0xe8] sm:$0xff]  ;;  %v12917_v39 = vpack.c.bf16 %v701_v36, %v700_v34  ;;  %v702_v40 = vld [vmem:[%s12847_s26 + $0x60] sm:$0xff]  ;;  %v720_v43 = vld [vmem:[%s12847_s26 + $0xf0] sm:$0xff] }
  0x44   : > { %15448 = vst [vmem:[#allocation13_spill] sm:$0xff] %v12910_v35  ;;  %v703_v41 = vld [vmem:[%s12847_s26 + $0x68] sm:$0xff]  ;;  %v12923_v42 = vpack.c.bf16 %v719_v38, %v718_v37  ;;  %v721_v44 = vld [vmem:[%s12847_s26 + $0xf8] sm:$0xff]  ;;  %v704_v46 = vld [vmem:[%s12847_s26 + $0x70] sm:$0xff] }
  0x45   : > { %15449 = vst [vmem:[#allocation14_spill] sm:$0xff] %v12917_v39  ;;  %v12929_v45 = vpack.c.bf16 %v703_v41, %v702_v40  ;;  %v12934_v47 = vpack.c.bf16 %v721_v44, %v720_v43  ;;  %v705_v48 = vld [vmem:[%s12847_s26 + $0x78] sm:$0xff]  ;;  %v11349_v0 = vld [vmem:[#allocation2 + $0x44] ss:$8 sps:$4 sm:$0xff]   ;;  %v11353_v2 = vld [vmem:[#allocation2 + $0x40] ss:$8 sps:$4 sm:$0xff]  }
  0x46   : > { %9468 = vmatpush3.bf16.msra.mxu0 %v12881_v19  ;;  %9580 = vmatpush3.bf16.msra.mxu1 %v12881_v19  ;;  %15450 = vst [vmem:[#allocation15_spill] sm:$0xff] %v12923_v42  ;;  %v12939_v49 = vpack.c.bf16 %v705_v48, %v704_v46  ;;  %v11348_v63 = vld [vmem:[#allocation2 + $0x130] ss:$8 sps:$4 sm:$0xff]   ;;  %v11351_v1 = vld [vmem:[#allocation2 + $0x144] ss:$8 sps:$4 sm:$0xff]   ;;  %s12679_s26 = smov 16  }
  0x47   : > { %9469 = vmatprep.subr.bf16.mxu0 %v12885_v20  ;;  %9581 = vmatprep.subr.bf16.mxu1 %v12885_v20  ;;  %15451 = vst [vmem:[#allocation16_spill] sm:$0xff] %v12929_v45  ;;  %15452 = vst [vmem:[#allocation17_spill] sm:$0xff] %v12934_v47  ;;  %v11354_v4 = vld [vmem:[#allocation2 + $0x140] ss:$8 sps:$4 sm:$0xff]   ;;  %v11355_v5 = vld [vmem:[#allocation2 + $0x54] ss:$8 sps:$4 sm:$0xff]  }
  0x48   : > { %15453 = vst [vmem:[#allocation18_spill] sm:$0xff] %v12939_v49  ;;  %v11357_v6 = vld [vmem:[#allocation2 + $0x154] ss:$8 sps:$4 sm:$0xff]   ;;  %v11359_v9 = vld [vmem:[#allocation2 + $0x50] ss:$8 sps:$4 sm:$0xff]  }
  0x49   : > { %v11360_v10 = vld [vmem:[#allocation2 + $0x150] ss:$8 sps:$4 sm:$0xff]   ;;  %v11361_v11 = vld [vmem:[#allocation2 + $0x64] ss:$8 sps:$4 sm:$0xff]   ;;  %v11365_v15 = vld [vmem:[#allocation2 + $0x60] ss:$8 sps:$4 sm:$0xff]  }
  0x4a   : > { %9470 = vmatpush3.bf16.msra.mxu0 %v12895_v28  ;;  %9582 = vmatpush3.bf16.msra.mxu1 %v12895_v28  ;;  %v11363_v12 = vld [vmem:[#allocation2 + $0x164] ss:$8 sps:$4 sm:$0xff]   ;;  %v11366_v16 = vld [vmem:[#allocation2 + $0x160] ss:$8 sps:$4 sm:$0xff]   ;;  %v11367_v17 = vld [vmem:[#allocation2 + $0x74] ss:$8 sps:$4 sm:$0xff]  }
  0x4b   : > { %9471 = vmatprep.subr.bf16.mxu0 %v12900_v30  ;;  %9583 = vmatprep.subr.bf16.mxu1 %v12900_v30  ;;  %v11369_v18 = vld [vmem:[#allocation2 + $0x174] ss:$8 sps:$4 sm:$0xff]   ;;  %v11371_v21 = vld [vmem:[#allocation2 + $0x70] ss:$8 sps:$4 sm:$0xff]   ;;  %v11373_v23 = vld [vmem:[#allocation2 + $0x84] ss:$8 sps:$4 sm:$0xff]  }
  0x4c   : > { %v11372_v22 = vld [vmem:[#allocation2 + $0x170] ss:$8 sps:$4 sm:$0xff]   ;;  %v11375_v24 = vld [vmem:[#allocation2 + $0x184] ss:$8 sps:$4 sm:$0xff]   ;;  %v11377_v25 = vld [vmem:[#allocation2 + $0x80] ss:$8 sps:$4 sm:$0xff]  }
  0x4d   : > { %v11378_v26 = vld [vmem:[#allocation2 + $0x180] ss:$8 sps:$4 sm:$0xff]   ;;  %v11379_v27 = vld [vmem:[#allocation2 + $0x94] ss:$8 sps:$4 sm:$0xff]   ;;  %v11383_v31 = vld [vmem:[#allocation2 + $0x90] ss:$8 sps:$4 sm:$0xff]  }
  0x4e   : > { %9472 = vmatpush3.bf16.msra.mxu0 %v12905_v33  ;;  %9584 = vmatpush3.bf16.msra.mxu1 %v12905_v33  ;;  %v11381_v29 = vld [vmem:[#allocation2 + $0x194] ss:$8 sps:$4 sm:$0xff]   ;;  %v11384_v32 = vld [vmem:[#allocation2 + $0x190] ss:$8 sps:$4 sm:$0xff]   ;;  %v11385_v34 = vld [vmem:[#allocation2 + $0xa4] ss:$8 sps:$4 sm:$0xff]  }
  0x4f   : > { %9473 = vmatprep.subr.bf16.mxu0 %v12910_v35  ;;  %9585 = vmatprep.subr.bf16.mxu1 %v12910_v35  ;;  %v11387_v36 = vld [vmem:[#allocation2 + $0x1a4] ss:$8 sps:$4 sm:$0xff]   ;;  %v11389_v37 = vld [vmem:[#allocation2 + $0xa0] ss:$8 sps:$4 sm:$0xff]   ;;  %v11391_v40 = vld [vmem:[#allocation2 + $0xb4] ss:$8 sps:$4 sm:$0xff]  }
  0x50   : > { %v11390_v38 = vld [vmem:[#allocation2 + $0x1a0] ss:$8 sps:$4 sm:$0xff]   ;;  %v11393_v41 = vld [vmem:[#allocation2 + $0x1b4] ss:$8 sps:$4 sm:$0xff]   ;;  %v11395_v43 = vld [vmem:[#allocation2 + $0xb0] ss:$8 sps:$4 sm:$0xff]  }
  0x51   : > { %v11396_v44 = vld [vmem:[#allocation2 + $0x1b0] ss:$8 sps:$4 sm:$0xff]   ;;  %v11397_v46 = vld [vmem:[#allocation2 + $0xc4] ss:$8 sps:$4 sm:$0xff]  }
  0x52   : > { %9474 = vmatpush3.bf16.msra.mxu0 %v12917_v39  ;;  %9586 = vmatpush3.bf16.msra.mxu1 %v12917_v39  ;;  %v11399_v48 = vld [vmem:[#allocation2 + $0x1c4] ss:$8 sps:$4 sm:$0xff]  }
  0x53   : > { %9475 = vmatprep.subr.bf16.mxu0 %v12923_v42  ;;  %9587 = vmatprep.subr.bf16.mxu1 %v12923_v42 }
  0x56   : > { %9476 = vmatpush3.bf16.msra.mxu0 %v12929_v45  ;;  %9588 = vmatpush3.bf16.msra.mxu1 %v12929_v45 }
  0x57   : > { %9477 = vmatprep.subr.bf16.mxu0 %v12934_v47  ;;  %9589 = vmatprep.subr.bf16.mxu1 %v12934_v47 }
  0x5a   : > { %9478 = vmatpush3.bf16.msra.mxu0 %v12939_v49  ;;  %9590 = vmatpush3.bf16.msra.mxu1 %v12939_v49 }
  0x5b   : > { %9687 = vmatprep.subr.bf16.mxu0 %v12852_v3  ;;  %9799 = vmatprep.subr.bf16.mxu1 %v12852_v3 }
  0x5d   : > { %963 = vmatmul.mubr.bf16.vlgmr.msra.gmra.mrb[0].mxu0 %v11325_v50  ;;  %1317 = vmatmul.mubr.bf16.vlgmr.msra.gmra.mrb[0].mxu1 %v11328_v51  ;;  %v11401_v50 = vld [vmem:[#allocation2 + $0xc0] ss:$8 sps:$4 sm:$0xff]  }
  0x5e   : > { %9688 = vmatpush3.bf16.msra.mxu0 %v12857_v7  ;;  %9800 = vmatpush3.bf16.msra.mxu1 %v12857_v7  ;;  %v11402_v51 = vld [vmem:[#allocation2 + $0x1c0] ss:$8 sps:$4 sm:$0xff]  }
  0x5f   : > { %970 = vmatprep.mubr.bf16.mxu0 %v11331_v52  ;;  %1324 = vmatprep.mubr.bf16.mxu1 %v11333_v53  ;;  %v11403_v52 = vld [vmem:[#allocation2 + $0xd4] ss:$8 sps:$4 sm:$0xff]  }
  0x60   : > { %9689 = vmatprep.subr.bf16.mxu0 %v12859_v8  ;;  %9801 = vmatprep.subr.bf16.mxu1 %v12859_v8  ;;  %v11405_v53 = vld [vmem:[#allocation2 + $0x1d4] ss:$8 sps:$4 sm:$0xff]  }
  0x62   : > { %9690 = vmatpush3.bf16.msra.mxu0 %v12869_v13  ;;  %9802 = vmatpush3.bf16.msra.mxu1 %v12869_v13 }
  0x63   : > { %9691 = vmatprep.subr.bf16.mxu0 %v12873_v14  ;;  %9803 = vmatprep.subr.bf16.mxu1 %v12873_v14 }
  0x65   : > { %971 = vmatmul.mubr.bf16.gmra.mrb[4].mxu0 %v11335_v54  ;;  %1325 = vmatmul.mubr.bf16.gmra.mrb[4].mxu1 %v11336_v55  ;;  %v11407_v54 = vld [vmem:[#allocation2 + $0xd0] ss:$8 sps:$4 sm:$0xff]  }
  0x66   : > { %978 = vmatprep.mubr.bf16.mxu0 %v11337_v56  ;;  %1332 = vmatprep.mubr.bf16.mxu1 %v11339_v57  ;;  %v11408_v55 = vld [vmem:[#allocation2 + $0x1d0] ss:$8 sps:$4 sm:$0xff]   ;;  %v11409_v56 = vld [vmem:[#allocation2 + $0xe4] ss:$8 sps:$4 sm:$0xff]  }
  0x67   : > { %9692 = vmatpush3.bf16.msra.mxu0 %v12881_v19  ;;  %9804 = vmatpush3.bf16.msra.mxu1 %v12881_v19  ;;  %v11411_v57 = vld [vmem:[#allocation2 + $0x1e4] ss:$8 sps:$4 sm:$0xff]  }
  0x68   : > { %9693 = vmatprep.subr.bf16.mxu0 %v12885_v20  ;;  %9805 = vmatprep.subr.bf16.mxu1 %v12885_v20 }
  0x6b   : > { %9694 = vmatpush3.bf16.msra.mxu0 %v12895_v28  ;;  %9806 = vmatpush3.bf16.msra.mxu1 %v12895_v28 }
  0x6c   : > { %9695 = vmatprep.subr.bf16.mxu0 %v12900_v30  ;;  %9807 = vmatprep.subr.bf16.mxu1 %v12900_v30 }
  0x6d   : > { %979 = vmatmul.mubr.bf16.gmra.mrb[8].mxu0 %v11341_v58  ;;  %1333 = vmatmul.mubr.bf16.gmra.mrb[8].mxu1 %v11342_v59  ;;  %v11413_v58 = vld [vmem:[#allocation2 + $0xe0] ss:$8 sps:$4 sm:$0xff]  }
  0x6e   : > { %986 = vmatprep.mubr.bf16.mxu0 %v11343_v60  ;;  %1340 = vmatprep.mubr.bf16.mxu1 %v11345_v61  ;;  %v11414_v59 = vld [vmem:[#allocation2 + $0x1e0] ss:$8 sps:$4 sm:$0xff]   ;;  %v11415_v60 = vld [vmem:[#allocation2 + $0xf4] ss:$8 sps:$4 sm:$0xff]  }
  0x6f   : > { %9696 = vmatpush3.bf16.msra.mxu0 %v12905_v33  ;;  %9808 = vmatpush3.bf16.msra.mxu1 %v12905_v33  ;;  %v11417_v61 = vld [vmem:[#allocation2 + $0x1f4] ss:$8 sps:$4 sm:$0xff]  }
  0x70   : > { %9697 = vmatprep.subr.bf16.mxu0 %v12910_v35  ;;  %9809 = vmatprep.subr.bf16.mxu1 %v12910_v35 }
  0x73   : > { %9698 = vmatpush3.bf16.msra.mxu0 %v12917_v39  ;;  %9810 = vmatpush3.bf16.msra.mxu1 %v12917_v39 }
  0x74   : > { %9699 = vmatprep.subr.bf16.mxu0 %v12923_v42  ;;  %9811 = vmatprep.subr.bf16.mxu1 %v12923_v42 }
  0x75   : > { %987 = vmatmul.mubr.bf16.gmra.mrb[12].mxu0 %v11347_v62  ;;  %1341 = vmatmul.mubr.bf16.gmra.mrb[12].mxu1 %v11348_v63  ;;  %v11419_v62 = vld [vmem:[#allocation2 + $0xf0] ss:$8 sps:$4 sm:$0xff]  }
  0x76   : > { %994 = vmatprep.mubr.bf16.mxu0 %v11349_v0  ;;  %1348 = vmatprep.mubr.bf16.mxu1 %v11351_v1  ;;  %v11420_v63 = vld [vmem:[#allocation2 + $0x1f0] ss:$8 sps:$4 sm:$0xff]   ;;  %v11423_v0 = vld [vmem:[#allocation2 + $0x204] ss:$8 sps:$4 sm:$0xff]  }
  0x77   : > { %9700 = vmatpush3.bf16.msra.mxu0 %v12929_v45  ;;  %9812 = vmatpush3.bf16.msra.mxu1 %v12929_v45  ;;  %v11426_v1 = vld [vmem:[#allocation2 + $0x304] ss:$8 sps:$4 sm:$0xff]  }
  0x78   : > { %9701 = vmatprep.subr.bf16.mxu0 %v12934_v47  ;;  %9813 = vmatprep.subr.bf16.mxu1 %v12934_v47 }
  0x7b   : > { %9702 = vmatpush3.bf16.msra.mxu0 %v12939_v49  ;;  %9814 = vmatpush3.bf16.msra.mxu1 %v12939_v49 }
  0x7d   : > { %995 = vmatmul.mubr.bf16.gmra.mrb[16].mxu0 %v11353_v2  ;;  %1349 = vmatmul.mubr.bf16.gmra.mrb[16].mxu1 %v11354_v4  ;;  %v11421_v2 = vld [vmem:[#allocation2 + $0x200] ss:$8 sps:$4 sm:$0xff]  }
  0x7e   : > { %1002 = vmatprep.mubr.bf16.mxu0 %v11355_v5  ;;  %1356 = vmatprep.mubr.bf16.mxu1 %v11357_v6  ;;  %v11424_v4 = vld [vmem:[#allocation2 + $0x300] ss:$8 sps:$4 sm:$0xff]   ;;  %v11427_v5 = vld [vmem:[#allocation2 + $0x214] ss:$8 sps:$4 sm:$0xff]  }
  0x7f   : > { %v11430_v6 = vld [vmem:[#allocation2 + $0x314] ss:$8 sps:$4 sm:$0xff]  }
  0x85   : > { %1003 = vmatmul.mubr.bf16.gmra.mrb[20].mxu0 %v11359_v9  ;;  %1357 = vmatmul.mubr.bf16.gmra.mrb[20].mxu1 %v11360_v10  ;;  %v11429_v9 = vld [vmem:[#allocation2 + $0x210] ss:$8 sps:$4 sm:$0xff]  }
  0x86   : > { %1010 = vmatprep.mubr.bf16.mxu0 %v11361_v11  ;;  %1364 = vmatprep.mubr.bf16.mxu1 %v11363_v12  ;;  %v11432_v10 = vld [vmem:[#allocation2 + $0x310] ss:$8 sps:$4 sm:$0xff]   ;;  %v11433_v11 = vld [vmem:[#allocation2 + $0x224] ss:$8 sps:$4 sm:$0xff]  }
  0x87   : > { %v11436_v12 = vld [vmem:[#allocation2 + $0x324] ss:$8 sps:$4 sm:$0xff]  }
  0x8d   : > { %1011 = vmatmul.mubr.bf16.gmra.mrb[24].mxu0 %v11365_v15  ;;  %1365 = vmatmul.mubr.bf16.gmra.mrb[24].mxu1 %v11366_v16  ;;  %v11435_v15 = vld [vmem:[#allocation2 + $0x220] ss:$8 sps:$4 sm:$0xff]  }
  0x8e   : > { %1018 = vmatprep.mubr.bf16.mxu0 %v11367_v17  ;;  %1372 = vmatprep.mubr.bf16.mxu1 %v11369_v18  ;;  %v11438_v16 = vld [vmem:[#allocation2 + $0x320] ss:$8 sps:$4 sm:$0xff]   ;;  %v11439_v17 = vld [vmem:[#allocation2 + $0x234] ss:$8 sps:$4 sm:$0xff]  }
  0x8f   : > { %v11442_v18 = vld [vmem:[#allocation2 + $0x334] ss:$8 sps:$4 sm:$0xff]  }
  0x95   : > { %1019 = vmatmul.mubr.bf16.gmra.mrb[28].mxu0 %v11371_v21  ;;  %1373 = vmatmul.mubr.bf16.gmra.mrb[28].mxu1 %v11372_v22  ;;  %v11441_v21 = vld [vmem:[#allocation2 + $0x230] ss:$8 sps:$4 sm:$0xff]  }
  0x96   : > { %1026 = vmatprep.mubr.bf16.mxu0 %v11373_v23  ;;  %1380 = vmatprep.mubr.bf16.mxu1 %v11375_v24  ;;  %v11444_v22 = vld [vmem:[#allocation2 + $0x330] ss:$8 sps:$4 sm:$0xff]   ;;  %v11445_v23 = vld [vmem:[#allocation2 + $0x244] ss:$8 sps:$4 sm:$0xff]  }
  0x97   : > { %v11448_v24 = vld [vmem:[#allocation2 + $0x344] ss:$8 sps:$4 sm:$0xff]  }
  0x9d   : > { %1027 = vmatmul.mubr.bf16.gmra.mrb[32].mxu0 %v11377_v25  ;;  %1381 = vmatmul.mubr.bf16.gmra.mrb[32].mxu1 %v11378_v26  ;;  %v11447_v25 = vld [vmem:[#allocation2 + $0x240] ss:$8 sps:$4 sm:$0xff]  }
  0x9e   : > { %1034 = vmatprep.mubr.bf16.mxu0 %v11379_v27  ;;  %1388 = vmatprep.mubr.bf16.mxu1 %v11381_v29  ;;  %v11450_v26 = vld [vmem:[#allocation2 + $0x340] ss:$8 sps:$4 sm:$0xff]   ;;  %v11451_v27 = vld [vmem:[#allocation2 + $0x254] ss:$8 sps:$4 sm:$0xff]  }
  0x9f   : > { %v11454_v29 = vld [vmem:[#allocation2 + $0x354] ss:$8 sps:$4 sm:$0xff]  }
  0xa5   : > { %1035 = vmatmul.mubr.bf16.gmra.mrb[36].mxu0 %v11383_v31  ;;  %1389 = vmatmul.mubr.bf16.gmra.mrb[36].mxu1 %v11384_v32  ;;  %v11453_v31 = vld [vmem:[#allocation2 + $0x250] ss:$8 sps:$4 sm:$0xff]  }
  0xa6   : > { %1042 = vmatprep.mubr.bf16.mxu0 %v11385_v34  ;;  %1396 = vmatprep.mubr.bf16.mxu1 %v11387_v36  ;;  %v11456_v32 = vld [vmem:[#allocation2 + $0x350] ss:$8 sps:$4 sm:$0xff]   ;;  %v11457_v34 = vld [vmem:[#allocation2 + $0x264] ss:$8 sps:$4 sm:$0xff]  }
  0xa7   : > { %v11460_v36 = vld [vmem:[#allocation2 + $0x364] ss:$8 sps:$4 sm:$0xff]  }
  0xad   : > { %1043 = vmatmul.mubr.bf16.gmra.mrb[40].mxu0 %v11389_v37  ;;  %1397 = vmatmul.mubr.bf16.gmra.mrb[40].mxu1 %v11390_v38  ;;  %v11459_v37 = vld [vmem:[#allocation2 + $0x260] ss:$8 sps:$4 sm:$0xff]  }
  0xae   : > { %1050 = vmatprep.mubr.bf16.mxu0 %v11391_v40  ;;  %1404 = vmatprep.mubr.bf16.mxu1 %v11393_v41  ;;  %v11462_v38 = vld [vmem:[#allocation2 + $0x360] ss:$8 sps:$4 sm:$0xff]   ;;  %v11463_v40 = vld [vmem:[#allocation2 + $0x274] ss:$8 sps:$4 sm:$0xff]  }
  0xaf   : > { %v11466_v41 = vld [vmem:[#allocation2 + $0x374] ss:$8 sps:$4 sm:$0xff]  }
  0xb5   : > { %1051 = vmatmul.mubr.bf16.gmra.mrb[44].mxu0 %v11395_v43  ;;  %1405 = vmatmul.mubr.bf16.gmra.mrb[44].mxu1 %v11396_v44  ;;  %v11465_v43 = vld [vmem:[#allocation2 + $0x270] ss:$8 sps:$4 sm:$0xff]  }
  0xb6   : > { %1058 = vmatprep.mubr.bf16.mxu0 %v11397_v46  ;;  %1412 = vmatprep.mubr.bf16.mxu1 %v11399_v48  ;;  %v11468_v44 = vld [vmem:[#allocation2 + $0x370] ss:$8 sps:$4 sm:$0xff]   ;;  %v11469_v46 = vld [vmem:[#allocation2 + $0x284] ss:$8 sps:$4 sm:$0xff]  }
  0xb7   : > { %v11472_v48 = vld [vmem:[#allocation2 + $0x384] ss:$8 sps:$4 sm:$0xff]  }
  0xbd   : > { %1059 = vmatmul.mubr.bf16.gmra.mrb[48].mxu0 %v11401_v50  ;;  %1413 = vmatmul.mubr.bf16.gmra.mrb[48].mxu1 %v11402_v51  ;;  %v11471_v50 = vld [vmem:[#allocation2 + $0x280] ss:$8 sps:$4 sm:$0xff]  }
  0xbe   : > { %1066 = vmatprep.mubr.bf16.mxu0 %v11403_v52  ;;  %1420 = vmatprep.mubr.bf16.mxu1 %v11405_v53  ;;  %v11474_v51 = vld [vmem:[#allocation2 + $0x380] ss:$8 sps:$4 sm:$0xff]   ;;  %v11475_v52 = vld [vmem:[#allocation2 + $0x294] ss:$8 sps:$4 sm:$0xff]  }
  0xbf   : > { %v11478_v53 = vld [vmem:[#allocation2 + $0x394] ss:$8 sps:$4 sm:$0xff]  }
  0xc5   : > { %1067 = vmatmul.mubr.bf16.gmra.mrb[52].mxu0 %v11407_v54  ;;  %1421 = vmatmul.mubr.bf16.gmra.mrb[52].mxu1 %v11408_v55  ;;  %v11477_v54 = vld [vmem:[#allocation2 + $0x290] ss:$8 sps:$4 sm:$0xff]  }
  0xc6   : > { %1074 = vmatprep.mubr.bf16.mxu0 %v11409_v56  ;;  %1428 = vmatprep.mubr.bf16.mxu1 %v11411_v57  ;;  %v11480_v55 = vld [vmem:[#allocation2 + $0x390] ss:$8 sps:$4 sm:$0xff]   ;;  %v11481_v56 = vld [vmem:[#allocation2 + $0x2a4] ss:$8 sps:$4 sm:$0xff]  }
  0xc7   : > { %v11484_v57 = vld [vmem:[#allocation2 + $0x3a4] ss:$8 sps:$4 sm:$0xff]  }
  0xcd   : > { %1075 = vmatmul.mubr.bf16.gmra.mrb[56].mxu0 %v11413_v58  ;;  %1429 = vmatmul.mubr.bf16.gmra.mrb[56].mxu1 %v11414_v59  ;;  %v11483_v58 = vld [vmem:[#allocation2 + $0x2a0] ss:$8 sps:$4 sm:$0xff]  }
  0xce   : > { %1082 = vmatprep.mubr.bf16.mxu0 %v11415_v60  ;;  %1436 = vmatprep.mubr.bf16.mxu1 %v11417_v61  ;;  %v11486_v59 = vld [vmem:[#allocation2 + $0x3a0] ss:$8 sps:$4 sm:$0xff]   ;;  %v11487_v60 = vld [vmem:[#allocation2 + $0x2b4] ss:$8 sps:$4 sm:$0xff]  }
  0xcf   : > { %v11490_v61 = vld [vmem:[#allocation2 + $0x3b4] ss:$8 sps:$4 sm:$0xff]  }
  0xd5   : > { %1083 = vmatmul.mubr.bf16.gmra.mrb[60].mxu0 %v11419_v62  ;;  %1437 = vmatmul.mubr.bf16.gmra.mrb[60].mxu1 %v11420_v63 }
  0xd6   : > { %1670 = vmatprep.mubr.bf16.mxu0 %v11423_v0  ;;  %2024 = vmatprep.mubr.bf16.mxu1 %v11426_v1 }
  0xdd   : > { %1671 = vmatmul.mubr.bf16.vlgmr.msra.gmra.mrb[64].mxu0 %v11421_v2  ;;  %2025 = vmatmul.mubr.bf16.vlgmr.msra.gmra.mrb[64].mxu1 %v11424_v4  ;;  %v11489_v2 = vld [vmem:[#allocation2 + $0x2b0] ss:$8 sps:$4 sm:$0xff]  }
  0xde   : > { %1678 = vmatprep.mubr.bf16.mxu0 %v11427_v5  ;;  %2032 = vmatprep.mubr.bf16.mxu1 %v11430_v6  ;;  %v11492_v4 = vld [vmem:[#allocation2 + $0x3b0] ss:$8 sps:$4 sm:$0xff]  }
  0xe5   : > { %1679 = vmatmul.mubr.bf16.gmra.mrb[68].mxu0 %v11429_v9  ;;  %2033 = vmatmul.mubr.bf16.gmra.mrb[68].mxu1 %v11432_v10 }
  0xe6   : > { %1686 = vmatprep.mubr.bf16.mxu0 %v11433_v11  ;;  %2040 = vmatprep.mubr.bf16.mxu1 %v11436_v12  ;;  %v11493_v11 = vld [vmem:[#allocation2 + $0x2c4] ss:$8 sps:$4 sm:$0xff]  }
  0xe7   : > { %v11496_v12 = vld [vmem:[#allocation2 + $0x3c4] ss:$8 sps:$4 sm:$0xff]  }
  0xed   : > { %1687 = vmatmul.mubr.bf16.gmra.mrb[72].mxu0 %v11435_v15  ;;  %2041 = vmatmul.mubr.bf16.gmra.mrb[72].mxu1 %v11438_v16 }
  0xee   : > { %1694 = vmatprep.mubr.bf16.mxu0 %v11439_v17  ;;  %2048 = vmatprep.mubr.bf16.mxu1 %v11442_v18 }
  0xf5   : > { %1695 = vmatmul.mubr.bf16.gmra.mrb[76].mxu0 %v11441_v21  ;;  %2049 = vmatmul.mubr.bf16.gmra.mrb[76].mxu1 %v11444_v22 }
  0xf6   : > { %1702 = vmatprep.mubr.bf16.mxu0 %v11445_v23  ;;  %2056 = vmatprep.mubr.bf16.mxu1 %v11448_v24 }
  0xfd   : > { %1703 = vmatmul.mubr.bf16.gmra.mrb[80].mxu0 %v11447_v25  ;;  %2057 = vmatmul.mubr.bf16.gmra.mrb[80].mxu1 %v11450_v26  ;;  %v11495_v26 = vld [vmem:[#allocation2 + $0x2c0] ss:$8 sps:$4 sm:$0xff]  }
  0xfe   : > { %1710 = vmatprep.mubr.bf16.mxu0 %v11451_v27  ;;  %2064 = vmatprep.mubr.bf16.mxu1 %v11454_v29  ;;  %v11498_v27 = vld [vmem:[#allocation2 + $0x3c0] ss:$8 sps:$4 sm:$0xff]  }
 0x105   : > { %1711 = vmatmul.mubr.bf16.gmra.mrb[84].mxu0 %v11453_v31  ;;  %2065 = vmatmul.mubr.bf16.gmra.mrb[84].mxu1 %v11456_v32 }
 0x106   : > { %1718 = vmatprep.mubr.bf16.mxu0 %v11457_v34  ;;  %2072 = vmatprep.mubr.bf16.mxu1 %v11460_v36  ;;  %v11499_v36 = vld [vmem:[#allocation2 + $0x2d4] ss:$8 sps:$4 sm:$0xff]  }
 0x10d   : > { %1719 = vmatmul.mubr.bf16.gmra.mrb[88].mxu0 %v11459_v37  ;;  %2073 = vmatmul.mubr.bf16.gmra.mrb[88].mxu1 %v11462_v38  ;;  %v11502_v37 = vld [vmem:[#allocation2 + $0x3d4] ss:$8 sps:$4 sm:$0xff]  }
 0x10e   : > { %1726 = vmatprep.mubr.bf16.mxu0 %v11463_v40  ;;  %2080 = vmatprep.mubr.bf16.mxu1 %v11466_v41 }
 0x115   : > { %1727 = vmatmul.mubr.bf16.gmra.mrb[92].mxu0 %v11465_v43  ;;  %2081 = vmatmul.mubr.bf16.gmra.mrb[92].mxu1 %v11468_v44 }
 0x116   : > { %1734 = vmatprep.mubr.bf16.mxu0 %v11469_v46  ;;  %2088 = vmatprep.mubr.bf16.mxu1 %v11472_v48 }
 0x11d   : > { %1735 = vmatmul.mubr.bf16.gmra.mrb[96].mxu0 %v11471_v50  ;;  %2089 = vmatmul.mubr.bf16.gmra.mrb[96].mxu1 %v11474_v51 }
 0x11e   : > { %1742 = vmatprep.mubr.bf16.mxu0 %v11475_v52  ;;  %2096 = vmatprep.mubr.bf16.mxu1 %v11478_v53  ;;  %v11501_v52 = vld [vmem:[#allocation2 + $0x2d0] ss:$8 sps:$4 sm:$0xff]  }
 0x11f   : > { %v11504_v53 = vld [vmem:[#allocation2 + $0x3d0] ss:$8 sps:$4 sm:$0xff]  }
 0x125   : > { %1743 = vmatmul.mubr.bf16.gmra.mrb[100].mxu0 %v11477_v54  ;;  %2097 = vmatmul.mubr.bf16.gmra.mrb[100].mxu1 %v11480_v55 }
 0x126   : > { %1750 = vmatprep.mubr.bf16.mxu0 %v11481_v56  ;;  %2104 = vmatprep.mubr.bf16.mxu1 %v11484_v57 }
 0x12d   : > { %1751 = vmatmul.mubr.bf16.gmra.mrb[104].mxu0 %v11483_v58  ;;  %2105 = vmatmul.mubr.bf16.gmra.mrb[104].mxu1 %v11486_v59  ;;  %v11505_v58 = vld [vmem:[#allocation2 + $0x2e4] ss:$8 sps:$4 sm:$0xff]  }
 0x12e   : > { %1758 = vmatprep.mubr.bf16.mxu0 %v11487_v60  ;;  %2112 = vmatprep.mubr.bf16.mxu1 %v11490_v61  ;;  %v11508_v59 = vld [vmem:[#allocation2 + $0x3e4] ss:$8 sps:$4 sm:$0xff]  }
 0x130   : > { %v9479_v62 = vpop.f32.mrb[0].mxu0  ;;  %v9591_v63 = vpop.f32.mrb[0].mxu1 }
 0x131   : > { %v9480_v0 = vpop.f32.mrb[1].mxu0  ;;  %v9592_v1 = vpop.f32.mrb[1].mxu1 }
 0x132   : > { %v12977_v5 = vadd.f32 %v9480_v0, %v9479_v62  ;;  %v9482_v6 = vpop.f32.mrb[2].mxu0  ;;  %v9594_v9 = vpop.f32.mrb[2].mxu1  ;;  %v9593_v10 = vadd.f32 %v9592_v1, %v9591_v63 }
 0x133   : > { %v9483_v15 = vpop.f32.mrb[3].mxu0  ;;  %v9595_v16 = vpop.f32.mrb[3].mxu1 }
 0x134   : > { %v12979_v17 = vadd.f32 %v9483_v15, %v9482_v6  ;;  %v9596_v18 = vadd.f32 %v9595_v16, %v9594_v9  ;;  %v11507_v9 = vld [vmem:[#allocation2 + $0x2e0] ss:$8 sps:$4 sm:$0xff]  }
 0x135   : > { %1759 = vmatmul.mubr.bf16.gmra.mrb[108].mxu0 %v11489_v2  ;;  %2113 = vmatmul.mubr.bf16.gmra.mrb[108].mxu1 %v11492_v4 }
 0x136   : > { %v11085_v21 = vpack.i.bf16 %v9596_v18, %v9593_v10  ;;  %1766 = vmatprep.mubr.bf16.mxu0 %v11493_v11  ;;  %2120 = vmatprep.mubr.bf16.mxu1 %v11496_v12  ;;  %v11510_v10 = vld [vmem:[#allocation2 + $0x3e0] ss:$8 sps:$4 sm:$0xff]   ;;  %v11511_v18 = vld [vmem:[#allocation2 + $0x2f4] ss:$8 sps:$4 sm:$0xff]  }
 0x138   : > { %v9597_v22 = vpop.f32.mrb[4].mxu1  ;;  %11086 = vrot.lane.b32.xlu0 %v11085_v21, %s12678_s25  ;;  %v9485_v23 = vpop.f32.mrb[4].mxu0  ;;  %v11514_v21 = vld [vmem:[#allocation2 + $0x3f4] ss:$8 sps:$4 sm:$0xff]  }
 0x139   : > { %v9486_v24 = vpop.f32.mrb[5].mxu0  ;;  %v9598_v25 = vpop.f32.mrb[5].mxu1 }
 0x13a   : > { %v12982_v29 = vadd.f32 %v9486_v24, %v9485_v23  ;;  %v9599_v31 = vadd.f32 %v9598_v25, %v9597_v22  ;;  %v9488_v32 = vpop.f32.mrb[6].mxu0  ;;  %v9600_v34 = vpop.f32.mrb[6].mxu1 }
 0x13b   : > { %v9489_v38 = vpop.f32.mrb[7].mxu0  ;;  %v9601_v40 = vpop.f32.mrb[7].mxu1 }
 0x13c   : > { %v12984_v41 = vadd.f32 %v9489_v38, %v9488_v32  ;;  %v9602_v43 = vadd.f32 %v9601_v40, %v9600_v34 }
 0x13d   : > { %1767 = vmatmul.mubr.bf16.gmra.mrb[112].mxu0 %v11495_v26  ;;  %2121 = vmatmul.mubr.bf16.gmra.mrb[112].mxu1 %v11498_v27 }
 0x13e   : > { %v11090_v44 = vpack.i.bf16 %v9602_v43, %v9599_v31  ;;  %1774 = vmatprep.mubr.bf16.mxu0 %v11499_v36  ;;  %2128 = vmatprep.mubr.bf16.mxu1 %v11502_v37  ;;  %v11513_v36 = vld [vmem:[#allocation2 + $0x2f0] ss:$8 sps:$4 sm:$0xff]  }
 0x13f   : > { %v11516_v37 = vld [vmem:[#allocation2 + $0x3f0] ss:$8 sps:$4 sm:$0xff]  }
 0x140   : > { %v9603_v46 = vpop.f32.mrb[8].mxu1  ;;  %11091 = vrot.lane.b32.xlu0 %v11090_v44, %s12678_s25  ;;  %v9491_v48 = vpop.f32.mrb[8].mxu0 }
 0x141   : > { %v9492_v50 = vpop.f32.mrb[9].mxu0  ;;  %v9604_v51 = vpop.f32.mrb[9].mxu1 }
 0x142   : > { %v12987_v54 = vadd.f32 %v9492_v50, %v9491_v48  ;;  %v9605_v55 = vadd.f32 %v9604_v51, %v9603_v46  ;;  %v9494_v56 = vpop.f32.mrb[10].mxu0  ;;  %v9606_v57 = vpop.f32.mrb[10].mxu1 }
 0x143   : > { %v9495_v60 = vpop.f32.mrb[11].mxu0  ;;  %v9607_v61 = vpop.f32.mrb[11].mxu1 }
 0x144   : > { %v12989_v62 = vadd.f32 %v9495_v60, %v9494_v56  ;;  %v9608_v63 = vadd.f32 %v9607_v61, %v9606_v57 }
 0x145   : > { %1775 = vmatmul.mubr.bf16.gmra.mrb[116].mxu0 %v11501_v52  ;;  %2129 = vmatmul.mubr.bf16.gmra.mrb[116].mxu1 %v11504_v53 }
 0x146   : > { %v11095_v0 = vpack.i.bf16 %v9608_v63, %v9605_v55  ;;  %1782 = vmatprep.mubr.bf16.mxu0 %v11505_v58  ;;  %2136 = vmatprep.mubr.bf16.mxu1 %v11508_v59 }
 0x148   : > { %v9609_v1 = vpop.f32.mrb[12].mxu1  ;;  %11096 = vrot.lane.b32.xlu0 %v11095_v0, %s12678_s25  ;;  %v9497_v2 = vpop.f32.mrb[12].mxu0 }
 0x149   : > { %v9498_v4 = vpop.f32.mrb[13].mxu0  ;;  %v9610_v6 = vpop.f32.mrb[13].mxu1 }
 0x14a   : > { %v12992_v11 = vadd.f32 %v9498_v4, %v9497_v2  ;;  %v9500_v12 = vpop.f32.mrb[14].mxu0  ;;  %v9612_v15 = vpop.f32.mrb[14].mxu1  ;;  %v9611_v16 = vadd.f32 %v9610_v6, %v9609_v1 }
 0x14b   : > { %v9501_v22 = vpop.f32.mrb[15].mxu0  ;;  %v9613_v23 = vpop.f32.mrb[15].mxu1 }
 0x14c   : > { %v12994_v24 = vadd.f32 %v9501_v22, %v9500_v12  ;;  %v9614_v25 = vadd.f32 %v9613_v23, %v9612_v15 }
 0x14d   : > { %1783 = vmatmul.mubr.bf16.gmra.mrb[120].mxu0 %v11507_v9  ;;  %2137 = vmatmul.mubr.bf16.gmra.mrb[120].mxu1 %v11510_v10 }
 0x14e   : > { %v11100_v26 = vpack.i.bf16 %v9614_v25, %v9611_v16  ;;  %1790 = vmatprep.mubr.bf16.mxu0 %v11511_v18  ;;  %2144 = vmatprep.mubr.bf16.mxu1 %v11514_v21 }
 0x150   : > { %v9615_v27 = vpop.f32.mrb[16].mxu1  ;;  %11101 = vrot.lane.b32.xlu1 %v11100_v26, %s12678_s25  ;;  %v9503_v31 = vpop.f32.mrb[16].mxu0 }
 0x151   : > { %v9504_v32 = vpop.f32.mrb[17].mxu0  ;;  %v9616_v34 = vpop.f32.mrb[17].mxu1 }
 0x152   : > { %v12997_v38 = vadd.f32 %v9504_v32, %v9503_v31  ;;  %v9617_v40 = vadd.f32 %v9616_v34, %v9615_v27  ;;  %v9506_v43 = vpop.f32.mrb[18].mxu0  ;;  %v9618_v44 = vpop.f32.mrb[18].mxu1 }
 0x153   : > { %v9507_v46 = vpop.f32.mrb[19].mxu0  ;;  %v9619_v48 = vpop.f32.mrb[19].mxu1 }
 0x154   : > { %v12999_v50 = vadd.f32 %v9507_v46, %v9506_v43  ;;  %v9620_v51 = vadd.f32 %v9619_v48, %v9618_v44 }
 0x155   : > { %1791 = vmatmul.mubr.bf16.gmra.mrb[124].mxu0 %v11513_v36  ;;  %2145 = vmatmul.mubr.bf16.gmra.mrb[124].mxu1 %v11516_v37 }
 0x156   : > { %v11105_v52 = vpack.i.bf16 %v9620_v51, %v9617_v40 }
 0x158   : > { %v9621_v53 = vpop.f32.mrb[20].mxu1  ;;  %11106 = vrot.lane.b32.xlu0 %v11105_v52, %s12678_s25  ;;  %v9509_v55 = vpop.f32.mrb[20].mxu0 }
 0x159   : > { %v9510_v56 = vpop.f32.mrb[21].mxu0  ;;  %v9622_v57 = vpop.f32.mrb[21].mxu1 }
 0x15a   : > { %v13002_v58 = vadd.f32 %v9510_v56, %v9509_v55  ;;  %v9623_v59 = vadd.f32 %v9622_v57, %v9621_v53  ;;  %v9512_v60 = vpop.f32.mrb[22].mxu0  ;;  %v9624_v61 = vpop.f32.mrb[22].mxu1 }
 0x15b   : > { %v9513_v63 = vpop.f32.mrb[23].mxu0  ;;  %v9625_v0 = vpop.f32.mrb[23].mxu1 }
 0x15c   : > { %v13004_v1 = vadd.f32 %v9513_v63, %v9512_v60  ;;  %v9626_v2 = vadd.f32 %v9625_v0, %v9624_v61 }
 0x15e   : > { %v11110_v4 = vpack.i.bf16 %v9626_v2, %v9623_v59 }
 0x160   : > { %v9627_v6 = vpop.f32.mrb[24].mxu1  ;;  %11111 = vrot.lane.b32.xlu1 %v11110_v4, %s12678_s25  ;;  %v9515_v9 = vpop.f32.mrb[24].mxu0 }
 0x161   : > { %v9516_v10 = vpop.f32.mrb[25].mxu0  ;;  %v9628_v12 = vpop.f32.mrb[25].mxu1 }
 0x162   : > { %v13007_v15 = vadd.f32 %v9516_v10, %v9515_v9  ;;  %v9629_v16 = vadd.f32 %v9628_v12, %v9627_v6  ;;  %v9518_v18 = vpop.f32.mrb[26].mxu0  ;;  %v9630_v21 = vpop.f32.mrb[26].mxu1  ;;  %v11517_v10 = vld [vmem:[%s15454_s0] sm:$0xff]  }
 0x163   : > { %v9519_v22 = vpop.f32.mrb[27].mxu0  ;;  %v9631_v23 = vpop.f32.mrb[27].mxu1  ;;  %10330 = vmatprep.subr.bf16.mxu1 %v11517_v10 }
 0x164   : > { %v13009_v25 = vadd.f32 %v9519_v22, %v9518_v18  ;;  %v9632_v26 = vadd.f32 %v9631_v23, %v9630_v21  ;;  %10331 = vmatpush3.bf16.msra.mxu1 %v11517_v10 }
 0x166   : > { %v11115_v27 = vpack.i.bf16 %v9632_v26, %v9629_v16 }
 0x168   : > { %v9633_v31 = vpop.f32.mrb[28].mxu1  ;;  %11116 = vrot.lane.b32.xlu0 %v11115_v27, %s12678_s25  ;;  %v9521_v32 = vpop.f32.mrb[28].mxu0 }
 0x169   : > { %v9522_v34 = vpop.f32.mrb[29].mxu0  ;;  %v9634_v36 = vpop.f32.mrb[29].mxu1 }
 0x16a   : > { %v13012_v37 = vadd.f32 %v9522_v34, %v9521_v32  ;;  %v9635_v40 = vadd.f32 %v9634_v36, %v9633_v31  ;;  %v9524_v43 = vpop.f32.mrb[30].mxu0  ;;  %v9636_v44 = vpop.f32.mrb[30].mxu1 }
 0x16b   : > { %v9525_v46 = vpop.f32.mrb[31].mxu0  ;;  %v9637_v48 = vpop.f32.mrb[31].mxu1 }
 0x16c   : > { %v13014_v51 = vadd.f32 %v9525_v46, %v9524_v43  ;;  %v9638_v52 = vadd.f32 %v9637_v48, %v9636_v44 }
 0x16e   : > { %v11120_v53 = vpack.i.bf16 %v9638_v52, %v9635_v40 }
 0x170   : > { %v9639_v55 = vpop.f32.mrb[32].mxu1  ;;  %11121 = vrot.lane.b32.xlu1 %v11120_v53, %s12678_s25  ;;  %v9527_v56 = vpop.f32.mrb[32].mxu0 }
 0x171   : > { %v9528_v57 = vpop.f32.mrb[33].mxu0  ;;  %v9640_v59 = vpop.f32.mrb[33].mxu1 }
 0x172   : > { %v13017_v60 = vadd.f32 %v9528_v57, %v9527_v56  ;;  %v9641_v61 = vadd.f32 %v9640_v59, %v9639_v55  ;;  %v9530_v63 = vpop.f32.mrb[34].mxu0  ;;  %v9642_v0 = vpop.f32.mrb[34].mxu1 }
 0x173   : > { %v9531_v2 = vpop.f32.mrb[35].mxu0  ;;  %v9643_v4 = vpop.f32.mrb[35].mxu1 }
 0x174   : > { %v13019_v6 = vadd.f32 %v9531_v2, %v9530_v63  ;;  %v9644_v9 = vadd.f32 %v9643_v4, %v9642_v0 }
 0x176   : > { %v11125_v12 = vpack.i.bf16 %v9644_v9, %v9641_v61 }
 0x178   : > { %v9645_v16 = vpop.f32.mrb[36].mxu1  ;;  %11126 = vrot.lane.b32.xlu0 %v11125_v12, %s12678_s25  ;;  %v9533_v18 = vpop.f32.mrb[36].mxu0 }
 0x179   : > { %v9534_v21 = vpop.f32.mrb[37].mxu0  ;;  %v9646_v22 = vpop.f32.mrb[37].mxu1 }
 0x17a   : > { %v13025_v23 = vadd.f32 %v9534_v21, %v9533_v18  ;;  %v9647_v26 = vadd.f32 %v9646_v22, %v9645_v16  ;;  %v9536_v27 = vpop.f32.mrb[38].mxu0  ;;  %v9648_v31 = vpop.f32.mrb[38].mxu1 }
 0x17b   : > { %v9537_v32 = vpop.f32.mrb[39].mxu0  ;;  %v9649_v34 = vpop.f32.mrb[39].mxu1 }
 0x17c   : > { %v13027_v36 = vadd.f32 %v9537_v32, %v9536_v27  ;;  %v9650_v40 = vadd.f32 %v9649_v34, %v9648_v31  ;;  %v11518_v34 = vld [vmem:[%s15455_s23] sm:$0xff]  }
 0x17d   : > { %10294 = vmatprep.subr.bf16.mxu0 %v11518_v34 }
 0x17e   : > { %v11130_v43 = vpack.i.bf16 %v9650_v40, %v9647_v26  ;;  %10295 = vmatpush3.bf16.msra.mxu0 %v11518_v34 }
 0x180   : > { %v9651_v44 = vpop.f32.mrb[40].mxu1  ;;  %11131 = vrot.lane.b32.xlu1 %v11130_v43, %s12678_s25  ;;  %v9539_v46 = vpop.f32.mrb[40].mxu0 }
 0x181   : > { %v9540_v48 = vpop.f32.mrb[41].mxu0  ;;  %v9652_v52 = vpop.f32.mrb[41].mxu1 }
 0x182   : > { %v13030_v53 = vadd.f32 %v9540_v48, %v9539_v46  ;;  %v9653_v55 = vadd.f32 %v9652_v52, %v9651_v44  ;;  %v9542_v56 = vpop.f32.mrb[42].mxu0  ;;  %v9654_v57 = vpop.f32.mrb[42].mxu1 }
 0x183   : > { %v9543_v59 = vpop.f32.mrb[43].mxu0  ;;  %v9655_v61 = vpop.f32.mrb[43].mxu1 }
 0x184   : > { %v13032_v63 = vadd.f32 %v9543_v59, %v9542_v56  ;;  %v9656_v0 = vadd.f32 %v9655_v61, %v9654_v57 }
 0x186   : > { %v11135_v2 = vpack.i.bf16 %v9656_v0, %v9653_v55 }
 0x188   : > { %v9657_v4 = vpop.f32.mrb[44].mxu1  ;;  %11136 = vrot.lane.b32.xlu0 %v11135_v2, %s12678_s25  ;;  %v9545_v9 = vpop.f32.mrb[44].mxu0 }
 0x189   : > { %v9546_v10 = vpop.f32.mrb[45].mxu0  ;;  %v9658_v12 = vpop.f32.mrb[45].mxu1 }
 0x18a   : > { %v13035_v16 = vadd.f32 %v9546_v10, %v9545_v9  ;;  %v9659_v18 = vadd.f32 %v9658_v12, %v9657_v4  ;;  %v9548_v21 = vpop.f32.mrb[46].mxu0  ;;  %v9660_v22 = vpop.f32.mrb[46].mxu1 }
 0x18b   : > { %v9549_v26 = vpop.f32.mrb[47].mxu0  ;;  %v9661_v27 = vpop.f32.mrb[47].mxu1 }
 0x18c   : > { %v13037_v31 = vadd.f32 %v9549_v26, %v9548_v21  ;;  %v9662_v32 = vadd.f32 %v9661_v27, %v9660_v22 }
 0x18e   : > { %v11140_v40 = vpack.i.bf16 %v9662_v32, %v9659_v18 }
 0x190   : > { %v9663_v43 = vpop.f32.mrb[48].mxu1  ;;  %11141 = vrot.lane.b32.xlu1 %v11140_v40, %s12678_s25  ;;  %v9551_v44 = vpop.f32.mrb[48].mxu0 }
 0x191   : > { %v9552_v46 = vpop.f32.mrb[49].mxu0  ;;  %v9664_v48 = vpop.f32.mrb[49].mxu1 }
 0x192   : > { %v13043_v52 = vadd.f32 %v9552_v46, %v9551_v44  ;;  %v9665_v55 = vadd.f32 %v9664_v48, %v9663_v43  ;;  %v9554_v56 = vpop.f32.mrb[50].mxu0  ;;  %v9666_v57 = vpop.f32.mrb[50].mxu1 }
 0x193   : > { %v9555_v59 = vpop.f32.mrb[51].mxu0  ;;  %v9667_v61 = vpop.f32.mrb[51].mxu1 }
 0x194   : > { %v13045_v0 = vadd.f32 %v9555_v59, %v9554_v56  ;;  %v9668_v2 = vadd.f32 %v9667_v61, %v9666_v57 }
 0x196   : > { %v11145_v4 = vpack.i.bf16 %v9668_v2, %v9665_v55 }
 0x198   : > { %v9669_v9 = vpop.f32.mrb[52].mxu1  ;;  %11146 = vrot.lane.b32.xlu0 %v11145_v4, %s12678_s25  ;;  %v9557_v10 = vpop.f32.mrb[52].mxu0 }
 0x199   : > { %v9558_v12 = vpop.f32.mrb[53].mxu0  ;;  %v9670_v18 = vpop.f32.mrb[53].mxu1 }
 0x19a   : > { %v13048_v21 = vadd.f32 %v9558_v12, %v9557_v10  ;;  %v9671_v22 = vadd.f32 %v9670_v18, %v9669_v9  ;;  %v9560_v26 = vpop.f32.mrb[54].mxu0  ;;  %v9672_v27 = vpop.f32.mrb[54].mxu1 }
 0x19b   : > { %v9561_v32 = vpop.f32.mrb[55].mxu0  ;;  %v9673_v34 = vpop.f32.mrb[55].mxu1 }
 0x19c   : > { %v13050_v40 = vadd.f32 %v9561_v32, %v9560_v26  ;;  %v9674_v43 = vadd.f32 %v9673_v34, %v9672_v27 }
 0x19e   : > { %v11150_v44 = vpack.i.bf16 %v9674_v43, %v9671_v22 }
 0x1a0   : > { %v9675_v46 = vpop.f32.mrb[56].mxu1  ;;  %11151 = vrot.lane.b32.xlu1 %v11150_v44, %s12678_s25  ;;  %v9563_v48 = vpop.f32.mrb[56].mxu0 }
 0x1a1   : > { %v9564_v55 = vpop.f32.mrb[57].mxu0  ;;  %v9676_v56 = vpop.f32.mrb[57].mxu1 }
 0x1a2   : > { %v13053_v57 = vadd.f32 %v9564_v55, %v9563_v48  ;;  %v9677_v59 = vadd.f32 %v9676_v56, %v9675_v46  ;;  %v9566_v61 = vpop.f32.mrb[58].mxu0  ;;  %v9678_v2 = vpop.f32.mrb[58].mxu1 }
 0x1a3   : > { %v9567_v4 = vpop.f32.mrb[59].mxu0  ;;  %v9679_v9 = vpop.f32.mrb[59].mxu1 }
 0x1a4   : > { %v13055_v10 = vadd.f32 %v9567_v4, %v9566_v61  ;;  %v9680_v12 = vadd.f32 %v9679_v9, %v9678_v2 }
 0x1a6   : > { %v11155_v18 = vpack.i.bf16 %v9680_v12, %v9677_v59 }
 0x1a8   : > { %v9681_v26 = vpop.f32.mrb[60].mxu1  ;;  %11156 = vrot.lane.b32.xlu0 %v11155_v18, %s12678_s25  ;;  %v9569_v22 = vpop.f32.mrb[60].mxu0 }
 0x1a9   : > { %v9570_v27 = vpop.f32.mrb[61].mxu0  ;;  %v9682_v32 = vpop.f32.mrb[61].mxu1 }
 0x1aa   : > { %v13058_v34 = vadd.f32 %v9570_v27, %v9569_v22  ;;  %v9683_v43 = vadd.f32 %v9682_v32, %v9681_v26  ;;  %v9684_v44 = vpop.f32.mrb[62].mxu1  ;;  %v9572_v48 = vpop.f32.mrb[62].mxu0 }
 0x1ab   : > { %v9685_v46 = vpop.f32.mrb[63].mxu1  ;;  %v9573_v55 = vpop.f32.mrb[63].mxu0 }
 0x1ac   : > { %v9686_v56 = vadd.f32 %v9685_v46, %v9684_v44  ;;  %v13060_v47 = vadd.f32 %v9573_v55, %v9572_v48  ;;  %v11519_v44 = vld [vmem:[%s15454_s0 + $0x8] sm:$0xff]  }
 0x1ad   : > { %10332 = vmatprep.subr.bf16.mxu1 %v11519_v44  ;;  %v11520_v46 = vld [vmem:[%s15455_s23 + $0x8] sm:$0xff]  }
 0x1ae   : > { %v11160_v61 = vpack.i.bf16 %v9686_v56, %v9683_v43  ;;  %10333 = vmatpush3.bf16.msra.mxu1 %v11519_v44  ;;  %10296 = vmatprep.subr.bf16.mxu0 %v11520_v46 }
 0x1af   : > { %10297 = vmatpush3.bf16.msra.mxu0 %v11520_v46 }
 0x1b0   : > { %11161 = vrot.lane.b32.xlu1 %v11160_v61, %s12678_s25  ;;  %v9703_v59 = vpop.f32.mrb[64].mxu0  ;;  %v9815_v2 = vpop.f32.mrb[64].mxu1  ;;  %s12680_s25 = smov 24  }
 0x1b1   : > { %v9704_v4 = vpop.f32.mrb[65].mxu0  ;;  %v9816_v9 = vpop.f32.mrb[65].mxu1 }
 0x1b2   : > { %v9705_v12 = vadd.f32 %v9704_v4, %v9703_v59  ;;  %v9817_v18 = vadd.f32 %v9816_v9, %v9815_v2  ;;  %v9706_v42 = vpop.f32.mrb[66].mxu0  ;;  %v9818_v27 = vpop.f32.mrb[66].mxu1 }
 0x1b3   : > { %v9707_v22 = vpop.f32.mrb[67].mxu0  ;;  %v9819_v32 = vpop.f32.mrb[67].mxu1 }
 0x1b4   : > { %v9708_v26 = vadd.f32 %v9707_v22, %v9706_v42  ;;  %v9820_v35 = vadd.f32 %v9819_v32, %v9818_v27 }
 0x1b6   : > { %v11165_v48 = vpack.i.bf16 %v9708_v26, %v9705_v12  ;;  %v11170_v43 = vpack.i.bf16 %v9820_v35, %v9817_v18 }
 0x1b8   : > { %v9709_v55 = vpop.f32.mrb[68].mxu0  ;;  %11166 = vrot.lane.b32.xlu1 %v11165_v48, %s12679_s26  ;;  %v9821_v56 = vpop.f32.mrb[68].mxu1  ;;  %11171 = vrot.lane.b32.xlu0 %v11170_v43, %s12680_s25 }
 0x1b9   : > { %v9710_v42 = vpop.f32.mrb[69].mxu0  ;;  %v9822_v61 = vpop.f32.mrb[69].mxu1 }
 0x1ba   : > { %v9711_v59 = vadd.f32 %v9710_v42, %v9709_v55  ;;  %v9712_v2 = vpop.f32.mrb[70].mxu0  ;;  %v9823_v35 = vadd.f32 %v9822_v61, %v9821_v56  ;;  %v9824_v9 = vpop.f32.mrb[70].mxu1 }
 0x1bb   : > { %v9713_v4 = vpop.f32.mrb[71].mxu0  ;;  %v9825_v18 = vpop.f32.mrb[71].mxu1 }
 0x1bc   : > { %v9714_v12 = vadd.f32 %v9713_v4, %v9712_v2  ;;  %v9826_v22 = vadd.f32 %v9825_v18, %v9824_v9  ;;  %v13073_v2 = vpop.permute.xlu0 %11086 }
 0x1be   : > { %v11175_v27 = vpack.i.bf16 %v9714_v12, %v9711_v59  ;;  %v11180_v26 = vpack.i.bf16 %v9826_v22, %v9823_v35 }
 0x1c0   : > { %v9715_v32 = vpop.f32.mrb[72].mxu0  ;;  %11176 = vrot.lane.b32.xlu1 %v11175_v27, %s12679_s26  ;;  %v9827_v44 = vpop.f32.mrb[72].mxu1 }
 0x1c1   : > { %v9716_v48 = vpop.f32.mrb[73].mxu0  ;;  %v9828_v43 = vpop.f32.mrb[73].mxu1 }
 0x1c2   : > { %v9717_v30 = vadd.f32 %v9716_v48, %v9715_v32  ;;  %v9718_v20 = vpop.f32.mrb[74].mxu0  ;;  %v9829_v14 = vadd.f32 %v9828_v43, %v9827_v44  ;;  %v9830_v42 = vpop.f32.mrb[74].mxu1 }
 0x1c3   : > { %v9719_v55 = vpop.f32.mrb[75].mxu0  ;;  %v9831_v46 = vpop.f32.mrb[75].mxu1 }
 0x1c4   : > { %v9720_v56 = vadd.f32 %v9719_v55, %v9718_v20  ;;  %11181 = vrot.lane.b32.xlu1 %v11180_v26, %s12680_s25  ;;  %v9832_v61 = vadd.f32 %v9831_v46, %v9830_v42  ;;  %v13076_v22 = vpop.permute.xlu0 %11091 }
 0x1c6   : > { %v11185_v59 = vpack.i.bf16 %v9720_v56, %v9717_v30  ;;  %v11190_v35 = vpack.i.bf16 %v9832_v61, %v9829_v14  ;;  %v13079_v30 = vpop.permute.xlu1 %11101 }
 0x1c8   : > { %v9721_v4 = vpop.f32.mrb[76].mxu0  ;;  %11186 = vrot.lane.b32.xlu0 %v11185_v59, %s12679_s26  ;;  %v9833_v9 = vpop.f32.mrb[76].mxu1 }
 0x1c9   : > { %v9722_v12 = vpop.f32.mrb[77].mxu0  ;;  %v9834_v18 = vpop.f32.mrb[77].mxu1 }
 0x1ca   : > { %v9723_v27 = vadd.f32 %v9722_v12, %v9721_v4  ;;  %v9724_v32 = vpop.f32.mrb[78].mxu0  ;;  %v9835_v44 = vadd.f32 %v9834_v18, %v9833_v9  ;;  %v9836_v48 = vpop.f32.mrb[78].mxu1 }
 0x1cb   : > { %v9725_v20 = vpop.f32.mrb[79].mxu0  ;;  %v9837_v43 = vpop.f32.mrb[79].mxu1 }
 0x1cc   : > { %v9726_v26 = vadd.f32 %v9725_v20, %v9724_v32  ;;  %11191 = vrot.lane.b32.xlu0 %v11190_v35, %s12680_s25  ;;  %v9838_v55 = vadd.f32 %v9837_v43, %v9836_v48  ;;  %v13081_v42 = vpop.permute.xlu0 %11096 }
 0x1ce   : > { %v11195_v14 = vpack.i.bf16 %v9726_v26, %v9723_v27  ;;  %v11200_v56 = vpack.i.bf16 %v9838_v55, %v9835_v44 }
 0x1d0   : > { %v9727_v46 = vpop.f32.mrb[80].mxu0  ;;  %11196 = vrot.lane.b32.xlu1 %v11195_v14, %s12679_s26  ;;  %v9839_v61 = vpop.f32.mrb[80].mxu1 }
 0x1d1   : > { %v9728_v59 = vpop.f32.mrb[81].mxu0  ;;  %v9840_v4 = vpop.f32.mrb[81].mxu1 }
 0x1d2   : > { %v9729_v9 = vadd.f32 %v9728_v59, %v9727_v46  ;;  %v11112_v12 = vpop.permute.xlu1 %11111  ;;  %v9730_v18 = vpop.f32.mrb[82].mxu0  ;;  %v9841_v32 = vadd.f32 %v9840_v4, %v9839_v61 }
 0x1d3   : > { %v11114_v20 = vunpack.i.h.bf16 %v11112_v12  ;;  %v11113_v35 = vunpack.i.l.bf16 %v11112_v12  ;;  %v9731_v8 = vpop.f32.mrb[83].mxu0  ;;  %v9842_v48 = vpop.f32.mrb[82].mxu1 }
 0x1d4   : > { %v9732_v43 = vadd.f32 %v9731_v8, %v9730_v18  ;;  %11201 = vrot.lane.b32.xlu1 %v11200_v56, %s12680_s25  ;;  %v9843_v27 = vpop.f32.mrb[83].mxu1  ;;  %v13093_v14 = vpop.permute.xlu0 %11106 }
 0x1d5   : > { %v13087_v44 = vsel %vm2537_vm0, %v13002_v58, %v11113_v35  ;;  %v13091_v26 = vsel %vm2537_vm0, %v13004_v1, %v11114_v20  ;;  %v9844_v55 = vadd.f32 %v9843_v27, %v9842_v48 }
 0x1d6   : > { %v11205_v46 = vpack.i.bf16 %v9732_v43, %v9729_v9 }
 0x1d7   : > { %v11210_v61 = vpack.i.bf16 %v9844_v55, %v9841_v32 }
 0x1d8   : > { %v9733_v59 = vpop.f32.mrb[84].mxu0  ;;  %11206 = vrot.lane.b32.xlu0 %v11205_v46, %s12679_s26  ;;  %v9845_v8 = vpop.f32.mrb[84].mxu1 }
 0x1d9   : > { %v9734_v4 = vpop.f32.mrb[85].mxu0  ;;  %v9846_v56 = vpop.f32.mrb[85].mxu1 }
 0x1da   : > { %v9735_v12 = vadd.f32 %v9734_v4, %v9733_v59  ;;  %v11117_v18 = vpop.permute.xlu0 %11116  ;;  %v9736_v3 = vpop.f32.mrb[86].mxu0  ;;  %v9847_v58 = vadd.f32 %v9846_v56, %v9845_v8 }
 0x1db   : > { %v11119_v35 = vunpack.i.h.bf16 %v11117_v18  ;;  %v11118_v49 = vunpack.i.l.bf16 %v11117_v18  ;;  %v9737_v45 = vpop.f32.mrb[87].mxu0  ;;  %v9848_v1 = vpop.f32.mrb[86].mxu1 }
 0x1dc   : > { %v9738_v20 = vadd.f32 %v9737_v45, %v9736_v3  ;;  %11211 = vrot.lane.b32.xlu0 %v11210_v61, %s12680_s25  ;;  %v9849_v48 = vpop.f32.mrb[87].mxu1 }
 0x1dd   : > { %v13099_v9 = vsel %vm2537_vm0, %v13007_v15, %v11118_v49  ;;  %v13103_v32 = vsel %vm2537_vm0, %v13009_v25, %v11119_v35  ;;  %v9850_v43 = vadd.f32 %v9849_v48, %v9848_v1 }
 0x1de   : > { %v11215_v27 = vpack.i.bf16 %v9738_v20, %v9735_v12 }
 0x1df   : > { %v11220_v55 = vpack.i.bf16 %v9850_v43, %v9847_v58 }
 0x1e0   : > { %v9739_v46 = vpop.f32.mrb[88].mxu0  ;;  %11216 = vrot.lane.b32.xlu1 %v11215_v27, %s12679_s26  ;;  %v9851_v59 = vpop.f32.mrb[88].mxu1 }
 0x1e1   : > { %v9740_v8 = vpop.f32.mrb[89].mxu0  ;;  %v9852_v3 = vpop.f32.mrb[89].mxu1 }
 0x1e2   : > { %v9741_v45 = vadd.f32 %v9740_v8, %v9739_v46  ;;  %v11122_v61 = vpop.permute.xlu1 %11121  ;;  %v9742_v4 = vpop.f32.mrb[90].mxu0  ;;  %v9853_v56 = vadd.f32 %v9852_v3, %v9851_v59 }
 0x1e3   : > { %v11124_v18 = vunpack.i.h.bf16 %v11122_v61  ;;  %v11123_v49 = vunpack.i.l.bf16 %v11122_v61  ;;  %v9743_v15 = vpop.f32.mrb[91].mxu0  ;;  %v9854_v39 = vpop.f32.mrb[90].mxu1 }
 0x1e4   : > { %v9744_v33 = vadd.f32 %v9743_v15, %v9742_v4  ;;  %11221 = vrot.lane.b32.xlu1 %v11220_v55, %s12680_s25  ;;  %v9855_v25 = vpop.f32.mrb[91].mxu1 }
 0x1e5   : > { %v13109_v12 = vsel %vm2537_vm0, %v13012_v37, %v11123_v49  ;;  %v13113_v58 = vsel %vm2537_vm0, %v13014_v51, %v11124_v18  ;;  %v9856_v35 = vadd.f32 %v9855_v25, %v9854_v39 }
 0x1e6   : > { %v11225_v1 = vpack.i.bf16 %v9744_v33, %v9741_v45 }
 0x1e7   : > { %v11230_v20 = vpack.i.bf16 %v9856_v35, %v9853_v56 }
 0x1e8   : > { %v9745_v48 = vpop.f32.mrb[92].mxu0  ;;  %11226 = vrot.lane.b32.xlu0 %v11225_v1, %s12679_s26  ;;  %v9857_v43 = vpop.f32.mrb[92].mxu1 }
 0x1e9   : > { %v9746_v27 = vpop.f32.mrb[93].mxu0  ;;  %v9858_v46 = vpop.f32.mrb[93].mxu1 }
 0x1ea   : > { %v9747_v59 = vadd.f32 %v9746_v27, %v9745_v48  ;;  %v11127_v55 = vpop.permute.xlu0 %11126  ;;  %v9748_v8 = vpop.f32.mrb[94].mxu0  ;;  %v9859_v3 = vadd.f32 %v9858_v46, %v9857_v43 }
 0x1eb   : > { %v11129_v61 = vunpack.i.h.bf16 %v11127_v55  ;;  %v11128_v37 = vunpack.i.l.bf16 %v11127_v55  ;;  %v9749_v4 = vpop.f32.mrb[95].mxu0  ;;  %v9860_v49 = vpop.f32.mrb[94].mxu1 }
 0x1ec   : > { %v9750_v15 = vadd.f32 %v9749_v4, %v9748_v8  ;;  %11231 = vrot.lane.b32.xlu0 %v11230_v20, %s12680_s25  ;;  %v9861_v39 = vpop.f32.mrb[95].mxu1 }
 0x1ed   : > { %v13119_v33 = vsel %vm2537_vm0, %v13017_v60, %v11128_v37  ;;  %v13123_v51 = vsel %vm2537_vm0, %v13019_v6, %v11129_v61  ;;  %v9862_v45 = vadd.f32 %v9861_v39, %v9860_v49  ;;  %v13138_v49 = vld [vmem:[%s15454_s0 + $0x10] sm:$0xff]  }
 0x1ee   : > { %v11235_v56 = vpack.i.bf16 %v9750_v15, %v9747_v59  ;;  %10402 = vmatprep.subr.bf16.mxu1 %v13138_v49 }
 0x1ef   : > { %v11240_v18 = vpack.i.bf16 %v9862_v45, %v9859_v3 }
 0x1f0   : > { %v9751_v25 = vpop.f32.mrb[96].mxu0  ;;  %11236 = vrot.lane.b32.xlu1 %v11235_v56, %s12679_s26  ;;  %v9863_v35 = vpop.f32.mrb[96].mxu1 }
 0x1f1   : > { %v9752_v1 = vpop.f32.mrb[97].mxu0  ;;  %v9864_v48 = vpop.f32.mrb[97].mxu1 }
 0x1f2   : > { %v9753_v43 = vadd.f32 %v9752_v1, %v9751_v25  ;;  %v11132_v20 = vpop.permute.xlu1 %11131  ;;  %v9754_v27 = vpop.f32.mrb[98].mxu0  ;;  %v9865_v46 = vadd.f32 %v9864_v48, %v9863_v35 }
 0x1f3   : > { %v11134_v55 = vunpack.i.h.bf16 %v11132_v20  ;;  %v11133_v60 = vunpack.i.l.bf16 %v11132_v20  ;;  %v9755_v8 = vpop.f32.mrb[99].mxu0  ;;  %v9866_v37 = vpop.f32.mrb[98].mxu1 }
 0x1f4   : > { %v9756_v4 = vadd.f32 %v9755_v8, %v9754_v27  ;;  %11241 = vrot.lane.b32.xlu1 %v11240_v18, %s12680_s25  ;;  %v9867_v6 = vpop.f32.mrb[99].mxu1 }
 0x1f5   : > { %v13129_v59 = vsel %vm2537_vm0, %v13025_v23, %v11133_v60  ;;  %v13133_v3 = vsel %vm2537_vm0, %v13027_v36, %v11134_v55  ;;  %v9868_v61 = vadd.f32 %v9867_v6, %v9866_v37 }
 0x1f6   : > { %v11245_v15 = vpack.i.bf16 %v9756_v4, %v9753_v43 }
 0x1f7   : > { %v11250_v39 = vpack.i.bf16 %v9868_v61, %v9865_v46 }
 0x1f8   : > { %v9757_v45 = vpop.f32.mrb[100].mxu0  ;;  %11246 = vrot.lane.b32.xlu0 %v11245_v15, %s12679_s26  ;;  %v9869_v56 = vpop.f32.mrb[100].mxu1 }
 0x1f9   : > { %v9758_v23 = vpop.f32.mrb[101].mxu0  ;;  %v9870_v18 = vpop.f32.mrb[101].mxu1 }
 0x1fa   : > { %v9759_v25 = vadd.f32 %v9758_v23, %v9757_v45  ;;  %v11137_v35 = vpop.permute.xlu0 %11136  ;;  %v9760_v36 = vpop.f32.mrb[102].mxu0  ;;  %v9871_v1 = vadd.f32 %v9870_v18, %v9869_v56 }
 0x1fb   : > { %v11139_v48 = vunpack.i.h.bf16 %v11137_v35  ;;  %v11138_v20 = vunpack.i.l.bf16 %v11137_v35  ;;  %v9761_v27 = vpop.f32.mrb[103].mxu0  ;;  %v9872_v55 = vpop.f32.mrb[102].mxu1 }
 0x1fc   : > { %v9762_v60 = vadd.f32 %v9761_v27, %v9760_v36  ;;  %11251 = vrot.lane.b32.xlu0 %v11250_v39, %s12680_s25  ;;  %v9873_v43 = vpop.f32.mrb[103].mxu1 }
 0x1fd   : > { %v13145_v46 = vsel %vm2537_vm0, %v13030_v53, %v11138_v20  ;;  %v13149_v8 = vsel %vm2537_vm0, %v13032_v63, %v11139_v48  ;;  %v9874_v37 = vadd.f32 %v9873_v43, %v9872_v55 }
 0x1fe   : > { %v11255_v4 = vpack.i.bf16 %v9762_v60, %v9759_v25 }
 0x1ff   : > { %v11260_v6 = vpack.i.bf16 %v9874_v37, %v9871_v1 }
 0x200   : > { %v9763_v61 = vpop.f32.mrb[104].mxu0  ;;  %11256 = vrot.lane.b32.xlu1 %v11255_v4, %s12679_s26  ;;  %v9875_v15 = vpop.f32.mrb[104].mxu1 }
 0x201   : > { %v9764_v45 = vpop.f32.mrb[105].mxu0  ;;  %v9876_v56 = vpop.f32.mrb[105].mxu1 }
 0x202   : > { %v9765_v23 = vadd.f32 %v9764_v45, %v9763_v61  ;;  %v11142_v39 = vpop.permute.xlu1 %11141  ;;  %v9766_v18 = vpop.f32.mrb[106].mxu0  ;;  %v9877_v35 = vadd.f32 %v9876_v56, %v9875_v15 }
 0x203   : > { %v11144_v36 = vunpack.i.h.bf16 %v11142_v39  ;;  %v11143_v53 = vunpack.i.l.bf16 %v11142_v39  ;;  %v9767_v20 = vpop.f32.mrb[107].mxu0  ;;  %v9878_v27 = vpop.f32.mrb[106].mxu1 }
 0x204   : > { %v9768_v28 = vadd.f32 %v9767_v20, %v9766_v18  ;;  %11261 = vrot.lane.b32.xlu1 %v11260_v6, %s12680_s25  ;;  %v9879_v63 = vpop.f32.mrb[107].mxu1 }
 0x205   : > { %v13155_v25 = vsel %vm2537_vm0, %v13035_v16, %v11143_v53  ;;  %v13159_v1 = vsel %vm2537_vm0, %v13037_v31, %v11144_v36  ;;  %v9880_v48 = vadd.f32 %v9879_v63, %v9878_v27  ;;  %v13174_v36 = vld [vmem:[%s15455_s23 + $0x10] sm:$0xff]  }
 0x206   : > { %v11265_v55 = vpack.i.bf16 %v9768_v28, %v9765_v23  ;;  %10366 = vmatprep.subr.bf16.mxu0 %v13174_v36 }
 0x207   : > { %v11270_v60 = vpack.i.bf16 %v9880_v48, %v9877_v35 }
 0x208   : > { %v9769_v43 = vpop.f32.mrb[108].mxu0  ;;  %11266 = vrot.lane.b32.xlu0 %v11265_v55, %s12679_s26  ;;  %v9881_v37 = vpop.f32.mrb[108].mxu1 }
 0x209   : > { %v9770_v4 = vpop.f32.mrb[109].mxu0  ;;  %v9882_v61 = vpop.f32.mrb[109].mxu1 }
 0x20a   : > { %v9771_v15 = vadd.f32 %v9770_v4, %v9769_v43  ;;  %v11147_v6 = vpop.permute.xlu0 %11146  ;;  %v9772_v45 = vpop.f32.mrb[110].mxu0  ;;  %v9883_v56 = vadd.f32 %v9882_v61, %v9881_v37 }
 0x20b   : > { %v11149_v39 = vunpack.i.h.bf16 %v11147_v6  ;;  %v11148_v16 = vunpack.i.l.bf16 %v11147_v6  ;;  %v9773_v18 = vpop.f32.mrb[111].mxu0  ;;  %v9884_v53 = vpop.f32.mrb[110].mxu1 }
 0x20c   : > { %v9774_v20 = vadd.f32 %v9773_v18, %v9772_v45  ;;  %11271 = vrot.lane.b32.xlu0 %v11270_v60, %s12680_s25  ;;  %v9885_v31 = vpop.f32.mrb[111].mxu1 }
 0x20d   : > { %v13165_v28 = vsel %vm2537_vm0, %v13043_v52, %v11148_v16  ;;  %v13169_v23 = vsel %vm2537_vm0, %v13045_v0, %v11149_v39  ;;  %v9886_v35 = vadd.f32 %v9885_v31, %v9884_v53 }
 0x20e   : > { %v11275_v27 = vpack.i.bf16 %v9774_v20, %v9771_v15 }
 0x20f   : > { %v11280_v63 = vpack.i.bf16 %v9886_v35, %v9883_v56 }
 0x210   : > { %v9775_v48 = vpop.f32.mrb[112].mxu0  ;;  %11276 = vrot.lane.b32.xlu1 %v11275_v27, %s12679_s26  ;;  %v9887_v55 = vpop.f32.mrb[112].mxu1 }
 0x211   : > { %v9776_v52 = vpop.f32.mrb[113].mxu0  ;;  %v9888_v60 = vpop.f32.mrb[113].mxu1 }
 0x212   : > { %v9777_v43 = vadd.f32 %v9776_v52, %v9775_v48  ;;  %v11152_v37 = vpop.permute.xlu1 %11151  ;;  %v9778_v0 = vpop.f32.mrb[114].mxu0  ;;  %v9889_v4 = vadd.f32 %v9888_v60, %v9887_v55 }
 0x213   : > { %v11154_v61 = vunpack.i.h.bf16 %v11152_v37  ;;  %v11153_v6 = vunpack.i.l.bf16 %v11152_v37  ;;  %v9779_v45 = vpop.f32.mrb[115].mxu0  ;;  %v9890_v39 = vpop.f32.mrb[114].mxu1 }
 0x214   : > { %v9780_v16 = vadd.f32 %v9779_v45, %v9778_v0  ;;  %11281 = vrot.lane.b32.xlu1 %v11280_v63, %s12680_s25  ;;  %v9891_v15 = vpop.f32.mrb[115].mxu1 }
 0x215   : > { %v13181_v56 = vsel %vm2537_vm0, %v13048_v21, %v11153_v6  ;;  %v13185_v18 = vsel %vm2537_vm0, %v13050_v40, %v11154_v61  ;;  %v9892_v53 = vadd.f32 %v9891_v15, %v9890_v39 }
 0x216   : > { %v11285_v20 = vpack.i.bf16 %v9780_v16, %v9777_v43 }
 0x217   : > { %v11290_v31 = vpack.i.bf16 %v9892_v53, %v9889_v4 }
 0x218   : > { %v9781_v35 = vpop.f32.mrb[116].mxu0  ;;  %11286 = vrot.lane.b32.xlu0 %v11285_v20, %s12679_s26  ;;  %v9893_v27 = vpop.f32.mrb[116].mxu1 }
 0x219   : > { %v9782_v48 = vpop.f32.mrb[117].mxu0  ;;  %v9894_v55 = vpop.f32.mrb[117].mxu1 }
 0x21a   : > { %v9783_v52 = vadd.f32 %v9782_v48, %v9781_v35  ;;  %v11157_v63 = vpop.permute.xlu0 %11156  ;;  %v9784_v60 = vpop.f32.mrb[118].mxu0  ;;  %v9895_v37 = vadd.f32 %v9894_v55, %v9893_v27 }
 0x21b   : > { %v11159_v0 = vunpack.i.h.bf16 %v11157_v63  ;;  %v11158_v21 = vunpack.i.l.bf16 %v11157_v63  ;;  %v9785_v6 = vpop.f32.mrb[119].mxu0  ;;  %v9896_v45 = vpop.f32.mrb[118].mxu1 }
 0x21c   : > { %v9786_v19 = vadd.f32 %v9785_v6, %v9784_v60  ;;  %11291 = vrot.lane.b32.xlu0 %v11290_v31, %s12680_s25  ;;  %v9897_v40 = vpop.f32.mrb[119].mxu1 }
 0x21d   : > { %v13191_v43 = vsel %vm2537_vm0, %v13053_v57, %v11158_v21  ;;  %v13195_v4 = vsel %vm2537_vm0, %v13055_v10, %v11159_v0  ;;  %v9898_v61 = vadd.f32 %v9897_v40, %v9896_v45  ;;  %v11088_v45 = vunpack.i.l.bf16 %v13073_v2 }
 0x21e   : > { %v11295_v39 = vpack.i.bf16 %v9786_v19, %v9783_v52 }
 0x21f   : > { %v11300_v16 = vpack.i.bf16 %v9898_v61, %v9895_v37  ;;  %v11089_v61 = vunpack.i.h.bf16 %v13073_v2 }
 0x220   : > { %v9787_v15 = vpop.f32.mrb[120].mxu0  ;;  %11296 = vrot.lane.b32.xlu1 %v11295_v39, %s12679_s26  ;;  %v9899_v53 = vpop.f32.mrb[120].mxu1 }
 0x221   : > { %v9788_v20 = vpop.f32.mrb[121].mxu0  ;;  %v9900_v35 = vpop.f32.mrb[121].mxu1  ;;  %v2539_v2 = vsel %vm2537_vm0, %v12979_v17, %v11089_v61  ;;  %v11094_v61 = vunpack.i.h.bf16 %v13076_v22 }
 0x222   : > { %v9789_v27 = vadd.f32 %v9788_v20, %v9787_v15  ;;  %v11162_v31 = vpop.permute.xlu1 %11161  ;;  %v9790_v48 = vpop.f32.mrb[122].mxu0  ;;  %v9901_v55 = vadd.f32 %v9900_v35, %v9899_v53 }
 0x223   : > { %v11164_v63 = vunpack.i.h.bf16 %v11162_v31  ;;  %v11163_v57 = vunpack.i.l.bf16 %v11162_v31  ;;  %v9791_v60 = vpop.f32.mrb[123].mxu0  ;;  %v9902_v21 = vpop.f32.mrb[122].mxu1 }
 0x224   : > { %v9792_v6 = vadd.f32 %v9791_v60, %v9790_v48  ;;  %11301 = vrot.lane.b32.xlu1 %v11300_v16, %s12680_s25  ;;  %v9903_v10 = vpop.f32.mrb[123].mxu1 }
 0x225   : > { %v13201_v19 = vsel %vm2537_vm0, %v13058_v34, %v11163_v57  ;;  %v13205_v52 = vsel %vm2537_vm0, %v13060_v47, %v11164_v63  ;;  %v9904_v37 = vadd.f32 %v9903_v10, %v9902_v21  ;;  %v2538_v47 = vsel %vm2537_vm0, %v12977_v5, %v11088_v45 }
 0x226   : > { %v11305_v0 = vpack.i.bf16 %v9792_v6, %v9789_v27 }
 0x227   : > { %v11315_v40 = vpack.i.bf16 %v9904_v37, %v9901_v55 }
 0x228   : > { %v9793_v39 = vpop.f32.mrb[124].mxu0  ;;  %11306 = vrot.lane.b32.xlu0 %v11305_v0, %s12679_s26  ;;  %v9905_v16 = vpop.f32.mrb[124].mxu1 }
 0x229   : > { %v9794_v15 = vpop.f32.mrb[125].mxu0  ;;  %v9906_v53 = vpop.f32.mrb[125].mxu1 }
 0x22a   : > { %v9795_v20 = vadd.f32 %v9794_v15, %v9793_v39  ;;  %v9796_v34 = vpop.f32.mrb[126].mxu0  ;;  %v11167_v35 = vpop.permute.xlu1 %11166  ;;  %v9907_v31 = vadd.f32 %v9906_v53, %v9905_v16  ;;  %v11093_v53 = vunpack.i.l.bf16 %v13076_v22 }
 0x22b   : > { %v11169_v27 = vunpack.i.h.bf16 %v11167_v35  ;;  %v11168_v48 = vunpack.i.l.bf16 %v11167_v35  ;;  %v11172_v55 = vpop.permute.xlu0 %11171  ;;  %v9797_v63 = vpop.f32.mrb[127].mxu0 }
 0x22c   : > { %v11174_v57 = vunpack.i.h.bf16 %v11172_v55  ;;  %v11173_v60 = vunpack.i.l.bf16 %v11172_v55  ;;  %v9798_v21 = vadd.f32 %v9797_v63, %v9796_v34  ;;  %v9908_v6 = vpop.f32.mrb[126].mxu1  ;;  %11316 = vrot.lane.b32.xlu0 %v11315_v40, %s12680_s25 }
 0x22d   : > { %v2571_v10 = vsel %vm2570_vm1, %v2538_v47, %v11168_v48  ;;  %v2572_v37 = vsel %vm2570_vm1, %v2539_v2, %v11169_v27  ;;  %v9909_v0 = vpop.f32.mrb[127].mxu1  ;;  %v2540_v47 = vsel %vm2537_vm0, %v12982_v29, %v11093_v53  ;;  %v11523_v29 = vld [vmem:[%s15454_s0 + $0x18] sm:$0xff]   ;;  %v11103_v53 = vunpack.i.l.bf16 %v13079_v30 }
 0x22e   : > { %v2604_v5 = vsel %vm2603_vm2, %v2571_v10, %v11173_v60  ;;  %v2605_v45 = vsel %vm2603_vm2, %v2572_v37, %v11174_v57  ;;  %v9910_v39 = vadd.f32 %v9909_v0, %v9908_v6  ;;  %v11310_v16 = vpack.i.bf16 %v9798_v21, %v9795_v20 }
 0x22f   : > { %v13219_v15 = vpack.c.bf16 %v2605_v45, %v2604_v5  ;;  %v11099_v21 = vunpack.i.h.bf16 %v13081_v42  ;;  %v11098_v6 = vunpack.i.l.bf16 %v13081_v42 }
 0x230   : > { %11311 = vrot.lane.b32.xlu1 %v11310_v16, %s12679_s26  ;;  %v11320_v17 = vpack.i.bf16 %v9910_v39, %v9907_v31  ;;  %v2541_v31 = vsel %vm2537_vm0, %v12984_v41, %v11094_v61  ;;  %v11524_v41 = vld [vmem:[%s15455_s23 + $0x18] sm:$0xff]  }
 0x231   : > { %10298 = vmatprep.mubr.msk.bf16.mxu0 %vm2680_vm3, %v13219_v15  ;;  %10334 = vmatprep.mubr.msk.bf16.mxu1 %vm2680_vm3, %v13219_v15  ;;  %v2542_v5 = vsel %vm2537_vm0, %v12987_v54, %v11098_v6  ;;  %v2543_v42 = vsel %vm2537_vm0, %v12989_v62, %v11099_v21  ;;  %v11104_v54 = vunpack.i.h.bf16 %v13079_v30 }
 0x232   : > { %v11177_v40 = vpop.permute.xlu1 %11176 }
 0x233   : > { %v11179_v34 = vunpack.i.h.bf16 %v11177_v40  ;;  %v11178_v35 = vunpack.i.l.bf16 %v11177_v40 }
 0x234   : > { %11321 = vrot.lane.b32.xlu1 %v11320_v17, %s12680_s25  ;;  %s15457_s25 = sld [smem:[#allocation22_spill]] }
 0x235   : > { %v2573_v55 = vsel %vm2570_vm1, %v2540_v47, %v11178_v35  ;;  %v2574_v63 = vsel %vm2570_vm1, %v2541_v31, %v11179_v34  ;;  %v2545_v47 = vsel %vm2537_vm0, %v12994_v24, %v11104_v54 }
 0x236   : > { %v11182_v20 = vpop.permute.xlu1 %11181 }
 0x237   : > { %v11184_v27 = vunpack.i.h.bf16 %v11182_v20  ;;  %v11183_v48 = vunpack.i.l.bf16 %v11182_v20  ;;  %v2544_v20 = vsel %vm2537_vm0, %v12992_v11, %v11103_v53  ;;  %v11108_v11 = vunpack.i.l.bf16 %v13093_v14 }
 0x239   : > { %v2606_v2 = vsel %vm2603_vm2, %v2573_v55, %v11183_v48  ;;  %v2607_v22 = vsel %vm2603_vm2, %v2574_v63, %v11184_v27  ;;  %v2546_v21 = vsel %vm2537_vm0, %v12997_v38, %v11108_v11 }
 0x23a   : > { %v13237_v57 = vpack.c.bf16 %v2607_v22, %v2606_v2  ;;  %v11187_v60 = vpop.permute.xlu0 %11186 }
 0x23b   : > { %v11189_v10 = vunpack.i.h.bf16 %v11187_v60  ;;  %v11188_v37 = vunpack.i.l.bf16 %v11187_v60  ;;  %v11109_v60 = vunpack.i.h.bf16 %v13093_v14 }
 0x23c   : > { %10299 = vmatmul.mubr.msk.bf16.vlgmr.msra.gmra.mrb[128].mxu0 %vm2680_vm3, %v13237_v57  ;;  %10335 = vmatmul.mubr.msk.bf16.vlgmr.msra.gmra.mrb[128].mxu1 %vm2680_vm3, %v13237_v57 }
 0x23d   : > { %10403 = vmatpush3.bf16.msra.mxu1 %v13138_v49  ;;  %10367 = vmatpush3.bf16.msra.mxu0 %v13174_v36  ;;  %v2575_v16 = vsel %vm2570_vm1, %v2542_v5, %v11188_v37  ;;  %v2576_v17 = vsel %vm2570_vm1, %v2543_v42, %v11189_v10  ;;  %v2547_v6 = vsel %vm2537_vm0, %v12999_v50, %v11109_v60 }
 0x23e   : > { %v11192_v0 = vpop.permute.xlu0 %11191  ;;  %10404 = vmatprep.subr.bf16.mxu1 %v11523_v29  ;;  %10368 = vmatprep.subr.bf16.mxu0 %v11524_v41 }
 0x23f   : > { %v11194_v45 = vunpack.i.h.bf16 %v11192_v0  ;;  %v11193_v39 = vunpack.i.l.bf16 %v11192_v0 }
 0x241   : > { %v2608_v40 = vsel %vm2603_vm2, %v2575_v16, %v11193_v39  ;;  %v2609_v49 = vsel %vm2603_vm2, %v2576_v17, %v11194_v45  ;;  %10405 = vmatpush3.bf16.msra.mxu1 %v11523_v29  ;;  %10369 = vmatpush3.bf16.msra.mxu0 %v11524_v41 }
 0x242   : > { %v13261_v36 = vpack.c.bf16 %v2609_v49, %v2608_v40  ;;  %v11197_v61 = vpop.permute.xlu1 %11196 }
 0x243   : > { %v11199_v62 = vunpack.i.h.bf16 %v11197_v61  ;;  %v11198_v34 = vunpack.i.l.bf16 %v11197_v61 }
 0x244   : > { %10302 = vmatprep.mubr.msk.bf16.mxu0 %vm2680_vm3, %v13261_v36  ;;  %10338 = vmatprep.mubr.msk.bf16.mxu1 %vm2680_vm3, %v13261_v36 }
 0x245   : > { %v2577_v48 = vsel %vm2570_vm1, %v2544_v20, %v11198_v34  ;;  %v2578_v30 = vsel %vm2570_vm1, %v2545_v47, %v11199_v62 }
 0x246   : > { %v11202_v35 = vpop.permute.xlu1 %11201 }
 0x247   : > { %v11204_v31 = vunpack.i.h.bf16 %v11202_v35  ;;  %v11203_v27 = vunpack.i.l.bf16 %v11202_v35 }
 0x249   : > { %v2610_v55 = vsel %vm2603_vm2, %v2577_v48, %v11203_v27  ;;  %v2611_v63 = vsel %vm2603_vm2, %v2578_v30, %v11204_v31 }
 0x24a   : > { %v13277_v2 = vpack.c.bf16 %v2611_v63, %v2610_v55  ;;  %v11207_v22 = vpop.permute.xlu0 %11206 }
 0x24b   : > { %v11209_v29 = vunpack.i.h.bf16 %v11207_v22  ;;  %v11208_v41 = vunpack.i.l.bf16 %v11207_v22 }
 0x24c   : > { %10303 = vmatmul.mubr.msk.bf16.gmra.mrb[132].mxu0 %vm2680_vm3, %v13277_v2  ;;  %10339 = vmatmul.mubr.msk.bf16.gmra.mrb[132].mxu1 %vm2680_vm3, %v13277_v2 }
 0x24d   : > { %v2579_v0 = vsel %vm2570_vm1, %v2546_v21, %v11208_v41  ;;  %v2580_v14 = vsel %vm2570_vm1, %v2547_v6, %v11209_v29 }
 0x24e   : > { %v11212_v24 = vpop.permute.xlu0 %11211 }
 0x24f   : > { %v11214_v10 = vunpack.i.h.bf16 %v11212_v24  ;;  %v11213_v37 = vunpack.i.l.bf16 %v11212_v24 }
 0x251   : > { %v2612_v5 = vsel %vm2603_vm2, %v2579_v0, %v11213_v37  ;;  %v2613_v42 = vsel %vm2603_vm2, %v2580_v14, %v11214_v10 }
 0x252   : > { %v13293_v45 = vpack.c.bf16 %v2613_v42, %v2612_v5  ;;  %v11217_v39 = vpop.permute.xlu1 %11216 }
 0x253   : > { %v11219_v16 = vunpack.i.h.bf16 %v11217_v39  ;;  %v11218_v17 = vunpack.i.l.bf16 %v11217_v39 }
 0x254   : > { %10306 = vmatprep.mubr.msk.bf16.mxu0 %vm2680_vm3, %v13293_v45  ;;  %10342 = vmatprep.mubr.msk.bf16.mxu1 %vm2680_vm3, %v13293_v45 }
 0x255   : > { %v2581_v49 = vsel %vm2570_vm1, %v13087_v44, %v11218_v17  ;;  %v2582_v61 = vsel %vm2570_vm1, %v13091_v26, %v11219_v16 }
 0x256   : > { %v11222_v38 = vpop.permute.xlu1 %11221 }
 0x257   : > { %v11224_v50 = vunpack.i.h.bf16 %v11222_v38  ;;  %v11223_v40 = vunpack.i.l.bf16 %v11222_v38 }
 0x259   : > { %v2614_v54 = vsel %vm2603_vm2, %v2581_v49, %v11223_v40  ;;  %v2615_v53 = vsel %vm2603_vm2, %v2582_v61, %v11224_v50 }
 0x25a   : > { %v13305_v62 = vpack.c.bf16 %v2615_v53, %v2614_v54  ;;  %v11227_v34 = vpop.permute.xlu0 %11226 }
 0x25b   : > { %v11229_v35 = vunpack.i.h.bf16 %v11227_v34  ;;  %v11228_v20 = vunpack.i.l.bf16 %v11227_v34 }
 0x25c   : > { %10307 = vmatmul.mubr.msk.bf16.gmra.mrb[136].mxu0 %vm2680_vm3, %v13305_v62  ;;  %10343 = vmatmul.mubr.msk.bf16.gmra.mrb[136].mxu1 %vm2680_vm3, %v13305_v62 }
 0x25d   : > { %v2583_v26 = vsel %vm2570_vm1, %v13099_v9, %v11228_v20  ;;  %v2584_v27 = vsel %vm2570_vm1, %v13103_v32, %v11229_v35 }
 0x25e   : > { %v11232_v47 = vpop.permute.xlu0 %11231 }
 0x25f   : > { %v11234_v44 = vunpack.i.h.bf16 %v11232_v47  ;;  %v11233_v31 = vunpack.i.l.bf16 %v11232_v47 }
 0x261   : > { %v2616_v48 = vsel %vm2603_vm2, %v2583_v26, %v11233_v31  ;;  %v2617_v30 = vsel %vm2603_vm2, %v2584_v27, %v11234_v44 }
 0x262   : > { %v13317_v55 = vpack.c.bf16 %v2617_v30, %v2616_v48  ;;  %v11237_v63 = vpop.permute.xlu1 %11236 }
 0x263   : > { %v11239_v22 = vunpack.i.h.bf16 %v11237_v63  ;;  %v11238_v60 = vunpack.i.l.bf16 %v11237_v63 }
 0x264   : > { %10310 = vmatprep.mubr.msk.bf16.mxu0 %vm2680_vm3, %v13317_v55  ;;  %10346 = vmatprep.mubr.msk.bf16.mxu1 %vm2680_vm3, %v13317_v55 }
 0x265   : > { %v2585_v32 = vsel %vm2570_vm1, %v13109_v12, %v11238_v60  ;;  %v2586_v41 = vsel %vm2570_vm1, %v13113_v58, %v11239_v22 }
 0x266   : > { %v11242_v11 = vpop.permute.xlu1 %11241 }
 0x267   : > { %v11244_v9 = vunpack.i.h.bf16 %v11242_v11  ;;  %v11243_v29 = vunpack.i.l.bf16 %v11242_v11 }
 0x269   : > { %v2618_v24 = vsel %vm2603_vm2, %v2585_v32, %v11243_v29  ;;  %v2619_v21 = vsel %vm2603_vm2, %v2586_v41, %v11244_v9 }
 0x26a   : > { %v13329_v6 = vpack.c.bf16 %v2619_v21, %v2618_v24  ;;  %v11247_v10 = vpop.permute.xlu0 %11246 }
 0x26b   : > { %v11249_v37 = vunpack.i.h.bf16 %v11247_v10  ;;  %v11248_v0 = vunpack.i.l.bf16 %v11247_v10 }
 0x26c   : > { %10311 = vmatmul.mubr.msk.bf16.gmra.mrb[140].mxu0 %vm2680_vm3, %v13329_v6  ;;  %10347 = vmatmul.mubr.msk.bf16.gmra.mrb[140].mxu1 %vm2680_vm3, %v13329_v6 }
 0x26d   : > { %v2587_v58 = vsel %vm2570_vm1, %v13119_v33, %v11248_v0  ;;  %v2588_v42 = vsel %vm2570_vm1, %v13123_v51, %v11249_v37 }
 0x26e   : > { %v11252_v14 = vpop.permute.xlu0 %11251 }
 0x26f   : > { %v11254_v12 = vunpack.i.h.bf16 %v11252_v14  ;;  %v11253_v5 = vunpack.i.l.bf16 %v11252_v14 }
 0x271   : > { %v2620_v39 = vsel %vm2603_vm2, %v2587_v58, %v11253_v5  ;;  %v2621_v16 = vsel %vm2603_vm2, %v2588_v42, %v11254_v12 }
 0x272   : > { %v13341_v17 = vpack.c.bf16 %v2621_v16, %v2620_v39  ;;  %v11257_v38 = vpop.permute.xlu1 %11256 }
 0x273   : > { %v11259_v50 = vunpack.i.h.bf16 %v11257_v38  ;;  %v11258_v40 = vunpack.i.l.bf16 %v11257_v38  ;;  %v11525_v38 = vld [vmem:[%s15389_s6] sm:$0xff]  }
 0x274   : > { %10314 = vmatprep.mubr.msk.bf16.mxu0 %vm2680_vm3, %v13341_v17  ;;  %10350 = vmatprep.mubr.msk.bf16.mxu1 %vm2680_vm3, %v13341_v17 }
 0x275   : > { %v2589_v51 = vsel %vm2570_vm1, %v13129_v59, %v11258_v40  ;;  %v2590_v54 = vsel %vm2570_vm1, %v13133_v3, %v11259_v50  ;;  %v11526_v50 = vld [vmem:[%s15391_s8] sm:$0xff]   ;;  %10438 = vmatprep.subr.bf16.mxu0 %v11525_v38 }
 0x276   : > { %v11262_v49 = vpop.permute.xlu1 %11261  ;;  %10486 = vmatprep.subr.bf16.mxu1 %v11526_v50 }
 0x277   : > { %v11264_v33 = vunpack.i.h.bf16 %v11262_v49  ;;  %v11263_v61 = vunpack.i.l.bf16 %v11262_v49 }
 0x279   : > { %v2622_v53 = vsel %vm2603_vm2, %v2589_v51, %v11263_v61  ;;  %v2623_v34 = vsel %vm2603_vm2, %v2590_v54, %v11264_v33 }
 0x27a   : > { %v13353_v35 = vpack.c.bf16 %v2623_v34, %v2622_v53  ;;  %v11267_v20 = vpop.permute.xlu0 %11266 }
 0x27b   : > { %v11269_v47 = vunpack.i.h.bf16 %v11267_v20  ;;  %v11268_v44 = vunpack.i.l.bf16 %v11267_v20 }
 0x27c   : > { %10315 = vmatmul.mubr.msk.bf16.gmra.mrb[144].mxu0 %vm2680_vm3, %v13353_v35  ;;  %10351 = vmatmul.mubr.msk.bf16.gmra.mrb[144].mxu1 %vm2680_vm3, %v13353_v35 }
 0x27d   : > { %v2591_v3 = vsel %vm2570_vm1, %v13145_v46, %v11268_v44  ;;  %v2592_v27 = vsel %vm2570_vm1, %v13149_v8, %v11269_v47 }
 0x27e   : > { %v11272_v31 = vpop.permute.xlu0 %11271 }
 0x27f   : > { %v11274_v59 = vunpack.i.h.bf16 %v11272_v31  ;;  %v11273_v26 = vunpack.i.l.bf16 %v11272_v31 }
 0x281   : > { %v2624_v48 = vsel %vm2603_vm2, %v2591_v3, %v11273_v26  ;;  %v2625_v30 = vsel %vm2603_vm2, %v2592_v27, %v11274_v59 }
 0x282   : > { %v13365_v63 = vpack.c.bf16 %v2625_v30, %v2624_v48  ;;  %v11277_v22 = vpop.permute.xlu1 %11276 }
 0x283   : > { %v11279_v60 = vunpack.i.h.bf16 %v11277_v22  ;;  %v11278_v11 = vunpack.i.l.bf16 %v11277_v22 }
 0x284   : > { %10318 = vmatprep.mubr.msk.bf16.mxu0 %vm2680_vm3, %v13365_v63  ;;  %10354 = vmatprep.mubr.msk.bf16.mxu1 %vm2680_vm3, %v13365_v63 }
 0x285   : > { %v2593_v8 = vsel %vm2570_vm1, %v13155_v25, %v11278_v11  ;;  %v2594_v32 = vsel %vm2570_vm1, %v13159_v1, %v11279_v60 }
 0x286   : > { %v11282_v9 = vpop.permute.xlu1 %11281 }
 0x287   : > { %v11284_v46 = vunpack.i.h.bf16 %v11282_v9  ;;  %v11283_v29 = vunpack.i.l.bf16 %v11282_v9 }
 0x289   : > { %v2626_v41 = vsel %vm2603_vm2, %v2593_v8, %v11283_v29  ;;  %v2627_v24 = vsel %vm2603_vm2, %v2594_v32, %v11284_v46 }
 0x28a   : > { %v13377_v21 = vpack.c.bf16 %v2627_v24, %v2626_v41  ;;  %v11287_v10 = vpop.permute.xlu0 %11286  ;;  %v11530_v41 = vld [vmem:[%s15391_s8 + $0x10] sm:$0xff]   ;;  %v11533_v24 = vld [vmem:[%s15389_s6 + $0x20] sm:$0xff]  }
 0x28b   : > { %v11289_v37 = vunpack.i.h.bf16 %v11287_v10  ;;  %v11288_v0 = vunpack.i.l.bf16 %v11287_v10  ;;  %v11534_v10 = vld [vmem:[%s15391_s8 + $0x20] sm:$0xff]  }
 0x28c   : > { %10319 = vmatmul.mubr.msk.bf16.gmra.mrb[148].mxu0 %vm2680_vm3, %v13377_v21  ;;  %10355 = vmatmul.mubr.msk.bf16.gmra.mrb[148].mxu1 %vm2680_vm3, %v13377_v21 }
 0x28d   : > { %v2595_v1 = vsel %vm2570_vm1, %v13165_v28, %v11288_v0  ;;  %v2596_v5 = vsel %vm2570_vm1, %v13169_v23, %v11289_v37  ;;  %v11537_v37 = vld [vmem:[%s15389_s6 + $0x30] sm:$0xff]  }
 0x28e   : > { %v11292_v14 = vpop.permute.xlu0 %11291  ;;  %v11538_v0 = vld [vmem:[%s15391_s8 + $0x30] sm:$0xff]  }
 0x28f   : > { %v11294_v25 = vunpack.i.h.bf16 %v11292_v14  ;;  %v11293_v12 = vunpack.i.l.bf16 %v11292_v14 }
 0x291   : > { %v2628_v58 = vsel %vm2603_vm2, %v2595_v1, %v11293_v12  ;;  %v2629_v42 = vsel %vm2603_vm2, %v2596_v5, %v11294_v25  ;;  %v13558_v12 = vld [vmem:[%s15389_s6 + $0x40] sm:$0xff]  }
 0x292   : > { %v13389_v39 = vpack.c.bf16 %v2629_v42, %v2628_v58  ;;  %v11297_v16 = vpop.permute.xlu1 %11296 }
 0x293   : > { %v11299_v40 = vunpack.i.h.bf16 %v11297_v16  ;;  %v11298_v28 = vunpack.i.l.bf16 %v11297_v16 }
 0x294   : > { %10322 = vmatprep.mubr.msk.bf16.mxu0 %vm2680_vm3, %v13389_v39  ;;  %10358 = vmatprep.mubr.msk.bf16.mxu1 %vm2680_vm3, %v13389_v39 }
 0x295   : > { %v2597_v61 = vsel %vm2570_vm1, %v13181_v56, %v11298_v28  ;;  %v2598_v51 = vsel %vm2570_vm1, %v13185_v18, %v11299_v40 }
 0x296   : > { %v11302_v23 = vpop.permute.xlu1 %11301 }
 0x297   : > { %v11304_v49 = vunpack.i.h.bf16 %v11302_v23  ;;  %v11303_v33 = vunpack.i.l.bf16 %v11302_v23 }
 0x299   : > { %v2630_v54 = vsel %vm2603_vm2, %v2597_v61, %v11303_v33  ;;  %v2631_v53 = vsel %vm2603_vm2, %v2598_v51, %v11304_v49 }
 0x29a   : > { %v13407_v34 = vpack.c.bf16 %v2631_v53, %v2630_v54  ;;  %v11307_v20 = vpop.permute.xlu0 %11306 }
 0x29b   : > { %v11309_v47 = vunpack.i.h.bf16 %v11307_v20  ;;  %v11308_v44 = vunpack.i.l.bf16 %v11307_v20 }
 0x29c   : > { %10323 = vmatmul.mubr.msk.bf16.gmra.mrb[152].mxu0 %vm2680_vm3, %v13407_v34  ;;  %10359 = vmatmul.mubr.msk.bf16.gmra.mrb[152].mxu1 %vm2680_vm3, %v13407_v34 }
 0x29d   : > { %v2599_v18 = vsel %vm2570_vm1, %v13191_v43, %v11308_v44  ;;  %v2600_v26 = vsel %vm2570_vm1, %v13195_v4, %v11309_v47 }
 0x29e   : > { %v11317_v31 = vpop.permute.xlu0 %11316 }
 0x29f   : > { %v11319_v56 = vunpack.i.h.bf16 %v11317_v31  ;;  %v11318_v59 = vunpack.i.l.bf16 %v11317_v31 }
 0x2a1   : > { %v2632_v3 = vsel %vm2603_vm2, %v2599_v18, %v11318_v59  ;;  %v2633_v27 = vsel %vm2603_vm2, %v2600_v26, %v11319_v56 }
 0x2a2   : > { %v13419_v48 = vpack.c.bf16 %v2633_v27, %v2632_v3  ;;  %v11312_v30 = vpop.permute.xlu1 %11311 }
 0x2a3   : > { %v11314_v22 = vunpack.i.h.bf16 %v11312_v30  ;;  %v11313_v60 = vunpack.i.l.bf16 %v11312_v30 }
 0x2a4   : > { %10326 = vmatprep.mubr.msk.bf16.mxu0 %vm2680_vm3, %v13419_v48  ;;  %10362 = vmatprep.mubr.msk.bf16.mxu1 %vm2680_vm3, %v13419_v48 }
 0x2a5   : > { %v2601_v4 = vsel %vm2570_vm1, %v13201_v19, %v11313_v60  ;;  %v2602_v46 = vsel %vm2570_vm1, %v13205_v52, %v11314_v22  ;;  %v11527_v19 = vld [vmem:[%s15389_s6 + $0x8] sm:$0xff]  }
 0x2a6   : > { %v11322_v11 = vpop.permute.xlu1 %11321  ;;  %v11528_v52 = vld [vmem:[%s15391_s8 + $0x8] sm:$0xff]  }
 0x2a7   : > { %v11324_v43 = vunpack.i.h.bf16 %v11322_v11  ;;  %v11323_v9 = vunpack.i.l.bf16 %v11322_v11 }
 0x2a9   : > { %v2634_v29 = vsel %vm2603_vm2, %v2601_v4, %v11323_v9  ;;  %v2635_v8 = vsel %vm2603_vm2, %v2602_v46, %v11324_v43  ;;  %v13579_v4 = vld [vmem:[%s15457_s25] ss:$0 sm:$0xff] }
 0x2aa   : > { %v13431_v32 = vpack.c.bf16 %v2635_v8, %v2634_v29 }
 0x2ac   : > { %10327 = vmatmul.mubr.msk.bf16.gmra.mrb[156].mxu0 %vm2680_vm3, %v13431_v32  ;;  %10363 = vmatmul.mubr.msk.bf16.gmra.mrb[156].mxu1 %vm2680_vm3, %v13431_v32 }
 0x2ad   : > { %10370 = vmatprep.mubr.msk.bf16.mxu0 %vm2680_vm3, %v13219_v15  ;;  %10406 = vmatprep.mubr.msk.bf16.mxu1 %vm2680_vm3, %v13219_v15  ;;  %v11529_v15 = vld [vmem:[%s15389_s6 + $0x10] sm:$0xff]  }
 0x2b4   : > { %10371 = vmatmul.mubr.msk.bf16.vlgmr.msra.gmra.mrb[160].mxu0 %vm2680_vm3, %v13237_v57  ;;  %10407 = vmatmul.mubr.msk.bf16.vlgmr.msra.gmra.mrb[160].mxu1 %vm2680_vm3, %v13237_v57  ;;  %v11531_v57 = vld [vmem:[%s15389_s6 + $0x18] sm:$0xff]  }
 0x2b5   : > { %10374 = vmatprep.mubr.msk.bf16.mxu0 %vm2680_vm3, %v13261_v36  ;;  %10410 = vmatprep.mubr.msk.bf16.mxu1 %vm2680_vm3, %v13261_v36  ;;  %v11532_v36 = vld [vmem:[%s15391_s8 + $0x18] sm:$0xff]  }
 0x2b6   : > { %10439 = vmatpush3.bf16.msra.mxu0 %v11525_v38  ;;  %10487 = vmatpush3.bf16.msra.mxu1 %v11526_v50 }
 0x2b7   : > { %10440 = vmatprep.subr.bf16.mxu0 %v11527_v19  ;;  %10488 = vmatprep.subr.bf16.mxu1 %v11528_v52 }
 0x2ba   : > { %10441 = vmatpush3.bf16.msra.mxu0 %v11527_v19  ;;  %10489 = vmatpush3.bf16.msra.mxu1 %v11528_v52 }
 0x2bb   : > { %10442 = vmatprep.subr.bf16.mxu0 %v11529_v15  ;;  %10490 = vmatprep.subr.bf16.mxu1 %v11530_v41 }
 0x2bc   : > { %10375 = vmatmul.mubr.msk.bf16.gmra.mrb[164].mxu0 %vm2680_vm3, %v13277_v2  ;;  %10411 = vmatmul.mubr.msk.bf16.gmra.mrb[164].mxu1 %vm2680_vm3, %v13277_v2  ;;  %v11535_v2 = vld [vmem:[%s15389_s6 + $0x28] sm:$0xff]  }
 0x2bd   : > { %10378 = vmatprep.mubr.msk.bf16.mxu0 %vm2680_vm3, %v13293_v45  ;;  %10414 = vmatprep.mubr.msk.bf16.mxu1 %vm2680_vm3, %v13293_v45  ;;  %v11536_v45 = vld [vmem:[%s15391_s8 + $0x28] sm:$0xff]  }
 0x2be   : > { %10443 = vmatpush3.bf16.msra.mxu0 %v11529_v15  ;;  %10491 = vmatpush3.bf16.msra.mxu1 %v11530_v41 }
 0x2bf   : > { %10444 = vmatprep.subr.bf16.mxu0 %v11531_v57  ;;  %10492 = vmatprep.subr.bf16.mxu1 %v11532_v36 }
 0x2c2   : > { %10445 = vmatpush3.bf16.msra.mxu0 %v11531_v57  ;;  %10493 = vmatpush3.bf16.msra.mxu1 %v11532_v36 }
 0x2c3   : > { %10446 = vmatprep.subr.bf16.mxu0 %v11533_v24  ;;  %10494 = vmatprep.subr.bf16.mxu1 %v11534_v10 }
 0x2c4   : > { %10379 = vmatmul.mubr.msk.bf16.gmra.mrb[168].mxu0 %vm2680_vm3, %v13305_v62  ;;  %10415 = vmatmul.mubr.msk.bf16.gmra.mrb[168].mxu1 %vm2680_vm3, %v13305_v62  ;;  %v11539_v62 = vld [vmem:[%s15389_s6 + $0x38] sm:$0xff]  }
 0x2c5   : > { %10382 = vmatprep.mubr.msk.bf16.mxu0 %vm2680_vm3, %v13317_v55  ;;  %10418 = vmatprep.mubr.msk.bf16.mxu1 %vm2680_vm3, %v13317_v55  ;;  %v11540_v55 = vld [vmem:[%s15391_s8 + $0x38] sm:$0xff]  }
 0x2c6   : > { %10447 = vmatpush3.bf16.msra.mxu0 %v11533_v24  ;;  %10495 = vmatpush3.bf16.msra.mxu1 %v11534_v10 }
 0x2c7   : > { %10448 = vmatprep.subr.bf16.mxu0 %v11535_v2  ;;  %10496 = vmatprep.subr.bf16.mxu1 %v11536_v45 }
 0x2ca   : > { %10449 = vmatpush3.bf16.msra.mxu0 %v11535_v2  ;;  %10497 = vmatpush3.bf16.msra.mxu1 %v11536_v45 }
 0x2cb   : > { %10450 = vmatprep.subr.bf16.mxu0 %v11537_v37  ;;  %10498 = vmatprep.subr.bf16.mxu1 %v11538_v0 }
 0x2cc   : > { %10383 = vmatmul.mubr.msk.bf16.gmra.mrb[172].mxu0 %vm2680_vm3, %v13329_v6  ;;  %10419 = vmatmul.mubr.msk.bf16.gmra.mrb[172].mxu1 %vm2680_vm3, %v13329_v6  ;;  %v13546_v6 = vld [vmem:[%s15391_s8 + $0x40] sm:$0xff]  }
 0x2cd   : > { %10386 = vmatprep.mubr.msk.bf16.mxu0 %vm2680_vm3, %v13341_v17  ;;  %10422 = vmatprep.mubr.msk.bf16.mxu1 %vm2680_vm3, %v13341_v17  ;;  %v13552_v17 = vld [vmem:[%s15456_s5] ss:$0 sm:$0xff] }
 0x2ce   : > { %10451 = vmatpush3.bf16.msra.mxu0 %v11537_v37  ;;  %10499 = vmatpush3.bf16.msra.mxu1 %v11538_v0 }
 0x2cf   : > { %10452 = vmatprep.subr.bf16.mxu0 %v11539_v62  ;;  %10500 = vmatprep.subr.bf16.mxu1 %v11540_v55 }
 0x2d2   : > { %10453 = vmatpush3.bf16.msra.mxu0 %v11539_v62  ;;  %10501 = vmatpush3.bf16.msra.mxu1 %v11540_v55 }
 0x2d3   : > { %10582 = vmatprep.subr.bf16.mxu1 %v13546_v6  ;;  %10534 = vmatprep.subr.bf16.mxu0 %v13558_v12 }
 0x2d4   : > { %10387 = vmatmul.mubr.msk.bf16.gmra.mrb[176].mxu0 %vm2680_vm3, %v13353_v35  ;;  %10423 = vmatmul.mubr.msk.bf16.gmra.mrb[176].mxu1 %vm2680_vm3, %v13353_v35 }
 0x2d5   : > { %10390 = vmatprep.mubr.msk.bf16.mxu0 %vm2680_vm3, %v13365_v63  ;;  %10426 = vmatprep.mubr.msk.bf16.mxu1 %vm2680_vm3, %v13365_v63 }
 0x2dc   : > { %10391 = vmatmul.mubr.msk.bf16.gmra.mrb[180].mxu0 %vm2680_vm3, %v13377_v21  ;;  %10427 = vmatmul.mubr.msk.bf16.gmra.mrb[180].mxu1 %vm2680_vm3, %v13377_v21 }
 0x2dd   : > { %10394 = vmatprep.mubr.msk.bf16.mxu0 %vm2680_vm3, %v13389_v39  ;;  %10430 = vmatprep.mubr.msk.bf16.mxu1 %vm2680_vm3, %v13389_v39 }
 0x2e4   : > { %10395 = vmatmul.mubr.msk.bf16.gmra.mrb[184].mxu0 %vm2680_vm3, %v13407_v34  ;;  %10431 = vmatmul.mubr.msk.bf16.gmra.mrb[184].mxu1 %vm2680_vm3, %v13407_v34 }
 0x2e5   : > { %10398 = vmatprep.mubr.msk.bf16.mxu0 %vm2680_vm3, %v13419_v48  ;;  %10434 = vmatprep.mubr.msk.bf16.mxu1 %vm2680_vm3, %v13419_v48 }
 0x2ec   : > { %10399 = vmatmul.mubr.msk.bf16.gmra.mrb[188].mxu0 %vm2680_vm3, %v13431_v32  ;;  %10435 = vmatmul.mubr.msk.bf16.gmra.mrb[188].mxu1 %vm2680_vm3, %v13431_v32 }
 0x30f   : > { %v10300_v35 = vpop.f32.mrb[128].mxu0  ;;  %v10336_v63 = vpop.f32.mrb[128].mxu1 }
 0x310   : > { %v2951_v21 = vadd.f32 %v10336_v63, %v13552_v17  ;;  %v2763_v14 = vpop.f32.mrb[129].mxu0  ;;  %v2942_v25 = vpop.f32.mrb[129].mxu1  ;;  %v2772_v46 = vadd.f32 %v10300_v35, %v13579_v4 }
 0x311   : > { %v2943_v1 = vadd.f32 %v13552_v17, %v2942_v25  ;;  %v10301_v5 = vpop.f32.mrb[130].mxu0  ;;  %v10337_v58 = vpop.f32.mrb[130].mxu1  ;;  %v2764_v8 = vadd.f32 %v13579_v4, %v2763_v14 }
 0x312   : > { %v8895_v42 = vmul.f32 -1.442695, %v2951_v21  ;;  %v2954_v39 = vadd.f32 %v10337_v58, %v13552_v17  ;;  %v2766_v16 = vpop.f32.mrb[131].mxu0  ;;  %v2945_v38 = vpop.f32.mrb[131].mxu1  ;;  %v2775_v19 = vadd.f32 %v10301_v5, %v13579_v4 }
 0x313   : > { %v8893_v50 = vmul.f32 -1.442695, %v2943_v1  ;;  %v2946_v40 = vadd.f32 %v13552_v17, %v2945_v38  ;;  %v2767_v41 = vadd.f32 %v13579_v4, %v2766_v16 }
 0x314   : > { %11611 = vpow2.f32 %v8895_v42  ;;  %v8896_v28 = vmul.f32 -1.442695, %v2954_v39  ;;  %v11542_v39 = vld [vmem:[%s15391_s8 + $0x48] sm:$0xff]  }
 0x315   : > { %11613 = vpow2.f32 %v8893_v50  ;;  %v8894_v23 = vmul.f32 -1.442695, %v2946_v40 }
 0x316   : > { %11615 = vpow2.f32 %v8896_v28 }
 0x317   : > { %11617 = vpow2.f32 %v8894_v23  ;;  %v11547_v23 = vld [vmem:[%s15389_s6 + $0x48] sm:$0xff]  }
 0x31e   : > { %v11612_v49 = vpop.eup %11611 }
 0x31f   : > { %v11614_v33 = vpop.eup %11613  ;;  %v3167_v61 = vadd.f32 1.0, %v11612_v49  ;;  %v13564_v51 = vpop.f32.mrb[132].mxu0 }
 0x320   : > { %v10340_v54 = vpop.f32.mrb[132].mxu1  ;;  %v11616_v53 = vpop.eup %11615  ;;  %v3165_v34 = vadd.f32 1.0, %v11614_v33 }
 0x321   : > { %v2967_v20 = vadd.f32 %v10340_v54, %v13552_v17  ;;  %v13567_v47 = vpop.f32.mrb[133].mxu0  ;;  %v2958_v44 = vpop.f32.mrb[133].mxu1  ;;  %11619 = vrcp.f32 %v3167_v61  ;;  %v3168_v56 = vadd.f32 1.0, %v11616_v53 }
 0x322   : > { %v11618_v31 = vpop.eup %11617  ;;  %v2959_v59 = vadd.f32 %v13552_v17, %v2958_v44  ;;  %v13570_v18 = vpop.f32.mrb[134].mxu0  ;;  %11621 = vrcp.f32 %v3165_v34  ;;  %v11548_v44 = vld [vmem:[%s15389_s6 + $0x50] sm:$0xff]  }
 0x323   : > { %v10341_v26 = vpop.f32.mrb[134].mxu1  ;;  %v3166_v3 = vadd.f32 1.0, %v11618_v31  ;;  %v8899_v27 = vmul.f32 -1.442695, %v2967_v20  ;;  %v13572_v48 = vpop.f32.mrb[135].mxu0  ;;  %11623 = vrcp.f32 %v3168_v56  ;;  %v11543_v20 = vld [vmem:[%s15391_s8 + $0x50] sm:$0xff]   ;;  %v2788_v31 = vadd.f32 %v13564_v51, %v13579_v4 }
 0x324   : > { %v2961_v30 = vpop.f32.mrb[135].mxu1  ;;  %v8897_v22 = vmul.f32 -1.442695, %v2959_v59  ;;  %v2970_v60 = vadd.f32 %v10341_v26, %v13552_v17  ;;  %v2780_v59 = vadd.f32 %v13579_v4, %v13567_v47  ;;  %v11546_v51 = vld [vmem:[%s15391_s8 + $0x60] sm:$0xff]  }
 0x325   : > { %11625 = vrcp.f32 %v3166_v3  ;;  %v2962_v11 = vadd.f32 %v13552_v17, %v2961_v30  ;;  %v2791_v3 = vadd.f32 %v13570_v18, %v13579_v4  ;;  %v11551_v47 = vld [vmem:[%s15389_s6 + $0x60] sm:$0xff]  }
 0x326   : > { %11627 = vpow2.f32 %v8899_v27  ;;  %v8900_v43 = vmul.f32 -1.442695, %v2970_v60 }
 0x327   : > { %11629 = vpow2.f32 %v8897_v22  ;;  %v8898_v9 = vmul.f32 -1.442695, %v2962_v11  ;;  %v2783_v22 = vadd.f32 %v13579_v4, %v13572_v48 }
 0x328   : > { %11631 = vpow2.f32 %v8900_v43 }
 0x329   : > { %11633 = vpow2.f32 %v8898_v9 }
 0x32b   : > { %v11620_v29 = vpop.eup %11619 }
 0x32c   : > { %v11622_v32 = vpop.eup %11621  ;;  %v3263_v52 = vmul.f32 %v11620_v29, %v2772_v46 }
 0x32d   : > { %v11624_v15 = vpop.eup %11623  ;;  %v3261_v57 = vmul.f32 %v11622_v32, %v2764_v8 }
 0x32e   : > { %v3264_v24 = vmul.f32 %v11624_v15, %v2775_v19 }
 0x32f   : > { %v11626_v36 = vpop.eup %11625  ;;  %v13585_v2 = vpop.f32.mrb[136].mxu0 }
 0x330   : > { %v11628_v10 = vpop.eup %11627  ;;  %v10344_v45 = vpop.f32.mrb[136].mxu1  ;;  %v3262_v37 = vmul.f32 %v11626_v36, %v2767_v41  ;;  %v3924_v21 = vpack.c.bf16 %v3264_v24, %v3263_v52 }
 0x331   : > { %v11630_v0 = vpop.eup %11629  ;;  %v3171_v62 = vadd.f32 1.0, %v11628_v10  ;;  %v2983_v55 = vadd.f32 %v10344_v45, %v13552_v17  ;;  %v13588_v35 = vpop.f32.mrb[137].mxu0 }
 0x332   : > { %v2974_v63 = vpop.f32.mrb[137].mxu1  ;;  %v11632_v14 = vpop.eup %11631  ;;  %v3169_v25 = vadd.f32 1.0, %v11630_v0  ;;  %v3923_v42 = vpack.c.bf16 %v3262_v37, %v3261_v57 }
 0x333   : > { %v2975_v1 = vadd.f32 %v13552_v17, %v2974_v63  ;;  %v13591_v5 = vpop.f32.mrb[138].mxu0  ;;  %v10345_v58 = vpop.f32.mrb[138].mxu1  ;;  %11635 = vrcp.f32 %v3171_v62  ;;  %v3172_v38 = vadd.f32 1.0, %v11632_v14  ;;  %v8903_v50 = vmul.f32 -1.442695, %v2983_v55  ;;  %v11549_v62 = vld [vmem:[%s15391_s8 + $0x68] sm:$0xff]  }
 0x334   : > { %v11634_v16 = vpop.eup %11633  ;;  %v13596_v40 = vpop.f32.mrb[139].mxu0  ;;  %11637 = vrcp.f32 %v3169_v25  ;;  %v2986_v61 = vadd.f32 %v10345_v58, %v13552_v17  ;;  %10454 = vmatprep.mubr.bf16.mxu0 %v3923_v42  ;;  %10502 = vmatprep.mubr.bf16.mxu1 %v3923_v42  ;;  %v11553_v55 = vld [vmem:[%s15389_s6 + $0x68] sm:$0xff]  }
 0x335   : > { %v2977_v28 = vpop.f32.mrb[139].mxu1  ;;  %v3170_v49 = vadd.f32 1.0, %v11634_v16  ;;  %v8901_v33 = vmul.f32 -1.442695, %v2975_v1  ;;  %11639 = vrcp.f32 %v3172_v38  ;;  %10455 = vmatmul.mubr.bf16.vlgmr.msra.gmra.mrb[192].mxu0 %v3924_v21  ;;  %10503 = vmatmul.mubr.bf16.vlgmr.msra.gmra.mrb[192].mxu1 %v3924_v21  ;;  %v11552_v38 = vld [vmem:[%s15391_s8 + $0x70] sm:$0xff]  }
 0x336   : > { %v2978_v54 = vadd.f32 %v13552_v17, %v2977_v28  ;;  %v8904_v53 = vmul.f32 -1.442695, %v2986_v61  ;;  %10583 = vmatpush3.bf16.msra.mxu1 %v13546_v6  ;;  %10535 = vmatpush3.bf16.msra.mxu0 %v13558_v12  ;;  %v11544_v6 = vld [vmem:[%s15391_s8 + $0x58] sm:$0xff]   ;;  %v2796_v61 = vadd.f32 %v13579_v4, %v13588_v35 }
 0x337   : > { %11641 = vrcp.f32 %v3170_v49  ;;  %10584 = vmatprep.subr.bf16.mxu1 %v11542_v39  ;;  %10536 = vmatprep.subr.bf16.mxu0 %v11547_v23  ;;  %v11550_v12 = vld [vmem:[%s15389_s6 + $0x58] sm:$0xff]   ;;  %v2804_v49 = vadd.f32 %v13585_v2, %v13579_v4 }
 0x338   : > { %11643 = vpow2.f32 %v8903_v50  ;;  %v8902_v34 = vmul.f32 -1.442695, %v2978_v54  ;;  %v11554_v50 = vld [vmem:[%s15389_s6 + $0x70] sm:$0xff]   ;;  %v11555_v28 = vld [vmem:[%s15391_s8 + $0x78] sm:$0xff]  }
 0x339   : > { %11645 = vpow2.f32 %v8901_v33 }
 0x33a   : > { %11647 = vpow2.f32 %v8904_v53  ;;  %10585 = vmatpush3.bf16.msra.mxu1 %v11542_v39  ;;  %10537 = vmatpush3.bf16.msra.mxu0 %v11547_v23  ;;  %v11556_v23 = vld [vmem:[%s15389_s6 + $0x78] sm:$0xff]   ;;  %v2807_v53 = vadd.f32 %v13591_v5, %v13579_v4 }
 0x33b   : > { %11649 = vpow2.f32 %v8902_v34  ;;  %10586 = vmatprep.subr.bf16.mxu1 %v11543_v20  ;;  %10538 = vmatprep.subr.bf16.mxu0 %v11548_v44 }
 0x33d   : > { %v11636_v56 = vpop.eup %11635 }
 0x33e   : > { %v11638_v26 = vpop.eup %11637  ;;  %v3267_v27 = vmul.f32 %v11636_v56, %v2788_v31  ;;  %10587 = vmatpush3.bf16.msra.mxu1 %v11543_v20  ;;  %10539 = vmatpush3.bf16.msra.mxu0 %v11548_v44  ;;  %v2799_v44 = vadd.f32 %v13579_v4, %v13596_v40 }
 0x33f   : > { %v11640_v30 = vpop.eup %11639  ;;  %v3265_v60 = vmul.f32 %v11638_v26, %v2780_v59  ;;  %10588 = vmatprep.subr.bf16.mxu1 %v11544_v6  ;;  %10540 = vmatprep.subr.bf16.mxu0 %v11550_v12  ;;  %v13631_v18 = vpop.f32.mrb[140].mxu0 }
 0x340   : > { %v10348_v43 = vpop.f32.mrb[140].mxu1  ;;  %v3268_v9 = vmul.f32 %v11640_v30, %v2791_v3  ;;  %v13634_v48 = vpop.f32.mrb[141].mxu0 }
 0x341   : > { %v11642_v11 = vpop.eup %11641  ;;  %v2999_v29 = vadd.f32 %v10348_v43, %v13552_v17  ;;  %v2990_v8 = vpop.f32.mrb[141].mxu1 }
 0x342   : > { %v11644_v46 = vpop.eup %11643  ;;  %v3266_v32 = vmul.f32 %v11642_v11, %v2783_v22  ;;  %v2991_v15 = vadd.f32 %v13552_v17, %v2990_v8  ;;  %v13637_v41 = vpop.f32.mrb[142].mxu0  ;;  %v3926_v36 = vpack.c.bf16 %v3268_v9, %v3267_v27  ;;  %10589 = vmatpush3.bf16.msra.mxu1 %v11544_v6  ;;  %10541 = vmatpush3.bf16.msra.mxu0 %v11550_v12 }
 0x343   : > { %v11646_v19 = vpop.eup %11645  ;;  %v3175_v52 = vadd.f32 1.0, %v11644_v46  ;;  %v10349_v57 = vpop.f32.mrb[142].mxu1  ;;  %10590 = vmatprep.subr.bf16.mxu1 %v11546_v51  ;;  %10542 = vmatprep.subr.bf16.mxu0 %v11551_v47  ;;  %v8907_v14 = vmul.f32 -1.442695, %v2999_v29 }
 0x344   : > { %v11648_v24 = vpop.eup %11647  ;;  %v3173_v10 = vadd.f32 1.0, %v11646_v19  ;;  %v3002_v45 = vadd.f32 %v10349_v57, %v13552_v17  ;;  %v13640_v37 = vpop.f32.mrb[143].mxu0  ;;  %v8905_v1 = vmul.f32 -1.442695, %v2991_v15  ;;  %v3925_v39 = vpack.c.bf16 %v3266_v32, %v3265_v60 }
 0x345   : > { %v2993_v0 = vpop.f32.mrb[143].mxu1  ;;  %v11650_v63 = vpop.eup %11649  ;;  %11651 = vrcp.f32 %v3175_v52  ;;  %v3176_v21 = vadd.f32 1.0, %v11648_v24 }
 0x346   : > { %11653 = vrcp.f32 %v3173_v10  ;;  %v3174_v25 = vadd.f32 1.0, %v11650_v63  ;;  %v2994_v58 = vadd.f32 %v13552_v17, %v2993_v0  ;;  %v8908_v42 = vmul.f32 -1.442695, %v3002_v45  ;;  %10591 = vmatpush3.bf16.msra.mxu1 %v11546_v51  ;;  %10543 = vmatpush3.bf16.msra.mxu0 %v11551_v47 }
 0x347   : > { %11655 = vrcp.f32 %v3176_v21  ;;  %10592 = vmatprep.subr.bf16.mxu1 %v11549_v62  ;;  %10544 = vmatprep.subr.bf16.mxu0 %v11553_v55  ;;  %v2820_v10 = vadd.f32 %v13631_v18, %v13579_v4  ;;  %v2812_v0 = vadd.f32 %v13579_v4, %v13634_v48 }
 0x348   : > { %11657 = vrcp.f32 %v3174_v25  ;;  %v8906_v16 = vmul.f32 -1.442695, %v2994_v58  ;;  %10458 = vmatprep.mubr.bf16.mxu0 %v3925_v39  ;;  %10506 = vmatprep.mubr.bf16.mxu1 %v3925_v39 }
 0x349   : > { %11659 = vpow2.f32 %v8907_v14  ;;  %10459 = vmatmul.mubr.bf16.gmra.mrb[196].mxu0 %v3926_v36  ;;  %10507 = vmatmul.mubr.bf16.gmra.mrb[196].mxu1 %v3926_v36 }
 0x34a   : > { %11661 = vpow2.f32 %v8905_v1  ;;  %10593 = vmatpush3.bf16.msra.mxu1 %v11549_v62  ;;  %10545 = vmatpush3.bf16.msra.mxu0 %v11553_v55  ;;  %v2823_v55 = vadd.f32 %v13637_v41, %v13579_v4  ;;  %v2815_v1 = vadd.f32 %v13579_v4, %v13640_v37 }
 0x34b   : > { %11663 = vpow2.f32 %v8908_v42  ;;  %10594 = vmatprep.subr.bf16.mxu1 %v11552_v38  ;;  %10546 = vmatprep.subr.bf16.mxu0 %v11554_v50 }
 0x34c   : > { %11665 = vpow2.f32 %v8906_v16 }
 0x34e   : > { %10595 = vmatpush3.bf16.msra.mxu1 %v11552_v38  ;;  %10547 = vmatpush3.bf16.msra.mxu0 %v11554_v50 }
 0x34f   : > { %v11652_v33 = vpop.eup %11651  ;;  %10596 = vmatprep.subr.bf16.mxu1 %v11555_v28  ;;  %10548 = vmatprep.subr.bf16.mxu0 %v11556_v23  ;;  %v13669_v6 = vpop.f32.mrb[144].mxu0 }
 0x350   : > { %v11654_v54 = vpop.eup %11653  ;;  %v3271_v34 = vmul.f32 %v11652_v33, %v2804_v49  ;;  %v10352_v2 = vpop.f32.mrb[144].mxu1 }
 0x351   : > { %v11656_v20 = vpop.eup %11655  ;;  %v3269_v12 = vmul.f32 %v11654_v54, %v2796_v61  ;;  %v3015_v35 = vadd.f32 %v10352_v2, %v13552_v17  ;;  %v13672_v56 = vpop.f32.mrb[145].mxu0 }
 0x352   : > { %v11658_v31 = vpop.eup %11657  ;;  %v3006_v59 = vpop.f32.mrb[145].mxu1  ;;  %v3272_v26 = vmul.f32 %v11656_v20, %v2807_v53  ;;  %10597 = vmatpush3.bf16.msra.mxu1 %v11555_v28  ;;  %10549 = vmatpush3.bf16.msra.mxu0 %v11556_v23 }
 0x353   : > { %v11660_v3 = vpop.eup %11659  ;;  %v3007_v5 = vadd.f32 %v13552_v17, %v3006_v59  ;;  %v13675_v27 = vpop.f32.mrb[146].mxu0  ;;  %v3270_v22 = vmul.f32 %v11658_v31, %v2799_v44  ;;  %v8911_v32 = vmul.f32 -1.442695, %v3015_v35 }
 0x354   : > { %v10353_v30 = vpop.f32.mrb[146].mxu1  ;;  %v11662_v40 = vpop.eup %11661  ;;  %v3179_v60 = vadd.f32 1.0, %v11660_v3  ;;  %v3928_v57 = vpack.c.bf16 %v3272_v26, %v3271_v34 }
 0x355   : > { %v3018_v51 = vadd.f32 %v10353_v30, %v13552_v17  ;;  %v13678_v47 = vpop.f32.mrb[147].mxu0  ;;  %v3009_v11 = vpop.f32.mrb[147].mxu1  ;;  %v3177_v9 = vadd.f32 1.0, %v11662_v40  ;;  %v3927_v19 = vpack.c.bf16 %v3270_v22, %v3269_v12  ;;  %v8909_v15 = vmul.f32 -1.442695, %v3007_v5 }
 0x356   : > { %v11664_v43 = vpop.eup %11663  ;;  %v3010_v46 = vadd.f32 %v13552_v17, %v3009_v11  ;;  %11667 = vrcp.f32 %v3179_v60  ;;  %v2836_v22 = vadd.f32 %v13669_v6, %v13579_v4  ;;  %v2828_v60 = vadd.f32 %v13579_v4, %v13672_v56 }
 0x357   : > { %v11666_v29 = vpop.eup %11665  ;;  %v3180_v8 = vadd.f32 1.0, %v11664_v43  ;;  %11669 = vrcp.f32 %v3177_v9  ;;  %v8912_v36 = vmul.f32 -1.442695, %v3018_v51  ;;  %10462 = vmatprep.mubr.bf16.mxu0 %v3927_v19  ;;  %10510 = vmatprep.mubr.bf16.mxu1 %v3927_v19  ;;  %v2831_v6 = vadd.f32 %v13579_v4, %v13678_v47 }
 0x358   : > { %v3178_v52 = vadd.f32 1.0, %v11666_v29  ;;  %v8910_v24 = vmul.f32 -1.442695, %v3010_v46  ;;  %10463 = vmatmul.mubr.bf16.gmra.mrb[200].mxu0 %v3928_v57  ;;  %10511 = vmatmul.mubr.bf16.gmra.mrb[200].mxu1 %v3928_v57  ;;  %v2839_v46 = vadd.f32 %v13675_v27, %v13579_v4 }
 0x359   : > { %11671 = vrcp.f32 %v3180_v8 }
 0x35a   : > { %11673 = vrcp.f32 %v3178_v52 }
 0x35b   : > { %11675 = vpow2.f32 %v8911_v32 }
 0x35c   : > { %11677 = vpow2.f32 %v8909_v15 }
 0x35d   : > { %11679 = vpow2.f32 %v8912_v36 }
 0x35e   : > { %11681 = vpow2.f32 %v8910_v24 }
 0x35f   : > { %v13687_v63 = vpop.f32.mrb[148].mxu0  ;;  %v10356_v21 = vpop.f32.mrb[148].mxu1 }
 0x360   : > { %v11668_v45 = vpop.eup %11667  ;;  %v3031_v58 = vadd.f32 %v10356_v21, %v13552_v17  ;;  %v13692_v42 = vpop.f32.mrb[149].mxu0 }
 0x361   : > { %v11670_v62 = vpop.eup %11669  ;;  %v3275_v14 = vmul.f32 %v11668_v45, %v2820_v10  ;;  %v3022_v18 = vpop.f32.mrb[149].mxu1 }
 0x362   : > { %v3273_v39 = vmul.f32 %v11670_v62, %v2812_v0  ;;  %v3023_v48 = vadd.f32 %v13552_v17, %v3022_v18  ;;  %v13695_v38 = vpop.f32.mrb[150].mxu0  ;;  %v10357_v41 = vpop.f32.mrb[150].mxu1  ;;  %v8915_v23 = vmul.f32 -1.442695, %v3031_v58 }
 0x363   : > { %v11672_v25 = vpop.eup %11671  ;;  %v3034_v49 = vadd.f32 %v10357_v41, %v13552_v17  ;;  %v13698_v33 = vpop.f32.mrb[151].mxu0 }
 0x364   : > { %v11674_v16 = vpop.eup %11673  ;;  %v3276_v50 = vmul.f32 %v11672_v25, %v2823_v55  ;;  %v3025_v37 = vpop.f32.mrb[151].mxu1  ;;  %11683 = vpow2.f32 %v8915_v23  ;;  %v8913_v35 = vmul.f32 -1.442695, %v3023_v48 }
 0x365   : > { %v11676_v28 = vpop.eup %11675  ;;  %v3274_v61 = vmul.f32 %v11674_v16, %v2815_v1  ;;  %v3026_v34 = vadd.f32 %v13552_v17, %v3025_v37  ;;  %v8916_v3 = vmul.f32 -1.442695, %v3034_v49 }
 0x366   : > { %v11678_v54 = vpop.eup %11677  ;;  %v3183_v53 = vadd.f32 1.0, %v11676_v28  ;;  %v3930_v59 = vpack.c.bf16 %v3276_v50, %v3275_v14  ;;  %v2852_v28 = vadd.f32 %v13687_v63, %v13579_v4 }
 0x367   : > { %v11680_v20 = vpop.eup %11679  ;;  %v3181_v44 = vadd.f32 1.0, %v11678_v54  ;;  %v3929_v2 = vpack.c.bf16 %v3274_v61, %v3273_v39  ;;  %v8914_v5 = vmul.f32 -1.442695, %v3026_v34  ;;  %v2844_v54 = vadd.f32 %v13579_v4, %v13692_v42 }
 0x368   : > { %v11682_v12 = vpop.eup %11681  ;;  %11685 = vrcp.f32 %v3183_v53  ;;  %v3184_v31 = vadd.f32 1.0, %v11680_v20 }
 0x369   : > { %11687 = vrcp.f32 %v3181_v44  ;;  %v3182_v26 = vadd.f32 1.0, %v11682_v12  ;;  %10466 = vmatprep.mubr.bf16.mxu0 %v3929_v2  ;;  %10514 = vmatprep.mubr.bf16.mxu1 %v3929_v2 }
 0x36a   : > { %11689 = vrcp.f32 %v3184_v31  ;;  %10467 = vmatmul.mubr.bf16.gmra.mrb[204].mxu0 %v3930_v59  ;;  %10515 = vmatmul.mubr.bf16.gmra.mrb[204].mxu1 %v3930_v59  ;;  %v2847_v59 = vadd.f32 %v13579_v4, %v13698_v33 }
 0x36b   : > { %11691 = vrcp.f32 %v3182_v26 }
 0x36c   : > { %11693 = vpow2.f32 %v8913_v35 }
 0x36d   : > { %11695 = vpow2.f32 %v8916_v3 }
 0x36e   : > { %11697 = vpow2.f32 %v8914_v5  ;;  %v11684_v30 = vpop.eup %11683 }
 0x36f   : > { %v3187_v51 = vadd.f32 1.0, %v11684_v30  ;;  %v13705_v11 = vpop.f32.mrb[152].mxu0  ;;  %v10360_v43 = vpop.f32.mrb[152].mxu1 }
 0x370   : > { %v3047_v29 = vadd.f32 %v10360_v43, %v13552_v17  ;;  %v13710_v8 = vpop.f32.mrb[153].mxu0  ;;  %v3038_v32 = vpop.f32.mrb[153].mxu1 }
 0x371   : > { %11699 = vrcp.f32 %v3187_v51  ;;  %v3039_v56 = vadd.f32 %v13552_v17, %v3038_v32  ;;  %v13715_v15 = vpop.f32.mrb[154].mxu0  ;;  %v10361_v57 = vpop.f32.mrb[154].mxu1 }
 0x372   : > { %v11686_v40 = vpop.eup %11685  ;;  %v8919_v10 = vmul.f32 -1.442695, %v3047_v29  ;;  %v3050_v27 = vadd.f32 %v10361_v57, %v13552_v17  ;;  %v13718_v45 = vpop.f32.mrb[155].mxu0 }
 0x373   : > { %v11688_v9 = vpop.eup %11687  ;;  %v3279_v19 = vmul.f32 %v11686_v40, %v2836_v22  ;;  %v3041_v0 = vpop.f32.mrb[155].mxu1  ;;  %v8917_v21 = vmul.f32 -1.442695, %v3039_v56  ;;  %v2855_v22 = vadd.f32 %v13695_v38, %v13579_v4 }
 0x374   : > { %v11690_v52 = vpop.eup %11689  ;;  %v3277_v36 = vmul.f32 %v11688_v9, %v2828_v60  ;;  %v3042_v14 = vadd.f32 %v13552_v17, %v3041_v0  ;;  %11701 = vpow2.f32 %v8919_v10  ;;  %v8920_v16 = vmul.f32 -1.442695, %v3050_v27 }
 0x375   : > { %v11692_v24 = vpop.eup %11691  ;;  %v3280_v62 = vmul.f32 %v11690_v52, %v2839_v46  ;;  %11703 = vpow2.f32 %v8917_v21 }
 0x376   : > { %v11694_v55 = vpop.eup %11693  ;;  %v3278_v47 = vmul.f32 %v11692_v24, %v2831_v6  ;;  %v8918_v50 = vmul.f32 -1.442695, %v3042_v14 }
 0x377   : > { %v11696_v25 = vpop.eup %11695  ;;  %v3185_v1 = vadd.f32 1.0, %v11694_v55  ;;  %v3932_v58 = vpack.c.bf16 %v3280_v62, %v3279_v19 }
 0x378   : > { %v11698_v18 = vpop.eup %11697  ;;  %v3188_v39 = vadd.f32 1.0, %v11696_v25  ;;  %v3931_v48 = vpack.c.bf16 %v3278_v47, %v3277_v36  ;;  %v13744_v36 = vld [vmem:[%s15456_s5 + $0x1] ss:$0 sm:$0xff]  ;;  %v2868_v47 = vadd.f32 %v13705_v11, %v13579_v4 }
 0x379   : > { %11705 = vrcp.f32 %v3185_v1  ;;  %v3186_v41 = vadd.f32 1.0, %v11698_v18 }
 0x37a   : > { %11707 = vrcp.f32 %v3188_v39  ;;  %10470 = vmatprep.mubr.bf16.mxu0 %v3931_v48  ;;  %10518 = vmatprep.mubr.bf16.mxu1 %v3931_v48 }
 0x37b   : > { %11709 = vrcp.f32 %v3186_v41  ;;  %10471 = vmatmul.mubr.bf16.gmra.mrb[208].mxu0 %v3932_v58  ;;  %10519 = vmatmul.mubr.bf16.gmra.mrb[208].mxu1 %v3932_v58  ;;  %v11700_v23 = vpop.eup %11699 }
 0x37c   : > { %11711 = vpow2.f32 %v8920_v16  ;;  %v3283_v49 = vmul.f32 %v11700_v23, %v2852_v28  ;;  %v2860_v16 = vadd.f32 %v13579_v4, %v13710_v8 }
 0x37d   : > { %11713 = vpow2.f32 %v8918_v50 }
 0x37e   : > { %v11702_v37 = vpop.eup %11701 }
 0x37f   : > { %v11704_v61 = vpop.eup %11703  ;;  %v3191_v53 = vadd.f32 1.0, %v11702_v37  ;;  %v13725_v34 = vpop.f32.mrb[156].mxu0 }
 0x380   : > { %v10364_v20 = vpop.f32.mrb[156].mxu1  ;;  %v3189_v2 = vadd.f32 1.0, %v11704_v61  ;;  %v13728_v31 = vpop.f32.mrb[157].mxu0 }
 0x381   : > { %v3063_v12 = vadd.f32 %v10364_v20, %v13552_v17  ;;  %v3054_v35 = vpop.f32.mrb[157].mxu1  ;;  %11715 = vrcp.f32 %v3191_v53  ;;  %v13733_v3 = vpop.f32.mrb[158].mxu0 }
 0x382   : > { %v3055_v26 = vadd.f32 %v13552_v17, %v3054_v35  ;;  %v10365_v42 = vpop.f32.mrb[158].mxu1  ;;  %11717 = vrcp.f32 %v3189_v2  ;;  %v13738_v51 = vpop.f32.mrb[159].mxu0 }
 0x383   : > { %v11706_v44 = vpop.eup %11705  ;;  %v8923_v40 = vmul.f32 -1.442695, %v3063_v12  ;;  %v3066_v60 = vadd.f32 %v10365_v42, %v13552_v17  ;;  %v3057_v43 = vpop.f32.mrb[159].mxu1 }
 0x384   : > { %v11708_v63 = vpop.eup %11707  ;;  %v3281_v5 = vmul.f32 %v11706_v44, %v2844_v54  ;;  %v8921_v33 = vmul.f32 -1.442695, %v3055_v26  ;;  %v3058_v46 = vadd.f32 %v13552_v17, %v3057_v43  ;;  %v2871_v54 = vadd.f32 %v13715_v15, %v13579_v4  ;;  %v13777_v15 = vld [vmem:[%s15391_s8 + $0x80] sm:$0xff]  }
 0x385   : > { %v11710_v30 = vpop.eup %11709  ;;  %11719 = vpow2.f32 %v8923_v40  ;;  %v8924_v52 = vmul.f32 -1.442695, %v3066_v60  ;;  %v3284_v6 = vmul.f32 %v11708_v63, %v2855_v22  ;;  %v2863_v60 = vadd.f32 %v13579_v4, %v13718_v45  ;;  %10678 = vmatprep.subr.bf16.mxu1 %v13777_v15 }
 0x386   : > { %v11712_v9 = vpop.eup %11711  ;;  %v3282_v29 = vmul.f32 %v11710_v30, %v2847_v59  ;;  %11721 = vpow2.f32 %v8921_v33  ;;  %v8922_v38 = vmul.f32 -1.442695, %v3058_v46  ;;  %v13772_v59 = vld [vmem:[%s15389_s6 + $0x80] sm:$0xff]  }
 0x387   : > { %v11714_v32 = vpop.eup %11713  ;;  %v3192_v19 = vadd.f32 1.0, %v11712_v9  ;;  %v3934_v24 = vpack.c.bf16 %v3284_v6, %v3283_v49  ;;  %v13746_v17 = vpop.f32.mrb[160].mxu0  ;;  %10630 = vmatprep.subr.bf16.mxu0 %v13772_v59 }
 0x388   : > { %v3190_v56 = vadd.f32 1.0, %v11714_v32  ;;  %v3933_v57 = vpack.c.bf16 %v3282_v29, %v3281_v5  ;;  %v10408_v10 = vpop.f32.mrb[160].mxu1  ;;  %v13749_v0 = vpop.f32.mrb[161].mxu0 }
 0x389   : > { %11723 = vrcp.f32 %v3192_v19  ;;  %v3547_v27 = vadd.f32 %v10408_v10, %v13744_v36  ;;  %v3538_v62 = vpop.f32.mrb[161].mxu1  ;;  %v13752_v21 = vpop.f32.mrb[162].mxu0 }
 0x38a   : > { %11725 = vrcp.f32 %v3190_v56  ;;  %10474 = vmatprep.mubr.bf16.mxu0 %v3933_v57  ;;  %10522 = vmatprep.mubr.bf16.mxu1 %v3933_v57  ;;  %v3539_v55 = vadd.f32 %v13744_v36, %v3538_v62  ;;  %v10409_v14 = vpop.f32.mrb[162].mxu1  ;;  %v13757_v58 = vpop.f32.mrb[163].mxu0 }
 0x38b   : > { %11727 = vpow2.f32 %v8924_v52  ;;  %10475 = vmatmul.mubr.bf16.gmra.mrb[212].mxu0 %v3934_v24  ;;  %10523 = vmatmul.mubr.bf16.gmra.mrb[212].mxu1 %v3934_v24  ;;  %v8975_v25 = vmul.f32 -1.442695, %v3547_v27  ;;  %v3550_v1 = vadd.f32 %v10409_v14, %v13744_v36  ;;  %v3541_v18 = vpop.f32.mrb[163].mxu1  ;;  %v11716_v39 = vpop.eup %11715 }
 0x38c   : > { %11729 = vpow2.f32 %v8922_v38  ;;  %v8973_v48 = vmul.f32 -1.442695, %v3539_v55  ;;  %v3542_v41 = vadd.f32 %v13744_v36, %v3541_v18  ;;  %v11718_v50 = vpop.eup %11717  ;;  %v3287_v23 = vmul.f32 %v11716_v39, %v2868_v47 }
 0x38d   : > { %11731 = vpow2.f32 %v8975_v25  ;;  %v8976_v28 = vmul.f32 -1.442695, %v3550_v1  ;;  %v3285_v11 = vmul.f32 %v11718_v50, %v2860_v16 }
 0x38e   : > { %11733 = vpow2.f32 %v8973_v48  ;;  %v8974_v49 = vmul.f32 -1.442695, %v3542_v41 }
 0x38f   : > { %v11720_v37 = vpop.eup %11719  ;;  %11735 = vpow2.f32 %v8976_v28  ;;  %v13764_v20 = vpop.f32.mrb[164].mxu0 }
 0x390   : > { %v11722_v61 = vpop.eup %11721  ;;  %v3195_v53 = vadd.f32 1.0, %v11720_v37  ;;  %11737 = vpow2.f32 %v8974_v49  ;;  %v10412_v8 = vpop.f32.mrb[164].mxu1 }
 0x391   : > { %v3193_v2 = vadd.f32 1.0, %v11722_v61  ;;  %v3563_v12 = vadd.f32 %v10412_v8, %v13744_v36  ;;  %v13767_v35 = vpop.f32.mrb[165].mxu0  ;;  %v3554_v63 = vpop.f32.mrb[165].mxu1 }
 0x392   : > { %11739 = vrcp.f32 %v3195_v53  ;;  %v3555_v42 = vadd.f32 %v13744_v36, %v3554_v63  ;;  %v13780_v5 = vpop.f32.mrb[166].mxu0  ;;  %v10413_v30 = vpop.f32.mrb[166].mxu1  ;;  %v2876_v53 = vadd.f32 %v13579_v4, %v13728_v31  ;;  %v2887_v31 = vadd.f32 %v13733_v3, %v13579_v4 }
 0x393   : > { %v11724_v44 = vpop.eup %11723  ;;  %11741 = vrcp.f32 %v3193_v2  ;;  %v8979_v43 = vmul.f32 -1.442695, %v3563_v12  ;;  %v3566_v9 = vadd.f32 %v10413_v30, %v13744_v36  ;;  %v13785_v33 = vpop.f32.mrb[167].mxu0 }
 0x394   : > { %v11726_v26 = vpop.eup %11725  ;;  %v3288_v22 = vmul.f32 %v11724_v44, %v2871_v54  ;;  %v3557_v46 = vpop.f32.mrb[167].mxu1  ;;  %v8977_v19 = vmul.f32 -1.442695, %v3555_v42 }
 0x395   : > { %v11728_v40 = vpop.eup %11727  ;;  %11743 = vpow2.f32 %v8979_v43  ;;  %v8980_v6 = vmul.f32 -1.442695, %v3566_v9  ;;  %v3286_v56 = vmul.f32 %v11726_v26, %v2863_v60  ;;  %v3558_v45 = vadd.f32 %v13744_v36, %v3557_v46 }
 0x396   : > { %v11730_v29 = vpop.eup %11729  ;;  %v3196_v32 = vadd.f32 1.0, %v11728_v40  ;;  %v3936_v38 = vpack.c.bf16 %v3288_v22, %v3287_v23  ;;  %v2884_v23 = vadd.f32 %v13725_v34, %v13579_v4  ;;  %v13809_v34 = vld [vmem:[%s15457_s25 + $0x1] ss:$0 sm:$0xff]  ;;  %v2879_v60 = vadd.f32 %v13579_v4, %v13738_v51 }
 0x397   : > { %v3194_v52 = vadd.f32 1.0, %v11730_v29  ;;  %v11732_v57 = vpop.eup %11731  ;;  %v3935_v24 = vpack.c.bf16 %v3286_v56, %v3285_v11  ;;  %v13790_v62 = vpop.f32.mrb[168].mxu0  ;;  %v8978_v48 = vmul.f32 -1.442695, %v3558_v45  ;;  %v3360_v4 = vadd.f32 %v13809_v34, %v13749_v0 }
 0x398   : > { %11745 = vrcp.f32 %v3196_v32  ;;  %v11734_v10 = vpop.eup %11733  ;;  %v3763_v27 = vadd.f32 1.0, %v11732_v57  ;;  %v10416_v55 = vpop.f32.mrb[168].mxu1  ;;  %v3368_v32 = vadd.f32 %v13746_v17, %v13809_v34  ;;  %v3371_v17 = vadd.f32 %v13752_v21, %v13809_v34 }
 0x399   : > { %11747 = vrcp.f32 %v3194_v52  ;;  %v11736_v14 = vpop.eup %11735  ;;  %v3761_v47 = vadd.f32 1.0, %v11734_v10  ;;  %10478 = vmatprep.mubr.bf16.mxu0 %v3935_v24  ;;  %10526 = vmatprep.mubr.bf16.mxu1 %v3935_v24  ;;  %v3579_v25 = vadd.f32 %v10416_v55, %v13744_v36  ;;  %v13793_v1 = vpop.f32.mrb[169].mxu0  ;;  %v3363_v0 = vadd.f32 %v13809_v34, %v13757_v58 }
 0x39a   : > { %11749 = vpow2.f32 %v8977_v19  ;;  %v3570_v18 = vpop.f32.mrb[169].mxu1  ;;  %v11738_v39 = vpop.eup %11737  ;;  %v3764_v16 = vadd.f32 1.0, %v11736_v14  ;;  %10479 = vmatmul.mubr.bf16.gmra.mrb[216].mxu0 %v3936_v38  ;;  %10527 = vmatmul.mubr.bf16.gmra.mrb[216].mxu1 %v3936_v38 }
 0x39b   : > { %11751 = vpow2.f32 %v8980_v6  ;;  %v3571_v41 = vadd.f32 %v13744_v36, %v3570_v18  ;;  %v13796_v50 = vpop.f32.mrb[170].mxu0  ;;  %v10417_v28 = vpop.f32.mrb[170].mxu1  ;;  %v3762_v49 = vadd.f32 1.0, %v11738_v39  ;;  %v8983_v11 = vmul.f32 -1.442695, %v3579_v25 }
 0x39c   : > { %11753 = vrcp.f32 %v3763_v27  ;;  %v13800_v37 = vpop.f32.mrb[171].mxu0  ;;  %v3573_v61 = vpop.f32.mrb[171].mxu1  ;;  %v3582_v44 = vadd.f32 %v10417_v28, %v13744_v36 }
 0x39d   : > { %11755 = vrcp.f32 %v3761_v47  ;;  %v11740_v54 = vpop.eup %11739  ;;  %v8981_v8 = vmul.f32 -1.442695, %v3571_v41  ;;  %v3574_v12 = vadd.f32 %v13744_v36, %v3573_v61 }
 0x39e   : > { %11757 = vrcp.f32 %v3764_v16  ;;  %v11742_v2 = vpop.eup %11741  ;;  %v3291_v63 = vmul.f32 %v11740_v54, %v2884_v23  ;;  %v8984_v26 = vmul.f32 -1.442695, %v3582_v44 }
 0x39f   : > { %11759 = vrcp.f32 %v3762_v49  ;;  %v3289_v42 = vmul.f32 %v11742_v2, %v2876_v53  ;;  %v11744_v30 = vpop.eup %11743  ;;  %v8982_v22 = vmul.f32 -1.442695, %v3574_v12  ;;  %v13815_v9 = vpop.f32.mrb[172].mxu0 }
 0x3a0   : > { %11761 = vpow2.f32 %v8978_v48  ;;  %v3767_v43 = vadd.f32 1.0, %v11744_v30  ;;  %v10420_v46 = vpop.f32.mrb[172].mxu1  ;;  %v13820_v52 = vpop.f32.mrb[173].mxu0 }
 0x3a1   : > { %11763 = vpow2.f32 %v8983_v11  ;;  %v3595_v19 = vadd.f32 %v10420_v46, %v13744_v36  ;;  %v3586_v3 = vpop.f32.mrb[173].mxu1  ;;  %v13825_v45 = vpop.f32.mrb[174].mxu0 }
 0x3a2   : > { %v11746_v40 = vpop.eup %11745  ;;  %11765 = vpow2.f32 %v8981_v8  ;;  %v3587_v51 = vadd.f32 %v13744_v36, %v3586_v3  ;;  %v10421_v38 = vpop.f32.mrb[174].mxu1 }
 0x3a3   : > { %v11748_v29 = vpop.eup %11747  ;;  %11767 = vpow2.f32 %v8984_v26  ;;  %v3292_v6 = vmul.f32 %v11746_v40, %v2887_v31  ;;  %v8987_v27 = vmul.f32 -1.442695, %v3595_v19  ;;  %v13829_v55 = vpop.f32.mrb[175].mxu0  ;;  %v3598_v39 = vadd.f32 %v10421_v38, %v13744_v36 }
 0x3a4   : > { %v11750_v56 = vpop.eup %11749  ;;  %11769 = vrcp.f32 %v3767_v43  ;;  %v3290_v57 = vmul.f32 %v11748_v29, %v2879_v60  ;;  %v3589_v14 = vpop.f32.mrb[175].mxu1  ;;  %v8985_v18 = vmul.f32 -1.442695, %v3587_v51  ;;  %v3384_v29 = vadd.f32 %v13764_v20, %v13809_v34 }
 0x3a5   : > { %v11752_v24 = vpop.eup %11751  ;;  %v3765_v10 = vadd.f32 1.0, %v11750_v56  ;;  %11771 = vpow2.f32 %v8982_v22  ;;  %v3590_v48 = vadd.f32 %v13744_v36, %v3589_v14  ;;  %v3938_v21 = vpack.c.bf16 %v3292_v6, %v3291_v63 }
 0x3a6   : > { %v11754_v47 = vpop.eup %11753  ;;  %v3768_v25 = vadd.f32 1.0, %v11752_v24  ;;  %v3937_v41 = vpack.c.bf16 %v3290_v57, %v3289_v42  ;;  %v8988_v23 = vmul.f32 -1.442695, %v3598_v39 }
 0x3a7   : > { %v11756_v16 = vpop.eup %11755  ;;  %11773 = vrcp.f32 %v3765_v10  ;;  %v3859_v11 = vmul.f32 %v11754_v47, %v3368_v32  ;;  %v8986_v54 = vmul.f32 -1.442695, %v3590_v48  ;;  %v13835_v8 = vpop.f32.mrb[176].mxu0  ;;  %v11559_v47 = vld [vmem:[%s15389_s6 + $0x88] sm:$0xff]  }
 0x3a8   : > { %v11758_v28 = vpop.eup %11757  ;;  %11775 = vrcp.f32 %v3768_v25  ;;  %v3857_v49 = vmul.f32 %v11756_v16, %v3360_v4  ;;  %10482 = vmatprep.mubr.bf16.mxu0 %v3937_v41  ;;  %10530 = vmatprep.mubr.bf16.mxu1 %v3937_v41  ;;  %v10424_v44 = vpop.f32.mrb[176].mxu1  ;;  %v3376_v4 = vadd.f32 %v13809_v34, %v13767_v35  ;;  %v11560_v35 = vld [vmem:[%s15391_s8 + $0x88] sm:$0xff]   ;;  %v3387_v25 = vadd.f32 %v13780_v5, %v13809_v34 }
 0x3a9   : > { %v11760_v61 = vpop.eup %11759  ;;  %11777 = vpow2.f32 %v8987_v27  ;;  %v3860_v58 = vmul.f32 %v11758_v28, %v3371_v17  ;;  %10483 = vmatmul.mubr.bf16.gmra.mrb[220].mxu0 %v3938_v21  ;;  %10531 = vmatmul.mubr.bf16.gmra.mrb[220].mxu1 %v3938_v21  ;;  %v3611_v26 = vadd.f32 %v10424_v44, %v13744_v36  ;;  %v13838_v42 = vpop.f32.mrb[177].mxu0 }
 0x3aa   : > { %v11762_v53 = vpop.eup %11761  ;;  %11779 = vpow2.f32 %v8985_v18  ;;  %v3858_v2 = vmul.f32 %v11760_v61, %v3363_v0  ;;  %v3602_v30 = vpop.f32.mrb[177].mxu1 }
 0x3ab   : > { %v11764_v12 = vpop.eup %11763  ;;  %v3766_v63 = vadd.f32 1.0, %v11762_v53  ;;  %11781 = vpow2.f32 %v8988_v23  ;;  %v3603_v40 = vadd.f32 %v13744_v36, %v3602_v30  ;;  %v13841_v60 = vpop.f32.mrb[178].mxu0  ;;  %v8991_v19 = vmul.f32 -1.442695, %v3611_v26 }
 0x3ac   : > { %v11766_v31 = vpop.eup %11765  ;;  %v3771_v22 = vadd.f32 1.0, %v11764_v12  ;;  %11783 = vpow2.f32 %v8986_v54  ;;  %v10425_v43 = vpop.f32.mrb[178].mxu1  ;;  %v4631_v20 = vpack.c.bf16 %v3858_v2, %v3857_v49  ;;  %v4632_v14 = vpack.c.bf16 %v3860_v58, %v3859_v11  ;;  %v11561_v12 = vld [vmem:[%s15389_s6 + $0x90] sm:$0xff]  }
 0x3ad   : > { %v11768_v46 = vpop.eup %11767  ;;  %11785 = vrcp.f32 %v3766_v63  ;;  %v3769_v32 = vadd.f32 1.0, %v11766_v31  ;;  %v13845_v3 = vpop.f32.mrb[179].mxu0  ;;  %v3614_v38 = vadd.f32 %v10425_v43, %v13744_v36  ;;  %v8989_v24 = vmul.f32 -1.442695, %v3603_v40 }
 0x3ae   : > { %v3605_v6 = vpop.f32.mrb[179].mxu1  ;;  %v11770_v56 = vpop.eup %11769  ;;  %11787 = vrcp.f32 %v3771_v22  ;;  %v3772_v51 = vadd.f32 1.0, %v11768_v46  ;;  %10550 = vmatprep.mubr.bf16.mxu0 %v4631_v20  ;;  %10598 = vmatprep.mubr.bf16.mxu1 %v4631_v20  ;;  %v3379_v54 = vadd.f32 %v13809_v34, %v13785_v33  ;;  %v3400_v33 = vadd.f32 %v13790_v62, %v13809_v34 }
 0x3af   : > { %v11772_v57 = vpop.eup %11771  ;;  %11789 = vrcp.f32 %v3769_v32  ;;  %v3606_v17 = vadd.f32 %v13744_v36, %v3605_v6  ;;  %v8992_v27 = vmul.f32 -1.442695, %v3614_v38  ;;  %v3863_v39 = vmul.f32 %v11770_v56, %v3384_v29  ;;  %v13859_v48 = vpop.f32.mrb[180].mxu0 }
 0x3b0   : > { %11791 = vrcp.f32 %v3772_v51  ;;  %v3770_v10 = vadd.f32 1.0, %v11772_v57  ;;  %v10428_v41 = vpop.f32.mrb[180].mxu1  ;;  %v13862_v49 = vpop.f32.mrb[181].mxu0  ;;  %v3392_v63 = vadd.f32 %v13809_v34, %v13793_v1  ;;  %v3403_v38 = vadd.f32 %v13796_v50, %v13809_v34 }
 0x3b1   : > { %v11774_v0 = vpop.eup %11773  ;;  %11793 = vpow2.f32 %v8991_v19  ;;  %v8990_v18 = vmul.f32 -1.442695, %v3606_v17  ;;  %10551 = vmatmul.mubr.bf16.vlgmr.msra.gmra.mrb[224].mxu0 %v4632_v14  ;;  %10599 = vmatmul.mubr.bf16.vlgmr.msra.gmra.mrb[224].mxu1 %v4632_v14  ;;  %v3627_v23 = vadd.f32 %v10428_v41, %v13744_v36  ;;  %v3618_v5 = vpop.f32.mrb[181].mxu1  ;;  %v3395_v41 = vadd.f32 %v13809_v34, %v13800_v37 }
 0x3b2   : > { %v11776_v16 = vpop.eup %11775  ;;  %11795 = vrcp.f32 %v3770_v10  ;;  %v3861_v21 = vmul.f32 %v11774_v0, %v3376_v4  ;;  %10631 = vmatpush3.bf16.msra.mxu0 %v13772_v59  ;;  %10679 = vmatpush3.bf16.msra.mxu1 %v13777_v15  ;;  %v3619_v53 = vadd.f32 %v13744_v36, %v3618_v5  ;;  %v13869_v44 = vpop.f32.mrb[182].mxu0  ;;  %v11562_v59 = vld [vmem:[%s15391_s8 + $0x90] sm:$0xff]   ;;  %v3416_v37 = vadd.f32 %v13815_v9, %v13809_v34 }
 0x3b3   : > { %v11778_v28 = vpop.eup %11777  ;;  %11797 = vpow2.f32 %v8989_v24  ;;  %v3864_v11 = vmul.f32 %v11776_v16, %v3387_v25  ;;  %v10429_v2 = vpop.f32.mrb[182].mxu1  ;;  %10632 = vmatprep.subr.bf16.mxu0 %v11559_v47  ;;  %10680 = vmatprep.subr.bf16.mxu1 %v11560_v35  ;;  %v8995_v43 = vmul.f32 -1.442695, %v3627_v23 }
 0x3b4   : > { %v11780_v61 = vpop.eup %11779  ;;  %v3775_v58 = vadd.f32 1.0, %v11778_v28  ;;  %11799 = vpow2.f32 %v8992_v27  ;;  %v13881_v30 = vpop.f32.mrb[183].mxu0  ;;  %v3630_v46 = vadd.f32 %v10429_v2, %v13744_v36  ;;  %v8993_v19 = vmul.f32 -1.442695, %v3619_v53 }
 0x3b5   : > { %v11782_v15 = vpop.eup %11781  ;;  %v3773_v26 = vadd.f32 1.0, %v11780_v61  ;;  %11801 = vpow2.f32 %v8990_v18  ;;  %v3621_v31 = vpop.f32.mrb[183].mxu1  ;;  %v4634_v4 = vpack.c.bf16 %v3864_v11, %v3863_v39  ;;  %v11565_v11 = vld [vmem:[%s15389_s6 + $0xa0] sm:$0xff]  }
 0x3b6   : > { %v11784_v22 = vpop.eup %11783  ;;  %11803 = vrcp.f32 %v3775_v58  ;;  %v3776_v40 = vadd.f32 1.0, %v11782_v15  ;;  %v3622_v62 = vadd.f32 %v13744_v36, %v3621_v31  ;;  %10633 = vmatpush3.bf16.msra.mxu0 %v11559_v47  ;;  %10681 = vmatpush3.bf16.msra.mxu1 %v11560_v35  ;;  %v8996_v6 = vmul.f32 -1.442695, %v3630_v46  ;;  %v11563_v47 = vld [vmem:[%s15389_s6 + $0x98] sm:$0xff]   ;;  %v11566_v61 = vld [vmem:[%s15391_s8 + $0xa0] sm:$0xff]  }
 0x3b7   : > { %v11786_v29 = vpop.eup %11785  ;;  %11805 = vrcp.f32 %v3773_v26  ;;  %v3774_v32 = vadd.f32 1.0, %v11784_v22  ;;  %10634 = vmatprep.subr.bf16.mxu0 %v11561_v12  ;;  %10682 = vmatprep.subr.bf16.mxu1 %v11562_v59  ;;  %v13887_v10 = vpop.f32.mrb[184].mxu0  ;;  %v11564_v35 = vld [vmem:[%s15391_s8 + $0x98] sm:$0xff]   ;;  %v3408_v15 = vadd.f32 %v13809_v34, %v13820_v52 }
 0x3b8   : > { %v11788_v1 = vpop.eup %11787  ;;  %11807 = vrcp.f32 %v3776_v40  ;;  %v3862_v56 = vmul.f32 %v11786_v29, %v3379_v54  ;;  %v8994_v57 = vmul.f32 -1.442695, %v3622_v62  ;;  %v10432_v27 = vpop.f32.mrb[184].mxu1 }
 0x3b9   : > { %v11790_v51 = vpop.eup %11789  ;;  %11809 = vrcp.f32 %v3774_v32  ;;  %v3867_v24 = vmul.f32 %v11788_v1, %v3400_v33  ;;  %v3643_v50 = vadd.f32 %v10432_v27, %v13744_v36  ;;  %v13896_v25 = vpop.f32.mrb[185].mxu0  ;;  %v3419_v32 = vadd.f32 %v13825_v45, %v13809_v34  ;;  %v11568_v45 = vld [vmem:[%s15391_s8 + $0xa8] sm:$0xff]  }
 0x3ba   : > { %v11792_v17 = vpop.eup %11791  ;;  %11811 = vpow2.f32 %v8995_v43  ;;  %v4633_v20 = vpack.c.bf16 %v3862_v56, %v3861_v21  ;;  %v3865_v14 = vmul.f32 %v11790_v51, %v3392_v63  ;;  %v3634_v18 = vpop.f32.mrb[185].mxu1  ;;  %10635 = vmatpush3.bf16.msra.mxu0 %v11561_v12  ;;  %10683 = vmatpush3.bf16.msra.mxu1 %v11562_v59 }
 0x3bb   : > { %v11794_v0 = vpop.eup %11793  ;;  %11813 = vpow2.f32 %v8993_v19  ;;  %v3868_v39 = vmul.f32 %v11792_v17, %v3403_v38  ;;  %v3635_v28 = vadd.f32 %v13744_v36, %v3634_v18  ;;  %v13901_v23 = vpop.f32.mrb[186].mxu0  ;;  %v8999_v58 = vmul.f32 -1.442695, %v3643_v50  ;;  %10636 = vmatprep.subr.bf16.mxu0 %v11563_v47  ;;  %10684 = vmatprep.subr.bf16.mxu1 %v11564_v35  ;;  %v11569_v50 = vld [vmem:[%s15389_s6 + $0xb0] sm:$0xff]  }
 0x3bc   : > { %v11796_v16 = vpop.eup %11795  ;;  %v3779_v21 = vadd.f32 1.0, %v11794_v0  ;;  %11815 = vpow2.f32 %v8996_v6  ;;  %10554 = vmatprep.mubr.bf16.mxu0 %v4633_v20  ;;  %10602 = vmatprep.mubr.bf16.mxu1 %v4633_v20  ;;  %v10433_v5 = vpop.f32.mrb[186].mxu1  ;;  %v3411_v6 = vadd.f32 %v13809_v34, %v13829_v55  ;;  %v11570_v18 = vld [vmem:[%s15391_s8 + $0xb0] sm:$0xff]  }
 0x3bd   : > { %v11798_v54 = vpop.eup %11797  ;;  %11817 = vpow2.f32 %v8994_v57  ;;  %10555 = vmatmul.mubr.bf16.gmra.mrb[228].mxu0 %v4634_v4  ;;  %10603 = vmatmul.mubr.bf16.gmra.mrb[228].mxu1 %v4634_v4  ;;  %v3646_v53 = vadd.f32 %v10433_v5, %v13744_v36  ;;  %v13912_v2 = vpop.f32.mrb[187].mxu0  ;;  %v8997_v63 = vmul.f32 -1.442695, %v3635_v28  ;;  %v3866_v46 = vmul.f32 %v11796_v16, %v3395_v41  ;;  %v11567_v57 = vld [vmem:[%s15389_s6 + $0xa8] sm:$0xff]  }
 0x3be   : > { %v3637_v12 = vpop.f32.mrb[187].mxu1  ;;  %v11800_v59 = vpop.eup %11799  ;;  %11819 = vrcp.f32 %v3779_v21  ;;  %v3777_v33 = vadd.f32 1.0, %v11798_v54  ;;  %10637 = vmatpush3.bf16.msra.mxu0 %v11563_v47  ;;  %10685 = vmatpush3.bf16.msra.mxu1 %v11564_v35  ;;  %v4636_v29 = vpack.c.bf16 %v3868_v39, %v3867_v24 }
 0x3bf   : > { %v11802_v26 = vpop.eup %11801  ;;  %v3780_v9 = vadd.f32 1.0, %v11800_v59  ;;  %11821 = vpow2.f32 %v8999_v58  ;;  %v9000_v31 = vmul.f32 -1.442695, %v3646_v53  ;;  %v3638_v22 = vadd.f32 %v13744_v36, %v3637_v12  ;;  %10638 = vmatprep.subr.bf16.mxu0 %v11565_v11  ;;  %10686 = vmatprep.subr.bf16.mxu1 %v11566_v61  ;;  %v13921_v4 = vpop.f32.mrb[188].mxu0 }
 0x3c0   : > { %v11804_v40 = vpop.eup %11803  ;;  %11823 = vrcp.f32 %v3777_v33  ;;  %v3778_v43 = vadd.f32 1.0, %v11802_v26  ;;  %v4635_v56 = vpack.c.bf16 %v3866_v46, %v3865_v14  ;;  %v10436_v51 = vpop.f32.mrb[188].mxu1  ;;  %v11572_v26 = vld [vmem:[%s15391_s8 + $0xb8] sm:$0xff]  }
 0x3c1   : > { %v11806_v52 = vpop.eup %11805  ;;  %11825 = vrcp.f32 %v3780_v9  ;;  %v8998_v19 = vmul.f32 -1.442695, %v3638_v22  ;;  %v3871_v62 = vmul.f32 %v11804_v40, %v3416_v37  ;;  %v3659_v17 = vadd.f32 %v10436_v51, %v13744_v36  ;;  %v13930_v20 = vpop.f32.mrb[189].mxu0 }
 0x3c2   : > { %v11808_v1 = vpop.eup %11807  ;;  %11827 = vrcp.f32 %v3778_v43  ;;  %v3869_v38 = vmul.f32 %v11806_v52, %v3408_v15  ;;  %v3650_v55 = vpop.f32.mrb[189].mxu1  ;;  %10639 = vmatpush3.bf16.msra.mxu0 %v11565_v11  ;;  %10687 = vmatpush3.bf16.msra.mxu1 %v11566_v61  ;;  %v3432_v11 = vadd.f32 %v13835_v8, %v13809_v34  ;;  %v11571_v8 = vld [vmem:[%s15389_s6 + $0xb8] sm:$0xff]   ;;  %v3435_v43 = vadd.f32 %v13841_v60, %v13809_v34 }
 0x3c3   : > { %v11810_v24 = vpop.eup %11809  ;;  %11829 = vpow2.f32 %v8997_v63  ;;  %v3872_v27 = vmul.f32 %v11808_v1, %v3419_v32  ;;  %10558 = vmatprep.mubr.bf16.mxu0 %v4635_v56  ;;  %10606 = vmatprep.mubr.bf16.mxu1 %v4635_v56  ;;  %v13932_v47 = vpop.f32.mrb[190].mxu0  ;;  %v3651_v41 = vadd.f32 %v13744_v36, %v3650_v55  ;;  %v9003_v54 = vmul.f32 -1.442695, %v3659_v17 }
 0x3c4   : > { %v11812_v14 = vpop.eup %11811  ;;  %11831 = vpow2.f32 %v9000_v31  ;;  %v10437_v35 = vpop.f32.mrb[190].mxu1  ;;  %v3870_v0 = vmul.f32 %v11810_v24, %v3411_v6  ;;  %10640 = vmatprep.subr.bf16.mxu0 %v11567_v57  ;;  %10688 = vmatprep.subr.bf16.mxu1 %v11568_v45  ;;  %v3427_v32 = vadd.f32 %v13809_v34, %v13845_v3  ;;  %v3448_v24 = vadd.f32 %v13859_v48, %v13809_v34 }
 0x3c5   : > { %v11814_v39 = vpop.eup %11813  ;;  %v3783_v16 = vadd.f32 1.0, %v11812_v14  ;;  %11833 = vpow2.f32 %v8998_v19  ;;  %10559 = vmatmul.mubr.bf16.gmra.mrb[232].mxu0 %v4636_v29  ;;  %10607 = vmatmul.mubr.bf16.gmra.mrb[232].mxu1 %v4636_v29  ;;  %v13941_v21 = vpop.f32.mrb[191].mxu0  ;;  %v3662_v37 = vadd.f32 %v10437_v35, %v13744_v36  ;;  %v4638_v63 = vpack.c.bf16 %v3872_v27, %v3871_v62 }
 0x3c6   : > { %v3653_v28 = vpop.f32.mrb[191].mxu1  ;;  %v11816_v5 = vpop.eup %11815  ;;  %v3781_v61 = vadd.f32 1.0, %v11814_v39  ;;  %v4637_v59 = vpack.c.bf16 %v3870_v0, %v3869_v38  ;;  %10641 = vmatpush3.bf16.msra.mxu0 %v11567_v57  ;;  %10689 = vmatpush3.bf16.msra.mxu1 %v11568_v45  ;;  %v9001_v31 = vmul.f32 -1.442695, %v3651_v41  ;;  %v3440_v27 = vadd.f32 %v13809_v34, %v13862_v49 }
 0x3c7   : > { %v11818_v58 = vpop.eup %11817  ;;  %11835 = vrcp.f32 %v3783_v16  ;;  %v3784_v53 = vadd.f32 1.0, %v11816_v5  ;;  %v3654_v12 = vadd.f32 %v13744_v36, %v3653_v28  ;;  %10642 = vmatprep.subr.bf16.mxu0 %v11569_v50  ;;  %10690 = vmatprep.subr.bf16.mxu1 %v11570_v18  ;;  %v3424_v36 = vadd.f32 %v13809_v34, %v13838_v42 }
 0x3c8   : > { %v11820_v15 = vpop.eup %11819  ;;  %11837 = vrcp.f32 %v3781_v61  ;;  %v3782_v33 = vadd.f32 1.0, %v11818_v58  ;;  %10562 = vmatprep.mubr.bf16.mxu0 %v4637_v59  ;;  %10610 = vmatprep.mubr.bf16.mxu1 %v4637_v59  ;;  %v9004_v29 = vmul.f32 -1.442695, %v3662_v37  ;;  %v3451_v35 = vadd.f32 %v13869_v44, %v13809_v34 }
 0x3c9   : > { %v11822_v9 = vpop.eup %11821  ;;  %11839 = vrcp.f32 %v3784_v53  ;;  %v3875_v22 = vmul.f32 %v11820_v15, %v3432_v11  ;;  %v9002_v19 = vmul.f32 -1.442695, %v3654_v12  ;;  %v3464_v49 = vadd.f32 %v13887_v10, %v13809_v34 }
 0x3ca   : > { %v11824_v40 = vpop.eup %11823  ;;  %11841 = vrcp.f32 %v3782_v33  ;;  %v3787_v46 = vadd.f32 1.0, %v11822_v9  ;;  %10643 = vmatpush3.bf16.msra.mxu0 %v11569_v50  ;;  %10691 = vmatpush3.bf16.msra.mxu1 %v11570_v18  ;;  %v3443_v18 = vadd.f32 %v13809_v34, %v13881_v30  ;;  %v3456_v12 = vadd.f32 %v13809_v34, %v13896_v25 }
 0x3cb   : > { %v11826_v52 = vpop.eup %11825  ;;  %11843 = vpow2.f32 %v9003_v54  ;;  %v3873_v62 = vmul.f32 %v11824_v40, %v3424_v36  ;;  %10644 = vmatprep.subr.bf16.mxu0 %v11571_v8  ;;  %10692 = vmatprep.subr.bf16.mxu1 %v11572_v26  ;;  %v3467_v15 = vadd.f32 %v13901_v23, %v13809_v34  ;;  %v3480_v40 = vadd.f32 %v13921_v4, %v13809_v34 }
 0x3cc   : > { %v11828_v42 = vpop.eup %11827  ;;  %11845 = vrcp.f32 %v3787_v46  ;;  %v3876_v1 = vmul.f32 %v11826_v52, %v3435_v43  ;;  %v3472_v43 = vadd.f32 %v13809_v34, %v13930_v20  ;;  %v13986_v20 = vld [vmem:[%s15391_s8 + $0xc0] sm:$0xff]  }
 0x3cd   : > { %v11830_v6 = vpop.eup %11829  ;;  %11847 = vpow2.f32 %v9001_v31  ;;  %10563 = vmatmul.mubr.bf16.gmra.mrb[236].mxu0 %v4638_v63  ;;  %10611 = vmatmul.mubr.bf16.gmra.mrb[236].mxu1 %v4638_v63  ;;  %v3874_v60 = vmul.f32 %v11828_v42, %v3427_v32  ;;  %v3475_v32 = vadd.f32 %v13809_v34, %v13941_v21 }
 0x3ce   : > { %v11832_v56 = vpop.eup %11831  ;;  %v3785_v51 = vadd.f32 1.0, %v11830_v6  ;;  %11849 = vpow2.f32 %v9004_v29  ;;  %v4640_v38 = vpack.c.bf16 %v3876_v1, %v3875_v22  ;;  %10645 = vmatpush3.bf16.msra.mxu0 %v11571_v8  ;;  %10693 = vmatpush3.bf16.msra.mxu1 %v11572_v26  ;;  %v3459_v8 = vadd.f32 %v13809_v34, %v13912_v2 }
 0x3cf   : > { %v11834_v3 = vpop.eup %11833  ;;  %v3788_v57 = vadd.f32 1.0, %v11832_v56  ;;  %11851 = vpow2.f32 %v9002_v19  ;;  %v4639_v45 = vpack.c.bf16 %v3874_v60, %v3873_v62  ;;  %v3483_v29 = vadd.f32 %v13932_v47, %v13809_v34  ;;  %10774 = vmatprep.subr.bf16.mxu1 %v13986_v20  ;;  %v13992_v34 = vld [vmem:[%s15392_s9] ss:$0 sm:$0xff] }
 0x3d0   : > { %11853 = vrcp.f32 %v3785_v51  ;;  %v3786_v17 = vadd.f32 1.0, %v11834_v3 }
 0x3d1   : > { %v11836_v55 = vpop.eup %11835  ;;  %11855 = vrcp.f32 %v3788_v57  ;;  %10566 = vmatprep.mubr.bf16.mxu0 %v4639_v45  ;;  %10614 = vmatprep.mubr.bf16.mxu1 %v4639_v45 }
 0x3d2   : > { %v11838_v14 = vpop.eup %11837  ;;  %11857 = vrcp.f32 %v3786_v17  ;;  %v3879_v0 = vmul.f32 %v11836_v55, %v3448_v24 }
 0x3d3   : > { %v11840_v50 = vpop.eup %11839  ;;  %v3877_v48 = vmul.f32 %v11838_v14, %v3440_v27 }
 0x3d4   : > { %v11842_v39 = vpop.eup %11841  ;;  %v3880_v16 = vmul.f32 %v11840_v50, %v3451_v35  ;;  %v14001_v35 = vld [vmem:[%s15389_s6 + $0xc0] sm:$0xff]  }
 0x3d5   : > { %v11844_v41 = vpop.eup %11843  ;;  %10567 = vmatmul.mubr.bf16.gmra.mrb[240].mxu0 %v4640_v38  ;;  %10615 = vmatmul.mubr.bf16.gmra.mrb[240].mxu1 %v4640_v38  ;;  %v3878_v28 = vmul.f32 %v11842_v39, %v3443_v18 }
 0x3d6   : > { %v11846_v5 = vpop.eup %11845  ;;  %v3791_v11 = vadd.f32 1.0, %v11844_v41  ;;  %v4642_v61 = vpack.c.bf16 %v3880_v16, %v3879_v0  ;;  %10726 = vmatprep.subr.bf16.mxu0 %v14001_v35 }
 0x3d7   : > { %v11848_v44 = vpop.eup %11847  ;;  %v4641_v54 = vpack.c.bf16 %v3878_v28, %v3877_v48  ;;  %v3883_v37 = vmul.f32 %v11846_v5, %v3464_v49 }
 0x3d8   : > { %v11850_v58 = vpop.eup %11849  ;;  %11859 = vrcp.f32 %v3791_v11  ;;  %v3789_v53 = vadd.f32 1.0, %v11848_v44 }
 0x3d9   : > { %v11852_v30 = vpop.eup %11851  ;;  %v3792_v59 = vadd.f32 1.0, %v11850_v58  ;;  %10570 = vmatprep.mubr.bf16.mxu0 %v4641_v54  ;;  %10618 = vmatprep.mubr.bf16.mxu1 %v4641_v54 }
 0x3da   : > { %v11854_v10 = vpop.eup %11853  ;;  %11861 = vrcp.f32 %v3789_v53  ;;  %v3790_v33 = vadd.f32 1.0, %v11852_v30 }
 0x3db   : > { %v11856_v63 = vpop.eup %11855  ;;  %11863 = vrcp.f32 %v3792_v59  ;;  %v3881_v26 = vmul.f32 %v11854_v10, %v3456_v12 }
 0x3dc   : > { %v11858_v9 = vpop.eup %11857  ;;  %11865 = vrcp.f32 %v3790_v33  ;;  %v3884_v36 = vmul.f32 %v11856_v63, %v3467_v15  ;;  %v14018_v33 = vld [vmem:[%s15390_s7] ss:$0 sm:$0xff] }
 0x3dd   : > { %10571 = vmatmul.mubr.bf16.gmra.mrb[244].mxu0 %v4642_v61  ;;  %10619 = vmatmul.mubr.bf16.gmra.mrb[244].mxu1 %v4642_v61  ;;  %v3882_v25 = vmul.f32 %v11858_v9, %v3459_v8 }
 0x3de   : > { %v4644_v31 = vpack.c.bf16 %v3884_v36, %v3883_v37 }
 0x3df   : > { %v4643_v22 = vpack.c.bf16 %v3882_v25, %v3881_v26 }
 0x3e1   : > { %10574 = vmatprep.mubr.bf16.mxu0 %v4643_v22  ;;  %10622 = vmatprep.mubr.bf16.mxu1 %v4643_v22 }
 0x3e2   : > { %v11860_v23 = vpop.eup %11859 }
 0x3e3   : > { %v3887_v2 = vmul.f32 %v11860_v23, %v3480_v40 }
 0x3e4   : > { %v11862_v46 = vpop.eup %11861 }
 0x3e5   : > { %v11864_v52 = vpop.eup %11863  ;;  %10575 = vmatmul.mubr.bf16.gmra.mrb[248].mxu0 %v4644_v31  ;;  %10623 = vmatmul.mubr.bf16.gmra.mrb[248].mxu1 %v4644_v31  ;;  %v3885_v19 = vmul.f32 %v11862_v46, %v3472_v43 }
 0x3e6   : > { %v11866_v62 = vpop.eup %11865  ;;  %v3888_v4 = vmul.f32 %v11864_v52, %v3483_v29 }
 0x3e7   : > { %v3886_v42 = vmul.f32 %v11866_v62, %v3475_v32 }
 0x3e8   : > { %v4646_v1 = vpack.c.bf16 %v3888_v4, %v3887_v2 }
 0x3e9   : > { %v4645_v6 = vpack.c.bf16 %v3886_v42, %v3885_v19 }
 0x3eb   : > { %10578 = vmatprep.mubr.bf16.mxu0 %v4645_v6  ;;  %10626 = vmatprep.mubr.bf16.mxu1 %v4645_v6  ;;  %v11574_v6 = vld [vmem:[%s15391_s8 + $0xc8] sm:$0xff]  }
 0x3ed   : > { %10579 = vmatmul.mubr.bf16.gmra.mrb[252].mxu0 %v4646_v1  ;;  %10627 = vmatmul.mubr.bf16.gmra.mrb[252].mxu1 %v4646_v1 }
 0x408   : > { %v10456_v47 = vpop.f32.mrb[192].mxu0  ;;  %v10504_v21 = vpop.f32.mrb[192].mxu1 }
 0x409   : > { %v4251_v60 = vadd.f32 %v10504_v21, %v13992_v34  ;;  %v4027_v56 = vpop.f32.mrb[193].mxu0  ;;  %v4242_v51 = vpop.f32.mrb[193].mxu1  ;;  %v4036_v36 = vadd.f32 %v10456_v47, %v14018_v33  ;;  %v11579_v47 = vld [vmem:[%s15389_s6 + $0xc8] sm:$0xff]  }
 0x40a   : > { %v4243_v38 = vadd.f32 %v13992_v34, %v4242_v51  ;;  %v10457_v3 = vpop.f32.mrb[194].mxu0  ;;  %v10505_v57 = vpop.f32.mrb[194].mxu1  ;;  %v4028_v31 = vadd.f32 %v14018_v33, %v4027_v56 }
 0x40b   : > { %v9025_v45 = vmul.f32 -1.442695, %v4251_v60  ;;  %v4254_v24 = vadd.f32 %v10505_v57, %v13992_v34  ;;  %v4030_v17 = vpop.f32.mrb[195].mxu0  ;;  %v4245_v55 = vpop.f32.mrb[195].mxu1  ;;  %v4039_v23 = vadd.f32 %v10457_v3, %v14018_v33 }
 0x40c   : > { %v9023_v27 = vmul.f32 -1.442695, %v4243_v38  ;;  %v4246_v14 = vadd.f32 %v13992_v34, %v4245_v55  ;;  %v4031_v2 = vadd.f32 %v14018_v33, %v4030_v17 }
 0x40d   : > { %11867 = vpow2.f32 %v9025_v45  ;;  %v9026_v0 = vmul.f32 -1.442695, %v4254_v24 }
 0x40e   : > { %11869 = vpow2.f32 %v9023_v27  ;;  %v9024_v50 = vmul.f32 -1.442695, %v4246_v14 }
 0x40f   : > { %11871 = vpow2.f32 %v9026_v0 }
 0x410   : > { %11873 = vpow2.f32 %v9024_v50 }
 0x417   : > { %v11868_v18 = vpop.eup %11867 }
 0x418   : > { %v11870_v48 = vpop.eup %11869  ;;  %v4467_v39 = vadd.f32 1.0, %v11868_v18 }
 0x419   : > { %v11872_v16 = vpop.eup %11871  ;;  %v4465_v41 = vadd.f32 1.0, %v11870_v48 }
 0x41a   : > { %v11874_v49 = vpop.eup %11873  ;;  %11875 = vrcp.f32 %v4467_v39  ;;  %v4468_v28 = vadd.f32 1.0, %v11872_v16  ;;  %v11575_v16 = vld [vmem:[%s15391_s8 + $0xd0] sm:$0xff]  }
 0x41b   : > { %11877 = vrcp.f32 %v4465_v41  ;;  %v4466_v5 = vadd.f32 1.0, %v11874_v49  ;;  %v11580_v41 = vld [vmem:[%s15389_s6 + $0xd0] sm:$0xff]  }
 0x41c   : > { %11879 = vrcp.f32 %v4468_v28  ;;  %v14004_v11 = vpop.f32.mrb[196].mxu0  ;;  %v10508_v61 = vpop.f32.mrb[196].mxu1  ;;  %v11576_v28 = vld [vmem:[%s15391_s8 + $0xd8] sm:$0xff]  }
 0x41d   : > { %11881 = vrcp.f32 %v4466_v5  ;;  %v4267_v44 = vadd.f32 %v10508_v61, %v13992_v34  ;;  %v14007_v54 = vpop.f32.mrb[197].mxu0  ;;  %v4258_v37 = vpop.f32.mrb[197].mxu1  ;;  %v11582_v5 = vld [vmem:[%s15389_s6 + $0xd8] sm:$0xff]   ;;  %v4052_v61 = vadd.f32 %v14004_v11, %v14018_v33 }
 0x41e   : > { %v4259_v58 = vadd.f32 %v13992_v34, %v4258_v37  ;;  %v14010_v53 = vpop.f32.mrb[198].mxu0  ;;  %v10509_v30 = vpop.f32.mrb[198].mxu1  ;;  %v11583_v37 = vld [vmem:[%s15389_s6 + $0xe0] sm:$0xff]  }
 0x41f   : > { %v9029_v12 = vmul.f32 -1.442695, %v4267_v44  ;;  %v4270_v59 = vadd.f32 %v10509_v30, %v13992_v34  ;;  %v14013_v10 = vpop.f32.mrb[199].mxu0  ;;  %v4261_v15 = vpop.f32.mrb[199].mxu1  ;;  %v11578_v44 = vld [vmem:[%s15391_s8 + $0xe0] sm:$0xff]   ;;  %v4044_v30 = vadd.f32 %v14018_v33, %v14007_v54  ;;  %v11581_v54 = vld [vmem:[%s15391_s8 + $0xe8] sm:$0xff]  }
 0x420   : > { %v9027_v63 = vmul.f32 -1.442695, %v4259_v58  ;;  %v4262_v8 = vadd.f32 %v13992_v34, %v4261_v15  ;;  %v4055_v15 = vadd.f32 %v14010_v53, %v14018_v33  ;;  %v11585_v53 = vld [vmem:[%s15389_s6 + $0xe8] sm:$0xff]  }
 0x421   : > { %11883 = vpow2.f32 %v9029_v12  ;;  %v9030_v26 = vmul.f32 -1.442695, %v4270_v59 }
 0x422   : > { %11885 = vpow2.f32 %v9027_v63  ;;  %v9028_v9 = vmul.f32 -1.442695, %v4262_v8  ;;  %v4047_v63 = vadd.f32 %v14018_v33, %v14013_v10 }
 0x423   : > { %11887 = vpow2.f32 %v9030_v26 }
 0x424   : > { %v11876_v25 = vpop.eup %11875  ;;  %11889 = vpow2.f32 %v9028_v9 }
 0x425   : > { %v11878_v22 = vpop.eup %11877  ;;  %v4563_v40 = vmul.f32 %v11876_v25, %v4036_v36 }
 0x426   : > { %v11880_v43 = vpop.eup %11879  ;;  %v4561_v46 = vmul.f32 %v11878_v22, %v4028_v31 }
 0x427   : > { %v11882_v29 = vpop.eup %11881  ;;  %v4564_v52 = vmul.f32 %v11880_v43, %v4039_v23 }
 0x428   : > { %v4562_v32 = vmul.f32 %v11882_v29, %v4031_v2 }
 0x429   : > { %v5340_v19 = vpack.c.bf16 %v4564_v52, %v4563_v40 }
 0x42a   : > { %v5339_v62 = vpack.c.bf16 %v4562_v32, %v4561_v46 }
 0x42b   : > { %v11884_v4 = vpop.eup %11883  ;;  %v14025_v42 = vpop.f32.mrb[200].mxu0 }
 0x42c   : > { %v10512_v1 = vpop.f32.mrb[200].mxu1  ;;  %v11886_v21 = vpop.eup %11885  ;;  %v4471_v60 = vadd.f32 1.0, %v11884_v4  ;;  %10646 = vmatprep.mubr.bf16.mxu0 %v5339_v62  ;;  %10694 = vmatprep.mubr.bf16.mxu1 %v5339_v62 }
 0x42d   : > { %v4283_v56 = vadd.f32 %v10512_v1, %v13992_v34  ;;  %v14034_v51 = vpop.f32.mrb[201].mxu0  ;;  %v4274_v38 = vpop.f32.mrb[201].mxu1  ;;  %v4469_v57 = vadd.f32 1.0, %v11886_v21  ;;  %10647 = vmatmul.mubr.bf16.vlgmr.msra.gmra.mrb[0].mxu0 %v5340_v19  ;;  %10695 = vmatmul.mubr.bf16.vlgmr.msra.gmra.mrb[0].mxu1 %v5340_v19 }
 0x42e   : > { %v11888_v3 = vpop.eup %11887  ;;  %v4275_v45 = vadd.f32 %v13992_v34, %v4274_v38  ;;  %v14037_v24 = vpop.f32.mrb[202].mxu0  ;;  %11891 = vrcp.f32 %v4471_v60  ;;  %10775 = vmatpush3.bf16.msra.mxu1 %v13986_v20  ;;  %10727 = vmatpush3.bf16.msra.mxu0 %v14001_v35 }
 0x42f   : > { %v10513_v17 = vpop.f32.mrb[202].mxu1  ;;  %v11890_v55 = vpop.eup %11889  ;;  %v4472_v27 = vadd.f32 1.0, %v11888_v3  ;;  %v9033_v14 = vmul.f32 -1.442695, %v4283_v56  ;;  %11893 = vrcp.f32 %v4469_v57  ;;  %10776 = vmatprep.subr.bf16.mxu1 %v11574_v6  ;;  %10728 = vmatprep.subr.bf16.mxu0 %v11579_v47 }
 0x430   : > { %v14039_v0 = vpop.f32.mrb[203].mxu0  ;;  %v4277_v50 = vpop.f32.mrb[203].mxu1  ;;  %v4470_v18 = vadd.f32 1.0, %v11890_v55  ;;  %v9031_v48 = vmul.f32 -1.442695, %v4275_v45  ;;  %v4286_v39 = vadd.f32 %v10513_v17, %v13992_v34  ;;  %v11584_v17 = vld [vmem:[%s15391_s8 + $0xf0] sm:$0xff]  }
 0x431   : > { %11895 = vrcp.f32 %v4472_v27  ;;  %v4278_v20 = vadd.f32 %v13992_v34, %v4277_v50  ;;  %v11586_v55 = vld [vmem:[%s15389_s6 + $0xf0] sm:$0xff]   ;;  %v11588_v50 = vld [vmem:[%s15389_s6 + $0xf8] sm:$0xff]  }
 0x432   : > { %11897 = vrcp.f32 %v4470_v18  ;;  %v9034_v35 = vmul.f32 -1.442695, %v4286_v39  ;;  %10777 = vmatpush3.bf16.msra.mxu1 %v11574_v6  ;;  %10729 = vmatpush3.bf16.msra.mxu0 %v11579_v47  ;;  %v4068_v18 = vadd.f32 %v14025_v42, %v14018_v33  ;;  %v4060_v39 = vadd.f32 %v14018_v33, %v14034_v51 }
 0x433   : > { %11899 = vpow2.f32 %v9033_v14  ;;  %v9032_v49 = vmul.f32 -1.442695, %v4278_v20  ;;  %10778 = vmatprep.subr.bf16.mxu1 %v11575_v16  ;;  %10730 = vmatprep.subr.bf16.mxu0 %v11580_v41  ;;  %v11587_v14 = vld [vmem:[%s15391_s8 + $0xf8] sm:$0xff]   ;;  %v4071_v20 = vadd.f32 %v14037_v24, %v14018_v33 }
 0x434   : > { %11901 = vpow2.f32 %v9031_v48 }
 0x435   : > { %11903 = vpow2.f32 %v9034_v35 }
 0x436   : > { %11905 = vpow2.f32 %v9032_v49  ;;  %10779 = vmatpush3.bf16.msra.mxu1 %v11575_v16  ;;  %10731 = vmatpush3.bf16.msra.mxu0 %v11580_v41  ;;  %v4063_v49 = vadd.f32 %v14018_v33, %v14039_v0 }
 0x437   : > { %10780 = vmatprep.subr.bf16.mxu1 %v11576_v28  ;;  %10732 = vmatprep.subr.bf16.mxu0 %v11582_v5 }
 0x438   : > { %v11892_v58 = vpop.eup %11891 }
 0x439   : > { %v11894_v12 = vpop.eup %11893  ;;  %v4567_v59 = vmul.f32 %v11892_v58, %v4052_v61 }
 0x43a   : > { %v4565_v8 = vmul.f32 %v11894_v12, %v4044_v30  ;;  %10781 = vmatpush3.bf16.msra.mxu1 %v11576_v28  ;;  %10733 = vmatpush3.bf16.msra.mxu0 %v11582_v5 }
 0x43b   : > { %v11896_v11 = vpop.eup %11895  ;;  %10782 = vmatprep.subr.bf16.mxu1 %v11578_v44  ;;  %10734 = vmatprep.subr.bf16.mxu0 %v11583_v37 }
 0x43c   : > { %v11898_v26 = vpop.eup %11897  ;;  %v4568_v9 = vmul.f32 %v11896_v11, %v4055_v15 }
 0x43d   : > { %v14071_v36 = vpop.f32.mrb[204].mxu0  ;;  %v10516_v25 = vpop.f32.mrb[204].mxu1  ;;  %v4566_v23 = vmul.f32 %v11898_v26, %v4047_v63 }
 0x43e   : > { %v11900_v31 = vpop.eup %11899  ;;  %v4299_v10 = vadd.f32 %v10516_v25, %v13992_v34  ;;  %v14080_v22 = vpop.f32.mrb[205].mxu0  ;;  %v5342_v2 = vpack.c.bf16 %v4568_v9, %v4567_v59  ;;  %10783 = vmatpush3.bf16.msra.mxu1 %v11578_v44  ;;  %10735 = vmatpush3.bf16.msra.mxu0 %v11583_v37 }
 0x43f   : > { %v4290_v40 = vpop.f32.mrb[205].mxu1  ;;  %v11902_v43 = vpop.eup %11901  ;;  %v4475_v46 = vadd.f32 1.0, %v11900_v31  ;;  %10784 = vmatprep.subr.bf16.mxu1 %v11581_v54  ;;  %10736 = vmatprep.subr.bf16.mxu0 %v11585_v53  ;;  %v5341_v45 = vpack.c.bf16 %v4566_v23, %v4565_v8 }
 0x440   : > { %v4291_v29 = vadd.f32 %v13992_v34, %v4290_v40  ;;  %v14083_v52 = vpop.f32.mrb[206].mxu0  ;;  %v10517_v32 = vpop.f32.mrb[206].mxu1  ;;  %v4473_v62 = vadd.f32 1.0, %v11902_v43  ;;  %v9037_v60 = vmul.f32 -1.442695, %v4299_v10 }
 0x441   : > { %v11904_v19 = vpop.eup %11903  ;;  %v4302_v4 = vadd.f32 %v10517_v32, %v13992_v34  ;;  %v14086_v1 = vpop.f32.mrb[207].mxu0  ;;  %11907 = vrcp.f32 %v4475_v46  ;;  %10650 = vmatprep.mubr.bf16.mxu0 %v5341_v45  ;;  %10698 = vmatprep.mubr.bf16.mxu1 %v5341_v45  ;;  %v4084_v32 = vadd.f32 %v14071_v36, %v14018_v33 }
 0x442   : > { %v4293_v6 = vpop.f32.mrb[207].mxu1  ;;  %v11906_v47 = vpop.eup %11905  ;;  %v4476_v21 = vadd.f32 1.0, %v11904_v19  ;;  %11909 = vrcp.f32 %v4473_v62  ;;  %v9035_v38 = vmul.f32 -1.442695, %v4291_v29  ;;  %10785 = vmatpush3.bf16.msra.mxu1 %v11581_v54  ;;  %10737 = vmatpush3.bf16.msra.mxu0 %v11585_v53  ;;  %v4076_v62 = vadd.f32 %v14018_v33, %v14080_v22 }
 0x443   : > { %v4474_v56 = vadd.f32 1.0, %v11906_v47  ;;  %v4294_v3 = vadd.f32 %v13992_v34, %v4293_v6  ;;  %v9038_v57 = vmul.f32 -1.442695, %v4302_v4  ;;  %10651 = vmatmul.mubr.bf16.gmra.mrb[4].mxu0 %v5342_v2  ;;  %10699 = vmatmul.mubr.bf16.gmra.mrb[4].mxu1 %v5342_v2  ;;  %v4087_v47 = vadd.f32 %v14083_v52, %v14018_v33 }
 0x444   : > { %11911 = vrcp.f32 %v4476_v21  ;;  %10786 = vmatprep.subr.bf16.mxu1 %v11584_v17  ;;  %10738 = vmatprep.subr.bf16.mxu0 %v11586_v55 }
 0x445   : > { %11913 = vrcp.f32 %v4474_v56  ;;  %v9036_v27 = vmul.f32 -1.442695, %v4294_v3 }
 0x446   : > { %11915 = vpow2.f32 %v9037_v60  ;;  %10787 = vmatpush3.bf16.msra.mxu1 %v11584_v17  ;;  %10739 = vmatpush3.bf16.msra.mxu0 %v11586_v55  ;;  %v4079_v60 = vadd.f32 %v14018_v33, %v14086_v1 }
 0x447   : > { %11917 = vpow2.f32 %v9035_v38  ;;  %10788 = vmatprep.subr.bf16.mxu1 %v11587_v14  ;;  %10740 = vmatprep.subr.bf16.mxu0 %v11588_v50 }
 0x448   : > { %11919 = vpow2.f32 %v9038_v57 }
 0x449   : > { %11921 = vpow2.f32 %v9036_v27 }
 0x44a   : > { %10789 = vmatpush3.bf16.msra.mxu1 %v11587_v14  ;;  %10741 = vmatpush3.bf16.msra.mxu0 %v11588_v50 }
 0x44b   : > { %v11908_v48 = vpop.eup %11907 }
 0x44c   : > { %v11910_v16 = vpop.eup %11909  ;;  %v4571_v41 = vmul.f32 %v11908_v48, %v4068_v18 }
 0x44d   : > { %v4569_v28 = vmul.f32 %v11910_v16, %v4060_v39 }
 0x44e   : > { %v11912_v35 = vpop.eup %11911  ;;  %v14109_v44 = vpop.f32.mrb[208].mxu0 }
 0x44f   : > { %v11914_v5 = vpop.eup %11913  ;;  %v4572_v61 = vmul.f32 %v11912_v35, %v4071_v20  ;;  %v10520_v42 = vpop.f32.mrb[208].mxu1 }
 0x450   : > { %v11916_v37 = vpop.eup %11915  ;;  %v4315_v51 = vadd.f32 %v10520_v42, %v13992_v34  ;;  %v14112_v58 = vpop.f32.mrb[209].mxu0  ;;  %v4570_v12 = vmul.f32 %v11914_v5, %v4063_v49 }
 0x451   : > { %v4306_v30 = vpop.f32.mrb[209].mxu1  ;;  %v11918_v24 = vpop.eup %11917  ;;  %v5344_v59 = vpack.c.bf16 %v4572_v61, %v4571_v41  ;;  %v4479_v15 = vadd.f32 1.0, %v11916_v37 }
 0x452   : > { %v4307_v11 = vadd.f32 %v13992_v34, %v4306_v30  ;;  %v14115_v63 = vpop.f32.mrb[210].mxu0  ;;  %v10521_v0 = vpop.f32.mrb[210].mxu1  ;;  %v4477_v26 = vadd.f32 1.0, %v11918_v24  ;;  %v9041_v10 = vmul.f32 -1.442695, %v4315_v51  ;;  %v5343_v46 = vpack.c.bf16 %v4570_v12, %v4569_v28 }
 0x453   : > { %v11920_v8 = vpop.eup %11919  ;;  %v4318_v9 = vadd.f32 %v10521_v0, %v13992_v34  ;;  %v14118_v25 = vpop.f32.mrb[211].mxu0  ;;  %11923 = vrcp.f32 %v4479_v15  ;;  %v4100_v24 = vadd.f32 %v14109_v44, %v14018_v33  ;;  %v4092_v15 = vadd.f32 %v14018_v33, %v14112_v58 }
 0x454   : > { %v4309_v54 = vpop.f32.mrb[211].mxu1  ;;  %v11922_v53 = vpop.eup %11921  ;;  %v4480_v31 = vadd.f32 1.0, %v11920_v8  ;;  %11925 = vrcp.f32 %v4477_v26  ;;  %v9039_v23 = vmul.f32 -1.442695, %v4307_v11  ;;  %10654 = vmatprep.mubr.bf16.mxu0 %v5343_v46  ;;  %10702 = vmatprep.mubr.bf16.mxu1 %v5343_v46  ;;  %v4103_v8 = vadd.f32 %v14115_v63, %v14018_v33 }
 0x455   : > { %v4478_v40 = vadd.f32 1.0, %v11922_v53  ;;  %v4310_v43 = vadd.f32 %v13992_v34, %v4309_v54  ;;  %v9042_v2 = vmul.f32 -1.442695, %v4318_v9  ;;  %10655 = vmatmul.mubr.bf16.gmra.mrb[8].mxu0 %v5344_v59  ;;  %10703 = vmatmul.mubr.bf16.gmra.mrb[8].mxu1 %v5344_v59  ;;  %v4095_v9 = vadd.f32 %v14018_v33, %v14118_v25 }
 0x456   : > { %11927 = vrcp.f32 %v4480_v31 }
 0x457   : > { %11929 = vrcp.f32 %v4478_v40  ;;  %v9040_v29 = vmul.f32 -1.442695, %v4310_v43 }
 0x458   : > { %11931 = vpow2.f32 %v9041_v10 }
 0x459   : > { %11933 = vpow2.f32 %v9039_v23 }
 0x45a   : > { %11935 = vpow2.f32 %v9042_v2 }
 0x45b   : > { %11937 = vpow2.f32 %v9040_v29 }
 0x45d   : > { %v11924_v19 = vpop.eup %11923 }
 0x45e   : > { %v11926_v4 = vpop.eup %11925  ;;  %v4575_v6 = vmul.f32 %v11924_v19, %v4084_v32  ;;  %v14129_v56 = vpop.f32.mrb[212].mxu0 }
 0x45f   : > { %v10524_v38 = vpop.f32.mrb[212].mxu1  ;;  %v4573_v3 = vmul.f32 %v11926_v4, %v4076_v62  ;;  %v14132_v17 = vpop.f32.mrb[213].mxu0 }
 0x460   : > { %v11928_v21 = vpop.eup %11927  ;;  %v4331_v36 = vadd.f32 %v10524_v38, %v13992_v34  ;;  %v4322_v22 = vpop.f32.mrb[213].mxu1 }
 0x461   : > { %v11930_v57 = vpop.eup %11929  ;;  %v4576_v45 = vmul.f32 %v11928_v21, %v4087_v47  ;;  %v4323_v27 = vadd.f32 %v13992_v34, %v4322_v22  ;;  %v14135_v14 = vpop.f32.mrb[214].mxu0 }
 0x462   : > { %v11932_v55 = vpop.eup %11931  ;;  %v10525_v52 = vpop.f32.mrb[214].mxu1  ;;  %v4574_v50 = vmul.f32 %v11930_v57, %v4079_v60  ;;  %v9045_v35 = vmul.f32 -1.442695, %v4331_v36 }
 0x463   : > { %v11934_v18 = vpop.eup %11933  ;;  %v5346_v1 = vpack.c.bf16 %v4576_v45, %v4575_v6  ;;  %v4483_v48 = vadd.f32 1.0, %v11932_v55  ;;  %v14137_v39 = vpop.f32.mrb[215].mxu0  ;;  %v4334_v49 = vadd.f32 %v10525_v52, %v13992_v34  ;;  %v9043_v51 = vmul.f32 -1.442695, %v4323_v27 }
 0x464   : > { %v4325_v16 = vpop.f32.mrb[215].mxu1  ;;  %v11936_v41 = vpop.eup %11935  ;;  %v4481_v20 = vadd.f32 1.0, %v11934_v18  ;;  %v5345_v42 = vpack.c.bf16 %v4574_v50, %v4573_v3  ;;  %v4116_v52 = vadd.f32 %v14129_v56, %v14018_v33 }
 0x465   : > { %v11938_v28 = vpop.eup %11937  ;;  %11939 = vrcp.f32 %v4483_v48  ;;  %v4484_v5 = vadd.f32 1.0, %v11936_v41  ;;  %v4326_v61 = vadd.f32 %v13992_v34, %v4325_v16  ;;  %v9046_v30 = vmul.f32 -1.442695, %v4334_v49 }
 0x466   : > { %11941 = vrcp.f32 %v4481_v20  ;;  %v4482_v37 = vadd.f32 1.0, %v11938_v28  ;;  %10658 = vmatprep.mubr.bf16.mxu0 %v5345_v42  ;;  %10706 = vmatprep.mubr.bf16.mxu1 %v5345_v42  ;;  %v4108_v48 = vadd.f32 %v14018_v33, %v14132_v17  ;;  %v4119_v28 = vadd.f32 %v14135_v14, %v14018_v33 }
 0x467   : > { %11943 = vrcp.f32 %v4484_v5  ;;  %v9044_v12 = vmul.f32 -1.442695, %v4326_v61  ;;  %10659 = vmatmul.mubr.bf16.gmra.mrb[12].mxu0 %v5346_v1  ;;  %10707 = vmatmul.mubr.bf16.gmra.mrb[12].mxu1 %v5346_v1 }
 0x468   : > { %11945 = vrcp.f32 %v4482_v37  ;;  %v4111_v37 = vadd.f32 %v14018_v33, %v14137_v39  ;;  %v14184_v39 = vld [vmem:[%s15392_s9 + $0x1] ss:$0 sm:$0xff] }
 0x469   : > { %11947 = vpow2.f32 %v9045_v35 }
 0x46a   : > { %11949 = vpow2.f32 %v9043_v51 }
 0x46b   : > { %11951 = vpow2.f32 %v9046_v30 }
 0x46c   : > { %11953 = vpow2.f32 %v9044_v12 }
 0x46d   : > { %v14149_v54 = vpop.f32.mrb[216].mxu0  ;;  %v10528_v53 = vpop.f32.mrb[216].mxu1 }
 0x46e   : > { %v4347_v44 = vadd.f32 %v10528_v53, %v13992_v34  ;;  %v14152_v23 = vpop.f32.mrb[217].mxu0  ;;  %v4338_v58 = vpop.f32.mrb[217].mxu1 }
 0x46f   : > { %v11940_v59 = vpop.eup %11939  ;;  %v4339_v2 = vadd.f32 %v13992_v34, %v4338_v58  ;;  %v14155_v46 = vpop.f32.mrb[218].mxu0 }
 0x470   : > { %v11942_v11 = vpop.eup %11941  ;;  %v4579_v0 = vmul.f32 %v11940_v59, %v4100_v24  ;;  %v10529_v63 = vpop.f32.mrb[218].mxu1  ;;  %v9049_v21 = vmul.f32 -1.442695, %v4347_v44 }
 0x471   : > { %v11944_v26 = vpop.eup %11943  ;;  %v4577_v31 = vmul.f32 %v11942_v11, %v4092_v15  ;;  %v14157_v62 = vpop.f32.mrb[219].mxu0  ;;  %v4350_v60 = vadd.f32 %v10529_v63, %v13992_v34  ;;  %v9047_v22 = vmul.f32 -1.442695, %v4339_v2 }
 0x472   : > { %v11946_v10 = vpop.eup %11945  ;;  %v4580_v40 = vmul.f32 %v11944_v26, %v4103_v8  ;;  %v4341_v4 = vpop.f32.mrb[219].mxu1 }
 0x473   : > { %v11948_v43 = vpop.eup %11947  ;;  %v4578_v29 = vmul.f32 %v11946_v10, %v4095_v9  ;;  %v4342_v57 = vadd.f32 %v13992_v34, %v4341_v4  ;;  %v9050_v55 = vmul.f32 -1.442695, %v4350_v60 }
 0x474   : > { %v11950_v32 = vpop.eup %11949  ;;  %v5348_v25 = vpack.c.bf16 %v4580_v40, %v4579_v0  ;;  %v4487_v19 = vadd.f32 1.0, %v11948_v43 }
 0x475   : > { %v11952_v6 = vpop.eup %11951  ;;  %v4485_v47 = vadd.f32 1.0, %v11950_v32  ;;  %v5347_v45 = vpack.c.bf16 %v4578_v29, %v4577_v31  ;;  %v9048_v27 = vmul.f32 -1.442695, %v4342_v57 }
 0x476   : > { %v11954_v38 = vpop.eup %11953  ;;  %11955 = vrcp.f32 %v4487_v19  ;;  %v4488_v3 = vadd.f32 1.0, %v11952_v6 }
 0x477   : > { %11957 = vrcp.f32 %v4485_v47  ;;  %v4486_v36 = vadd.f32 1.0, %v11954_v38  ;;  %10662 = vmatprep.mubr.bf16.mxu0 %v5347_v45  ;;  %10710 = vmatprep.mubr.bf16.mxu1 %v5347_v45 }
 0x478   : > { %11959 = vrcp.f32 %v4488_v3  ;;  %10663 = vmatmul.mubr.bf16.gmra.mrb[16].mxu0 %v5348_v25  ;;  %10711 = vmatmul.mubr.bf16.gmra.mrb[16].mxu1 %v5348_v25 }
 0x479   : > { %11961 = vrcp.f32 %v4486_v36 }
 0x47a   : > { %11963 = vpow2.f32 %v9049_v21 }
 0x47b   : > { %11965 = vpow2.f32 %v9047_v22 }
 0x47c   : > { %11967 = vpow2.f32 %v9050_v55  ;;  %v14163_v50 = vpop.f32.mrb[220].mxu0  ;;  %v10532_v18 = vpop.f32.mrb[220].mxu1 }
 0x47d   : > { %11969 = vpow2.f32 %v9048_v27  ;;  %v4363_v16 = vadd.f32 %v10532_v18, %v13992_v34  ;;  %v14168_v41 = vpop.f32.mrb[221].mxu0  ;;  %v4354_v20 = vpop.f32.mrb[221].mxu1 }
 0x47e   : > { %v4355_v5 = vadd.f32 %v13992_v34, %v4354_v20  ;;  %v14173_v56 = vpop.f32.mrb[222].mxu0  ;;  %v10533_v61 = vpop.f32.mrb[222].mxu1  ;;  %v4124_v20 = vadd.f32 %v14018_v33, %v14152_v23 }
 0x47f   : > { %v9053_v17 = vmul.f32 -1.442695, %v4363_v16  ;;  %v4366_v51 = vadd.f32 %v10533_v61, %v13992_v34  ;;  %v14178_v30 = vpop.f32.mrb[223].mxu0  ;;  %v4357_v12 = vpop.f32.mrb[223].mxu1 }
 0x480   : > { %v11956_v1 = vpop.eup %11955  ;;  %v9051_v11 = vmul.f32 -1.442695, %v4355_v5  ;;  %v4358_v14 = vadd.f32 %v13992_v34, %v4357_v12  ;;  %v4135_v5 = vadd.f32 %v14155_v46, %v14018_v33 }
 0x481   : > { %v11958_v35 = vpop.eup %11957  ;;  %v4583_v49 = vmul.f32 %v11956_v1, %v4116_v52  ;;  %11971 = vpow2.f32 %v9053_v17  ;;  %v9054_v8 = vmul.f32 -1.442695, %v4366_v51  ;;  %v4132_v1 = vadd.f32 %v14149_v54, %v14018_v33 }
 0x482   : > { %v11960_v42 = vpop.eup %11959  ;;  %v4581_v24 = vmul.f32 %v11958_v35, %v4108_v48  ;;  %11973 = vpow2.f32 %v9051_v11  ;;  %v9052_v43 = vmul.f32 -1.442695, %v4358_v14  ;;  %v4127_v54 = vadd.f32 %v14018_v33, %v14157_v62 }
 0x483   : > { %v11962_v59 = vpop.eup %11961  ;;  %v4584_v15 = vmul.f32 %v11960_v42, %v4119_v28  ;;  %11975 = vpow2.f32 %v9054_v8 }
 0x484   : > { %v11964_v0 = vpop.eup %11963  ;;  %v4582_v26 = vmul.f32 %v11962_v59, %v4111_v37  ;;  %v14186_v2 = vpop.f32.mrb[224].mxu0 }
 0x485   : > { %v11966_v9 = vpop.eup %11965  ;;  %v5350_v53 = vpack.c.bf16 %v4584_v15, %v4583_v49  ;;  %v4491_v31 = vadd.f32 1.0, %v11964_v0  ;;  %v10600_v63 = vpop.f32.mrb[224].mxu1 }
 0x486   : > { %v11968_v10 = vpop.eup %11967  ;;  %v4489_v40 = vadd.f32 1.0, %v11966_v9  ;;  %v5349_v44 = vpack.c.bf16 %v4582_v26, %v4581_v24  ;;  %v4959_v32 = vadd.f32 %v10600_v63, %v14184_v39  ;;  %v14189_v25 = vpop.f32.mrb[225].mxu0  ;;  %v14219_v9 = vld [vmem:[%s15393_s10] sm:$0xff]  }
 0x487   : > { %v11970_v58 = vpop.eup %11969  ;;  %11977 = vrcp.f32 %v4491_v31  ;;  %v4492_v34 = vadd.f32 1.0, %v11968_v10  ;;  %v4950_v19 = vpop.f32.mrb[225].mxu1  ;;  %10822 = vmatprep.subr.bf16.mxu0 %v14219_v9 }
 0x488   : > { %11979 = vrcp.f32 %v4489_v40  ;;  %v4490_v29 = vadd.f32 1.0, %v11970_v58  ;;  %10666 = vmatprep.mubr.bf16.mxu0 %v5349_v44  ;;  %10714 = vmatprep.mubr.bf16.mxu1 %v5349_v44  ;;  %v4951_v4 = vadd.f32 %v14184_v39, %v4950_v19  ;;  %v14192_v6 = vpop.f32.mrb[226].mxu0  ;;  %v10601_v47 = vpop.f32.mrb[226].mxu1  ;;  %v9109_v21 = vmul.f32 -1.442695, %v4959_v32 }
 0x489   : > { %11981 = vrcp.f32 %v4492_v34  ;;  %10667 = vmatmul.mubr.bf16.gmra.mrb[20].mxu0 %v5350_v53  ;;  %10715 = vmatmul.mubr.bf16.gmra.mrb[20].mxu1 %v5350_v53  ;;  %v4962_v60 = vadd.f32 %v10601_v47, %v14184_v39  ;;  %v14195_v38 = vpop.f32.mrb[227].mxu0  ;;  %v4953_v3 = vpop.f32.mrb[227].mxu1  ;;  %v4148_v47 = vadd.f32 %v14163_v50, %v14018_v33 }
 0x48a   : > { %11983 = vrcp.f32 %v4490_v29  ;;  %v9107_v57 = vmul.f32 -1.442695, %v4951_v4  ;;  %v4954_v45 = vadd.f32 %v14184_v39, %v4953_v3 }
 0x48b   : > { %11985 = vpow2.f32 %v9052_v43  ;;  %v9110_v36 = vmul.f32 -1.442695, %v4962_v60  ;;  %v11972_v55 = vpop.eup %11971 }
 0x48c   : > { %11987 = vpow2.f32 %v9109_v21  ;;  %v9108_v22 = vmul.f32 -1.442695, %v4954_v45  ;;  %v11974_v27 = vpop.eup %11973  ;;  %v4495_v52 = vadd.f32 1.0, %v11972_v55 }
 0x48d   : > { %11989 = vpow2.f32 %v9107_v57  ;;  %v11976_v18 = vpop.eup %11975  ;;  %v4493_v48 = vadd.f32 1.0, %v11974_v27 }
 0x48e   : > { %11991 = vpow2.f32 %v9110_v36  ;;  %v4496_v35 = vadd.f32 1.0, %v11976_v18  ;;  %v4151_v18 = vadd.f32 %v14173_v56, %v14018_v33 }
 0x48f   : > { %11993 = vpow2.f32 %v9108_v22 }
 0x490   : > { %11995 = vrcp.f32 %v4495_v52  ;;  %v14204_v61 = vpop.f32.mrb[228].mxu0  ;;  %v10604_v42 = vpop.f32.mrb[228].mxu1 }
 0x491   : > { %v11978_v16 = vpop.eup %11977  ;;  %11997 = vrcp.f32 %v4493_v48  ;;  %v4975_v17 = vadd.f32 %v10604_v42, %v14184_v39  ;;  %v14209_v51 = vpop.f32.mrb[229].mxu0 }
 0x492   : > { %v11980_v49 = vpop.eup %11979  ;;  %v4587_v28 = vmul.f32 %v11978_v16, %v4132_v1  ;;  %11999 = vrcp.f32 %v4496_v35  ;;  %v4966_v23 = vpop.f32.mrb[229].mxu1  ;;  %v4140_v35 = vadd.f32 %v14018_v33, %v14168_v41 }
 0x493   : > { %v11982_v37 = vpop.eup %11981  ;;  %v4585_v12 = vmul.f32 %v11980_v49, %v4124_v20  ;;  %v14211_v15 = vpop.f32.mrb[230].mxu0  ;;  %v9113_v14 = vmul.f32 -1.442695, %v4975_v17  ;;  %v4967_v0 = vadd.f32 %v14184_v39, %v4966_v23 }
 0x494   : > { %v11984_v24 = vpop.eup %11983  ;;  %v4588_v59 = vmul.f32 %v11982_v37, %v4135_v5  ;;  %v10605_v46 = vpop.f32.mrb[230].mxu1 }
 0x495   : > { %v11986_v11 = vpop.eup %11985  ;;  %v14214_v8 = vpop.f32.mrb[231].mxu0  ;;  %v4586_v62 = vmul.f32 %v11984_v24, %v4127_v54  ;;  %v4978_v40 = vadd.f32 %v10605_v46, %v14184_v39  ;;  %12001 = vpow2.f32 %v9113_v14  ;;  %v9111_v4 = vmul.f32 -1.442695, %v4967_v0  ;;  %v14244_v54 = vld [vmem:[%s15390_s7 + $0x1] ss:$0 sm:$0xff] }
 0x496   : > { %v4969_v26 = vpop.f32.mrb[231].mxu1  ;;  %v11988_v53 = vpop.eup %11987  ;;  %v5352_v31 = vpack.c.bf16 %v4588_v59, %v4587_v28  ;;  %v4494_v10 = vadd.f32 1.0, %v11986_v11  ;;  %v4143_v59 = vadd.f32 %v14018_v33, %v14178_v30  ;;  %v4744_v14 = vadd.f32 %v14186_v2, %v14244_v54 }
 0x497   : > { %v11990_v44 = vpop.eup %11989  ;;  %v5175_v58 = vadd.f32 1.0, %v11988_v53  ;;  %v4970_v34 = vadd.f32 %v14184_v39, %v4969_v26  ;;  %v5351_v29 = vpack.c.bf16 %v4586_v62, %v4585_v12  ;;  %v9114_v60 = vmul.f32 -1.442695, %v4978_v40 }
 0x498   : > { %v11992_v43 = vpop.eup %11991  ;;  %12003 = vrcp.f32 %v4494_v10  ;;  %v5173_v63 = vadd.f32 1.0, %v11990_v44  ;;  %v14226_v3 = vpop.f32.mrb[232].mxu0  ;;  %v4747_v2 = vadd.f32 %v14192_v6, %v14244_v54 }
 0x499   : > { %v11994_v32 = vpop.eup %11993  ;;  %12005 = vrcp.f32 %v5175_v58  ;;  %v5176_v19 = vadd.f32 1.0, %v11992_v43  ;;  %10670 = vmatprep.mubr.bf16.mxu0 %v5351_v29  ;;  %10718 = vmatprep.mubr.bf16.mxu1 %v5351_v29  ;;  %v10608_v57 = vpop.f32.mrb[232].mxu1  ;;  %v9112_v36 = vmul.f32 -1.442695, %v4970_v34 }
 0x49a   : > { %12007 = vrcp.f32 %v5173_v63  ;;  %v5174_v21 = vadd.f32 1.0, %v11994_v32  ;;  %v11996_v45 = vpop.eup %11995  ;;  %10671 = vmatmul.mubr.bf16.gmra.mrb[24].mxu0 %v5352_v31  ;;  %10719 = vmatmul.mubr.bf16.gmra.mrb[24].mxu1 %v5352_v31  ;;  %v4991_v22 = vadd.f32 %v10608_v57, %v14184_v39  ;;  %v14229_v55 = vpop.f32.mrb[233].mxu0  ;;  %v4736_v31 = vadd.f32 %v14244_v54, %v14189_v25 }
 0x49b   : > { %12009 = vrcp.f32 %v5176_v19  ;;  %v4982_v27 = vpop.f32.mrb[233].mxu1  ;;  %v11998_v52 = vpop.eup %11997  ;;  %v4591_v50 = vmul.f32 %v11996_v45, %v4148_v47  ;;  %v4739_v25 = vadd.f32 %v14244_v54, %v14195_v38 }
 0x49c   : > { %12011 = vrcp.f32 %v5174_v21  ;;  %v4983_v1 = vadd.f32 %v14184_v39, %v4982_v27  ;;  %v14234_v48 = vpop.f32.mrb[234].mxu0  ;;  %v10609_v16 = vpop.f32.mrb[234].mxu1  ;;  %v9117_v49 = vmul.f32 -1.442695, %v4991_v22  ;;  %v4589_v41 = vmul.f32 %v11998_v52, %v4140_v35 }
 0x49d   : > { %v12000_v20 = vpop.eup %11999  ;;  %12013 = vpow2.f32 %v9111_v4  ;;  %v4994_v28 = vadd.f32 %v10609_v16, %v14184_v39  ;;  %v14239_v5 = vpop.f32.mrb[235].mxu0 }
 0x49e   : > { %v4985_v42 = vpop.f32.mrb[235].mxu1  ;;  %v4592_v37 = vmul.f32 %v12000_v20, %v4151_v18  ;;  %12015 = vpow2.f32 %v9114_v60  ;;  %v9115_v56 = vmul.f32 -1.442695, %v4983_v1 }
 0x49f   : > { %12017 = vpow2.f32 %v9112_v36  ;;  %v9118_v17 = vmul.f32 -1.442695, %v4994_v28  ;;  %v4986_v23 = vadd.f32 %v14184_v39, %v4985_v42  ;;  %v12002_v24 = vpop.eup %12001 }
 0x4a0   : > { %v5354_v12 = vpack.c.bf16 %v4592_v37, %v4591_v50  ;;  %12019 = vpow2.f32 %v9117_v49  ;;  %v5179_v0 = vadd.f32 1.0, %v12002_v24  ;;  %v14251_v26 = vpop.f32.mrb[236].mxu0  ;;  %v10612_v62 = vpop.f32.mrb[236].mxu1 }
 0x4a1   : > { %12021 = vpow2.f32 %v9115_v56  ;;  %v9116_v46 = vmul.f32 -1.442695, %v4986_v23  ;;  %v5007_v10 = vadd.f32 %v10612_v62, %v14184_v39  ;;  %v14256_v40 = vpop.f32.mrb[237].mxu0  ;;  %v4998_v33 = vpop.f32.mrb[237].mxu1 }
 0x4a2   : > { %v12004_v11 = vpop.eup %12003  ;;  %12023 = vpow2.f32 %v9118_v17  ;;  %v4999_v34 = vadd.f32 %v14184_v39, %v4998_v33  ;;  %v14261_v43 = vpop.f32.mrb[238].mxu0 }
 0x4a3   : > { %v12006_v53 = vpop.eup %12005  ;;  %12025 = vpow2.f32 %v9116_v46  ;;  %v4590_v30 = vmul.f32 %v12004_v11, %v4143_v59  ;;  %v10613_v63 = vpop.f32.mrb[238].mxu1  ;;  %v9121_v32 = vmul.f32 -1.442695, %v5007_v10 }
 0x4a4   : > { %v12008_v44 = vpop.eup %12007  ;;  %v5271_v58 = vmul.f32 %v12006_v53, %v4744_v14  ;;  %12027 = vrcp.f32 %v5179_v0  ;;  %v5010_v19 = vadd.f32 %v10613_v63, %v14184_v39  ;;  %v14266_v4 = vpop.f32.mrb[239].mxu0  ;;  %v9119_v6 = vmul.f32 -1.442695, %v4999_v34 }
 0x4a5   : > { %v12010_v29 = vpop.eup %12009  ;;  %v5001_v47 = vpop.f32.mrb[239].mxu1  ;;  %v5353_v21 = vpack.c.bf16 %v4590_v30, %v4589_v41  ;;  %12029 = vpow2.f32 %v9121_v32  ;;  %v5269_v22 = vmul.f32 %v12008_v44, %v4736_v31  ;;  %v4760_v0 = vadd.f32 %v14204_v61, %v14244_v54 }
 0x4a6   : > { %v12012_v60 = vpop.eup %12011  ;;  %v5272_v57 = vmul.f32 %v12010_v29, %v4747_v2  ;;  %v9122_v36 = vmul.f32 -1.442695, %v5010_v19  ;;  %12031 = vpow2.f32 %v9119_v6  ;;  %v5002_v16 = vadd.f32 %v14184_v39, %v5001_v47 }
 0x4a7   : > { %v12014_v45 = vpop.eup %12013  ;;  %10674 = vmatprep.mubr.bf16.mxu0 %v5353_v21  ;;  %10722 = vmatprep.mubr.bf16.mxu1 %v5353_v21  ;;  %v5270_v27 = vmul.f32 %v12012_v60, %v4739_v25  ;;  %v4752_v25 = vadd.f32 %v14244_v54, %v14209_v51  ;;  %v4763_v32 = vadd.f32 %v14211_v15, %v14244_v54  ;;  %v11591_v51 = vld [vmem:[%s15393_s10 + $0x10] sm:$0xff]  }
 0x4a8   : > { %v12016_v52 = vpop.eup %12015  ;;  %v6048_v50 = vpack.c.bf16 %v5272_v57, %v5271_v58  ;;  %v5177_v38 = vadd.f32 1.0, %v12014_v45  ;;  %10675 = vmatmul.mubr.bf16.gmra.mrb[28].mxu0 %v5354_v12  ;;  %10723 = vmatmul.mubr.bf16.gmra.mrb[28].mxu1 %v5354_v12  ;;  %12033 = vpow2.f32 %v9122_v36  ;;  %v14269_v28 = vpop.f32.mrb[240].mxu0  ;;  %v9120_v53 = vmul.f32 -1.442695, %v5002_v16  ;;  %v11590_v58 = vld [vmem:[%s15393_s10 + $0x8] sm:$0xff]  }
 0x4a9   : > { %v12018_v18 = vpop.eup %12017  ;;  %v5180_v1 = vadd.f32 1.0, %v12016_v52  ;;  %v6047_v20 = vpack.c.bf16 %v5270_v27, %v5269_v22  ;;  %v10616_v42 = vpop.f32.mrb[240].mxu1  ;;  %v4755_v47 = vadd.f32 %v14244_v54, %v14214_v8  ;;  %v4776_v21 = vadd.f32 %v14226_v3, %v14244_v54 }
 0x4aa   : > { %v12020_v35 = vpop.eup %12019  ;;  %12035 = vrcp.f32 %v5177_v38  ;;  %v5178_v49 = vadd.f32 1.0, %v12018_v18  ;;  %v5023_v17 = vadd.f32 %v10616_v42, %v14184_v39  ;;  %v14272_v23 = vpop.f32.mrb[241].mxu0  ;;  %v4768_v16 = vadd.f32 %v14244_v54, %v14229_v55  ;;  %v11592_v55 = vld [vmem:[%s15393_s10 + $0x18] sm:$0xff]  }
 0x4ab   : > { %v12022_v37 = vpop.eup %12021  ;;  %12037 = vrcp.f32 %v5180_v1  ;;  %v5183_v56 = vadd.f32 1.0, %v12020_v35  ;;  %v5014_v41 = vpop.f32.mrb[241].mxu1  ;;  %10742 = vmatprep.mubr.bf16.mxu0 %v6047_v20  ;;  %10790 = vmatprep.mubr.bf16.mxu1 %v6047_v20 }
 0x4ac   : > { %v12024_v12 = vpop.eup %12023  ;;  %12039 = vrcp.f32 %v5178_v49  ;;  %v5181_v24 = vadd.f32 1.0, %v12022_v37  ;;  %v5015_v59 = vadd.f32 %v14184_v39, %v5014_v41  ;;  %v14275_v46 = vpop.f32.mrb[242].mxu0  ;;  %v9125_v44 = vmul.f32 -1.442695, %v5023_v17 }
 0x4ad   : > { %v10617_v11 = vpop.f32.mrb[242].mxu1  ;;  %v12026_v14 = vpop.eup %12025  ;;  %12041 = vrcp.f32 %v5183_v56  ;;  %v5184_v62 = vadd.f32 1.0, %v12024_v12  ;;  %v4779_v17 = vadd.f32 %v14234_v48, %v14244_v54  ;;  %v4771_v48 = vadd.f32 %v14244_v54, %v14239_v5 }
 0x4ae   : > { %v14279_v31 = vpop.f32.mrb[243].mxu0  ;;  %v5017_v10 = vpop.f32.mrb[243].mxu1  ;;  %12043 = vrcp.f32 %v5181_v24  ;;  %v5182_v30 = vadd.f32 1.0, %v12026_v14  ;;  %v9123_v34 = vmul.f32 -1.442695, %v5015_v59  ;;  %v5026_v63 = vadd.f32 %v10617_v11, %v14184_v39 }
 0x4af   : > { %v12028_v33 = vpop.eup %12027  ;;  %12045 = vrcp.f32 %v5184_v62  ;;  %v5018_v61 = vadd.f32 %v14184_v39, %v5017_v10 }
 0x4b0   : > { %v5275_v2 = vmul.f32 %v12028_v33, %v4760_v0  ;;  %12047 = vrcp.f32 %v5182_v30  ;;  %10743 = vmatmul.mubr.bf16.vlgmr.msra.gmra.mrb[32].mxu0 %v6048_v50  ;;  %10791 = vmatmul.mubr.bf16.vlgmr.msra.gmra.mrb[32].mxu1 %v6048_v50  ;;  %v12030_v29 = vpop.eup %12029  ;;  %v14295_v57 = vpop.f32.mrb[244].mxu0 }
 0x4b1   : > { %12049 = vpow2.f32 %v9120_v53  ;;  %10823 = vmatpush3.bf16.msra.mxu0 %v14219_v9  ;;  %v12032_v19 = vpop.eup %12031  ;;  %v5187_v60 = vadd.f32 1.0, %v12030_v29  ;;  %v10620_v6 = vpop.f32.mrb[244].mxu1  ;;  %v9126_v9 = vmul.f32 -1.442695, %v5026_v63  ;;  %v9124_v52 = vmul.f32 -1.442695, %v5018_v61 }
 0x4b2   : > { %12051 = vpow2.f32 %v9125_v44  ;;  %10824 = vmatprep.subr.bf16.mxu0 %v11590_v58  ;;  %v12034_v15 = vpop.eup %12033  ;;  %v5185_v45 = vadd.f32 1.0, %v12032_v19  ;;  %v5039_v36 = vadd.f32 %v10620_v6, %v14184_v39  ;;  %v14301_v8 = vpop.f32.mrb[245].mxu0  ;;  %v11593_v19 = vld [vmem:[%s15393_s10 + $0x20] sm:$0xff]  }
 0x4b3   : > { %12053 = vpow2.f32 %v9123_v34  ;;  %v5030_v22 = vpop.f32.mrb[245].mxu1  ;;  %v5188_v27 = vadd.f32 1.0, %v12034_v15  ;;  %v14304_v38 = vpop.f32.mrb[246].mxu0 }
 0x4b4   : > { %v12036_v3 = vpop.eup %12035  ;;  %12055 = vrcp.f32 %v5187_v60  ;;  %v5031_v50 = vadd.f32 %v14184_v39, %v5030_v22  ;;  %v10621_v18 = vpop.f32.mrb[246].mxu1  ;;  %v9129_v20 = vmul.f32 -1.442695, %v5039_v36 }
 0x4b5   : > { %v12038_v1 = vpop.eup %12037  ;;  %12057 = vrcp.f32 %v5185_v45  ;;  %v5042_v35 = vadd.f32 %v10621_v18, %v14184_v39  ;;  %v14309_v49 = vpop.f32.mrb[247].mxu0  ;;  %10825 = vmatpush3.bf16.msra.mxu0 %v11590_v58  ;;  %v5273_v11 = vmul.f32 %v12036_v3, %v4752_v25  ;;  %v4792_v45 = vadd.f32 %v14251_v26, %v14244_v54 }
 0x4b6   : > { %v5033_v42 = vpop.f32.mrb[247].mxu1  ;;  %v12040_v37 = vpop.eup %12039  ;;  %v5276_v56 = vmul.f32 %v12038_v1, %v4763_v32  ;;  %12059 = vrcp.f32 %v5188_v27  ;;  %v9127_v41 = vmul.f32 -1.442695, %v5031_v50  ;;  %10826 = vmatprep.subr.bf16.mxu0 %v11591_v51  ;;  %v4784_v50 = vadd.f32 %v14244_v54, %v14256_v40  ;;  %v11594_v40 = vld [vmem:[%s15393_s10 + $0x28] sm:$0xff]  }
 0x4b7   : > { %v12042_v12 = vpop.eup %12041  ;;  %12061 = vpow2.f32 %v9126_v9  ;;  %v9130_v24 = vmul.f32 -1.442695, %v5042_v35  ;;  %v5034_v59 = vadd.f32 %v14184_v39, %v5033_v42  ;;  %v5274_v53 = vmul.f32 %v12040_v37, %v4755_v47 }
 0x4b8   : > { %v12044_v14 = vpop.eup %12043  ;;  %v6050_v0 = vpack.c.bf16 %v5276_v56, %v5275_v2  ;;  %v5279_v62 = vmul.f32 %v12042_v12, %v4776_v21  ;;  %12063 = vpow2.f32 %v9124_v52  ;;  %v14319_v63 = vpop.f32.mrb[248].mxu0 }
 0x4b9   : > { %v12046_v10 = vpop.eup %12045  ;;  %12065 = vpow2.f32 %v9129_v20  ;;  %v9128_v33 = vmul.f32 -1.442695, %v5034_v59  ;;  %v5277_v30 = vmul.f32 %v12044_v14, %v4768_v16  ;;  %10827 = vmatpush3.bf16.msra.mxu0 %v11591_v51  ;;  %v6049_v34 = vpack.c.bf16 %v5274_v53, %v5273_v11  ;;  %v10624_v61 = vpop.f32.mrb[248].mxu1 }
 0x4ba   : > { %v12048_v44 = vpop.eup %12047  ;;  %v5280_v58 = vmul.f32 %v12046_v10, %v4779_v17  ;;  %12067 = vpow2.f32 %v9127_v41  ;;  %10828 = vmatprep.subr.bf16.mxu0 %v11592_v55  ;;  %v5055_v29 = vadd.f32 %v10624_v61, %v14184_v39  ;;  %v14322_v25 = vpop.f32.mrb[249].mxu0  ;;  %v4795_v20 = vadd.f32 %v14261_v43, %v14244_v54 }
 0x4bb   : > { %v12050_v2 = vpop.eup %12049  ;;  %12069 = vpow2.f32 %v9130_v24  ;;  %v5046_v32 = vpop.f32.mrb[249].mxu1  ;;  %v5278_v5 = vmul.f32 %v12048_v44, %v4771_v48  ;;  %10746 = vmatprep.mubr.bf16.mxu0 %v6049_v34  ;;  %10794 = vmatprep.mubr.bf16.mxu1 %v6049_v34  ;;  %v4787_v43 = vadd.f32 %v14244_v54, %v14266_v4 }
 0x4bc   : > { %v12052_v47 = vpop.eup %12051  ;;  %v14327_v21 = vpack.c.bf16 %v5280_v58, %v5279_v62  ;;  %v5186_v60 = vadd.f32 1.0, %v12050_v2  ;;  %12071 = vpow2.f32 %v9128_v33  ;;  %v14329_v6 = vpop.f32.mrb[250].mxu0  ;;  %10747 = vmatmul.mubr.bf16.gmra.mrb[36].mxu0 %v6050_v0  ;;  %10795 = vmatmul.mubr.bf16.gmra.mrb[36].mxu1 %v6050_v0  ;;  %v9133_v36 = vmul.f32 -1.442695, %v5055_v29  ;;  %v11595_v2 = vld [vmem:[%s15393_s10 + $0x30] sm:$0xff]  }
 0x4bd   : > { %v10625_v51 = vpop.f32.mrb[250].mxu1  ;;  %v12054_v15 = vpop.eup %12053  ;;  %v5191_v9 = vadd.f32 1.0, %v12052_v47  ;;  %v5047_v22 = vadd.f32 %v14184_v39, %v5046_v32  ;;  %10829 = vmatpush3.bf16.msra.mxu0 %v11592_v55  ;;  %v6051_v56 = vpack.c.bf16 %v5278_v5, %v5277_v30 }
 0x4be   : > { %v14334_v3 = vpop.f32.mrb[251].mxu0  ;;  %v5049_v27 = vpop.f32.mrb[251].mxu1  ;;  %12073 = vrcp.f32 %v5186_v60  ;;  %v5189_v18 = vadd.f32 1.0, %v12054_v15  ;;  %v5058_v1 = vadd.f32 %v10625_v51, %v14184_v39  ;;  %10830 = vmatprep.subr.bf16.mxu0 %v11593_v19 }
 0x4bf   : > { %v12056_v52 = vpop.eup %12055  ;;  %12075 = vrcp.f32 %v5191_v9  ;;  %v9131_v35 = vmul.f32 -1.442695, %v5047_v22  ;;  %v5050_v59 = vadd.f32 %v14184_v39, %v5049_v27  ;;  %10750 = vmatprep.mubr.bf16.mxu0 %v6051_v56  ;;  %10798 = vmatprep.mubr.bf16.mxu1 %v6051_v56 }
 0x4c0   : > { %v12058_v16 = vpop.eup %12057  ;;  %v5283_v26 = vmul.f32 %v12056_v52, %v4792_v45  ;;  %12077 = vrcp.f32 %v5189_v18  ;;  %v9134_v37 = vmul.f32 -1.442695, %v5058_v1  ;;  %v10580_v11 = vpop.f32.mrb[252].mxu0  ;;  %v4808_v52 = vadd.f32 %v14269_v28, %v14244_v54  ;;  %v11596_v1 = vld [vmem:[%s15393_s10 + $0x38] sm:$0xff]  }
 0x4c1   : > { %v12060_v42 = vpop.eup %12059  ;;  %v14341_v17 = vmul.f32 %v12058_v16, %v4784_v50  ;;  %12079 = vpow2.f32 %v9133_v36  ;;  %v10628_v14 = vpop.f32.mrb[252].mxu1  ;;  %v14352_v10 = vadd.f32 %v10580_v11, %v14244_v54  ;;  %10831 = vmatpush3.bf16.msra.mxu0 %v11593_v19  ;;  %v9132_v45 = vmul.f32 -1.442695, %v5050_v59 }
 0x4c2   : > { %v12062_v41 = vpop.eup %12061  ;;  %v5284_v55 = vmul.f32 %v12060_v42, %v4795_v20  ;;  %12081 = vpow2.f32 %v9131_v35  ;;  %v4847_v48 = vpop.f32.mrb[253].mxu0  ;;  %v5071_v44 = vadd.f32 %v10628_v14, %v14184_v39  ;;  %10832 = vmatprep.subr.bf16.mxu0 %v11594_v40  ;;  %v4803_v59 = vadd.f32 %v14244_v54, %v14279_v31 }
 0x4c3   : > { %v12064_v12 = vpop.eup %12063  ;;  %v5192_v24 = vadd.f32 1.0, %v12062_v41  ;;  %12083 = vpow2.f32 %v9134_v37  ;;  %v5062_v33 = vpop.f32.mrb[253].mxu1  ;;  %v14356_v58 = vadd.f32 %v14244_v54, %v4847_v48 }
 0x4c4   : > { %v12066_v0 = vpop.eup %12065  ;;  %v14349_v62 = vpack.c.bf16 %v5284_v55, %v5283_v26  ;;  %v5190_v53 = vadd.f32 1.0, %v12064_v12  ;;  %v10581_v34 = vpop.f32.mrb[254].mxu0  ;;  %10751 = vmatmul.mubr.bf16.gmra.mrb[40].mxu0 %v14327_v21  ;;  %10799 = vmatmul.mubr.bf16.gmra.mrb[40].mxu1 %v14327_v21  ;;  %v5063_v5 = vadd.f32 %v14184_v39, %v5062_v33  ;;  %v9137_v22 = vmul.f32 -1.442695, %v5071_v44 }
 0x4c5   : > { %v12068_v4 = vpop.eup %12067  ;;  %12085 = vrcp.f32 %v5192_v24  ;;  %v5195_v30 = vadd.f32 1.0, %v12066_v0  ;;  %v10629_v61 = vpop.f32.mrb[254].mxu1  ;;  %v14365_v19 = vadd.f32 %v10581_v34, %v14244_v54  ;;  %10833 = vmatpush3.bf16.msra.mxu0 %v11594_v40  ;;  %v4800_v26 = vadd.f32 %v14244_v54, %v14272_v23 }
 0x4c6   : > { %v12070_v29 = vpop.eup %12069  ;;  %12087 = vrcp.f32 %v5190_v53  ;;  %v5193_v32 = vadd.f32 1.0, %v12068_v4  ;;  %v4850_v47 = vpop.f32.mrb[255].mxu0  ;;  %v5074_v9 = vadd.f32 %v10629_v61, %v14184_v39  ;;  %v9135_v50 = vmul.f32 -1.442695, %v5063_v5  ;;  %10834 = vmatprep.subr.bf16.mxu0 %v11595_v2 }
 0x4c7   : > { %v5065_v60 = vpop.f32.mrb[255].mxu1  ;;  %v12072_v51 = vpop.eup %12071  ;;  %12089 = vrcp.f32 %v5195_v30  ;;  %v5196_v15 = vadd.f32 1.0, %v12070_v29  ;;  %v14369_v27 = vadd.f32 %v14244_v54, %v4850_v47  ;;  %v4811_v23 = vadd.f32 %v14275_v46, %v14244_v54 }
 0x4c8   : > { %12091 = vrcp.f32 %v5193_v32  ;;  %v5194_v36 = vadd.f32 1.0, %v12072_v51  ;;  %v12074_v21 = vpop.eup %12073  ;;  %v5066_v18 = vadd.f32 %v14184_v39, %v5065_v60  ;;  %v9138_v20 = vmul.f32 -1.442695, %v5074_v9 }
 0x4c9   : > { %12093 = vrcp.f32 %v5196_v15  ;;  %v12076_v16 = vpop.eup %12075  ;;  %v5282_v35 = vmul.f32 %v12074_v21, %v4787_v43  ;;  %10835 = vmatpush3.bf16.msra.mxu0 %v11595_v2  ;;  %v4824_v46 = vadd.f32 %v14295_v57, %v14244_v54  ;;  %v4816_v53 = vadd.f32 %v14244_v54, %v14301_v8 }
 0x4ca   : > { %12095 = vrcp.f32 %v5194_v36  ;;  %v12078_v42 = vpop.eup %12077  ;;  %v5287_v37 = vmul.f32 %v12076_v16, %v4808_v52  ;;  %10836 = vmatprep.subr.bf16.mxu0 %v11596_v1  ;;  %v9136_v43 = vmul.f32 -1.442695, %v5066_v18  ;;  %v4827_v30 = vadd.f32 %v14304_v38, %v14244_v54 }
 0x4cb   : > { %12097 = vpow2.f32 %v9132_v45  ;;  %v12080_v28 = vpop.eup %12079  ;;  %v6053_v56 = vpack.c.bf16 %v5282_v35, %v14341_v17  ;;  %v5285_v39 = vmul.f32 %v12078_v42, %v4800_v26  ;;  %v4819_v44 = vadd.f32 %v14244_v54, %v14309_v49 }
 0x4cc   : > { %12099 = vpow2.f32 %v9137_v22  ;;  %v12082_v40 = vpop.eup %12081  ;;  %v5199_v41 = vadd.f32 1.0, %v12080_v28  ;;  %v4840_v49 = vadd.f32 %v14319_v63, %v14244_v54  ;;  %v4832_v36 = vadd.f32 %v14244_v54, %v14322_v25 }
 0x4cd   : > { %12101 = vpow2.f32 %v9135_v50  ;;  %v12084_v55 = vpop.eup %12083  ;;  %v5197_v12 = vadd.f32 1.0, %v12082_v40  ;;  %10754 = vmatprep.mubr.bf16.mxu0 %v6053_v56  ;;  %10802 = vmatprep.mubr.bf16.mxu1 %v6053_v56  ;;  %v4843_v50 = vadd.f32 %v14329_v6, %v14244_v54  ;;  %v4835_v25 = vadd.f32 %v14244_v54, %v14334_v3 }
 0x4ce   : > { %12103 = vpow2.f32 %v9138_v20  ;;  %v5200_v17 = vadd.f32 1.0, %v12084_v55  ;;  %10755 = vmatmul.mubr.bf16.gmra.mrb[44].mxu0 %v14349_v62  ;;  %10803 = vmatmul.mubr.bf16.gmra.mrb[44].mxu1 %v14349_v62 }
 0x4cf   : > { %v12086_v24 = vpop.eup %12085  ;;  %12105 = vrcp.f32 %v5199_v41  ;;  %10837 = vmatpush3.bf16.msra.mxu0 %v11596_v1 }
 0x4d0   : > { %v12088_v11 = vpop.eup %12087  ;;  %v5288_v14 = vmul.f32 %v12086_v24, %v4811_v23  ;;  %12107 = vrcp.f32 %v5197_v12 }
 0x4d1   : > { %v12090_v0 = vpop.eup %12089  ;;  %12109 = vrcp.f32 %v5200_v17  ;;  %v5286_v48 = vmul.f32 %v12088_v11, %v4803_v59 }
 0x4d2   : > { %v12092_v31 = vpop.eup %12091  ;;  %v6056_v33 = vpack.c.bf16 %v5288_v14, %v5287_v37  ;;  %v5291_v4 = vmul.f32 %v12090_v0, %v4824_v46  ;;  %12111 = vpow2.f32 %v9136_v43 }
 0x4d3   : > { %v12094_v62 = vpop.eup %12093  ;;  %v6055_v57 = vpack.c.bf16 %v5286_v48, %v5285_v39  ;;  %v5289_v34 = vmul.f32 %v12092_v31, %v4816_v53 }
 0x4d4   : > { %v12096_v61 = vpop.eup %12095  ;;  %v5292_v2 = vmul.f32 %v12094_v62, %v4827_v30  ;;  %v11598_v30 = vld [vmem:[%s15394_s11 + $0x8] sm:$0xff]   ;;  %v11599_v62 = vld [vmem:[%s15394_s11 + $0x10] sm:$0xff]  }
 0x4d5   : > { %v12098_v29 = vpop.eup %12097  ;;  %10758 = vmatprep.mubr.bf16.mxu0 %v6055_v57  ;;  %10806 = vmatprep.mubr.bf16.mxu1 %v6055_v57  ;;  %v5290_v8 = vmul.f32 %v12096_v61, %v4819_v44 }
 0x4d6   : > { %v12100_v32 = vpop.eup %12099  ;;  %v6058_v5 = vpack.c.bf16 %v5292_v2, %v5291_v4  ;;  %v5198_v47 = vadd.f32 1.0, %v12098_v29  ;;  %10759 = vmatmul.mubr.bf16.gmra.mrb[48].mxu0 %v6056_v33  ;;  %10807 = vmatmul.mubr.bf16.gmra.mrb[48].mxu1 %v6056_v33 }
 0x4d7   : > { %v12102_v60 = vpop.eup %12101  ;;  %v5203_v51 = vadd.f32 1.0, %v12100_v32  ;;  %v6057_v38 = vpack.c.bf16 %v5290_v8, %v5289_v34 }
 0x4d8   : > { %v12104_v15 = vpop.eup %12103  ;;  %12113 = vrcp.f32 %v5198_v47  ;;  %v5201_v45 = vadd.f32 1.0, %v12102_v60 }
 0x4d9   : > { %v12106_v9 = vpop.eup %12105  ;;  %12115 = vrcp.f32 %v5203_v51  ;;  %v5204_v22 = vadd.f32 1.0, %v12104_v15  ;;  %10762 = vmatprep.mubr.bf16.mxu0 %v6057_v38  ;;  %10810 = vmatprep.mubr.bf16.mxu1 %v6057_v38  ;;  %v14432_v51 = vld [vmem:[%s15390_s7 + $0x2] ss:$0 sm:$0xff] }
 0x4da   : > { %v12108_v21 = vpop.eup %12107  ;;  %v5295_v52 = vmul.f32 %v12106_v9, %v4840_v49  ;;  %12117 = vrcp.f32 %v5201_v45 }
 0x4db   : > { %v12110_v18 = vpop.eup %12109  ;;  %12119 = vrcp.f32 %v5204_v22  ;;  %v5293_v1 = vmul.f32 %v12108_v21, %v4832_v36  ;;  %v11601_v22 = vld [vmem:[%s15394_s11 + $0x20] sm:$0xff]  }
 0x4dc   : > { %v12112_v63 = vpop.eup %12111  ;;  %v5296_v16 = vmul.f32 %v12110_v18, %v4843_v50 }
 0x4dd   : > { %v5202_v26 = vadd.f32 1.0, %v12112_v63 }
 0x4de   : > { %v6060_v20 = vpack.c.bf16 %v5296_v16, %v5295_v52  ;;  %10763 = vmatmul.mubr.bf16.gmra.mrb[52].mxu0 %v6058_v5  ;;  %10811 = vmatmul.mubr.bf16.gmra.mrb[52].mxu1 %v6058_v5  ;;  %v11600_v5 = vld [vmem:[%s15394_s11 + $0x18] sm:$0xff]  }
 0x4df   : > { %12121 = vrcp.f32 %v5202_v26 }
 0x4e2   : > { %v12114_v35 = vpop.eup %12113 }
 0x4e3   : > { %v12116_v42 = vpop.eup %12115  ;;  %v5294_v37 = vmul.f32 %v12114_v35, %v4835_v25 }
 0x4e4   : > { %v12118_v28 = vpop.eup %12117  ;;  %v5299_v6 = vmul.f32 %v12116_v42, %v14352_v10  ;;  %v11597_v10 = vld [vmem:[%s15394_s11] sm:$0xff]  }
 0x4e5   : > { %v12120_v56 = vpop.eup %12119  ;;  %v6059_v39 = vpack.c.bf16 %v5294_v37, %v5293_v1  ;;  %v5297_v40 = vmul.f32 %v12118_v28, %v14356_v58  ;;  %v14412_v58 = vld [vmem:[%s15392_s9 + $0x2] ss:$0 sm:$0xff]  ;;  %10870 = vmatprep.subr.bf16.mxu1 %v11597_v10 }
 0x4e6   : > { %v5300_v41 = vmul.f32 %v12120_v56, %v14365_v19  ;;  %10871 = vmatpush3.bf16.msra.mxu1 %v11597_v10  ;;  %v11603_v10 = vld [vmem:[%s15394_s11 + $0x30] sm:$0xff]  }
 0x4e7   : > { %10766 = vmatprep.mubr.bf16.mxu0 %v6059_v39  ;;  %10814 = vmatprep.mubr.bf16.mxu1 %v6059_v39 }
 0x4e8   : > { %v6062_v55 = vpack.c.bf16 %v5300_v41, %v5299_v6  ;;  %10767 = vmatmul.mubr.bf16.gmra.mrb[56].mxu0 %v6060_v20  ;;  %10815 = vmatmul.mubr.bf16.gmra.mrb[56].mxu1 %v6060_v20 }
 0x4e9   : > { %v12122_v23 = vpop.eup %12121  ;;  %10872 = vmatprep.subr.bf16.mxu1 %v11598_v30 }
 0x4ea   : > { %v5298_v54 = vmul.f32 %v12122_v23, %v14369_v27  ;;  %10873 = vmatpush3.bf16.msra.mxu1 %v11598_v30 }
 0x4eb   : > { %10874 = vmatprep.subr.bf16.mxu1 %v11599_v62 }
 0x4ec   : > { %v6061_v3 = vpack.c.bf16 %v5298_v54, %v5297_v40 }
 0x4ee   : > { %10770 = vmatprep.mubr.bf16.mxu0 %v6061_v3  ;;  %10818 = vmatprep.mubr.bf16.mxu1 %v6061_v3 }
 0x4ef   : > { %10875 = vmatpush3.bf16.msra.mxu1 %v11599_v62 }
 0x4f0   : > { %10771 = vmatmul.mubr.bf16.gmra.mrb[60].mxu0 %v6062_v55  ;;  %10819 = vmatmul.mubr.bf16.gmra.mrb[60].mxu1 %v6062_v55  ;;  %v11602_v55 = vld [vmem:[%s15394_s11 + $0x28] sm:$0xff]  }
 0x4f1   : > { %10876 = vmatprep.subr.bf16.mxu1 %v11600_v5 }
 0x4f3   : > { %10877 = vmatpush3.bf16.msra.mxu1 %v11600_v5 }
 0x4f4   : > { %10878 = vmatprep.subr.bf16.mxu1 %v11601_v22 }
 0x4f7   : > { %10879 = vmatpush3.bf16.msra.mxu1 %v11601_v22 }
 0x4f8   : > { %10880 = vmatprep.subr.bf16.mxu1 %v11602_v55 }
 0x4fb   : > { %10881 = vmatpush3.bf16.msra.mxu1 %v11602_v55 }
 0x4fc   : > { %10882 = vmatprep.subr.bf16.mxu1 %v11603_v10 }
 0x4ff   : > { %10883 = vmatpush3.bf16.msra.mxu1 %v11603_v10 }
 0x500   : > { %v10648_v19 = vpop.f32.mrb[0].mxu0  ;;  %v10696_v12 = vpop.f32.mrb[0].mxu1 }
 0x501   : > { %v5667_v27 = vadd.f32 %v10696_v12, %v14412_v58  ;;  %v5443_v43 = vpop.f32.mrb[1].mxu0  ;;  %v5658_v24 = vpop.f32.mrb[1].mxu1  ;;  %v5452_v1 = vadd.f32 %v10648_v19, %v14432_v51 }
 0x502   : > { %v5659_v59 = vadd.f32 %v14412_v58, %v5658_v24  ;;  %v10649_v17 = vpop.f32.mrb[2].mxu0  ;;  %v10697_v11 = vpop.f32.mrb[2].mxu1  ;;  %v5444_v20 = vadd.f32 %v14432_v51, %v5443_v43 }
 0x503   : > { %v9193_v14 = vmul.f32 -1.442695, %v5667_v27  ;;  %v5670_v46 = vadd.f32 %v10697_v11, %v14412_v58  ;;  %v5446_v0 = vpop.f32.mrb[3].mxu0  ;;  %v5661_v53 = vpop.f32.mrb[3].mxu1  ;;  %v5455_v37 = vadd.f32 %v10649_v17, %v14432_v51 }
 0x504   : > { %v9191_v48 = vmul.f32 -1.442695, %v5659_v59  ;;  %v5662_v31 = vadd.f32 %v14412_v58, %v5661_v53  ;;  %v5447_v56 = vadd.f32 %v14432_v51, %v5446_v0 }
 0x505   : > { %12123 = vpow2.f32 %v9193_v14  ;;  %v9194_v33 = vmul.f32 -1.442695, %v5670_v46 }
 0x506   : > { %12125 = vpow2.f32 %v9191_v48  ;;  %v9192_v4 = vmul.f32 -1.442695, %v5662_v31 }
 0x507   : > { %12127 = vpow2.f32 %v9194_v33 }
 0x508   : > { %12129 = vpow2.f32 %v9192_v4 }
 0x50f   : > { %v12124_v44 = vpop.eup %12123 }
 0x510   : > { %v12126_v57 = vpop.eup %12125  ;;  %v5883_v34 = vadd.f32 1.0, %v12124_v44 }
 0x511   : > { %v12128_v61 = vpop.eup %12127  ;;  %v5881_v2 = vadd.f32 1.0, %v12126_v57 }
 0x512   : > { %v12130_v29 = vpop.eup %12129  ;;  %12131 = vrcp.f32 %v5883_v34  ;;  %v5884_v8 = vadd.f32 1.0, %v12128_v61 }
 0x513   : > { %12133 = vrcp.f32 %v5881_v2  ;;  %v5882_v32 = vadd.f32 1.0, %v12130_v29  ;;  %v11604_v2 = vld [vmem:[%s15394_s11 + $0x38] sm:$0xff]  }
 0x514   : > { %12135 = vrcp.f32 %v5884_v8  ;;  %10884 = vmatprep.subr.bf16.mxu1 %v11604_v2 }
 0x515   : > { %12137 = vrcp.f32 %v5882_v32  ;;  %10885 = vmatpush3.bf16.msra.mxu1 %v11604_v2 }
 0x516   : > { %v14427_v47 = vpop.f32.mrb[4].mxu0  ;;  %v10700_v60 = vpop.f32.mrb[4].mxu1 }
 0x517   : > { %v5683_v38 = vadd.f32 %v10700_v60, %v14412_v58  ;;  %v14435_v15 = vpop.f32.mrb[5].mxu0  ;;  %v5674_v49 = vpop.f32.mrb[5].mxu1  ;;  %v5468_v32 = vadd.f32 %v14427_v47, %v14432_v51 }
 0x518   : > { %v5675_v45 = vadd.f32 %v14412_v58, %v5674_v49  ;;  %v14438_v9 = vpop.f32.mrb[6].mxu0  ;;  %v10701_v36 = vpop.f32.mrb[6].mxu1  ;;  %v5460_v60 = vadd.f32 %v14432_v51, %v14435_v15 }
 0x519   : > { %v9197_v21 = vmul.f32 -1.442695, %v5683_v38  ;;  %v5686_v52 = vadd.f32 %v10701_v36, %v14412_v58  ;;  %v14444_v50 = vpop.f32.mrb[7].mxu0  ;;  %v5677_v18 = vpop.f32.mrb[7].mxu1 }
 0x51a   : > { %v9195_v63 = vmul.f32 -1.442695, %v5675_v45  ;;  %v5678_v16 = vadd.f32 %v14412_v58, %v5677_v18  ;;  %v5471_v45 = vadd.f32 %v14438_v9, %v14432_v51  ;;  %v5463_v22 = vadd.f32 %v14432_v51, %v14444_v50 }
 0x51b   : > { %12139 = vpow2.f32 %v9197_v21  ;;  %v9198_v25 = vmul.f32 -1.442695, %v5686_v52 }
 0x51c   : > { %v12132_v26 = vpop.eup %12131  ;;  %12141 = vpow2.f32 %v9195_v63  ;;  %v9196_v28 = vmul.f32 -1.442695, %v5678_v16 }
 0x51d   : > { %v12134_v35 = vpop.eup %12133  ;;  %v5979_v42 = vmul.f32 %v12132_v26, %v5452_v1  ;;  %12143 = vpow2.f32 %v9198_v25 }
 0x51e   : > { %v12136_v6 = vpop.eup %12135  ;;  %v5977_v39 = vmul.f32 %v12134_v35, %v5444_v20  ;;  %12145 = vpow2.f32 %v9196_v28 }
 0x51f   : > { %v12138_v40 = vpop.eup %12137  ;;  %v5980_v41 = vmul.f32 %v12136_v6, %v5455_v37 }
 0x520   : > { %v5978_v23 = vmul.f32 %v12138_v40, %v5447_v56 }
 0x521   : > { %v6734_v54 = vpack.c.bf16 %v5980_v41, %v5979_v42 }
 0x522   : > { %v6733_v3 = vpack.c.bf16 %v5978_v23, %v5977_v39 }
 0x524   : > { %10838 = vmatprep.mubr.bf16.mxu0 %v6733_v3 }
 0x525   : > { %10839 = vmatmul.mubr.bf16.vlgmr.msra.gmra.mrb[64].mxu0 %v6734_v54  ;;  %v12140_v19 = vpop.eup %12139 }
 0x526   : > { %v12142_v12 = vpop.eup %12141  ;;  %v5887_v27 = vadd.f32 1.0, %v12140_v19 }
 0x527   : > { %v12144_v43 = vpop.eup %12143  ;;  %v5885_v24 = vadd.f32 1.0, %v12142_v12 }
 0x528   : > { %v14457_v59 = vpop.f32.mrb[8].mxu0  ;;  %v10704_v17 = vpop.f32.mrb[8].mxu1  ;;  %12147 = vrcp.f32 %v5887_v27  ;;  %v5888_v14 = vadd.f32 1.0, %v12144_v43 }
 0x529   : > { %v12146_v11 = vpop.eup %12145  ;;  %v5699_v46 = vadd.f32 %v10704_v17, %v14412_v58  ;;  %v14460_v0 = vpop.f32.mrb[9].mxu0  ;;  %12149 = vrcp.f32 %v5885_v24  ;;  %v5484_v43 = vadd.f32 %v14457_v59, %v14432_v51 }
 0x52a   : > { %v5690_v53 = vpop.f32.mrb[9].mxu1  ;;  %v5886_v48 = vadd.f32 1.0, %v12146_v11  ;;  %v14463_v33 = vpop.f32.mrb[10].mxu0  ;;  %12151 = vrcp.f32 %v5888_v14  ;;  %v5476_v17 = vadd.f32 %v14432_v51, %v14460_v0 }
 0x52b   : > { %v5691_v31 = vadd.f32 %v14412_v58, %v5690_v53  ;;  %v10705_v4 = vpop.f32.mrb[10].mxu1  ;;  %v9201_v30 = vmul.f32 -1.442695, %v5699_v46  ;;  %v14466_v44 = vpop.f32.mrb[11].mxu0  ;;  %v5487_v46 = vadd.f32 %v14463_v33, %v14432_v51 }
 0x52c   : > { %v5702_v62 = vadd.f32 %v10705_v4, %v14412_v58  ;;  %v5693_v57 = vpop.f32.mrb[11].mxu1  ;;  %12153 = vrcp.f32 %v5886_v48  ;;  %v5479_v48 = vadd.f32 %v14432_v51, %v14466_v44 }
 0x52d   : > { %v9199_v34 = vmul.f32 -1.442695, %v5691_v31  ;;  %v5694_v61 = vadd.f32 %v14412_v58, %v5693_v57  ;;  %12155 = vpow2.f32 %v9201_v30 }
 0x52e   : > { %v9202_v29 = vmul.f32 -1.442695, %v5702_v62 }
 0x52f   : > { %12157 = vpow2.f32 %v9199_v34  ;;  %v9200_v8 = vmul.f32 -1.442695, %v5694_v61 }
 0x530   : > { %12159 = vpow2.f32 %v9202_v29 }
 0x531   : > { %12161 = vpow2.f32 %v9200_v8 }
 0x532   : > { %v12148_v5 = vpop.eup %12147 }
 0x533   : > { %v12150_v38 = vpop.eup %12149  ;;  %v5983_v49 = vmul.f32 %v12148_v5, %v5468_v32 }
 0x534   : > { %v12152_v36 = vpop.eup %12151  ;;  %v5981_v21 = vmul.f32 %v12150_v38, %v5460_v60 }
 0x535   : > { %v5984_v18 = vmul.f32 %v12152_v36, %v5471_v45 }
 0x536   : > { %v12154_v52 = vpop.eup %12153 }
 0x537   : > { %v12156_v1 = vpop.eup %12155  ;;  %v5982_v16 = vmul.f32 %v12154_v52, %v5463_v22  ;;  %v6736_v20 = vpack.c.bf16 %v5984_v18, %v5983_v49 }
 0x538   : > { %v5891_v15 = vadd.f32 1.0, %v12156_v1 }
 0x539   : > { %v12158_v26 = vpop.eup %12157  ;;  %v6735_v56 = vpack.c.bf16 %v5982_v16, %v5981_v21 }
 0x53a   : > { %v14480_v63 = vpop.f32.mrb[12].mxu0  ;;  %v10708_v47 = vpop.f32.mrb[12].mxu1  ;;  %v5889_v37 = vadd.f32 1.0, %v12158_v26  ;;  %12163 = vrcp.f32 %v5891_v15 }
 0x53b   : > { %v5715_v25 = vadd.f32 %v10708_v47, %v14412_v58  ;;  %v14483_v35 = vpop.f32.mrb[13].mxu0  ;;  %v5706_v9 = vpop.f32.mrb[13].mxu1  ;;  %10842 = vmatprep.mubr.bf16.mxu0 %v6735_v56  ;;  %v5500_v15 = vadd.f32 %v14480_v63, %v14432_v51 }
 0x53c   : > { %v12160_v42 = vpop.eup %12159  ;;  %v5707_v50 = vadd.f32 %v14412_v58, %v5706_v9  ;;  %v14486_v28 = vpop.f32.mrb[14].mxu0  ;;  %12165 = vrcp.f32 %v5889_v37  ;;  %10843 = vmatmul.mubr.bf16.gmra.mrb[68].mxu0 %v6736_v20  ;;  %v5492_v9 = vadd.f32 %v14432_v51, %v14483_v35 }
 0x53d   : > { %v10709_v6 = vpop.f32.mrb[14].mxu1  ;;  %v12162_v39 = vpop.eup %12161  ;;  %v5892_v40 = vadd.f32 1.0, %v12160_v42  ;;  %v9205_v41 = vmul.f32 -1.442695, %v5715_v25 }
 0x53e   : > { %v14488_v55 = vpop.f32.mrb[15].mxu0  ;;  %v5709_v23 = vpop.f32.mrb[15].mxu1  ;;  %v5890_v54 = vadd.f32 1.0, %v12162_v39  ;;  %v9203_v3 = vmul.f32 -1.442695, %v5707_v50  ;;  %v5718_v10 = vadd.f32 %v10709_v6, %v14412_v58  ;;  %v5503_v50 = vadd.f32 %v14486_v28, %v14432_v51 }
 0x53f   : > { %12167 = vrcp.f32 %v5892_v40  ;;  %v5710_v19 = vadd.f32 %v14412_v58, %v5709_v23  ;;  %v5495_v56 = vadd.f32 %v14432_v51, %v14488_v55 }
 0x540   : > { %12169 = vrcp.f32 %v5890_v54  ;;  %v9206_v12 = vmul.f32 -1.442695, %v5718_v10 }
 0x541   : > { %12171 = vpow2.f32 %v9205_v41  ;;  %v9204_v27 = vmul.f32 -1.442695, %v5710_v19 }
 0x542   : > { %12173 = vpow2.f32 %v9203_v3 }
 0x543   : > { %12175 = vpow2.f32 %v9206_v12 }
 0x544   : > { %12177 = vpow2.f32 %v9204_v27  ;;  %v12164_v24 = vpop.eup %12163 }
 0x545   : > { %v5987_v14 = vmul.f32 %v12164_v24, %v5484_v43 }
 0x546   : > { %v12166_v11 = vpop.eup %12165 }
 0x547   : > { %v5985_v31 = vmul.f32 %v12166_v11, %v5476_v17 }
 0x549   : > { %v12168_v53 = vpop.eup %12167 }
 0x54a   : > { %v12170_v4 = vpop.eup %12169  ;;  %v5988_v30 = vmul.f32 %v12168_v53, %v5487_v46 }
 0x54b   : > { %v12172_v62 = vpop.eup %12171  ;;  %v14500_v57 = vpop.f32.mrb[16].mxu0  ;;  %v5986_v34 = vmul.f32 %v12170_v4, %v5479_v48 }
 0x54c   : > { %v10712_v59 = vpop.f32.mrb[16].mxu1  ;;  %v12174_v61 = vpop.eup %12173  ;;  %v6738_v2 = vpack.c.bf16 %v5988_v30, %v5987_v14  ;;  %v5895_v0 = vadd.f32 1.0, %v12172_v62 }
 0x54d   : > { %v5731_v29 = vadd.f32 %v10712_v59, %v14412_v58  ;;  %v14503_v8 = vpop.f32.mrb[17].mxu0  ;;  %v5722_v33 = vpop.f32.mrb[17].mxu1  ;;  %v5893_v5 = vadd.f32 1.0, %v12174_v61  ;;  %v6737_v49 = vpack.c.bf16 %v5986_v34, %v5985_v31 }
 0x54e   : > { %v12176_v32 = vpop.eup %12175  ;;  %v5723_v44 = vadd.f32 %v14412_v58, %v5722_v33  ;;  %v14506_v60 = vpop.f32.mrb[18].mxu0  ;;  %12179 = vrcp.f32 %v5895_v0  ;;  %v5516_v0 = vadd.f32 %v14500_v57, %v14432_v51  ;;  %v5508_v33 = vadd.f32 %v14432_v51, %v14503_v8 }
 0x54f   : > { %v10713_v38 = vpop.f32.mrb[18].mxu1  ;;  %v12178_v45 = vpop.eup %12177  ;;  %v5896_v36 = vadd.f32 1.0, %v12176_v32  ;;  %v9209_v22 = vmul.f32 -1.442695, %v5731_v29  ;;  %12181 = vrcp.f32 %v5893_v5  ;;  %10846 = vmatprep.mubr.bf16.mxu0 %v6737_v49 }
 0x550   : > { %v14508_v21 = vpop.f32.mrb[19].mxu0  ;;  %v5725_v52 = vpop.f32.mrb[19].mxu1  ;;  %v5894_v18 = vadd.f32 1.0, %v12178_v45  ;;  %v9207_v1 = vmul.f32 -1.442695, %v5723_v44  ;;  %v5734_v47 = vadd.f32 %v10713_v38, %v14412_v58  ;;  %10847 = vmatmul.mubr.bf16.gmra.mrb[72].mxu0 %v6738_v2  ;;  %v5519_v44 = vadd.f32 %v14506_v60, %v14432_v51 }
 0x551   : > { %12183 = vrcp.f32 %v5896_v36  ;;  %v5726_v16 = vadd.f32 %v14412_v58, %v5725_v52  ;;  %v5511_v49 = vadd.f32 %v14432_v51, %v14508_v21 }
 0x552   : > { %12185 = vrcp.f32 %v5894_v18  ;;  %v9210_v26 = vmul.f32 -1.442695, %v5734_v47 }
 0x553   : > { %12187 = vpow2.f32 %v9209_v22  ;;  %v9208_v20 = vmul.f32 -1.442695, %v5726_v16 }
 0x554   : > { %12189 = vpow2.f32 %v9207_v1 }
 0x555   : > { %12191 = vpow2.f32 %v9210_v26 }
 0x556   : > { %12193 = vpow2.f32 %v9208_v20 }
 0x558   : > { %v12180_v25 = vpop.eup %12179 }
 0x559   : > { %v12182_v42 = vpop.eup %12181  ;;  %v5991_v37 = vmul.f32 %v12180_v25, %v5500_v15 }
 0x55a   : > { %v5989_v39 = vmul.f32 %v12182_v42, %v5492_v9 }
 0x55b   : > { %v12184_v6 = vpop.eup %12183 }
 0x55c   : > { %v12186_v40 = vpop.eup %12185  ;;  %v5992_v41 = vmul.f32 %v12184_v6, %v5503_v50  ;;  %v14520_v23 = vpop.f32.mrb[20].mxu0 }
 0x55d   : > { %v10716_v54 = vpop.f32.mrb[20].mxu1  ;;  %v12188_v63 = vpop.eup %12187  ;;  %v5990_v19 = vmul.f32 %v12186_v40, %v5495_v56 }
 0x55e   : > { %v5747_v3 = vadd.f32 %v10716_v54, %v14412_v58  ;;  %v14523_v10 = vpop.f32.mrb[21].mxu0  ;;  %v5738_v35 = vpop.f32.mrb[21].mxu1  ;;  %v6740_v27 = vpack.c.bf16 %v5992_v41, %v5991_v37  ;;  %v5899_v28 = vadd.f32 1.0, %v12188_v63 }
 0x55f   : > { %v12190_v12 = vpop.eup %12189  ;;  %v5739_v43 = vadd.f32 %v14412_v58, %v5738_v35  ;;  %v14526_v24 = vpop.f32.mrb[22].mxu0  ;;  %v6739_v61 = vpack.c.bf16 %v5990_v19, %v5989_v39 }
 0x560   : > { %v10717_v55 = vpop.f32.mrb[22].mxu1  ;;  %v12192_v17 = vpop.eup %12191  ;;  %v5897_v11 = vadd.f32 1.0, %v12190_v12  ;;  %12195 = vrcp.f32 %v5899_v28  ;;  %v9213_v4 = vmul.f32 -1.442695, %v5747_v3  ;;  %v5532_v12 = vadd.f32 %v14520_v23, %v14432_v51 }
 0x561   : > { %v5750_v14 = vadd.f32 %v10717_v55, %v14412_v58  ;;  %v14529_v46 = vpop.f32.mrb[23].mxu0  ;;  %v5741_v53 = vpop.f32.mrb[23].mxu1  ;;  %v5900_v31 = vadd.f32 1.0, %v12192_v17  ;;  %v9211_v62 = vmul.f32 -1.442695, %v5739_v43  ;;  %10850 = vmatprep.mubr.bf16.mxu0 %v6739_v61  ;;  %v5524_v28 = vadd.f32 %v14432_v51, %v14523_v10 }
 0x562   : > { %v12194_v48 = vpop.eup %12193  ;;  %12197 = vrcp.f32 %v5897_v11  ;;  %v5742_v59 = vadd.f32 %v14412_v58, %v5741_v53  ;;  %10851 = vmatmul.mubr.bf16.gmra.mrb[76].mxu0 %v6740_v27  ;;  %v5527_v23 = vadd.f32 %v14432_v51, %v14529_v46 }
 0x563   : > { %v5898_v30 = vadd.f32 1.0, %v12194_v48  ;;  %12199 = vrcp.f32 %v5900_v31  ;;  %v9214_v34 = vmul.f32 -1.442695, %v5750_v14  ;;  %v5535_v14 = vadd.f32 %v14526_v24, %v14432_v51 }
 0x564   : > { %v9212_v2 = vmul.f32 -1.442695, %v5742_v59 }
 0x565   : > { %12201 = vrcp.f32 %v5898_v30 }
 0x566   : > { %12203 = vpow2.f32 %v9213_v4 }
 0x567   : > { %12205 = vpow2.f32 %v9211_v62 }
 0x568   : > { %12207 = vpow2.f32 %v9214_v34 }
 0x569   : > { %12209 = vpow2.f32 %v9212_v2 }
 0x56a   : > { %v12196_v29 = vpop.eup %12195 }
 0x56b   : > { %v5995_v5 = vmul.f32 %v12196_v29, %v5516_v0 }
 0x56c   : > { %v12198_v32 = vpop.eup %12197 }
 0x56d   : > { %v12200_v38 = vpop.eup %12199  ;;  %v5993_v45 = vmul.f32 %v12198_v32, %v5508_v33  ;;  %v14540_v18 = vpop.f32.mrb[24].mxu0 }
 0x56e   : > { %v5996_v22 = vmul.f32 %v12200_v38, %v5519_v44  ;;  %v10720_v57 = vpop.f32.mrb[24].mxu1  ;;  %v14543_v20 = vpop.f32.mrb[25].mxu0 }
 0x56f   : > { %v12202_v36 = vpop.eup %12201  ;;  %v5763_v26 = vadd.f32 %v10720_v57, %v14412_v58  ;;  %v5754_v60 = vpop.f32.mrb[25].mxu1 }
 0x570   : > { %v12204_v52 = vpop.eup %12203  ;;  %v5994_v1 = vmul.f32 %v12202_v36, %v5511_v49  ;;  %v6742_v16 = vpack.c.bf16 %v5996_v22, %v5995_v5  ;;  %v5755_v21 = vadd.f32 %v14412_v58, %v5754_v60  ;;  %v14546_v9 = vpop.f32.mrb[26].mxu0 }
 0x571   : > { %v12206_v47 = vpop.eup %12205  ;;  %v5903_v8 = vadd.f32 1.0, %v12204_v52  ;;  %v10721_v42 = vpop.f32.mrb[26].mxu1  ;;  %v9217_v56 = vmul.f32 -1.442695, %v5763_v26  ;;  %v14575_v52 = vld [vmem:[%s15392_s9 + $0x3] ss:$0 sm:$0xff] }
 0x572   : > { %v12208_v15 = vpop.eup %12207  ;;  %v5901_v25 = vadd.f32 1.0, %v12206_v47  ;;  %v6741_v37 = vpack.c.bf16 %v5994_v1, %v5993_v45  ;;  %v14548_v39 = vpop.f32.mrb[27].mxu0  ;;  %v9215_v54 = vmul.f32 -1.442695, %v5755_v21  ;;  %v5766_v63 = vadd.f32 %v10721_v42, %v14412_v58 }
 0x573   : > { %v12210_v50 = vpop.eup %12209  ;;  %12211 = vrcp.f32 %v5903_v8  ;;  %v5904_v6 = vadd.f32 1.0, %v12208_v15  ;;  %v5757_v40 = vpop.f32.mrb[27].mxu1 }
 0x574   : > { %12213 = vrcp.f32 %v5901_v25  ;;  %v5902_v41 = vadd.f32 1.0, %v12210_v50  ;;  %10854 = vmatprep.mubr.bf16.mxu0 %v6741_v37  ;;  %v5758_v3 = vadd.f32 %v14412_v58, %v5757_v40  ;;  %v9218_v35 = vmul.f32 -1.442695, %v5766_v63 }
 0x575   : > { %12215 = vrcp.f32 %v5904_v6  ;;  %10855 = vmatmul.mubr.bf16.gmra.mrb[80].mxu0 %v6742_v16 }
 0x576   : > { %12217 = vrcp.f32 %v5902_v41  ;;  %v9216_v19 = vmul.f32 -1.442695, %v5758_v3 }
 0x577   : > { %12219 = vpow2.f32 %v9217_v56 }
 0x578   : > { %12221 = vpow2.f32 %v9215_v54 }
 0x579   : > { %12223 = vpow2.f32 %v9218_v35 }
 0x57a   : > { %12225 = vpow2.f32 %v9216_v19 }
 0x57b   : > { %v14556_v43 = vpop.f32.mrb[28].mxu0  ;;  %v10724_v55 = vpop.f32.mrb[28].mxu1 }
 0x57c   : > { %v5779_v53 = vadd.f32 %v10724_v55, %v14412_v58  ;;  %v14561_v48 = vpop.f32.mrb[29].mxu0  ;;  %v5770_v31 = vpop.f32.mrb[29].mxu1  ;;  %v5540_v55 = vadd.f32 %v14432_v51, %v14543_v20 }
 0x57d   : > { %v12212_v27 = vpop.eup %12211  ;;  %v5771_v30 = vadd.f32 %v14412_v58, %v5770_v31  ;;  %v14566_v10 = vpop.f32.mrb[30].mxu0 }
 0x57e   : > { %v12214_v17 = vpop.eup %12213  ;;  %v5999_v11 = vmul.f32 %v12212_v27, %v5532_v12  ;;  %v10725_v62 = vpop.f32.mrb[30].mxu1  ;;  %v9221_v2 = vmul.f32 -1.442695, %v5779_v53  ;;  %v5548_v12 = vadd.f32 %v14540_v18, %v14432_v51  ;;  %v5551_v53 = vadd.f32 %v14546_v9, %v14432_v51 }
 0x57f   : > { %v12216_v4 = vpop.eup %12215  ;;  %v5997_v59 = vmul.f32 %v12214_v17, %v5524_v28  ;;  %v5782_v24 = vadd.f32 %v10725_v62, %v14412_v58  ;;  %v14569_v0 = vpop.f32.mrb[31].mxu0  ;;  %v9219_v32 = vmul.f32 -1.442695, %v5771_v30 }
 0x580   : > { %v12218_v34 = vpop.eup %12217  ;;  %v6000_v61 = vmul.f32 %v12216_v4, %v5535_v14  ;;  %v5773_v29 = vpop.f32.mrb[31].mxu1  ;;  %12227 = vpow2.f32 %v9221_v2  ;;  %v5543_v4 = vadd.f32 %v14432_v51, %v14548_v39 }
 0x581   : > { %v12220_v33 = vpop.eup %12219  ;;  %v5774_v5 = vadd.f32 %v14412_v58, %v5773_v29  ;;  %v5998_v44 = vmul.f32 %v12218_v34, %v5527_v23  ;;  %12229 = vpow2.f32 %v9219_v32  ;;  %v9222_v47 = vmul.f32 -1.442695, %v5782_v24 }
 0x582   : > { %v12222_v46 = vpop.eup %12221  ;;  %v6744_v38 = vpack.c.bf16 %v6000_v61, %v5999_v11  ;;  %v5907_v49 = vadd.f32 1.0, %v12220_v33 }
 0x583   : > { %v12224_v45 = vpop.eup %12223  ;;  %v5905_v36 = vadd.f32 1.0, %v12222_v46  ;;  %v6743_v22 = vpack.c.bf16 %v5998_v44, %v5997_v59  ;;  %v9220_v16 = vmul.f32 -1.442695, %v5774_v5  ;;  %v14577_v8 = vpop.f32.mrb[32].mxu0 }
 0x584   : > { %v12226_v57 = vpop.eup %12225  ;;  %12231 = vrcp.f32 %v5907_v49  ;;  %v5908_v1 = vadd.f32 1.0, %v12224_v45  ;;  %v10792_v26 = vpop.f32.mrb[32].mxu1 }
 0x585   : > { %12233 = vrcp.f32 %v5905_v36  ;;  %v5906_v58 = vadd.f32 1.0, %v12226_v57  ;;  %10858 = vmatprep.mubr.bf16.mxu0 %v6743_v22  ;;  %v6375_v60 = vadd.f32 %v10792_v26, %v14575_v52  ;;  %v14580_v15 = vpop.f32.mrb[33].mxu0  ;;  %v6366_v25 = vpop.f32.mrb[33].mxu1 }
 0x586   : > { %12235 = vrcp.f32 %v5908_v1  ;;  %10859 = vmatmul.mubr.bf16.gmra.mrb[84].mxu0 %v6744_v38  ;;  %v6367_v21 = vadd.f32 %v14575_v52, %v6366_v25  ;;  %v14583_v42 = vpop.f32.mrb[34].mxu0  ;;  %v10793_v37 = vpop.f32.mrb[34].mxu1  ;;  %v5564_v25 = vadd.f32 %v14556_v43, %v14432_v51 }
 0x587   : > { %12237 = vrcp.f32 %v5906_v58  ;;  %v9277_v50 = vmul.f32 -1.442695, %v6375_v60  ;;  %v6378_v6 = vadd.f32 %v10793_v37, %v14575_v52  ;;  %v14586_v56 = vpop.f32.mrb[35].mxu0  ;;  %v6369_v40 = vpop.f32.mrb[35].mxu1 }
 0x588   : > { %12239 = vpow2.f32 %v9222_v47  ;;  %v9275_v41 = vmul.f32 -1.442695, %v6367_v21  ;;  %v6370_v54 = vadd.f32 %v14575_v52, %v6369_v40 }
 0x589   : > { %12241 = vpow2.f32 %v9220_v16  ;;  %v9278_v63 = vmul.f32 -1.442695, %v6378_v6  ;;  %v5556_v6 = vadd.f32 %v14432_v51, %v14561_v48 }
 0x58a   : > { %12243 = vpow2.f32 %v9277_v50  ;;  %v9276_v3 = vmul.f32 -1.442695, %v6370_v54  ;;  %v12228_v35 = vpop.eup %12227 }
 0x58b   : > { %12245 = vpow2.f32 %v9275_v41  ;;  %v12230_v19 = vpop.eup %12229  ;;  %v5911_v27 = vadd.f32 1.0, %v12228_v35 }
 0x58c   : > { %12247 = vpow2.f32 %v9278_v63  ;;  %v5909_v17 = vadd.f32 1.0, %v12230_v19 }
 0x58d   : > { %12249 = vpow2.f32 %v9276_v3 }
 0x58e   : > { %v12232_v28 = vpop.eup %12231  ;;  %12251 = vrcp.f32 %v5911_v27 }
 0x58f   : > { %v12234_v11 = vpop.eup %12233  ;;  %v6003_v14 = vmul.f32 %v12232_v28, %v5548_v12  ;;  %12253 = vrcp.f32 %v5909_v17  ;;  %v14597_v59 = vpop.f32.mrb[36].mxu0  ;;  %v14624_v17 = vld [vmem:[%s15390_s7 + $0x3] ss:$0 sm:$0xff] }
 0x590   : > { %v12236_v31 = vpop.eup %12235  ;;  %v6001_v23 = vmul.f32 %v12234_v11, %v5540_v55  ;;  %v10796_v34 = vpop.f32.mrb[36].mxu1 }
 0x591   : > { %v12238_v18 = vpop.eup %12237  ;;  %v6004_v30 = vmul.f32 %v12236_v31, %v5551_v53  ;;  %v6391_v29 = vadd.f32 %v10796_v34, %v14575_v52  ;;  %v14600_v9 = vpop.f32.mrb[37].mxu0 }
 0x592   : > { %v12240_v62 = vpop.eup %12239  ;;  %v6002_v20 = vmul.f32 %v12238_v18, %v5543_v4  ;;  %v6382_v33 = vpop.f32.mrb[37].mxu1  ;;  %v5567_v4 = vadd.f32 %v14566_v10, %v14432_v51  ;;  %v6152_v10 = vadd.f32 %v14624_v17, %v14580_v15 }
 0x593   : > { %v12242_v61 = vpop.eup %12241  ;;  %v6746_v2 = vpack.c.bf16 %v6004_v30, %v6003_v14  ;;  %v5912_v24 = vadd.f32 1.0, %v12240_v62  ;;  %v6383_v39 = vadd.f32 %v14575_v52, %v6382_v33  ;;  %v14603_v44 = vpop.f32.mrb[38].mxu0  ;;  %v9281_v26 = vmul.f32 -1.442695, %v6391_v29 }
 0x594   : > { %v12244_v32 = vpop.eup %12243  ;;  %v5910_v5 = vadd.f32 1.0, %v12242_v61  ;;  %v10797_v46 = vpop.f32.mrb[38].mxu1  ;;  %v6745_v38 = vpack.c.bf16 %v6002_v20, %v6001_v23  ;;  %v5559_v62 = vadd.f32 %v14432_v51, %v14569_v0  ;;  %v6163_v51 = vadd.f32 %v14583_v42, %v14624_v17 }
 0x595   : > { %v12246_v49 = vpop.eup %12245  ;;  %12255 = vrcp.f32 %v5912_v24  ;;  %v6591_v45 = vadd.f32 1.0, %v12244_v32  ;;  %v14605_v36 = vpop.f32.mrb[39].mxu0  ;;  %v6394_v47 = vadd.f32 %v10797_v46, %v14575_v52  ;;  %v9279_v37 = vmul.f32 -1.442695, %v6383_v39 }
 0x596   : > { %v6385_v22 = vpop.f32.mrb[39].mxu1  ;;  %v12248_v57 = vpop.eup %12247  ;;  %12257 = vrcp.f32 %v5910_v5  ;;  %v6589_v1 = vadd.f32 1.0, %v12246_v49  ;;  %10862 = vmatprep.mubr.bf16.mxu0 %v6745_v38  ;;  %v6155_v46 = vadd.f32 %v14624_v17, %v14586_v56 }
 0x597   : > { %v12250_v58 = vpop.eup %12249  ;;  %12259 = vrcp.f32 %v6591_v45  ;;  %v6592_v16 = vadd.f32 1.0, %v12248_v57  ;;  %v6386_v60 = vadd.f32 %v14575_v52, %v6385_v22  ;;  %10863 = vmatmul.mubr.bf16.gmra.mrb[88].mxu0 %v6746_v2  ;;  %v9282_v40 = vmul.f32 -1.442695, %v6394_v47  ;;  %v14613_v3 = vpop.f32.mrb[40].mxu0 }
 0x598   : > { %12261 = vrcp.f32 %v6589_v1  ;;  %v6590_v21 = vadd.f32 1.0, %v12250_v58  ;;  %v12252_v50 = vpop.eup %12251  ;;  %v10800_v35 = vpop.f32.mrb[40].mxu1  ;;  %v6160_v2 = vadd.f32 %v14577_v8, %v14624_v17 }
 0x599   : > { %12263 = vrcp.f32 %v6592_v16  ;;  %v12254_v41 = vpop.eup %12253  ;;  %v6007_v54 = vmul.f32 %v12252_v50, %v5564_v25  ;;  %v9280_v63 = vmul.f32 -1.442695, %v6386_v60  ;;  %v6407_v19 = vadd.f32 %v10800_v35, %v14575_v52  ;;  %v14616_v43 = vpop.f32.mrb[41].mxu0 }
 0x59a   : > { %12265 = vrcp.f32 %v6590_v21  ;;  %v6398_v12 = vpop.f32.mrb[41].mxu1  ;;  %v6005_v27 = vmul.f32 %v12254_v41, %v5556_v6  ;;  %v14619_v48 = vpop.f32.mrb[42].mxu0 }
 0x59b   : > { %12267 = vpow2.f32 %v9281_v26  ;;  %v6399_v28 = vadd.f32 %v14575_v52, %v6398_v12  ;;  %v10801_v55 = vpop.f32.mrb[42].mxu1  ;;  %v9285_v11 = vmul.f32 -1.442695, %v6407_v19  ;;  %v14627_v53 = vpop.f32.mrb[43].mxu0 }
 0x59c   : > { %12269 = vpow2.f32 %v9279_v37  ;;  %v6410_v14 = vadd.f32 %v10801_v55, %v14575_v52  ;;  %v6401_v31 = vpop.f32.mrb[43].mxu1 }
 0x59d   : > { %12271 = vpow2.f32 %v9282_v40  ;;  %v9283_v23 = vmul.f32 -1.442695, %v6399_v28  ;;  %v6402_v18 = vadd.f32 %v14575_v52, %v6401_v31 }
 0x59e   : > { %12273 = vpow2.f32 %v9280_v63  ;;  %v9286_v34 = vmul.f32 -1.442695, %v6410_v14 }
 0x59f   : > { %v12256_v30 = vpop.eup %12255  ;;  %12275 = vpow2.f32 %v9285_v11  ;;  %v9284_v24 = vmul.f32 -1.442695, %v6402_v18 }
 0x5a0   : > { %v12258_v20 = vpop.eup %12257  ;;  %v6008_v61 = vmul.f32 %v12256_v30, %v5567_v4  ;;  %12277 = vpow2.f32 %v9283_v23 }
 0x5a1   : > { %v12260_v29 = vpop.eup %12259  ;;  %12279 = vpow2.f32 %v9286_v34  ;;  %v6006_v33 = vmul.f32 %v12258_v20, %v5559_v62  ;;  %v14642_v8 = vpop.f32.mrb[44].mxu0 }
 0x5a2   : > { %v12262_v32 = vpop.eup %12261  ;;  %v6748_v5 = vpack.c.bf16 %v6008_v61, %v6007_v54  ;;  %v6687_v39 = vmul.f32 %v12260_v29, %v6160_v2  ;;  %12281 = vpow2.f32 %v9284_v24  ;;  %v10804_v38 = vpop.f32.mrb[44].mxu1 }
 0x5a3   : > { %v12264_v0 = vpop.eup %12263  ;;  %v6747_v49 = vpack.c.bf16 %v6006_v33, %v6005_v27  ;;  %v6685_v45 = vmul.f32 %v12262_v32, %v6152_v10  ;;  %v14644_v57 = vpop.f32.mrb[45].mxu0  ;;  %v6423_v41 = vadd.f32 %v10804_v38, %v14575_v52  ;;  %v6176_v38 = vadd.f32 %v14597_v59, %v14624_v17 }
 0x5a4   : > { %v12266_v22 = vpop.eup %12265  ;;  %v6688_v15 = vmul.f32 %v12264_v0, %v6163_v51  ;;  %v6414_v1 = vpop.f32.mrb[45].mxu1 }
 0x5a5   : > { %v12268_v47 = vpop.eup %12267  ;;  %v14646_v58 = vpop.f32.mrb[46].mxu0  ;;  %10866 = vmatprep.mubr.bf16.mxu0 %v6747_v49  ;;  %v6686_v42 = vmul.f32 %v12266_v22, %v6155_v46  ;;  %v6415_v19 = vadd.f32 %v14575_v52, %v6414_v1  ;;  %v9289_v30 = vmul.f32 -1.442695, %v6423_v41  ;;  %v6168_v22 = vadd.f32 %v14624_v17, %v14600_v9 }
 0x5a6   : > { %v10805_v16 = vpop.f32.mrb[46].mxu1  ;;  %v12270_v26 = vpop.eup %12269  ;;  %v6975_v60 = vpack.c.bf16 %v6688_v15, %v6687_v39  ;;  %v6595_v25 = vadd.f32 1.0, %v12268_v47  ;;  %10867 = vmatmul.mubr.bf16.gmra.mrb[92].mxu0 %v6748_v5  ;;  %v6179_v15 = vadd.f32 %v14603_v44, %v14624_v17  ;;  %v6192_v9 = vadd.f32 %v14613_v3, %v14624_v17 }
 0x5a7   : > { %v14648_v56 = vpop.f32.mrb[47].mxu0  ;;  %v6417_v21 = vpop.f32.mrb[47].mxu1  ;;  %v6593_v50 = vadd.f32 1.0, %v12270_v26  ;;  %v6974_v54 = vpack.c.bf16 %v6686_v42, %v6685_v45  ;;  %v6426_v28 = vadd.f32 %v10805_v16, %v14575_v52  ;;  %v9287_v2 = vmul.f32 -1.442695, %v6415_v19 }
 0x5a8   : > { %v12272_v37 = vpop.eup %12271  ;;  %12283 = vrcp.f32 %v6595_v25  ;;  %v6418_v14 = vadd.f32 %v14575_v52, %v6417_v21  ;;  %v6171_v42 = vadd.f32 %v14624_v17, %v14605_v36  ;;  %v6184_v36 = vadd.f32 %v14624_v17, %v14616_v43 }
 0x5a9   : > { %v12274_v6 = vpop.eup %12273  ;;  %v6596_v40 = vadd.f32 1.0, %v12272_v37  ;;  %12285 = vrcp.f32 %v6593_v50  ;;  %10886 = vmatprep.mubr.bf16.mxu1 %v6974_v54  ;;  %v14654_v31 = vpop.f32.mrb[48].mxu0  ;;  %v9290_v33 = vmul.f32 -1.442695, %v6426_v28  ;;  %v6195_v3 = vadd.f32 %v14619_v48, %v14624_v17 }
 0x5aa   : > { %v12276_v63 = vpop.eup %12275  ;;  %v6594_v35 = vadd.f32 1.0, %v12274_v6  ;;  %v10808_v4 = vpop.f32.mrb[48].mxu1  ;;  %10887 = vmatmul.mubr.bf16.vlgmr.msra.gmra.mrb[64].mxu1 %v6975_v60  ;;  %v9288_v51 = vmul.f32 -1.442695, %v6418_v14 }
 0x5ab   : > { %v12278_v12 = vpop.eup %12277  ;;  %12287 = vrcp.f32 %v6596_v40  ;;  %v6599_v27 = vadd.f32 1.0, %v12276_v63  ;;  %v6439_v62 = vadd.f32 %v10808_v4, %v14575_v52  ;;  %v14657_v34 = vpop.f32.mrb[49].mxu0 }
 0x5ac   : > { %v12280_v55 = vpop.eup %12279  ;;  %12289 = vrcp.f32 %v6594_v35  ;;  %v6597_v11 = vadd.f32 1.0, %v12278_v12  ;;  %v6430_v20 = vpop.f32.mrb[49].mxu1 }
 0x5ad   : > { %v12282_v23 = vpop.eup %12281  ;;  %12291 = vrcp.f32 %v6599_v27  ;;  %v6600_v18 = vadd.f32 1.0, %v12280_v55  ;;  %v6431_v24 = vadd.f32 %v14575_v52, %v6430_v20  ;;  %v14660_v29 = vpop.f32.mrb[50].mxu0  ;;  %v9293_v46 = vmul.f32 -1.442695, %v6439_v62 }
 0x5ae   : > { %12293 = vrcp.f32 %v6597_v11  ;;  %v6598_v61 = vadd.f32 1.0, %v12282_v23  ;;  %v10809_v10 = vpop.f32.mrb[50].mxu1  ;;  %v14663_v5 = vpop.f32.mrb[51].mxu0  ;;  %v6187_v23 = vadd.f32 %v14624_v17, %v14627_v53 }
 0x5af   : > { %12295 = vrcp.f32 %v6600_v18  ;;  %v6442_v32 = vadd.f32 %v10809_v10, %v14575_v52  ;;  %v6433_v39 = vpop.f32.mrb[51].mxu1  ;;  %v9291_v49 = vmul.f32 -1.442695, %v6431_v24 }
 0x5b0   : > { %12297 = vrcp.f32 %v6598_v61  ;;  %v6434_v0 = vadd.f32 %v14575_v52, %v6433_v39 }
 0x5b1   : > { %12299 = vpow2.f32 %v9289_v30  ;;  %v9294_v1 = vmul.f32 -1.442695, %v6442_v32  ;;  %v14676_v59 = vpop.f32.mrb[52].mxu0  ;;  %v10812_v60 = vpop.f32.mrb[52].mxu1 }
 0x5b2   : > { %12301 = vpow2.f32 %v9287_v2  ;;  %v12284_v45 = vpop.eup %12283  ;;  %v9292_v26 = vmul.f32 -1.442695, %v6434_v0  ;;  %v6455_v44 = vadd.f32 %v10812_v60, %v14575_v52  ;;  %v14681_v21 = vpop.f32.mrb[53].mxu0 }
 0x5b3   : > { %12303 = vpow2.f32 %v9290_v33  ;;  %v12286_v47 = vpop.eup %12285  ;;  %v14672_v16 = vmul.f32 %v12284_v45, %v6176_v38  ;;  %v6446_v37 = vpop.f32.mrb[53].mxu1 }
 0x5b4   : > { %12305 = vpow2.f32 %v9288_v51  ;;  %v6689_v50 = vmul.f32 %v12286_v47, %v6168_v22  ;;  %v6447_v41 = vadd.f32 %v14575_v52, %v6446_v37  ;;  %v14686_v54 = vpop.f32.mrb[54].mxu0  ;;  %v10813_v63 = vpop.f32.mrb[54].mxu1  ;;  %v9297_v19 = vmul.f32 -1.442695, %v6455_v44 }
 0x5b5   : > { %v12288_v25 = vpop.eup %12287  ;;  %12307 = vpow2.f32 %v9293_v46  ;;  %v6458_v12 = vadd.f32 %v10813_v63, %v14575_v52  ;;  %v14691_v27 = vpop.f32.mrb[55].mxu0  ;;  %v6208_v63 = vadd.f32 %v14642_v8, %v14624_v17 }
 0x5b6   : > { %v12290_v6 = vpop.eup %12289  ;;  %v6692_v40 = vmul.f32 %v12288_v25, %v6179_v15  ;;  %12309 = vpow2.f32 %v9291_v49  ;;  %v6449_v28 = vpop.f32.mrb[55].mxu1  ;;  %v9295_v14 = vmul.f32 -1.442695, %v6447_v41 }
 0x5b7   : > { %v12292_v35 = vpop.eup %12291  ;;  %12311 = vpow2.f32 %v9294_v1  ;;  %v9298_v48 = vmul.f32 -1.442695, %v6458_v12  ;;  %v6450_v18 = vadd.f32 %v14575_v52, %v6449_v28  ;;  %v6690_v20 = vmul.f32 %v12290_v6, %v6171_v42 }
 0x5b8   : > { %v12294_v55 = vpop.eup %12293  ;;  %v6977_v43 = vpack.c.bf16 %v6692_v40, %v14672_v16  ;;  %v14694_v11 = vmul.f32 %v12292_v35, %v6192_v9  ;;  %12313 = vpow2.f32 %v9292_v26  ;;  %v6200_v12 = vadd.f32 %v14624_v17, %v14644_v57 }
 0x5b9   : > { %v12296_v4 = vpop.eup %12295  ;;  %12315 = vpow2.f32 %v9297_v19  ;;  %v6693_v61 = vmul.f32 %v12294_v55, %v6184_v36  ;;  %v9296_v24 = vmul.f32 -1.442695, %v6450_v18  ;;  %v6976_v53 = vpack.c.bf16 %v6690_v20, %v6689_v50 }
 0x5ba   : > { %v12298_v30 = vpop.eup %12297  ;;  %v14699_v62 = vmul.f32 %v12296_v4, %v6195_v3  ;;  %12317 = vpow2.f32 %v9295_v14 }
 0x5bb   : > { %v12300_v2 = vpop.eup %12299  ;;  %12319 = vpow2.f32 %v9298_v48  ;;  %v6694_v10 = vmul.f32 %v12298_v30, %v6187_v23  ;;  %v14703_v46 = vpop.f32.mrb[56].mxu0  ;;  %10890 = vmatprep.mubr.bf16.mxu1 %v6976_v53  ;;  %v6211_v48 = vadd.f32 %v14646_v58, %v14624_v17 }
 0x5bc   : > { %v12302_v33 = vpop.eup %12301  ;;  %v6979_v32 = vpack.c.bf16 %v14699_v62, %v14694_v11  ;;  %v6603_v39 = vadd.f32 1.0, %v12300_v2  ;;  %12321 = vpow2.f32 %v9296_v24  ;;  %v10816_v38 = vpop.f32.mrb[56].mxu1  ;;  %10891 = vmatmul.mubr.bf16.gmra.mrb[68].mxu1 %v6977_v43 }
 0x5bd   : > { %v12304_v51 = vpop.eup %12303  ;;  %v6601_v0 = vadd.f32 1.0, %v12302_v33  ;;  %v6978_v49 = vpack.c.bf16 %v6694_v10, %v6693_v61  ;;  %v14705_v15 = vpop.f32.mrb[57].mxu0  ;;  %v6471_v6 = vadd.f32 %v10816_v38, %v14575_v52  ;;  %v6203_v61 = vadd.f32 %v14624_v17, %v14648_v56 }
 0x5be   : > { %v12306_v45 = vpop.eup %12305  ;;  %12323 = vrcp.f32 %v6603_v39  ;;  %v6604_v22 = vadd.f32 1.0, %v12304_v51  ;;  %v6462_v1 = vpop.f32.mrb[57].mxu1  ;;  %v6224_v39 = vadd.f32 %v14654_v31, %v14624_v17  ;;  %v11605_v31 = vld [vmem:[%s15395_s12] sm:$0xff]  }
 0x5bf   : > { %v12308_v47 = vpop.eup %12307  ;;  %12325 = vrcp.f32 %v6601_v0  ;;  %v6602_v16 = vadd.f32 1.0, %v12306_v45  ;;  %v14707_v42 = vpop.f32.mrb[58].mxu0  ;;  %10894 = vmatprep.mubr.bf16.mxu1 %v6978_v49  ;;  %v6463_v3 = vadd.f32 %v14575_v52, %v6462_v1  ;;  %v9301_v14 = vmul.f32 -1.442695, %v6471_v6  ;;  %10918 = vmatprep.subr.bf16.mxu0 %v11605_v31 }
 0x5c0   : > { %v10817_v26 = vpop.f32.mrb[58].mxu1  ;;  %v12310_v60 = vpop.eup %12309  ;;  %12327 = vrcp.f32 %v6604_v22  ;;  %v6607_v25 = vadd.f32 1.0, %v12308_v47  ;;  %10919 = vmatpush3.bf16.msra.mxu0 %v11605_v31 }
 0x5c1   : > { %v14709_v9 = vpop.f32.mrb[59].mxu0  ;;  %v6465_v44 = vpop.f32.mrb[59].mxu1  ;;  %12329 = vrcp.f32 %v6602_v16  ;;  %v6605_v50 = vadd.f32 1.0, %v12310_v60  ;;  %v6474_v55 = vadd.f32 %v10817_v26, %v14575_v52  ;;  %v9299_v2 = vmul.f32 -1.442695, %v6463_v3 }
 0x5c2   : > { %v12312_v37 = vpop.eup %12311  ;;  %12331 = vrcp.f32 %v6607_v25  ;;  %v6466_v4 = vadd.f32 %v14575_v52, %v6465_v44  ;;  %v6216_v25 = vadd.f32 %v14624_v17, %v14657_v34  ;;  %v6219_v34 = vadd.f32 %v14624_v17, %v14663_v5 }
 0x5c3   : > { %v12314_v40 = vpop.eup %12313  ;;  %v6608_v36 = vadd.f32 1.0, %v12312_v37  ;;  %12333 = vrcp.f32 %v6605_v50  ;;  %v14719_v23 = vpop.f32.mrb[60].mxu0  ;;  %v9302_v51 = vmul.f32 -1.442695, %v6474_v55  ;;  %v6227_v50 = vadd.f32 %v14660_v29, %v14624_v17 }
 0x5c4   : > { %v12316_v41 = vpop.eup %12315  ;;  %v6606_v35 = vadd.f32 1.0, %v12314_v40  ;;  %v10820_v8 = vpop.f32.mrb[60].mxu1  ;;  %10895 = vmatmul.mubr.bf16.gmra.mrb[72].mxu1 %v6979_v32  ;;  %v9300_v45 = vmul.f32 -1.442695, %v6466_v4  ;;  %v6240_v29 = vadd.f32 %v14676_v59, %v14624_v17  ;;  %v6243_v5 = vadd.f32 %v14686_v54, %v14624_v17 }
 0x5c5   : > { %v12318_v19 = vpop.eup %12317  ;;  %12335 = vrcp.f32 %v6608_v36  ;;  %v6611_v28 = vadd.f32 1.0, %v12316_v41  ;;  %v6487_v57 = vadd.f32 %v10820_v8, %v14575_v52  ;;  %v14724_v30 = vpop.f32.mrb[61].mxu0 }
 0x5c6   : > { %v12320_v43 = vpop.eup %12319  ;;  %12337 = vrcp.f32 %v6606_v35  ;;  %v6609_v11 = vadd.f32 1.0, %v12318_v19  ;;  %v6478_v62 = vpop.f32.mrb[61].mxu1 }
 0x5c7   : > { %12339 = vrcp.f32 %v6611_v28  ;;  %v6612_v18 = vadd.f32 1.0, %v12320_v43  ;;  %v12322_v20 = vpop.eup %12321  ;;  %v6479_v24 = vadd.f32 %v14575_v52, %v6478_v62  ;;  %v14729_v10 = vpop.f32.mrb[62].mxu0  ;;  %v9305_v1 = vmul.f32 -1.442695, %v6487_v57 }
 0x5c8   : > { %12341 = vrcp.f32 %v6609_v11  ;;  %v10821_v33 = vpop.f32.mrb[62].mxu1  ;;  %v12324_v58 = vpop.eup %12323  ;;  %v6610_v53 = vadd.f32 1.0, %v12322_v20  ;;  %v6232_v43 = vadd.f32 %v14624_v17, %v14681_v21  ;;  %v6235_v20 = vadd.f32 %v14624_v17, %v14691_v27 }
 0x5c9   : > { %12343 = vrcp.f32 %v6612_v18  ;;  %v14733_v0 = vpop.f32.mrb[63].mxu0  ;;  %v6481_v38 = vpop.f32.mrb[63].mxu1  ;;  %v6699_v56 = vmul.f32 %v12324_v58, %v6208_v63  ;;  %v6490_v32 = vadd.f32 %v10821_v33, %v14575_v52  ;;  %v9303_v44 = vmul.f32 -1.442695, %v6479_v24 }
 0x5ca   : > { %v12326_v49 = vpop.eup %12325  ;;  %12345 = vpow2.f32 %v9301_v14  ;;  %v6482_v47 = vadd.f32 %v14575_v52, %v6481_v38 }
 0x5cb   : > { %v12328_v22 = vpop.eup %12327  ;;  %12347 = vrcp.f32 %v6610_v53  ;;  %v6697_v16 = vmul.f32 %v12326_v49, %v6200_v12  ;;  %v9306_v6 = vmul.f32 -1.442695, %v6490_v32 }
 0x5cc   : > { %v12330_v26 = vpop.eup %12329  ;;  %v6700_v60 = vmul.f32 %v12328_v22, %v6211_v48  ;;  %12349 = vpow2.f32 %v9299_v2  ;;  %v9304_v63 = vmul.f32 -1.442695, %v6482_v47 }
 0x5cd   : > { %v12332_v37 = vpop.eup %12331  ;;  %12351 = vpow2.f32 %v9302_v51  ;;  %v6698_v40 = vmul.f32 %v12330_v26, %v6203_v61 }
 0x5ce   : > { %v12334_v52 = vpop.eup %12333  ;;  %v6981_v36 = vpack.c.bf16 %v6700_v60, %v6699_v56  ;;  %v6703_v41 = vmul.f32 %v12332_v37, %v6224_v39  ;;  %12353 = vpow2.f32 %v9300_v45  ;;  %v6248_v60 = vadd.f32 %v14624_v17, %v14705_v15 }
 0x5cf   : > { %v12336_v35 = vpop.eup %12335  ;;  %12355 = vpow2.f32 %v9305_v1  ;;  %v6980_v3 = vpack.c.bf16 %v6698_v40, %v6697_v16  ;;  %v6701_v19 = vmul.f32 %v12334_v52, %v6216_v25  ;;  %v6256_v16 = vadd.f32 %v14703_v46, %v14624_v17 }
 0x5d0   : > { %v12338_v12 = vpop.eup %12337  ;;  %v6704_v28 = vmul.f32 %v12336_v35, %v6227_v50  ;;  %12357 = vpow2.f32 %v9303_v44  ;;  %v6259_v44 = vadd.f32 %v14707_v42, %v14624_v17  ;;  %v6251_v50 = vadd.f32 %v14624_v17, %v14709_v9 }
 0x5d1   : > { %v12340_v55 = vpop.eup %12339  ;;  %12359 = vpow2.f32 %v9306_v6  ;;  %10898 = vmatprep.mubr.bf16.mxu1 %v6980_v3  ;;  %v6702_v11 = vmul.f32 %v12338_v12, %v6219_v34  ;;  %v6272_v46 = vadd.f32 %v14719_v23, %v14624_v17  ;;  %v6275_v42 = vadd.f32 %v14729_v10, %v14624_v17 }
 0x5d2   : > { %v12342_v14 = vpop.eup %12341  ;;  %v6983_v4 = vpack.c.bf16 %v6704_v28, %v6703_v41  ;;  %v6707_v8 = vmul.f32 %v12340_v55, %v6240_v29  ;;  %12361 = vpow2.f32 %v9304_v63  ;;  %10899 = vmatmul.mubr.bf16.gmra.mrb[76].mxu1 %v6981_v36  ;;  %v6264_v41 = vadd.f32 %v14624_v17, %v14724_v30 }
 0x5d3   : > { %v12344_v48 = vpop.eup %12343  ;;  %v6982_v18 = vpack.c.bf16 %v6702_v11, %v6701_v19  ;;  %v6705_v57 = vmul.f32 %v12342_v14, %v6232_v43  ;;  %v6267_v9 = vadd.f32 %v14624_v17, %v14733_v0  ;;  %v11606_v43 = vld [vmem:[%s15395_s12 + $0x8] sm:$0xff]  }
 0x5d4   : > { %v12346_v59 = vpop.eup %12345  ;;  %v6708_v62 = vmul.f32 %v12344_v48, %v6243_v5  ;;  %10920 = vmatprep.subr.bf16.mxu0 %v11606_v43 }
 0x5d5   : > { %v12348_v21 = vpop.eup %12347  ;;  %v6615_v61 = vadd.f32 1.0, %v12346_v59  ;;  %10902 = vmatprep.mubr.bf16.mxu1 %v6982_v18  ;;  %10921 = vmatpush3.bf16.msra.mxu0 %v11606_v43 }
 0x5d6   : > { %v12350_v2 = vpop.eup %12349  ;;  %v6985_v24 = vpack.c.bf16 %v6708_v62, %v6707_v8  ;;  %v6706_v33 = vmul.f32 %v12348_v21, %v6235_v20 }
 0x5d7   : > { %v12352_v58 = vpop.eup %12351  ;;  %12363 = vrcp.f32 %v6615_v61  ;;  %v6613_v39 = vadd.f32 1.0, %v12350_v2 }
 0x5d8   : > { %v12354_v54 = vpop.eup %12353  ;;  %v6616_v53 = vadd.f32 1.0, %v12352_v58  ;;  %v6984_v51 = vpack.c.bf16 %v6706_v33, %v6705_v57 }
 0x5d9   : > { %v12356_v38 = vpop.eup %12355  ;;  %12365 = vrcp.f32 %v6613_v39  ;;  %v6614_v49 = vadd.f32 1.0, %v12354_v54  ;;  %v11607_v39 = vld [vmem:[%s15397_s14] sm:$0xff]  }
 0x5da   : > { %v12358_v56 = vpop.eup %12357  ;;  %12367 = vrcp.f32 %v6616_v53  ;;  %v6619_v45 = vadd.f32 1.0, %v12356_v38  ;;  %10903 = vmatmul.mubr.bf16.gmra.mrb[80].mxu1 %v6983_v4  ;;  %10954 = vmatprep.subr.bf16.mxu1 %v11607_v39 }
 0x5db   : > { %v12360_v27 = vpop.eup %12359  ;;  %12369 = vrcp.f32 %v6614_v49  ;;  %v6617_v32 = vadd.f32 1.0, %v12358_v56  ;;  %10906 = vmatprep.mubr.bf16.mxu1 %v6984_v51  ;;  %10955 = vmatpush3.bf16.msra.mxu1 %v11607_v39 }
 0x5dc   : > { %v12362_v22 = vpop.eup %12361  ;;  %12371 = vrcp.f32 %v6619_v45  ;;  %v6620_v1 = vadd.f32 1.0, %v12360_v27 }
 0x5dd   : > { %12373 = vrcp.f32 %v6617_v32  ;;  %v6618_v47 = vadd.f32 1.0, %v12362_v22 }
 0x5de   : > { %12375 = vrcp.f32 %v6620_v1 }
 0x5df   : > { %12377 = vrcp.f32 %v6618_v47 }
 0x5e1   : > { %v12364_v31 = vpop.eup %12363 }
 0x5e2   : > { %v6711_v26 = vmul.f32 %v12364_v31, %v6256_v16  ;;  %10907 = vmatmul.mubr.bf16.gmra.mrb[84].mxu1 %v6985_v24 }
 0x5e3   : > { %v12366_v25 = vpop.eup %12365 }
 0x5e4   : > { %v12368_v37 = vpop.eup %12367  ;;  %v6709_v6 = vmul.f32 %v12366_v25, %v6248_v60 }
 0x5e5   : > { %v12370_v40 = vpop.eup %12369  ;;  %v6712_v52 = vmul.f32 %v12368_v37, %v6259_v44 }
 0x5e6   : > { %v12372_v36 = vpop.eup %12371  ;;  %v6710_v15 = vmul.f32 %v12370_v40, %v6251_v50 }
 0x5e7   : > { %v12374_v63 = vpop.eup %12373  ;;  %v6987_v35 = vpack.c.bf16 %v6712_v52, %v6711_v26  ;;  %v6715_v34 = vmul.f32 %v12372_v36, %v6272_v46 }
 0x5e8   : > { %v12376_v3 = vpop.eup %12375  ;;  %v6986_v19 = vpack.c.bf16 %v6710_v15, %v6709_v6  ;;  %v6713_v12 = vmul.f32 %v12374_v63, %v6264_v41 }
 0x5e9   : > { %v12378_v28 = vpop.eup %12377  ;;  %v6716_v29 = vmul.f32 %v12376_v3, %v6275_v42 }
 0x5ea   : > { %10910 = vmatprep.mubr.bf16.mxu1 %v6986_v19  ;;  %v6714_v23 = vmul.f32 %v12378_v28, %v6267_v9 }
 0x5eb   : > { %v6989_v55 = vpack.c.bf16 %v6716_v29, %v6715_v34  ;;  %10911 = vmatmul.mubr.bf16.gmra.mrb[88].mxu1 %v6987_v35 }
 0x5ec   : > { %v6988_v30 = vpack.c.bf16 %v6714_v23, %v6713_v12 }
 0x5ee   : > { %10914 = vmatprep.mubr.bf16.mxu1 %v6988_v30 }
 0x5f3   : > { %10915 = vmatmul.mubr.bf16.gmra.mrb[92].mxu1 %v6989_v55 }
 0x5f8   : > { %v10840_v10 = vpop.f32.mrb[64].mxu0 }
 0x5f9   : > { %v6831_v11 = vpop.f32.mrb[65].mxu0 }
 0x5fa   : > { %v10841_v17 = vpop.f32.mrb[66].mxu0 }
 0x5fb   : > { %v6834_v0 = vpop.f32.mrb[67].mxu0 }
 0x60f   : > { %v10844_v14 = vpop.f32.mrb[68].mxu0 }
 0x610   : > { %v6847_v4 = vpop.f32.mrb[69].mxu0 }
 0x611   : > { %v10845_v8 = vpop.f32.mrb[70].mxu0 }
 0x612   : > { %v6850_v5 = vpop.f32.mrb[71].mxu0 }
 0x623   : > { %v10848_v48 = vpop.f32.mrb[72].mxu0 }
 0x624   : > { %v6863_v18 = vpop.f32.mrb[73].mxu0 }
 0x625   : > { %v10849_v57 = vpop.f32.mrb[74].mxu0 }
 0x626   : > { %v6866_v59 = vpop.f32.mrb[75].mxu0 }
 0x635   : > { %v14773_v62 = vpop.f32.mrb[76].mxu0 }
 0x636   : > { %v14775_v20 = vpop.f32.mrb[77].mxu0 }
 0x637   : > { %v14777_v21 = vpop.f32.mrb[78].mxu0 }
 0x638   : > { %v14779_v61 = vpop.f32.mrb[79].mxu0 }
 0x648   : > { %v14781_v2 = vpop.f32.mrb[80].mxu0 }
 0x649   : > { %v14783_v24 = vpop.f32.mrb[81].mxu0 }
 0x64a   : > { %v14785_v33 = vpop.f32.mrb[82].mxu0 }
 0x64b   : > { %v14787_v58 = vpop.f32.mrb[83].mxu0 }
 0x659   : > { %v14792_v54 = vpop.f32.mrb[84].mxu0 }
 0x65a   : > { %v14794_v53 = vpop.f32.mrb[85].mxu0 }
 0x65b   : > { %v14796_v51 = vpop.f32.mrb[86].mxu0 }
 0x65c   : > { %v14798_v38 = vpop.f32.mrb[87].mxu0 }
 0x66a   : > { %v14800_v49 = vpop.f32.mrb[88].mxu0 }
 0x66b   : > { %v14802_v56 = vpop.f32.mrb[89].mxu0 }
 0x66c   : > { %v14804_v45 = vpop.f32.mrb[90].mxu0 }
 0x66d   : > { %v14806_v27 = vpop.f32.mrb[91].mxu0 }
 0x679   : > { %v14808_v32 = vpop.f32.mrb[92].mxu0 }
 0x67a   : > { %v14810_v22 = vpop.f32.mrb[93].mxu0 }
 0x67b   : > { %v14812_v1 = vpop.f32.mrb[94].mxu0 }
 0x67c   : > { %v14814_v47 = vpop.f32.mrb[95].mxu0 }
 0x67d   : > { %v10888_v16 = vpop.f32.mrb[64].mxu1 }
 0x67e   : > { %v7201_v31 = vsub.f32 %v10840_v10, %v10888_v16  ;;  %v7072_v26 = vpop.f32.mrb[65].mxu1 }
 0x67f   : > { %v7199_v60 = vsub.f32 %v6831_v11, %v7072_v26  ;;  %v10889_v25 = vpop.f32.mrb[66].mxu1 }
 0x680   : > { %v7202_v44 = vsub.f32 %v10841_v17, %v10889_v25  ;;  %v7075_v37 = vpop.f32.mrb[67].mxu1 }
 0x681   : > { %v7200_v50 = vsub.f32 %v6834_v0, %v7075_v37 }
 0x682   : > { %v14816_v6 = vpack.c.bf16 %v7202_v44, %v7201_v31 }
 0x683   : > { %v14818_v40 = vpack.c.bf16 %v7200_v50, %v7199_v60 }
 0x685   : > { %10922 = vmatprep.mubr.msk.bf16.mxu0 %vm2680_vm3, %v14818_v40 }
 0x686   : > { %10923 = vmatmul.mubr.msk.bf16.vlgmr.msra.gmra.mrb[96].mxu0 %vm2680_vm3, %v14816_v6 }
 0x68f   : > { %v10892_v52 = vpop.f32.mrb[68].mxu1 }
 0x690   : > { %v7205_v46 = vsub.f32 %v10844_v14, %v10892_v52  ;;  %v7088_v36 = vpop.f32.mrb[69].mxu1 }
 0x691   : > { %v7203_v41 = vsub.f32 %v6847_v4, %v7088_v36  ;;  %v10893_v15 = vpop.f32.mrb[70].mxu1 }
 0x692   : > { %v7206_v63 = vsub.f32 %v10845_v8, %v10893_v15  ;;  %v7091_v35 = vpop.f32.mrb[71].mxu1 }
 0x693   : > { %v7204_v34 = vsub.f32 %v6850_v5, %v7091_v35 }
 0x694   : > { %v14824_v42 = vpack.c.bf16 %v7206_v63, %v7205_v46 }
 0x695   : > { %v14826_v3 = vpack.c.bf16 %v7204_v34, %v7203_v41 }
 0x697   : > { %v10896_v9 = vpop.f32.mrb[72].mxu1  ;;  %10926 = vmatprep.mubr.msk.bf16.mxu0 %vm2680_vm3, %v14826_v3 }
 0x698   : > { %v7209_v19 = vsub.f32 %v10848_v48, %v10896_v9  ;;  %v7104_v12 = vpop.f32.mrb[73].mxu1  ;;  %10927 = vmatmul.mubr.msk.bf16.gmra.mrb[100].mxu0 %vm2680_vm3, %v14824_v42 }
 0x699   : > { %v7207_v28 = vsub.f32 %v6863_v18, %v7104_v12  ;;  %v10897_v29 = vpop.f32.mrb[74].mxu1 }
 0x69a   : > { %v7210_v23 = vsub.f32 %v10849_v57, %v10897_v29  ;;  %v7107_v55 = vpop.f32.mrb[75].mxu1 }
 0x69b   : > { %v7208_v30 = vsub.f32 %v6866_v59, %v7107_v55  ;;  %v15459_v55 = vld [vmem:[#allocation10_spill] sm:$0xff] }
 0x69c   : > { %v14832_v43 = vpack.c.bf16 %v7210_v23, %v7209_v19 }
 0x69d   : > { %v14834_v10 = vpack.c.bf16 %v7208_v30, %v7207_v28  ;;  %v15460_v30 = vld [vmem:[#allocation12_spill] sm:$0xff] }
 0x69f   : > { %10930 = vmatprep.mubr.msk.bf16.mxu0 %vm2680_vm3, %v14834_v10 }
 0x6a0   : > { %10931 = vmatmul.mubr.msk.bf16.gmra.mrb[104].mxu0 %vm2680_vm3, %v14832_v43 }
 0x6a5   : > { %v10900_v11 = vpop.f32.mrb[76].mxu1 }
 0x6a6   : > { %v7213_v17 = vsub.f32 %v14773_v62, %v10900_v11  ;;  %v7120_v0 = vpop.f32.mrb[77].mxu1  ;;  %v15461_v11 = vld [vmem:[#allocation14_spill] sm:$0xff] }
 0x6a7   : > { %v7211_v14 = vsub.f32 %v14775_v20, %v7120_v0  ;;  %v10901_v4 = vpop.f32.mrb[78].mxu1  ;;  %v15463_v0 = vld [vmem:[#allocation18_spill] sm:$0xff] }
 0x6a8   : > { %v7214_v8 = vsub.f32 %v14777_v21, %v10901_v4  ;;  %v7123_v5 = vpop.f32.mrb[79].mxu1  ;;  %v15466_v4 = vld [vmem:[#allocation7_spill] sm:$0xff] }
 0x6a9   : > { %v7212_v48 = vsub.f32 %v14779_v61, %v7123_v5  ;;  %v15468_v5 = vld [vmem:[#allocation11_spill] sm:$0xff] }
 0x6aa   : > { %v14844_v18 = vpack.c.bf16 %v7214_v8, %v7213_v17  ;;  %v15462_v17 = vld [vmem:[#allocation16_spill] sm:$0xff]  ;;  %v15467_v8 = vld [vmem:[#allocation9_spill] sm:$0xff] }
 0x6ab   : > { %v14846_v57 = vpack.c.bf16 %v7212_v48, %v7211_v14  ;;  %v15464_v14 = vld [vmem:[#allocation5_spill] sm:$0xff] }
 0x6ac   : > { %v14941_v48 = vld [vmem:[%s15396_s13] ss:$0 sm:$0xff] }
 0x6ad   : > { %v10904_v59 = vpop.f32.mrb[80].mxu1  ;;  %10934 = vmatprep.mubr.msk.bf16.mxu0 %vm2680_vm3, %v14846_v57 }
 0x6ae   : > { %v7217_v39 = vsub.f32 %v14781_v2, %v10904_v59  ;;  %v7136_v62 = vpop.f32.mrb[81].mxu1  ;;  %10935 = vmatmul.mubr.msk.bf16.gmra.mrb[108].mxu0 %vm2680_vm3, %v14844_v18 }
 0x6af   : > { %v7215_v20 = vsub.f32 %v14783_v24, %v7136_v62  ;;  %v10905_v21 = vpop.f32.mrb[82].mxu1 }
 0x6b0   : > { %v7218_v16 = vsub.f32 %v14785_v33, %v10905_v21  ;;  %v7139_v61 = vpop.f32.mrb[83].mxu1 }
 0x6b1   : > { %v7216_v31 = vsub.f32 %v14787_v58, %v7139_v61  ;;  %v15470_v61 = vld [vmem:[#allocation15_spill] sm:$0xff] }
 0x6b2   : > { %v14856_v26 = vpack.c.bf16 %v7218_v16, %v7217_v39 }
 0x6b3   : > { %v14858_v60 = vpack.c.bf16 %v7216_v31, %v7215_v20  ;;  %v15469_v20 = vld [vmem:[#allocation13_spill] sm:$0xff] }
 0x6b5   : > { %v10908_v25 = vpop.f32.mrb[84].mxu1  ;;  %10938 = vmatprep.mubr.msk.bf16.mxu0 %vm2680_vm3, %v14858_v60 }
 0x6b6   : > { %v7221_v2 = vsub.f32 %v14792_v54, %v10908_v25  ;;  %v7152_v44 = vpop.f32.mrb[85].mxu1  ;;  %10939 = vmatmul.mubr.msk.bf16.gmra.mrb[112].mxu0 %vm2680_vm3, %v14856_v26 }
 0x6b7   : > { %v7219_v24 = vsub.f32 %v14794_v53, %v7152_v44  ;;  %v10909_v33 = vpop.f32.mrb[86].mxu1 }
 0x6b8   : > { %v7222_v37 = vsub.f32 %v14796_v51, %v10909_v33  ;;  %v7155_v58 = vpop.f32.mrb[87].mxu1 }
 0x6b9   : > { %v7220_v50 = vsub.f32 %v14798_v38, %v7155_v58  ;;  %v15471_v58 = vld [vmem:[#allocation17_spill] sm:$0xff] }
 0x6ba   : > { %v14868_v52 = vpack.c.bf16 %v7222_v37, %v7221_v2 }
 0x6bb   : > { %v14870_v46 = vpack.c.bf16 %v7220_v50, %v7219_v24 }
 0x6bd   : > { %10942 = vmatprep.mubr.msk.bf16.mxu0 %vm2680_vm3, %v14870_v46 }
 0x6be   : > { %v10912_v54 = vpop.f32.mrb[88].mxu1  ;;  %10943 = vmatmul.mubr.msk.bf16.gmra.mrb[116].mxu0 %vm2680_vm3, %v14868_v52 }
 0x6bf   : > { %v7225_v36 = vsub.f32 %v14800_v49, %v10912_v54  ;;  %v7168_v53 = vpop.f32.mrb[89].mxu1 }
 0x6c0   : > { %v7223_v41 = vsub.f32 %v14802_v56, %v7168_v53  ;;  %v10913_v51 = vpop.f32.mrb[90].mxu1 }
 0x6c1   : > { %v7226_v15 = vsub.f32 %v14804_v45, %v10913_v51  ;;  %v7171_v38 = vpop.f32.mrb[91].mxu1 }
 0x6c2   : > { %v7224_v63 = vsub.f32 %v14806_v27, %v7171_v38 }
 0x6c3   : > { %v14880_v35 = vpack.c.bf16 %v7226_v15, %v7225_v36 }
 0x6c4   : > { %v14882_v34 = vpack.c.bf16 %v7224_v63, %v7223_v41 }
 0x6c6   : > { %v10916_v9 = vpop.f32.mrb[92].mxu1  ;;  %10946 = vmatprep.mubr.msk.bf16.mxu0 %vm2680_vm3, %v14882_v34 }
 0x6c7   : > { %v7229_v19 = vsub.f32 %v14808_v32, %v10916_v9  ;;  %v7184_v49 = vpop.f32.mrb[93].mxu1  ;;  %10947 = vmatmul.mubr.msk.bf16.gmra.mrb[120].mxu0 %vm2680_vm3, %v14880_v35  ;;  %v11608_v32 = vld [vmem:[%s15397_s14 + $0x8] sm:$0xff]  }
 0x6c8   : > { %v7227_v56 = vsub.f32 %v14810_v22, %v7184_v49  ;;  %v10917_v45 = vpop.f32.mrb[94].mxu1  ;;  %10956 = vmatprep.subr.bf16.mxu1 %v11608_v32  ;;  %v7951_v22 = vld [vmem:[%s15401_s18] sm:$0xf] }
 0x6c9   : > { %v7230_v12 = vsub.f32 %v14812_v1, %v10917_v45  ;;  %v7187_v27 = vpop.f32.mrb[95].mxu1  ;;  %10957 = vmatpush3.bf16.msra.mxu1 %v11608_v32  ;;  %v14911_v1 = vld [vmem:[%s15399_s16] sm:$0xff]   ;;  %11060 = vmatprep.subr.msk.bf16.mxu0 %vm8007_vm4, %v7951_v22 }
 0x6ca   : > { %v7228_v28 = vsub.f32 %v14814_v47, %v7187_v27  ;;  %v8009_v47 = vsel %vm8007_vm4, %v7951_v22, 0  ;;  %11024 = vmatprep.subr.bf16.mxu1 %v14911_v1 }
 0x6cb   : > { %v14892_v29 = vpack.c.bf16 %v7230_v12, %v7229_v19  ;;  %10991 = vmatpush3.bf16.msra.mxu0 %v8009_v47 }
 0x6cc   : > { %v14894_v23 = vpack.c.bf16 %v7228_v28, %v7227_v56 }
 0x6ce   : > { %10950 = vmatprep.mubr.msk.bf16.mxu0 %vm2680_vm3, %v14894_v23 }
 0x6cf   : > { %10951 = vmatmul.mubr.msk.bf16.gmra.mrb[124].mxu0 %vm2680_vm3, %v14892_v29 }
 0x6d0   : > { %10992 = vmatprep.mubr.msk.bf16.mxu0 %vm2537_vm0, %v12857_v7  ;;  %v15458_v7 = vld [vmem:[#allocation8_spill] sm:$0xff] }
 0x6d7   : > { %10993 = vmatmul.mubr.msk.bf16.vlgmr.msra.gmra.mrb[128].mxu0 %vm2537_vm0, %v12869_v13  ;;  %v15465_v13 = vld [vmem:[#allocation6_spill] sm:$0xff] }
 0x6d8   : > { %10996 = vmatprep.mubr.msk.bf16.mxu0 %vm2537_vm0, %v15458_v7 }
 0x6df   : > { %10997 = vmatmul.mubr.msk.bf16.gmra.mrb[132].mxu0 %vm2537_vm0, %v15459_v55 }
 0x6e0   : > { %11000 = vmatprep.mubr.msk.bf16.mxu0 %vm2537_vm0, %v15460_v30 }
 0x6e7   : > { %11001 = vmatmul.mubr.msk.bf16.gmra.mrb[136].mxu0 %vm2537_vm0, %v15461_v11 }
 0x6e8   : > { %11004 = vmatprep.mubr.msk.bf16.mxu0 %vm2537_vm0, %v15462_v17 }
 0x6ef   : > { %11005 = vmatmul.mubr.msk.bf16.gmra.mrb[140].mxu0 %vm2537_vm0, %v15463_v0 }
 0x6f0   : > { %11008 = vmatprep.mubr.msk.bf16.mxu0 %vm2537_vm0, %v15464_v14 }
 0x6f7   : > { %11009 = vmatmul.mubr.msk.bf16.gmra.mrb[144].mxu0 %vm2537_vm0, %v15465_v13 }
 0x6f8   : > { %11012 = vmatprep.mubr.msk.bf16.mxu0 %vm2537_vm0, %v15466_v4 }
 0x6ff   : > { %11013 = vmatmul.mubr.msk.bf16.gmra.mrb[148].mxu0 %vm2537_vm0, %v15467_v8 }
 0x700   : > { %11016 = vmatprep.mubr.msk.bf16.mxu0 %vm2537_vm0, %v15468_v5 }
 0x707   : > { %11017 = vmatmul.mubr.msk.bf16.gmra.mrb[152].mxu0 %vm2537_vm0, %v15469_v20 }
 0x708   : > { %11020 = vmatprep.mubr.msk.bf16.mxu0 %vm2537_vm0, %v15470_v61 }
 0x70f   : > { %11021 = vmatmul.mubr.msk.bf16.gmra.mrb[156].mxu0 %vm2537_vm0, %v15471_v58 }
 0x759   : > { %v10924_v59 = vpop.f32.mrb[96].mxu0 }
 0x75a   : > { %v7361_v39 = vadd.f32 %v10924_v59, %v14941_v48  ;;  %v7352_v62 = vpop.f32.mrb[97].mxu0 }
 0x75b   : > { %v7353_v21 = vadd.f32 %v14941_v48, %v7352_v62  ;;  %v10925_v16 = vpop.f32.mrb[98].mxu0 }
 0x75c   : > { %v9344_v31 = vmul.f32 -1.442695, %v7361_v39  ;;  %v7364_v25 = vadd.f32 %v10925_v16, %v14941_v48  ;;  %v7355_v2 = vpop.f32.mrb[99].mxu0 }
 0x75d   : > { %v9342_v44 = vmul.f32 -1.442695, %v7353_v21  ;;  %v7356_v24 = vadd.f32 %v14941_v48, %v7355_v2 }
 0x75e   : > { %12379 = vpow2.f32 %v9344_v31  ;;  %v9345_v33 = vmul.f32 -1.442695, %v7364_v25  ;;  %v11610_v31 = vld [vmem:[%s15399_s16 + $0x8] sm:$0xff]  }
 0x75f   : > { %12381 = vpow2.f32 %v9342_v44  ;;  %v9343_v37 = vmul.f32 -1.442695, %v7356_v24 }
 0x760   : > { %12383 = vpow2.f32 %v9345_v33 }
 0x761   : > { %12385 = vpow2.f32 %v9343_v37 }
 0x768   : > { %v12380_v50 = vpop.eup %12379 }
 0x769   : > { %v12382_v54 = vpop.eup %12381  ;;  %v7577_v36 = vadd.f32 1.0, %v12380_v50 }
 0x76a   : > { %v12384_v53 = vpop.eup %12383  ;;  %v7575_v41 = vadd.f32 1.0, %v12382_v54 }
 0x76b   : > { %v12386_v51 = vpop.eup %12385  ;;  %12387 = vrcp.f32 %v7577_v36  ;;  %v7578_v15 = vadd.f32 1.0, %v12384_v53  ;;  %v10928_v63 = vpop.f32.mrb[100].mxu0 }
 0x76c   : > { %12389 = vrcp.f32 %v7575_v41  ;;  %v7576_v38 = vadd.f32 1.0, %v12386_v51  ;;  %v7377_v9 = vadd.f32 %v10928_v63, %v14941_v48  ;;  %v7368_v19 = vpop.f32.mrb[101].mxu0 }
 0x76d   : > { %12391 = vrcp.f32 %v7578_v15  ;;  %v7369_v49 = vadd.f32 %v14941_v48, %v7368_v19  ;;  %v10929_v56 = vpop.f32.mrb[102].mxu0 }
 0x76e   : > { %12393 = vrcp.f32 %v7576_v38  ;;  %v9348_v45 = vmul.f32 -1.442695, %v7377_v9  ;;  %v7380_v12 = vadd.f32 %v10929_v56, %v14941_v48  ;;  %v7371_v27 = vpop.f32.mrb[103].mxu0 }
 0x76f   : > { %v9346_v28 = vmul.f32 -1.442695, %v7369_v49  ;;  %v7372_v32 = vadd.f32 %v14941_v48, %v7371_v27 }
 0x770   : > { %12395 = vpow2.f32 %v9348_v45  ;;  %v9349_v22 = vmul.f32 -1.442695, %v7380_v12 }
 0x771   : > { %12397 = vpow2.f32 %v9346_v28  ;;  %v9347_v47 = vmul.f32 -1.442695, %v7372_v32 }
 0x772   : > { %12399 = vpow2.f32 %v9349_v22 }
 0x773   : > { %12401 = vpow2.f32 %v9347_v47  ;;  %v10932_v7 = vpop.f32.mrb[104].mxu0 }
 0x774   : > { %v7393_v30 = vadd.f32 %v10932_v7, %v14941_v48  ;;  %v7384_v11 = vpop.f32.mrb[105].mxu0 }
 0x775   : > { %v12388_v55 = vpop.eup %12387  ;;  %v7385_v0 = vadd.f32 %v14941_v48, %v7384_v11  ;;  %v10933_v14 = vpop.f32.mrb[106].mxu0 }
 0x776   : > { %v12390_v17 = vpop.eup %12389  ;;  %v9352_v4 = vmul.f32 -1.442695, %v7393_v30  ;;  %v7396_v8 = vadd.f32 %v10933_v14, %v14941_v48  ;;  %v7387_v5 = vpop.f32.mrb[107].mxu0 }
 0x777   : > { %v12392_v13 = vpop.eup %12391  ;;  %v9350_v62 = vmul.f32 -1.442695, %v7385_v0  ;;  %v7388_v20 = vadd.f32 %v14941_v48, %v7387_v5 }
 0x778   : > { %v12394_v59 = vpop.eup %12393  ;;  %v7676_v39 = vpack.c.bf16 %v12392_v13, %v12388_v55  ;;  %12403 = vpow2.f32 %v9352_v4  ;;  %v9353_v21 = vmul.f32 -1.442695, %v7396_v8 }
 0x779   : > { %v7675_v16 = vpack.c.bf16 %v12394_v59, %v12390_v17  ;;  %12405 = vpow2.f32 %v9350_v62  ;;  %v9351_v61 = vmul.f32 -1.442695, %v7388_v20 }
 0x77a   : > { %v12396_v25 = vpop.eup %12395  ;;  %12407 = vpow2.f32 %v9353_v21 }
 0x77b   : > { %10958 = vmatprep.mubr.msk.bf16.mxu1 %vm2680_vm3, %v7675_v16  ;;  %v12398_v2 = vpop.eup %12397  ;;  %v7581_v44 = vadd.f32 1.0, %v12396_v25  ;;  %12409 = vpow2.f32 %v9351_v61 }
 0x77c   : > { %10959 = vmatmul.mubr.msk.bf16.vlgmr.msra.gmra.mrb[96].mxu1 %vm2680_vm3, %v7676_v39  ;;  %v12400_v24 = vpop.eup %12399  ;;  %v7579_v33 = vadd.f32 1.0, %v12398_v2 }
 0x77d   : > { %11025 = vmatpush3.bf16.msra.mxu1 %v14911_v1  ;;  %v12402_v37 = vpop.eup %12401  ;;  %12411 = vrcp.f32 %v7581_v44  ;;  %v7582_v58 = vadd.f32 1.0, %v12400_v24 }
 0x77e   : > { %11026 = vmatprep.subr.bf16.mxu1 %v11610_v31  ;;  %12413 = vrcp.f32 %v7579_v33  ;;  %v7580_v54 = vadd.f32 1.0, %v12402_v37 }
 0x77f   : > { %12415 = vrcp.f32 %v7582_v58 }
 0x780   : > { %12417 = vrcp.f32 %v7580_v54 }
 0x781   : > { %v10936_v50 = vpop.f32.mrb[108].mxu0  ;;  %11027 = vmatpush3.bf16.msra.mxu1 %v11610_v31 }
 0x782   : > { %v7409_v36 = vadd.f32 %v10936_v50, %v14941_v48  ;;  %v7400_v53 = vpop.f32.mrb[109].mxu0  ;;  %v12404_v19 = vpop.eup %12403 }
 0x783   : > { %v7401_v41 = vadd.f32 %v14941_v48, %v7400_v53  ;;  %v10937_v51 = vpop.f32.mrb[110].mxu0  ;;  %v12406_v56 = vpop.eup %12405  ;;  %v7585_v45 = vadd.f32 1.0, %v12404_v19 }
 0x784   : > { %v9356_v15 = vmul.f32 -1.442695, %v7409_v36  ;;  %v7412_v38 = vadd.f32 %v10937_v51, %v14941_v48  ;;  %v7403_v63 = vpop.f32.mrb[111].mxu0  ;;  %v12408_v12 = vpop.eup %12407  ;;  %v7583_v27 = vadd.f32 1.0, %v12406_v56 }
 0x785   : > { %v9354_v1 = vmul.f32 -1.442695, %v7401_v41  ;;  %v7404_v9 = vadd.f32 %v14941_v48, %v7403_v63  ;;  %v12410_v28 = vpop.eup %12409  ;;  %v7586_v32 = vadd.f32 1.0, %v12408_v12 }
 0x786   : > { %12419 = vpow2.f32 %v9356_v15  ;;  %v9357_v49 = vmul.f32 -1.442695, %v7412_v38  ;;  %v7584_v7 = vadd.f32 1.0, %v12410_v28 }
 0x787   : > { %12421 = vpow2.f32 %v9354_v1  ;;  %v9355_v22 = vmul.f32 -1.442695, %v7404_v9  ;;  %v12412_v11 = vpop.eup %12411 }
 0x788   : > { %12423 = vpow2.f32 %v9357_v49  ;;  %v12414_v14 = vpop.eup %12413 }
 0x789   : > { %12425 = vrcp.f32 %v7585_v45  ;;  %v10940_v47 = vpop.f32.mrb[112].mxu0  ;;  %v12416_v5 = vpop.eup %12415 }
 0x78a   : > { %12427 = vrcp.f32 %v7583_v27  ;;  %v7425_v55 = vadd.f32 %v10940_v47, %v14941_v48  ;;  %v7416_v30 = vpop.f32.mrb[113].mxu0  ;;  %v12418_v62 = vpop.eup %12417  ;;  %v7678_v20 = vpack.c.bf16 %v12416_v5, %v12412_v11 }
 0x78b   : > { %12429 = vrcp.f32 %v7586_v32  ;;  %v7417_v17 = vadd.f32 %v14941_v48, %v7416_v30  ;;  %v10941_v0 = vpop.f32.mrb[114].mxu0  ;;  %v7677_v61 = vpack.c.bf16 %v12418_v62, %v12414_v14 }
 0x78c   : > { %12431 = vrcp.f32 %v7584_v7  ;;  %v9360_v13 = vmul.f32 -1.442695, %v7425_v55  ;;  %v7428_v4 = vadd.f32 %v10941_v0, %v14941_v48  ;;  %v7419_v8 = vpop.f32.mrb[115].mxu0 }
 0x78d   : > { %12433 = vpow2.f32 %v9355_v22  ;;  %v9358_v59 = vmul.f32 -1.442695, %v7417_v17  ;;  %v7420_v39 = vadd.f32 %v14941_v48, %v7419_v8  ;;  %10962 = vmatprep.mubr.msk.bf16.mxu1 %vm2680_vm3, %v7677_v61 }
 0x78e   : > { %12435 = vpow2.f32 %v9360_v13  ;;  %v9361_v21 = vmul.f32 -1.442695, %v7428_v4  ;;  %10963 = vmatmul.mubr.msk.bf16.gmra.mrb[100].mxu1 %vm2680_vm3, %v7678_v20 }
 0x78f   : > { %12437 = vpow2.f32 %v9358_v59  ;;  %v9359_v16 = vmul.f32 -1.442695, %v7420_v39 }
 0x790   : > { %v12420_v31 = vpop.eup %12419  ;;  %12439 = vpow2.f32 %v9361_v21 }
 0x791   : > { %v12422_v25 = vpop.eup %12421  ;;  %v7589_v2 = vadd.f32 1.0, %v12420_v31  ;;  %12441 = vpow2.f32 %v9359_v16  ;;  %v10944_v44 = vpop.f32.mrb[116].mxu0 }
 0x792   : > { %v12424_v24 = vpop.eup %12423  ;;  %v7587_v33 = vadd.f32 1.0, %v12422_v25  ;;  %v7441_v37 = vadd.f32 %v10944_v44, %v14941_v48  ;;  %v7432_v58 = vpop.f32.mrb[117].mxu0 }
 0x793   : > { %v12426_v50 = vpop.eup %12425  ;;  %12443 = vrcp.f32 %v7589_v2  ;;  %v7590_v54 = vadd.f32 1.0, %v12424_v24  ;;  %v7433_v36 = vadd.f32 %v14941_v48, %v7432_v58  ;;  %v10945_v53 = vpop.f32.mrb[118].mxu0 }
 0x794   : > { %v12428_v41 = vpop.eup %12427  ;;  %12445 = vrcp.f32 %v7587_v33  ;;  %v9364_v51 = vmul.f32 -1.442695, %v7441_v37  ;;  %v7444_v15 = vadd.f32 %v10945_v53, %v14941_v48  ;;  %v7435_v38 = vpop.f32.mrb[119].mxu0 }
 0x795   : > { %v12430_v63 = vpop.eup %12429  ;;  %12447 = vrcp.f32 %v7590_v54  ;;  %v9362_v1 = vmul.f32 -1.442695, %v7433_v36  ;;  %v7436_v9 = vadd.f32 %v14941_v48, %v7435_v38 }
 0x796   : > { %v12432_v19 = vpop.eup %12431  ;;  %v7680_v49 = vpack.c.bf16 %v12430_v63, %v12426_v50  ;;  %12449 = vpow2.f32 %v9364_v51  ;;  %v9365_v56 = vmul.f32 -1.442695, %v7444_v15 }
 0x797   : > { %v12434_v45 = vpop.eup %12433  ;;  %12451 = vpow2.f32 %v9362_v1  ;;  %v9363_v12 = vmul.f32 -1.442695, %v7436_v9  ;;  %v7679_v27 = vpack.c.bf16 %v12432_v19, %v12428_v41 }
 0x798   : > { %v12436_v28 = vpop.eup %12435  ;;  %v7588_v32 = vadd.f32 1.0, %v12434_v45  ;;  %12453 = vpow2.f32 %v9365_v56 }
 0x799   : > { %v12438_v22 = vpop.eup %12437  ;;  %v7593_v47 = vadd.f32 1.0, %v12436_v28  ;;  %12455 = vpow2.f32 %v9363_v12  ;;  %10966 = vmatprep.mubr.msk.bf16.mxu1 %vm2680_vm3, %v7679_v27 }
 0x79a   : > { %v12440_v7 = vpop.eup %12439  ;;  %12457 = vrcp.f32 %v7588_v32  ;;  %v7591_v55 = vadd.f32 1.0, %v12438_v22  ;;  %v10948_v30 = vpop.f32.mrb[120].mxu0  ;;  %10967 = vmatmul.mubr.msk.bf16.gmra.mrb[104].mxu1 %vm2680_vm3, %v7680_v49 }
 0x79b   : > { %v12442_v11 = vpop.eup %12441  ;;  %12459 = vrcp.f32 %v7593_v47  ;;  %v7594_v17 = vadd.f32 1.0, %v12440_v7  ;;  %v7457_v0 = vadd.f32 %v10948_v30, %v14941_v48  ;;  %v7448_v14 = vpop.f32.mrb[121].mxu0 }
 0x79c   : > { %12461 = vrcp.f32 %v7591_v55  ;;  %v7592_v13 = vadd.f32 1.0, %v12442_v11  ;;  %v7449_v4 = vadd.f32 %v14941_v48, %v7448_v14  ;;  %v10949_v8 = vpop.f32.mrb[122].mxu0 }
 0x79d   : > { %v12444_v5 = vpop.eup %12443  ;;  %12463 = vrcp.f32 %v7594_v17  ;;  %v9368_v59 = vmul.f32 -1.442695, %v7457_v0  ;;  %v7460_v39 = vadd.f32 %v10949_v8, %v14941_v48  ;;  %v7451_v62 = vpop.f32.mrb[123].mxu0 }
 0x79e   : > { %v12446_v20 = vpop.eup %12445  ;;  %12465 = vrcp.f32 %v7592_v13  ;;  %v9366_v21 = vmul.f32 -1.442695, %v7449_v4  ;;  %v7452_v16 = vadd.f32 %v14941_v48, %v7451_v62 }
 0x79f   : > { %v12448_v61 = vpop.eup %12447  ;;  %12467 = vpow2.f32 %v9368_v59  ;;  %v9369_v31 = vmul.f32 -1.442695, %v7460_v39 }
 0x7a0   : > { %v12450_v25 = vpop.eup %12449  ;;  %v7682_v2 = vpack.c.bf16 %v12448_v61, %v12444_v5  ;;  %12469 = vpow2.f32 %v9366_v21  ;;  %v9367_v44 = vmul.f32 -1.442695, %v7452_v16 }
 0x7a1   : > { %v12452_v24 = vpop.eup %12451  ;;  %v7597_v33 = vadd.f32 1.0, %v12450_v25  ;;  %12471 = vpow2.f32 %v9369_v31 }
 0x7a2   : > { %v12454_v37 = vpop.eup %12453  ;;  %v7595_v58 = vadd.f32 1.0, %v12452_v24  ;;  %12473 = vpow2.f32 %v9367_v44  ;;  %v10952_v50 = vpop.f32.mrb[124].mxu0 }
 0x7a3   : > { %v12456_v54 = vpop.eup %12455  ;;  %12475 = vrcp.f32 %v7597_v33  ;;  %v7598_v36 = vadd.f32 1.0, %v12454_v37  ;;  %v7473_v53 = vadd.f32 %v10952_v50, %v14941_v48  ;;  %v7464_v41 = vpop.f32.mrb[125].mxu0 }
 0x7a4   : > { %v12458_v51 = vpop.eup %12457  ;;  %12477 = vrcp.f32 %v7595_v58  ;;  %v7596_v15 = vadd.f32 1.0, %v12456_v54  ;;  %v7465_v38 = vadd.f32 %v14941_v48, %v7464_v41  ;;  %v10953_v63 = vpop.f32.mrb[126].mxu0 }
 0x7a5   : > { %v12460_v1 = vpop.eup %12459  ;;  %12479 = vrcp.f32 %v7598_v36  ;;  %v9372_v9 = vmul.f32 -1.442695, %v7473_v53  ;;  %v7476_v19 = vadd.f32 %v10953_v63, %v14941_v48  ;;  %v7681_v49 = vpack.c.bf16 %v12458_v51, %v12446_v20  ;;  %v7467_v56 = vpop.f32.mrb[127].mxu0 }
 0x7a6   : > { %v12462_v45 = vpop.eup %12461  ;;  %12481 = vrcp.f32 %v7596_v15  ;;  %v9370_v12 = vmul.f32 -1.442695, %v7465_v38  ;;  %v7468_v27 = vadd.f32 %v14941_v48, %v7467_v56 }
 0x7a7   : > { %v12464_v28 = vpop.eup %12463  ;;  %12483 = vpow2.f32 %v9372_v9  ;;  %v9373_v32 = vmul.f32 -1.442695, %v7476_v19  ;;  %10970 = vmatprep.mubr.msk.bf16.mxu1 %vm2680_vm3, %v7681_v49 }
 0x7a8   : > { %v12466_v22 = vpop.eup %12465  ;;  %v7684_v47 = vpack.c.bf16 %v12464_v28, %v12460_v1  ;;  %12485 = vpow2.f32 %v9370_v12  ;;  %v9371_v7 = vmul.f32 -1.442695, %v7468_v27  ;;  %10971 = vmatmul.mubr.msk.bf16.gmra.mrb[108].mxu1 %vm2680_vm3, %v7682_v2  ;;  %v15084_v28 = vld [vmem:[%s15398_s15] ss:$0 sm:$0xff] }
 0x7a9   : > { %v12468_v55 = vpop.eup %12467  ;;  %12487 = vpow2.f32 %v9373_v32  ;;  %v7683_v30 = vpack.c.bf16 %v12466_v22, %v12462_v45 }
 0x7aa   : > { %v12470_v11 = vpop.eup %12469  ;;  %v7601_v17 = vadd.f32 1.0, %v12468_v55  ;;  %12489 = vpow2.f32 %v9371_v7 }
 0x7ab   : > { %v12472_v0 = vpop.eup %12471  ;;  %v7599_v14 = vadd.f32 1.0, %v12470_v11  ;;  %10974 = vmatprep.mubr.msk.bf16.mxu1 %vm2680_vm3, %v7683_v30 }
 0x7ac   : > { %v12474_v48 = vpop.eup %12473  ;;  %12491 = vrcp.f32 %v7601_v17  ;;  %v7602_v13 = vadd.f32 1.0, %v12472_v0 }
 0x7ad   : > { %v12476_v4 = vpop.eup %12475  ;;  %12493 = vrcp.f32 %v7599_v14  ;;  %v7600_v8 = vadd.f32 1.0, %v12474_v48 }
 0x7ae   : > { %v12478_v5 = vpop.eup %12477  ;;  %12495 = vrcp.f32 %v7602_v13 }
 0x7af   : > { %v12480_v59 = vpop.eup %12479  ;;  %12497 = vrcp.f32 %v7600_v8 }
 0x7b0   : > { %v12482_v39 = vpop.eup %12481  ;;  %v7686_v62 = vpack.c.bf16 %v12480_v59, %v12476_v4  ;;  %10975 = vmatmul.mubr.msk.bf16.gmra.mrb[112].mxu1 %vm2680_vm3, %v7684_v47 }
 0x7b1   : > { %v12484_v20 = vpop.eup %12483  ;;  %v7685_v21 = vpack.c.bf16 %v12482_v39, %v12478_v5 }
 0x7b2   : > { %v12486_v16 = vpop.eup %12485  ;;  %v7605_v61 = vadd.f32 1.0, %v12484_v20 }
 0x7b3   : > { %v12488_v31 = vpop.eup %12487  ;;  %v7603_v25 = vadd.f32 1.0, %v12486_v16  ;;  %10978 = vmatprep.mubr.msk.bf16.mxu1 %vm2680_vm3, %v7685_v21 }
 0x7b4   : > { %v12490_v2 = vpop.eup %12489  ;;  %12499 = vrcp.f32 %v7605_v61  ;;  %v7606_v44 = vadd.f32 1.0, %v12488_v31 }
 0x7b5   : > { %12501 = vrcp.f32 %v7603_v25  ;;  %v7604_v24 = vadd.f32 1.0, %v12490_v2 }
 0x7b6   : > { %v12492_v33 = vpop.eup %12491  ;;  %12503 = vrcp.f32 %v7606_v44 }
 0x7b7   : > { %v12494_v37 = vpop.eup %12493  ;;  %12505 = vrcp.f32 %v7604_v24 }
 0x7b8   : > { %v12496_v58 = vpop.eup %12495  ;;  %10979 = vmatmul.mubr.msk.bf16.gmra.mrb[116].mxu1 %vm2680_vm3, %v7686_v62 }
 0x7b9   : > { %v12498_v50 = vpop.eup %12497  ;;  %v7688_v54 = vpack.c.bf16 %v12496_v58, %v12492_v33 }
 0x7ba   : > { %v7687_v36 = vpack.c.bf16 %v12498_v50, %v12494_v37 }
 0x7bc   : > { %10982 = vmatprep.mubr.msk.bf16.mxu1 %vm2680_vm3, %v7687_v36 }
 0x7be   : > { %v12500_v53 = vpop.eup %12499 }
 0x7bf   : > { %v12502_v41 = vpop.eup %12501 }
 0x7c0   : > { %v12504_v51 = vpop.eup %12503  ;;  %10983 = vmatmul.mubr.msk.bf16.gmra.mrb[120].mxu1 %vm2680_vm3, %v7688_v54 }
 0x7c1   : > { %v12506_v15 = vpop.eup %12505  ;;  %v7690_v38 = vpack.c.bf16 %v12504_v51, %v12500_v53 }
 0x7c2   : > { %v7689_v63 = vpack.c.bf16 %v12506_v15, %v12502_v41 }
 0x7c4   : > { %10986 = vmatprep.mubr.msk.bf16.mxu1 %vm2680_vm3, %v7689_v63 }
 0x7c8   : > { %10987 = vmatmul.mubr.msk.bf16.gmra.mrb[124].mxu1 %vm2680_vm3, %v7690_v38 }
 0x7c9   : > { %11028 = vmatprep.mubr.msk.bf16.mxu1 %vm2680_vm3, %v14818_v40 }
 0x7d0   : > { %11029 = vmatmul.mubr.msk.bf16.vlgmr.msra.gmra.mrb[128].mxu1 %vm2680_vm3, %v14816_v6  ;;  %v15033_v6 = vpop.f32.mrb[128].mxu0 }
 0x7d1   : > { %11032 = vmatprep.mubr.msk.bf16.mxu1 %vm2680_vm3, %v14826_v3  ;;  %v15035_v40 = vpop.f32.mrb[129].mxu0 }
 0x7d8   : > { %11033 = vmatmul.mubr.msk.bf16.gmra.mrb[132].mxu1 %vm2680_vm3, %v14824_v42  ;;  %v15037_v42 = vpop.f32.mrb[130].mxu0 }
 0x7d9   : > { %11036 = vmatprep.mubr.msk.bf16.mxu1 %vm2680_vm3, %v14834_v10  ;;  %v15039_v3 = vpop.f32.mrb[131].mxu0 }
 0x7e0   : > { %11037 = vmatmul.mubr.msk.bf16.gmra.mrb[136].mxu1 %vm2680_vm3, %v14832_v43  ;;  %v15041_v43 = vpop.f32.mrb[132].mxu0 }
 0x7e1   : > { %11040 = vmatprep.mubr.msk.bf16.mxu1 %vm2680_vm3, %v14846_v57  ;;  %v15043_v10 = vpop.f32.mrb[133].mxu0 }
 0x7e8   : > { %11041 = vmatmul.mubr.msk.bf16.gmra.mrb[140].mxu1 %vm2680_vm3, %v14844_v18  ;;  %v15045_v18 = vpop.f32.mrb[134].mxu0 }
 0x7e9   : > { %11044 = vmatprep.mubr.msk.bf16.mxu1 %vm2680_vm3, %v14858_v60  ;;  %v15047_v57 = vpop.f32.mrb[135].mxu0 }
 0x7f0   : > { %11045 = vmatmul.mubr.msk.bf16.gmra.mrb[144].mxu1 %vm2680_vm3, %v14856_v26  ;;  %v15049_v26 = vpop.f32.mrb[136].mxu0 }
 0x7f1   : > { %11048 = vmatprep.mubr.msk.bf16.mxu1 %vm2680_vm3, %v14870_v46  ;;  %v15051_v60 = vpop.f32.mrb[137].mxu0 }
 0x7f8   : > { %11049 = vmatmul.mubr.msk.bf16.gmra.mrb[148].mxu1 %vm2680_vm3, %v14868_v52  ;;  %v15053_v52 = vpop.f32.mrb[138].mxu0 }
 0x7f9   : > { %11052 = vmatprep.mubr.msk.bf16.mxu1 %vm2680_vm3, %v14882_v34  ;;  %v15055_v46 = vpop.f32.mrb[139].mxu0 }
 0x800   : > { %11053 = vmatmul.mubr.msk.bf16.gmra.mrb[152].mxu1 %vm2680_vm3, %v14880_v35  ;;  %v15057_v35 = vpop.f32.mrb[140].mxu0 }
 0x801   : > { %11056 = vmatprep.mubr.msk.bf16.mxu1 %vm2680_vm3, %v14894_v23  ;;  %v15059_v34 = vpop.f32.mrb[141].mxu0 }
 0x808   : > { %11057 = vmatmul.mubr.msk.bf16.gmra.mrb[156].mxu1 %vm2680_vm3, %v14892_v29  ;;  %v15061_v29 = vpop.f32.mrb[142].mxu0 }
 0x809   : > { %v15063_v23 = vpop.f32.mrb[143].mxu0 }
 0x80a   : > { %v15065_v1 = vpop.f32.mrb[144].mxu0 }
 0x80b   : > { %v15067_v9 = vpop.f32.mrb[145].mxu0 }
 0x80c   : > { %v15069_v19 = vpop.f32.mrb[146].mxu0 }
 0x80d   : > { %v15071_v49 = vpop.f32.mrb[147].mxu0 }
 0x80e   : > { %v15073_v56 = vpop.f32.mrb[148].mxu0 }
 0x80f   : > { %v15075_v45 = vpop.f32.mrb[149].mxu0 }
 0x810   : > { %v15077_v12 = vpop.f32.mrb[150].mxu0 }
 0x811   : > { %v15079_v27 = vpop.f32.mrb[151].mxu0 }
 0x812   : > { %v15092_v22 = vpop.f32.mrb[152].mxu0 }
 0x813   : > { %v15095_v55 = vpop.f32.mrb[153].mxu0 }
 0x814   : > { %v15098_v17 = vpop.f32.mrb[154].mxu0 }
 0x815   : > { %v15106_v13 = vpop.f32.mrb[155].mxu0 }
 0x816   : > { %v15112_v4 = vpop.f32.mrb[156].mxu0 }
 0x817   : > { %v15114_v8 = vpop.f32.mrb[157].mxu0 }
 0x818   : > { %v15116_v5 = vpop.f32.mrb[158].mxu0 }
 0x819   : > { %v15118_v59 = vpop.f32.mrb[159].mxu0 }
 0x84f   : > { %v10960_v32 = vpop.f32.mrb[96].mxu1 }
 0x850   : > { %v7801_v47 = vadd.f32 %v10960_v32, %v15084_v28  ;;  %v7792_v7 = vpop.f32.mrb[97].mxu1 }
 0x851   : > { %v7793_v30 = vadd.f32 %v15084_v28, %v7792_v7  ;;  %v10961_v11 = vpop.f32.mrb[98].mxu1 }
 0x852   : > { %7921 = vst.msk [vmem:[%s15090_s29 + $0x10] sm:$0xff] %vm2537_vm0, %v7801_v47  ;;  %v7804_v0 = vadd.f32 %v10961_v11, %v15084_v28  ;;  %v7795_v14 = vpop.f32.mrb[99].mxu1 }
 0x853   : > { %7919 = vst.msk [vmem:[%s15090_s29] sm:$0xff] %vm2537_vm0, %v7793_v30  ;;  %v7796_v48 = vadd.f32 %v15084_v28, %v7795_v14 }
 0x854   : > { %7922 = vst.msk [vmem:[%s15090_s29 + $0x18] sm:$0xff] %vm2537_vm0, %v7804_v0 }
 0x855   : > { %7920 = vst.msk [vmem:[%s15090_s29 + $0x8] sm:$0xff] %vm2537_vm0, %v7796_v48 }
 0x861   : > { %v10964_v39 = vpop.f32.mrb[100].mxu1 }
 0x862   : > { %v7817_v62 = vadd.f32 %v10964_v39, %v15084_v28  ;;  %v7808_v20 = vpop.f32.mrb[101].mxu1 }
 0x863   : > { %v7809_v21 = vadd.f32 %v15084_v28, %v7808_v20  ;;  %v10965_v16 = vpop.f32.mrb[102].mxu1 }
 0x864   : > { %7925 = vst.msk [vmem:[%s15090_s29 + $0x30] sm:$0xff] %vm2537_vm0, %v7817_v62  ;;  %v7820_v61 = vadd.f32 %v10965_v16, %v15084_v28  ;;  %v7811_v31 = vpop.f32.mrb[103].mxu1 }
 0x865   : > { %7923 = vst.msk [vmem:[%s15090_s29 + $0x20] sm:$0xff] %vm2537_vm0, %v7809_v21  ;;  %v7812_v25 = vadd.f32 %v15084_v28, %v7811_v31 }
 0x866   : > { %7926 = vst.msk [vmem:[%s15090_s29 + $0x38] sm:$0xff] %vm2537_vm0, %v7820_v61 }
 0x867   : > { %7924 = vst.msk [vmem:[%s15090_s29 + $0x28] sm:$0xff] %vm2537_vm0, %v7812_v25 }
 0x86d   : > { %v10968_v2 = vpop.f32.mrb[104].mxu1 }
 0x86e   : > { %v7833_v44 = vadd.f32 %v10968_v2, %v15084_v28  ;;  %v7824_v24 = vpop.f32.mrb[105].mxu1 }
 0x86f   : > { %v7825_v33 = vadd.f32 %v15084_v28, %v7824_v24  ;;  %v10969_v37 = vpop.f32.mrb[106].mxu1 }
 0x870   : > { %7929 = vst.msk [vmem:[%s15090_s29 + $0x50] sm:$0xff] %vm2537_vm0, %v7833_v44  ;;  %v7836_v58 = vadd.f32 %v10969_v37, %v15084_v28  ;;  %v7827_v50 = vpop.f32.mrb[107].mxu1 }
 0x871   : > { %7927 = vst.msk [vmem:[%s15090_s29 + $0x40] sm:$0xff] %vm2537_vm0, %v7825_v33  ;;  %v7828_v54 = vadd.f32 %v15084_v28, %v7827_v50 }
 0x872   : > { %7930 = vst.msk [vmem:[%s15090_s29 + $0x58] sm:$0xff] %vm2537_vm0, %v7836_v58 }
 0x873   : > { %7928 = vst.msk [vmem:[%s15090_s29 + $0x48] sm:$0xff] %vm2537_vm0, %v7828_v54 }
 0x87b   : > { %v10972_v36 = vpop.f32.mrb[108].mxu1 }
 0x87c   : > { %v7849_v53 = vadd.f32 %v10972_v36, %v15084_v28  ;;  %v7840_v41 = vpop.f32.mrb[109].mxu1 }
 0x87d   : > { %v7841_v51 = vadd.f32 %v15084_v28, %v7840_v41  ;;  %v10973_v15 = vpop.f32.mrb[110].mxu1 }
 0x87e   : > { %7933 = vst.msk [vmem:[%s15090_s29 + $0x70] sm:$0xff] %vm2537_vm0, %v7849_v53  ;;  %v7852_v38 = vadd.f32 %v10973_v15, %v15084_v28  ;;  %v7843_v63 = vpop.f32.mrb[111].mxu1 }
 0x87f   : > { %7931 = vst.msk [vmem:[%s15090_s29 + $0x60] sm:$0xff] %vm2537_vm0, %v7841_v51  ;;  %v7844_v32 = vadd.f32 %v15084_v28, %v7843_v63 }
 0x880   : > { %7934 = vst.msk [vmem:[%s15090_s29 + $0x78] sm:$0xff] %vm2537_vm0, %v7852_v38 }
 0x881   : > { %7932 = vst.msk [vmem:[%s15090_s29 + $0x68] sm:$0xff] %vm2537_vm0, %v7844_v32 }
 0x883   : > { %v10976_v47 = vpop.f32.mrb[112].mxu1 }
 0x884   : > { %v7865_v7 = vadd.f32 %v10976_v47, %v15084_v28  ;;  %v7856_v30 = vpop.f32.mrb[113].mxu1 }
 0x885   : > { %v7857_v11 = vadd.f32 %v15084_v28, %v7856_v30  ;;  %v10977_v0 = vpop.f32.mrb[114].mxu1  ;;  %v15212_v30 = vld [vmem:[%s15400_s17] ss:$0 sm:$0xff] }
 0x886   : > { %7937 = vst.msk [vmem:[%s15090_s29 + $0x90] sm:$0xff] %vm2537_vm0, %v7865_v7  ;;  %v7868_v14 = vadd.f32 %v10977_v0, %v15084_v28  ;;  %v7859_v48 = vpop.f32.mrb[115].mxu1  ;;  %v15203_v7 = vld [vmem:[%s15402_s19] ss:$0 sm:$0xff] }
 0x887   : > { %7935 = vst.msk [vmem:[%s15090_s29 + $0x80] sm:$0xff] %vm2537_vm0, %v7857_v11  ;;  %v7860_v39 = vadd.f32 %v15084_v28, %v7859_v48  ;;  %v8054_v11 = vadd.f32 %v15033_v6, %v15203_v7  ;;  %v8049_v6 = vadd.f32 %v15203_v7, %v15039_v3 }
 0x888   : > { %7938 = vst.msk [vmem:[%s15090_s29 + $0x98] sm:$0xff] %vm2537_vm0, %v7868_v14 }
 0x889   : > { %7936 = vst.msk [vmem:[%s15090_s29 + $0x88] sm:$0xff] %vm2537_vm0, %v7860_v39 }
 0x88b   : > { %v10980_v62 = vpop.f32.mrb[116].mxu1 }
 0x88c   : > { %v7881_v20 = vadd.f32 %v10980_v62, %v15084_v28  ;;  %v7872_v21 = vpop.f32.mrb[117].mxu1 }
 0x88d   : > { %v7873_v16 = vadd.f32 %v15084_v28, %v7872_v21  ;;  %v10981_v61 = vpop.f32.mrb[118].mxu1 }
 0x88e   : > { %7941 = vst.msk [vmem:[%s15090_s29 + $0xb0] sm:$0xff] %vm2537_vm0, %v7881_v20  ;;  %v7884_v31 = vadd.f32 %v10981_v61, %v15084_v28  ;;  %v7875_v25 = vpop.f32.mrb[119].mxu1  ;;  %v8057_v20 = vadd.f32 %v15037_v42, %v15203_v7 }
 0x88f   : > { %7939 = vst.msk [vmem:[%s15090_s29 + $0xa0] sm:$0xff] %vm2537_vm0, %v7873_v16  ;;  %v7876_v2 = vadd.f32 %v15084_v28, %v7875_v25 }
 0x890   : > { %7942 = vst.msk [vmem:[%s15090_s29 + $0xb8] sm:$0xff] %vm2537_vm0, %v7884_v31 }
 0x891   : > { %7940 = vst.msk [vmem:[%s15090_s29 + $0xa8] sm:$0xff] %vm2537_vm0, %v7876_v2 }
 0x893   : > { %v10984_v44 = vpop.f32.mrb[120].mxu1 }
 0x894   : > { %v7897_v24 = vadd.f32 %v10984_v44, %v15084_v28  ;;  %v7888_v33 = vpop.f32.mrb[121].mxu1 }
 0x895   : > { %v7889_v37 = vadd.f32 %v15084_v28, %v7888_v33  ;;  %v10985_v58 = vpop.f32.mrb[122].mxu1 }
 0x896   : > { %7945 = vst.msk [vmem:[%s15090_s29 + $0xd0] sm:$0xff] %vm2537_vm0, %v7897_v24  ;;  %v7900_v50 = vadd.f32 %v10985_v58, %v15084_v28  ;;  %v7891_v54 = vpop.f32.mrb[123].mxu1  ;;  %v8062_v58 = vadd.f32 %v15203_v7, %v15043_v10 }
 0x897   : > { %7943 = vst.msk [vmem:[%s15090_s29 + $0xc0] sm:$0xff] %vm2537_vm0, %v7889_v37  ;;  %v7892_v36 = vadd.f32 %v15084_v28, %v7891_v54  ;;  %v8070_v37 = vadd.f32 %v15041_v43, %v15203_v7 }
 0x898   : > { %7946 = vst.msk [vmem:[%s15090_s29 + $0xd8] sm:$0xff] %vm2537_vm0, %v7900_v50 }
 0x899   : > { %7944 = vst.msk [vmem:[%s15090_s29 + $0xc8] sm:$0xff] %vm2537_vm0, %v7892_v36 }
 0x89b   : > { %v10988_v53 = vpop.f32.mrb[124].mxu1 }
 0x89c   : > { %v7913_v41 = vadd.f32 %v10988_v53, %v15084_v28  ;;  %v7904_v51 = vpop.f32.mrb[125].mxu1 }
 0x89d   : > { %v7905_v15 = vadd.f32 %v15084_v28, %v7904_v51  ;;  %v10989_v38 = vpop.f32.mrb[126].mxu1 }
 0x89e   : > { %7949 = vst.msk [vmem:[%s15090_s29 + $0xf0] sm:$0xff] %vm2537_vm0, %v7913_v41  ;;  %v7916_v63 = vadd.f32 %v10989_v38, %v15084_v28  ;;  %v7907_v32 = vpop.f32.mrb[127].mxu1  ;;  %v8073_v41 = vadd.f32 %v15045_v18, %v15203_v7  ;;  %v8065_v38 = vadd.f32 %v15203_v7, %v15047_v57 }
 0x89f   : > { %7947 = vst.msk [vmem:[%s15090_s29 + $0xe0] sm:$0xff] %vm2537_vm0, %v7905_v15  ;;  %v7908_v47 = vadd.f32 %v15084_v28, %v7907_v32  ;;  %v8046_v28 = vadd.f32 %v15203_v7, %v15035_v40 }
 0x8a0   : > { %7950 = vst.msk [vmem:[%s15090_s29 + $0xf8] sm:$0xff] %vm2537_vm0, %v7916_v63 }
 0x8a1   : > { %7948 = vst.msk [vmem:[%s15090_s29 + $0xe8] sm:$0xff] %vm2537_vm0, %v7908_v47 }
 0x8a3   : > { %v11030_v0 = vpop.f32.mrb[128].mxu1 }
 0x8a4   : > { %v8238_v14 = vadd.f32 %v11030_v0, %v15212_v30  ;;  %v8229_v48 = vpop.f32.mrb[129].mxu1 }
 0x8a5   : > { %v8230_v39 = vadd.f32 %v15212_v30, %v8229_v48  ;;  %v11031_v62 = vpop.f32.mrb[130].mxu1  ;;  %v8078_v48 = vadd.f32 %v15203_v7, %v15051_v60  ;;  %v8081_v60 = vadd.f32 %v15203_v7, %v15055_v46  ;;  %v8102_v46 = vadd.f32 %v15057_v35, %v15203_v7 }
 0x8a6   : > { %v8358_v21 = vsub.f32 %v8238_v14, %v8054_v11  ;;  %v8241_v16 = vadd.f32 %v11031_v62, %v15212_v30  ;;  %v8232_v61 = vpop.f32.mrb[131].mxu1  ;;  %v8086_v14 = vadd.f32 %v15049_v26, %v15203_v7  ;;  %v8097_v35 = vadd.f32 %v15203_v7, %v15063_v23 }
 0x8a7   : > { %v8356_v31 = vsub.f32 %v8230_v39, %v8046_v28  ;;  %v8233_v40 = vadd.f32 %v15212_v30, %v8232_v61  ;;  %v8089_v61 = vadd.f32 %v15053_v52, %v15203_v7 }
 0x8a8   : > { %v9431_v25 = vmul.f32 -1.442695, %v8358_v21  ;;  %v8359_v2 = vsub.f32 %v8241_v16, %v8057_v20 }
 0x8a9   : > { %v9429_v44 = vmul.f32 -1.442695, %v8356_v31  ;;  %v8357_v24 = vsub.f32 %v8233_v40, %v8049_v6 }
 0x8aa   : > { %12507 = vpow2.f32 %v9431_v25  ;;  %v9432_v33 = vmul.f32 -1.442695, %v8359_v2 }
 0x8ab   : > { %12509 = vpow2.f32 %v9429_v44  ;;  %v9430_v42 = vmul.f32 -1.442695, %v8357_v24  ;;  %v11034_v50 = vpop.f32.mrb[132].mxu1 }
 0x8ac   : > { %12511 = vpow2.f32 %v9432_v33  ;;  %v8254_v3 = vadd.f32 %v11034_v50, %v15212_v30  ;;  %v8245_v54 = vpop.f32.mrb[133].mxu1 }
 0x8ad   : > { %12513 = vpow2.f32 %v9430_v42  ;;  %v8246_v36 = vadd.f32 %v15212_v30, %v8245_v54  ;;  %v11035_v53 = vpop.f32.mrb[134].mxu1 }
 0x8ae   : > { %v8362_v51 = vsub.f32 %v8254_v3, %v8070_v37  ;;  %v8257_v43 = vadd.f32 %v11035_v53, %v15212_v30  ;;  %v8248_v15 = vpop.f32.mrb[135].mxu1 }
 0x8af   : > { %v8360_v10 = vsub.f32 %v8246_v36, %v8062_v58  ;;  %v8249_v63 = vadd.f32 %v15212_v30, %v8248_v15  ;;  %v8105_v15 = vadd.f32 %v15061_v29, %v15203_v7 }
 0x8b0   : > { %v9435_v32 = vmul.f32 -1.442695, %v8362_v51  ;;  %v8363_v47 = vsub.f32 %v8257_v43, %v8073_v41  ;;  %v8094_v41 = vadd.f32 %v15203_v7, %v15059_v34 }
 0x8b1   : > { %v9433_v11 = vmul.f32 -1.442695, %v8360_v10  ;;  %v8361_v28 = vsub.f32 %v8249_v63, %v8065_v38 }
 0x8b2   : > { %12515 = vpow2.f32 %v9435_v32  ;;  %v9436_v0 = vmul.f32 -1.442695, %v8363_v47 }
 0x8b3   : > { %12517 = vpow2.f32 %v9433_v11  ;;  %v9434_v18 = vmul.f32 -1.442695, %v8361_v28  ;;  %v11038_v39 = vpop.f32.mrb[136].mxu1 }
 0x8b4   : > { %v12508_v62 = vpop.eup %12507  ;;  %12519 = vpow2.f32 %v9436_v0  ;;  %v8270_v57 = vadd.f32 %v11038_v39, %v15212_v30  ;;  %v8261_v20 = vpop.f32.mrb[137].mxu1 }
 0x8b5   : > { %v12510_v21 = vpop.eup %12509  ;;  %v8486_v16 = vadd.f32 1.0, %v12508_v62  ;;  %12521 = vpow2.f32 %v9434_v18  ;;  %v8262_v6 = vadd.f32 %v15212_v30, %v8261_v20  ;;  %v11039_v26 = vpop.f32.mrb[138].mxu1 }
 0x8b6   : > { %v12512_v31 = vpop.eup %12511  ;;  %v8484_v40 = vadd.f32 1.0, %v12510_v21  ;;  %v8366_v25 = vsub.f32 %v8270_v57, %v8086_v14  ;;  %v8273_v2 = vadd.f32 %v11039_v26, %v15212_v30  ;;  %v8264_v44 = vpop.f32.mrb[139].mxu1 }
 0x8b7   : > { %v12514_v24 = vpop.eup %12513  ;;  %12523 = vrcp.f32 %v8486_v16  ;;  %v8487_v33 = vadd.f32 1.0, %v12512_v31  ;;  %v8364_v37 = vsub.f32 %v8262_v6, %v8078_v48  ;;  %v8265_v42 = vadd.f32 %v15212_v30, %v8264_v44 }
 0x8b8   : > { %12525 = vrcp.f32 %v8484_v40  ;;  %v8485_v52 = vadd.f32 1.0, %v12514_v24  ;;  %v9439_v58 = vmul.f32 -1.442695, %v8366_v25  ;;  %v8367_v50 = vsub.f32 %v8273_v2, %v8089_v61 }
 0x8b9   : > { %12527 = vrcp.f32 %v8487_v33  ;;  %v9437_v3 = vmul.f32 -1.442695, %v8364_v37  ;;  %v8365_v54 = vsub.f32 %v8265_v42, %v8081_v60  ;;  %v8118_v31 = vadd.f32 %v15065_v1, %v15203_v7 }
 0x8ba   : > { %12529 = vrcp.f32 %v8485_v52  ;;  %v9440_v36 = vmul.f32 -1.442695, %v8367_v50  ;;  %v8110_v60 = vadd.f32 %v15203_v7, %v15067_v9  ;;  %v8121_v1 = vadd.f32 %v15069_v19, %v15203_v7 }
 0x8bb   : > { %12531 = vpow2.f32 %v9439_v58  ;;  %v9438_v53 = vmul.f32 -1.442695, %v8365_v54  ;;  %v11042_v51 = vpop.f32.mrb[140].mxu1 }
 0x8bc   : > { %v12516_v43 = vpop.eup %12515  ;;  %12533 = vpow2.f32 %v9437_v3  ;;  %v8286_v38 = vadd.f32 %v11042_v51, %v15212_v30  ;;  %v8277_v10 = vpop.f32.mrb[141].mxu1 }
 0x8bd   : > { %v12518_v63 = vpop.eup %12517  ;;  %v8490_v32 = vadd.f32 1.0, %v12516_v43  ;;  %12535 = vpow2.f32 %v9440_v36  ;;  %v8278_v47 = vadd.f32 %v15212_v30, %v8277_v10  ;;  %v11043_v11 = vpop.f32.mrb[142].mxu1 }
 0x8be   : > { %v12520_v34 = vpop.eup %12519  ;;  %v8488_v28 = vadd.f32 1.0, %v12518_v63  ;;  %12537 = vpow2.f32 %v9438_v53  ;;  %v8370_v0 = vsub.f32 %v8286_v38, %v8102_v46  ;;  %v8289_v14 = vadd.f32 %v11043_v11, %v15212_v30  ;;  %v8280_v29 = vpop.f32.mrb[143].mxu1 }
 0x8bf   : > { %v12522_v18 = vpop.eup %12521  ;;  %12539 = vrcp.f32 %v8490_v32  ;;  %v8491_v48 = vadd.f32 1.0, %v12520_v34  ;;  %v8368_v23 = vsub.f32 %v8278_v47, %v8094_v41  ;;  %v8281_v39 = vadd.f32 %v15212_v30, %v8280_v29 }
 0x8c0   : > { %12541 = vrcp.f32 %v8488_v28  ;;  %v8489_v62 = vadd.f32 1.0, %v12522_v18  ;;  %v9443_v57 = vmul.f32 -1.442695, %v8370_v0  ;;  %v8371_v20 = vsub.f32 %v8289_v14, %v8105_v15 }
 0x8c1   : > { %v12524_v21 = vpop.eup %12523  ;;  %12543 = vrcp.f32 %v8491_v48  ;;  %v9441_v16 = vmul.f32 -1.442695, %v8368_v23  ;;  %v8369_v61 = vsub.f32 %v8281_v39, %v8097_v35  ;;  %v8113_v53 = vadd.f32 %v15203_v7, %v15071_v49 }
 0x8c2   : > { %v12526_v6 = vpop.eup %12525  ;;  %8582 = vst.msk [vmem:[%s15265_s22 + $0x10] sm:$0xff] %vm2537_vm0, %v12524_v21  ;;  %12545 = vrcp.f32 %v8489_v62  ;;  %v9444_v26 = vmul.f32 -1.442695, %v8371_v20  ;;  %v8134_v11 = vadd.f32 %v15073_v56, %v15203_v7  ;;  %v8126_v0 = vadd.f32 %v15203_v7, %v15075_v45 }
 0x8c3   : > { %v12528_v40 = vpop.eup %12527  ;;  %8580 = vst.msk [vmem:[%s15265_s22] sm:$0xff] %vm2537_vm0, %v12526_v6  ;;  %12547 = vpow2.f32 %v9443_v57  ;;  %v9442_v25 = vmul.f32 -1.442695, %v8369_v61  ;;  %v11046_v2 = vpop.f32.mrb[144].mxu1  ;;  %v8137_v56 = vadd.f32 %v15077_v12, %v15203_v7  ;;  %v8129_v39 = vadd.f32 %v15203_v7, %v15079_v27 }
 0x8c4   : > { %v12530_v44 = vpop.eup %12529  ;;  %8583 = vst.msk [vmem:[%s15265_s22 + $0x18] sm:$0xff] %vm2537_vm0, %v12528_v40  ;;  %12549 = vpow2.f32 %v9441_v16  ;;  %v8302_v24 = vadd.f32 %v11046_v2, %v15212_v30  ;;  %v8293_v33 = vpop.f32.mrb[145].mxu1 }
 0x8c5   : > { %v12532_v37 = vpop.eup %12531  ;;  %8581 = vst.msk [vmem:[%s15265_s22 + $0x8] sm:$0xff] %vm2537_vm0, %v12530_v44  ;;  %12551 = vpow2.f32 %v9444_v26  ;;  %v8294_v42 = vadd.f32 %v15212_v30, %v8293_v33  ;;  %v11047_v52 = vpop.f32.mrb[146].mxu1 }
 0x8c6   : > { %v12534_v58 = vpop.eup %12533  ;;  %v8494_v9 = vadd.f32 1.0, %v12532_v37  ;;  %12553 = vpow2.f32 %v9442_v25  ;;  %v8374_v50 = vsub.f32 %v8302_v24, %v8118_v31  ;;  %v8305_v3 = vadd.f32 %v11047_v52, %v15212_v30  ;;  %v8296_v54 = vpop.f32.mrb[147].mxu1 }
 0x8c7   : > { %v12536_v36 = vpop.eup %12535  ;;  %v8492_v46 = vadd.f32 1.0, %v12534_v58  ;;  %v8372_v41 = vsub.f32 %v8294_v42, %v8110_v60  ;;  %v8297_v51 = vadd.f32 %v15212_v30, %v8296_v54  ;;  %v8142_v58 = vadd.f32 %v15203_v7, %v15095_v55 }
 0x8c8   : > { %v12538_v19 = vpop.eup %12537  ;;  %12555 = vrcp.f32 %v8494_v9  ;;  %v8495_v43 = vadd.f32 1.0, %v12536_v36  ;;  %v9447_v15 = vmul.f32 -1.442695, %v8374_v50  ;;  %v8375_v38 = vsub.f32 %v8305_v3, %v8121_v1 }
 0x8c9   : > { %v12540_v10 = vpop.eup %12539  ;;  %12557 = vrcp.f32 %v8492_v46  ;;  %v8493_v63 = vadd.f32 1.0, %v12538_v19  ;;  %v9445_v32 = vmul.f32 -1.442695, %v8372_v41  ;;  %v8373_v35 = vsub.f32 %v8297_v51, %v8113_v53 }
 0x8ca   : > { %v12542_v47 = vpop.eup %12541  ;;  %8586 = vst.msk [vmem:[%s15265_s22 + $0x30] sm:$0xff] %vm2537_vm0, %v12540_v10  ;;  %12559 = vrcp.f32 %v8495_v43  ;;  %v9448_v49 = vmul.f32 -1.442695, %v8375_v38  ;;  %v8150_v1 = vadd.f32 %v15092_v22, %v15203_v7  ;;  %v8153_v22 = vadd.f32 %v15098_v17, %v15203_v7 }
 0x8cb   : > { %v12544_v34 = vpop.eup %12543  ;;  %8584 = vst.msk [vmem:[%s15265_s22 + $0x20] sm:$0xff] %vm2537_vm0, %v12542_v47  ;;  %12561 = vrcp.f32 %v8493_v63  ;;  %v9446_v28 = vmul.f32 -1.442695, %v8373_v35  ;;  %v11050_v14 = vpop.f32.mrb[148].mxu1  ;;  %v8145_v51 = vadd.f32 %v15203_v7, %v15106_v13 }
 0x8cc   : > { %v12546_v29 = vpop.eup %12545  ;;  %8587 = vst.msk [vmem:[%s15265_s22 + $0x38] sm:$0xff] %vm2537_vm0, %v12544_v34  ;;  %12563 = vpow2.f32 %v9447_v15  ;;  %v8318_v18 = vadd.f32 %v11050_v14, %v15212_v30  ;;  %v8309_v48 = vpop.f32.mrb[149].mxu1  ;;  %v8166_v14 = vadd.f32 %v15112_v4, %v15203_v7  ;;  %v8169_v4 = vadd.f32 %v15116_v5, %v15203_v7 }
 0x8cd   : > { %v12548_v23 = vpop.eup %12547  ;;  %8585 = vst.msk [vmem:[%s15265_s22 + $0x28] sm:$0xff] %vm2537_vm0, %v12546_v29  ;;  %12565 = vpow2.f32 %v9445_v32  ;;  %v8310_v45 = vadd.f32 %v15212_v30, %v8309_v48  ;;  %v11051_v62 = vpop.f32.mrb[150].mxu1  ;;  %v8158_v48 = vadd.f32 %v15203_v7, %v15114_v8 }
 0x8ce   : > { %v12550_v57 = vpop.eup %12549  ;;  %v8498_v20 = vadd.f32 1.0, %v12548_v23  ;;  %12567 = vpow2.f32 %v9448_v49  ;;  %v8378_v21 = vsub.f32 %v8318_v18, %v8134_v11  ;;  %v8321_v16 = vadd.f32 %v11051_v62, %v15212_v30  ;;  %v8312_v61 = vpop.f32.mrb[151].mxu1 }
 0x8cf   : > { %v12552_v6 = vpop.eup %12551  ;;  %v8496_v26 = vadd.f32 1.0, %v12550_v57  ;;  %12569 = vpow2.f32 %v9446_v28  ;;  %v8376_v31 = vsub.f32 %v8310_v45, %v8126_v0  ;;  %v8313_v12 = vadd.f32 %v15212_v30, %v8312_v61 }
 0x8d0   : > { %v12554_v40 = vpop.eup %12553  ;;  %12571 = vrcp.f32 %v8498_v20  ;;  %v8499_v27 = vadd.f32 1.0, %v12552_v6  ;;  %v9451_v25 = vmul.f32 -1.442695, %v8378_v21  ;;  %v8379_v60 = vsub.f32 %v8321_v16, %v8137_v56 }
 0x8d1   : > { %12573 = vrcp.f32 %v8496_v26  ;;  %v8497_v2 = vadd.f32 1.0, %v12554_v40  ;;  %v9449_v44 = vmul.f32 -1.442695, %v8376_v31  ;;  %v8377_v24 = vsub.f32 %v8313_v12, %v8129_v39 }
 0x8d2   : > { %v12556_v33 = vpop.eup %12555  ;;  %12575 = vrcp.f32 %v8499_v27  ;;  %v9452_v37 = vmul.f32 -1.442695, %v8379_v60  ;;  %v8161_v61 = vadd.f32 %v15203_v7, %v15118_v59 }
 0x8d3   : > { %v12558_v42 = vpop.eup %12557  ;;  %8590 = vst.msk [vmem:[%s15265_s22 + $0x50] sm:$0xff] %vm2537_vm0, %v12556_v33  ;;  %12577 = vrcp.f32 %v8497_v2  ;;  %v9450_v52 = vmul.f32 -1.442695, %v8377_v24  ;;  %v11054_v9 = vpop.f32.mrb[152].mxu1 }
 0x8d4   : > { %v12560_v50 = vpop.eup %12559  ;;  %8588 = vst.msk [vmem:[%s15265_s22 + $0x40] sm:$0xff] %vm2537_vm0, %v12558_v42  ;;  %12579 = vpow2.f32 %v9451_v25  ;;  %v8334_v3 = vadd.f32 %v11054_v9, %v15212_v30  ;;  %v8325_v54 = vpop.f32.mrb[153].mxu1 }
 0x8d5   : > { %v12562_v36 = vpop.eup %12561  ;;  %8591 = vst.msk [vmem:[%s15265_s22 + $0x58] sm:$0xff] %vm2537_vm0, %v12560_v50  ;;  %12581 = vpow2.f32 %v9449_v44  ;;  %v8326_v46 = vadd.f32 %v15212_v30, %v8325_v54  ;;  %v11055_v53 = vpop.f32.mrb[154].mxu1 }
 0x8d6   : > { %v12564_v41 = vpop.eup %12563  ;;  %8589 = vst.msk [vmem:[%s15265_s22 + $0x48] sm:$0xff] %vm2537_vm0, %v12562_v36  ;;  %12583 = vpow2.f32 %v9452_v37  ;;  %v8382_v55 = vsub.f32 %v8334_v3, %v8150_v1  ;;  %v8337_v19 = vadd.f32 %v11055_v53, %v15212_v30  ;;  %v8328_v43 = vpop.f32.mrb[155].mxu1 }
 0x8d7   : > { %v12566_v15 = vpop.eup %12565  ;;  %v8502_v38 = vadd.f32 1.0, %v12564_v41  ;;  %12585 = vpow2.f32 %v9450_v52  ;;  %v8380_v10 = vsub.f32 %v8326_v46, %v8142_v58  ;;  %v8329_v17 = vadd.f32 %v15212_v30, %v8328_v43 }
 0x8d8   : > { %v12568_v63 = vpop.eup %12567  ;;  %v8500_v32 = vadd.f32 1.0, %v12566_v15  ;;  %v8383_v35 = vsub.f32 %v8337_v19, %v8153_v22  ;;  %v9455_v11 = vmul.f32 -1.442695, %v8382_v55 }
 0x8d9   : > { %v12570_v47 = vpop.eup %12569  ;;  %12587 = vrcp.f32 %v8502_v38  ;;  %v8503_v49 = vadd.f32 1.0, %v12568_v63  ;;  %v8381_v34 = vsub.f32 %v8329_v17, %v8145_v51  ;;  %v9453_v0 = vmul.f32 -1.442695, %v8380_v10 }
 0x8da   : > { %v12572_v13 = vpop.eup %12571  ;;  %12589 = vrcp.f32 %v8500_v32  ;;  %v8501_v28 = vadd.f32 1.0, %v12570_v47  ;;  %v9456_v18 = vmul.f32 -1.442695, %v8383_v35 }
 0x8db   : > { %v12574_v29 = vpop.eup %12573  ;;  %8594 = vst.msk [vmem:[%s15265_s22 + $0x70] sm:$0xff] %vm2537_vm0, %v12572_v13  ;;  %12591 = vrcp.f32 %v8503_v49  ;;  %v11058_v23 = vpop.f32.mrb[156].mxu1  ;;  %v9454_v39 = vmul.f32 -1.442695, %v8381_v34 }
 0x8dc   : > { %v12576_v56 = vpop.eup %12575  ;;  %8592 = vst.msk [vmem:[%s15265_s22 + $0x60] sm:$0xff] %vm2537_vm0, %v12574_v29  ;;  %12593 = vrcp.f32 %v8501_v28  ;;  %v8350_v45 = vadd.f32 %v11058_v23, %v15212_v30  ;;  %v8341_v62 = vpop.f32.mrb[157].mxu1 }
 0x8dd   : > { %v12578_v57 = vpop.eup %12577  ;;  %8595 = vst.msk [vmem:[%s15265_s22 + $0x78] sm:$0xff] %vm2537_vm0, %v12576_v56  ;;  %12595 = vpow2.f32 %v9455_v11  ;;  %v8342_v20 = vadd.f32 %v15212_v30, %v8341_v62  ;;  %v11059_v21 = vpop.f32.mrb[158].mxu1 }
 0x8de   : > { %v12580_v8 = vpop.eup %12579  ;;  %8593 = vst.msk [vmem:[%s15265_s22 + $0x68] sm:$0xff] %vm2537_vm0, %v12578_v57  ;;  %12597 = vpow2.f32 %v9453_v0  ;;  %v8386_v16 = vsub.f32 %v8350_v45, %v8166_v14  ;;  %v8353_v6 = vadd.f32 %v11059_v21, %v15212_v30  ;;  %v8344_v26 = vpop.f32.mrb[159].mxu1 }
 0x8df   : > { %v12582_v31 = vpop.eup %12581  ;;  %v8506_v12 = vadd.f32 1.0, %v12580_v8  ;;  %12599 = vpow2.f32 %v9456_v18  ;;  %v8384_v40 = vsub.f32 %v8342_v20, %v8158_v48  ;;  %v8345_v5 = vadd.f32 %v15212_v30, %v8344_v26 }
 0x8e0   : > { %v12584_v27 = vpop.eup %12583  ;;  %v8504_v25 = vadd.f32 1.0, %v12582_v31  ;;  %12601 = vpow2.f32 %v9454_v39  ;;  %v8387_v60 = vsub.f32 %v8353_v6, %v8169_v4  ;;  %v9459_v24 = vmul.f32 -1.442695, %v8386_v16 }
 0x8e1   : > { %v12586_v2 = vpop.eup %12585  ;;  %12603 = vrcp.f32 %v8506_v12  ;;  %v8507_v44 = vadd.f32 1.0, %v12584_v27  ;;  %v8385_v59 = vsub.f32 %v8345_v5, %v8161_v61  ;;  %v9457_v33 = vmul.f32 -1.442695, %v8384_v40 }
 0x8e2   : > { %12605 = vrcp.f32 %v8504_v25  ;;  %v8505_v7 = vadd.f32 1.0, %v12586_v2  ;;  %v9460_v1 = vmul.f32 -1.442695, %v8387_v60 }
 0x8e3   : > { %v12588_v37 = vpop.eup %12587  ;;  %12607 = vrcp.f32 %v8507_v44  ;;  %v9458_v42 = vmul.f32 -1.442695, %v8385_v59 }
 0x8e4   : > { %v12590_v30 = vpop.eup %12589  ;;  %8598 = vst.msk [vmem:[%s15265_s22 + $0x90] sm:$0xff] %vm2537_vm0, %v12588_v37  ;;  %12609 = vrcp.f32 %v8505_v7 }
 0x8e5   : > { %v12592_v52 = vpop.eup %12591  ;;  %8596 = vst.msk [vmem:[%s15265_s22 + $0x80] sm:$0xff] %vm2537_vm0, %v12590_v30  ;;  %12611 = vpow2.f32 %v9459_v24 }
 0x8e6   : > { %v12594_v58 = vpop.eup %12593  ;;  %8599 = vst.msk [vmem:[%s15265_s22 + $0x98] sm:$0xff] %vm2537_vm0, %v12592_v52  ;;  %12613 = vpow2.f32 %v9457_v33 }
 0x8e7   : > { %v12596_v9 = vpop.eup %12595  ;;  %8597 = vst.msk [vmem:[%s15265_s22 + $0x88] sm:$0xff] %vm2537_vm0, %v12594_v58  ;;  %12615 = vpow2.f32 %v9460_v1 }
 0x8e8   : > { %v12598_v50 = vpop.eup %12597  ;;  %v8510_v3 = vadd.f32 1.0, %v12596_v9  ;;  %12617 = vpow2.f32 %v9458_v42 }
 0x8e9   : > { %v12600_v54 = vpop.eup %12599  ;;  %v8508_v36 = vadd.f32 1.0, %v12598_v50 }
 0x8ea   : > { %v12602_v22 = vpop.eup %12601  ;;  %12619 = vrcp.f32 %v8510_v3  ;;  %v8511_v46 = vadd.f32 1.0, %v12600_v54 }
 0x8eb   : > { %v12604_v53 = vpop.eup %12603  ;;  %12621 = vrcp.f32 %v8508_v36  ;;  %v8509_v41 = vadd.f32 1.0, %v12602_v22 }
 0x8ec   : > { %v12606_v55 = vpop.eup %12605  ;;  %8602 = vst.msk [vmem:[%s15265_s22 + $0xb0] sm:$0xff] %vm2537_vm0, %v12604_v53  ;;  %12623 = vrcp.f32 %v8511_v46 }
 0x8ed   : > { %v12608_v51 = vpop.eup %12607  ;;  %8600 = vst.msk [vmem:[%s15265_s22 + $0xa0] sm:$0xff] %vm2537_vm0, %v12606_v55  ;;  %12625 = vrcp.f32 %v8509_v41 }
 0x8ee   : > { %v12610_v19 = vpop.eup %12609  ;;  %8603 = vst.msk [vmem:[%s15265_s22 + $0xb8] sm:$0xff] %vm2537_vm0, %v12608_v51 }
 0x8ef   : > { %v12612_v43 = vpop.eup %12611  ;;  %8601 = vst.msk [vmem:[%s15265_s22 + $0xa8] sm:$0xff] %vm2537_vm0, %v12610_v19 }
 0x8f0   : > { %v12614_v15 = vpop.eup %12613  ;;  %v8514_v38 = vadd.f32 1.0, %v12612_v43 }
 0x8f1   : > { %v12616_v10 = vpop.eup %12615  ;;  %v8512_v17 = vadd.f32 1.0, %v12614_v15 }
 0x8f2   : > { %v12618_v63 = vpop.eup %12617  ;;  %12627 = vrcp.f32 %v8514_v38  ;;  %v8515_v32 = vadd.f32 1.0, %v12616_v10 }
 0x8f3   : > { %12629 = vrcp.f32 %v8512_v17  ;;  %v8513_v35 = vadd.f32 1.0, %v12618_v63 }
 0x8f4   : > { %v12620_v47 = vpop.eup %12619  ;;  %12631 = vrcp.f32 %v8515_v32 }
 0x8f5   : > { %v12622_v49 = vpop.eup %12621  ;;  %8606 = vst.msk [vmem:[%s15265_s22 + $0xd0] sm:$0xff] %vm2537_vm0, %v12620_v47  ;;  %12633 = vrcp.f32 %v8513_v35 }
 0x8f6   : > { %v12624_v11 = vpop.eup %12623  ;;  %8604 = vst.msk [vmem:[%s15265_s22 + $0xc0] sm:$0xff] %vm2537_vm0, %v12622_v49 }
 0x8f7   : > { %v12626_v34 = vpop.eup %12625  ;;  %8607 = vst.msk [vmem:[%s15265_s22 + $0xd8] sm:$0xff] %vm2537_vm0, %v12624_v11 }
 0x8f8   : > { %8605 = vst.msk [vmem:[%s15265_s22 + $0xc8] sm:$0xff] %vm2537_vm0, %v12626_v34 }
 0x8fc   : > { %v12628_v13 = vpop.eup %12627 }
 0x8fd   : > { %v12630_v28 = vpop.eup %12629  ;;  %8610 = vst.msk [vmem:[%s15265_s22 + $0xf0] sm:$0xff] %vm2537_vm0, %v12628_v13 }
 0x8fe   : > { %v12632_v0 = vpop.eup %12631  ;;  %8608 = vst.msk [vmem:[%s15265_s22 + $0xe0] sm:$0xff] %vm2537_vm0, %v12630_v28 }
 0x8ff   : > { %v12634_v14 = vpop.eup %12633  ;;  %8611 = vst.msk [vmem:[%s15265_s22 + $0xf8] sm:$0xff] %vm2537_vm0, %v12632_v0 }
 0x900   : > { %8609 = vst.msk [vmem:[%s15265_s22 + $0xe8] sm:$0xff] %vm2537_vm0, %v12634_v14 }
 0x901 PF: > { %s33_s2 = sadd.s32 1, %s12673_s2  }
 0x902   : > { %p30_p3 = scmp.ge.s32.totalorder %s33_s2, 4  }
 0x904   :  { %32 = sbr.rel (!%p30_p3) target bundleno = 8 (0x8), region = 166 }
 0x90b   :  { %8651 = vsyncpa [#allocation3], 1 }
 0x90c   :  { %8653 = vsyncpa [#allocation3 + $0x1], 1 }

</bundles_post_ra>
